<compile_context>
chip_gen: v7x
topology: tpu7x:2x2x1
jax: 0.10.0
libtpu: 0.0.40
codegen_flags: <defaults>
</compile_context>

<pallas_src>
import functools

import jax
import jax.numpy as jnp
from jax import lax
from jax.experimental import pallas as pl
from jax.experimental.pallas import tpu as pltpu

EPS = 1e-5


# ----------------------------- in-kernel helpers -----------------------------
def _zero_halo(pad_ref, H, W, C, dt):
    """Zero only the 4 halo slabs of a (H+2, W+2, C) padded VMEM scratch."""
    pad_ref[0:1, :, :] = jnp.zeros((1, W + 2, C), dt)
    pad_ref[H + 1:H + 2, :, :] = jnp.zeros((1, W + 2, C), dt)
    pad_ref[:, 0:1, :] = jnp.zeros((H + 2, 1, C), dt)
    pad_ref[:, W + 1:W + 2, :] = jnp.zeros((H + 2, 1, C), dt)


def _conv3x3_taps(xp_ref, w_ref, H, W, cin, cout):
    """3x3 / stride-1 / pad-1 conv as 9 accumulating per-tap MXU matmuls.

    xp_ref: (H+2, W+2, Cin) zero-padded VMEM scratch (conv dtype).
    w_ref : (9*Cin, Cout) packed weights (conv dtype), tap-major.
    Returns (H*W, Cout) float32 accumulator (no im2col concat, no 9x temporaries).
    """
    acc = None
    for tap in range(9):
        ky, kx = tap // 3, tap % 3
        win = xp_ref[ky:ky + H, kx:kx + W, :].reshape(H * W, cin)
        w_tap = w_ref[tap * cin:(tap + 1) * cin, :]
        contrib = jnp.dot(win, w_tap, preferred_element_type=jnp.float32)
        acc = contrib if acc is None else acc + contrib
    return acc


def _stats(z, cout):
    """Per-tile BN partials [sum, sum of squares] over the spatial axis. z: (H*W, C) f32."""
    s1 = jnp.sum(z, axis=0, keepdims=True)        # (1, C)
    s2 = jnp.sum(z * z, axis=0, keepdims=True)    # (1, C)
    return jnp.concatenate([s1, s2], axis=0).reshape(1, 2, cout)


# --------------------------------- kernels ------------------------------------
def _conv1_stats_kernel(x_ref, w_ref, z1_ref, st_ref, xp_ref, *, conv_dtype):
    """Pass 1: in-kernel zero padding + raw conv1 of one image + BN1 partial sums."""
    _, H, W, C = x_ref.shape
    Cout = z1_ref.shape[-1]

    # In-kernel padding: zero ONLY the 4 halo slabs, write the interior once.
    _zero_halo(xp_ref, H, W, C, conv_dtype)
    xp_ref[1:H + 1, 1:W + 1, :] = x_ref[0].astype(conv_dtype)

    z = _conv3x3_taps(xp_ref, w_ref, H, W, C, Cout)            # (H*W, Cout) f32
    z1_ref[...] = z.reshape(1, H, W, Cout).astype(z1_ref.dtype)  # bf16 inter-pass store
    st_ref[...] = _stats(z, Cout)                               # f32 BN partials


def _bn1_relu_conv2_stats_kernel(z1_ref, bn1_ref, w_ref, z2_ref, st_ref, yp_ref,
                                 *, conv_dtype):
    """Pass 2: folded BN1 + ReLU (f32, interior only) fused into conv2 + BN2 partials."""
    _, H, W, C = z1_ref.shape
    Cout = z2_ref.shape[-1]

    scale = bn1_ref[0:1, :].reshape(1, 1, C)
    shift = bn1_ref[1:2, :].reshape(1, 1, C)
    # Apply BN+ReLU only on the interior; the conv sees a zero-padded VMEM scratch,
    # so no full-tile iota mask / re-zeroing is needed.
    y = jnp.maximum(z1_ref[0].astype(jnp.float32) * scale + shift, 0.0)   # (H, W, C) f32
    _zero_halo(yp_ref, H, W, C, conv_dtype)
    yp_ref[1:H + 1, 1:W + 1, :] = y.astype(conv_dtype)

    z2 = _conv3x3_taps(yp_ref, w_ref, H, W, C, Cout)            # (H*W, Cout) f32
    z2_ref[...] = z2.reshape(1, H, W, Cout).astype(z2_ref.dtype)
    st_ref[...] = _stats(z2, Cout)


def _bn2_add_relu_kernel(z2_ref, x_ref, bn2_ref, o_ref):
    """Pass 3: folded BN2 + identity add + ReLU (pure VPU, f32 math, batched tiles)."""
    C = o_ref.shape[-1]
    scale = bn2_ref[0:1, :].reshape(1, 1, 1, C)
    shift = bn2_ref[1:2, :].reshape(1, 1, 1, C)
    o_ref[...] = jnp.maximum(
        z2_ref[...].astype(jnp.float32) * scale + shift + x_ref[...], 0.0)


# ------------------------------ host-side glue ---------------------------------
def _fold_bn(partial_stats, gamma, beta, count):
    """(B, 2, C) per-tile [sum, sumsq] -> (2, C) [scale, shift] for y*scale + shift."""
    s = jnp.sum(partial_stats, axis=0)                     # (2, C)
    mean = s[0] / count
    var = s[1] / count - mean * mean                       # biased variance (training BN)
    scale = gamma * lax.rsqrt(var + EPS)
    shift = beta - mean * scale
    return jnp.stack([scale, shift], axis=0).astype(jnp.float32)


def _batch_tile(B, bytes_per_image):
    """Largest divisor of B whose per-array pass-3 tile stays around <= 4 MiB."""
    limit = max(1, (4 << 20) // max(bytes_per_image, 1))
    bb = 1
    for d in range(1, B + 1):
        if B % d == 0 and d <= limit:
            bb = d
    return bb


@functools.partial(jax.jit, static_argnames=("conv_dtype",))
def basic_block(x_nchw, w1_oihw, g1, b1, w2_oihw, g2, b2, conv_dtype=jnp.bfloat16):
    """Forward pass of BasicBlock (stride=1, downsample=None). x: NCHW float32."""
    B, C, H, W = x_nchw.shape
    Cout = w1_oihw.shape[0]
    assert Cout == C, "identity path requires inplanes == planes when downsample is None"
    Hp, Wp = H + 2, W + 2
    n = B * H * W                                          # BN normalization count

    # layout / packing glue (see TODO(synk) at top) — NO host-side padding anymore
    x_nhwc = jnp.transpose(x_nchw, (0, 2, 3, 1))                                   # NHWC f32
    w1 = jnp.transpose(w1_oihw, (2, 3, 1, 0)).reshape(9 * C, Cout).astype(conv_dtype)
    w2 = jnp.transpose(w2_oihw, (2, 3, 1, 0)).reshape(9 * Cout, Cout).astype(conv_dtype)

    cparams = pltpu.CompilerParams(
        dimension_semantics=("parallel",),        # batch sharded across TCs on v7x megacore
        vmem_limit_bytes=40 * 1024 * 1024,        # fits v7x 64 MiB physical with headroom
    )

    # ---- pass 1: in-kernel pad + conv1 (tiled over batch, pipelined) + BN1 partials
    z1, st1 = pl.pallas_call(
        functools.partial(_conv1_stats_kernel, conv_dtype=conv_dtype),
        grid=(B,),
        in_specs=[
            pl.BlockSpec((1, H, W, C), lambda b: (b, 0, 0, 0)),       # unpadded input
            pl.BlockSpec((9 * C, Cout), lambda b: (0, 0)),            # resident weights
        ],
        out_specs=[
            pl.BlockSpec((1, H, W, Cout), lambda b: (b, 0, 0, 0)),
            pl.BlockSpec((1, 2, Cout), lambda b: (b, 0, 0)),
        ],
        out_shape=[
            jax.ShapeDtypeStruct((B, H, W, Cout), conv_dtype),        # bf16 inter-pass
            jax.ShapeDtypeStruct((B, 2, Cout), jnp.float32),
        ],
        scratch_shapes=[pltpu.VMEM((Hp, Wp, C), conv_dtype)],         # padded activation
        compiler_params=cparams,
    )(x_nhwc, w1)
    bn1 = _fold_bn(st1, g1, b1, n)                                    # (2, C), tiny XLA op

    # ---- pass 2: bn1 + relu fused into conv2 (padded VMEM scratch) + BN2 partials
    z2, st2 = pl.pallas_call(
        functools.partial(_bn1_relu_conv2_stats_kernel, conv_dtype=conv_dtype),
        grid=(B,),
        in_specs=[
            pl.BlockSpec((1, H, W, Cout), lambda b: (b, 0, 0, 0)),
            pl.BlockSpec((2, Cout), lambda b: (0, 0)),
            pl.BlockSpec((9 * Cout, Cout), lambda b: (0, 0)),
        ],
        out_specs=[
            pl.BlockSpec((1, H, W, Cout), lambda b: (b, 0, 0, 0)),
            pl.BlockSpec((1, 2, Cout), lambda b: (b, 0, 0)),
        ],
        out_shape=[
            jax.ShapeDtypeStruct((B, H, W, Cout), conv_dtype),        # bf16 inter-pass
            jax.ShapeDtypeStruct((B, 2, Cout), jnp.float32),
        ],
        scratch_shapes=[pltpu.VMEM((Hp, Wp, Cout), conv_dtype)],      # padded post-ReLU act
        compiler_params=cparams,
    )(z1, bn1, w2)
    bn2 = _fold_bn(st2, g2, b2, n)

    # ---- pass 3: bn2 + identity add + relu (fattened: several images per grid step)
    bb = _batch_tile(B, H * W * Cout * 4)
    out = pl.pallas_call(
        _bn2_add_relu_kernel,
        grid=(B // bb,),
        in_specs=[
            pl.BlockSpec((bb, H, W, Cout), lambda b: (b, 0, 0, 0)),
            pl.BlockSpec((bb, H, W, C), lambda b: (b, 0, 0, 0)),
            pl.BlockSpec((2, Cout), lambda b: (0, 0)),
        ],
        out_specs=pl.BlockSpec((bb, H, W, Cout), lambda b: (b, 0, 0, 0)),
        out_shape=jax.ShapeDtypeStruct((B, H, W, Cout), jnp.float32),
        compiler_params=cparams,
    )(z2, x_nhwc, bn2)

    return jnp.transpose(out, (0, 3, 1, 2))                           # back to NCHW


# ---------------- pure-JAX reference (for correctness check) ----------------
def basic_block_ref(x, w1, g1, b1, w2, g2, b2, conv_dtype=jnp.float32):
    def conv(v, w):
        return lax.conv_general_dilated(
            v.astype(conv_dtype), w.astype(conv_dtype),
            window_strides=(1, 1), padding=((1, 1), (1, 1)),
            dimension_numbers=("NCHW", "OIHW", "NCHW"),
            preferred_element_type=jnp.float32)

    def bn(v, g, b):
        mean = jnp.mean(v, axis=(0, 2, 3), keepdims=True)
        var = jnp.mean((v - mean) ** 2, axis=(0, 2, 3), keepdims=True)
        return (v - mean) * lax.rsqrt(var + EPS) * g.reshape(1, -1, 1, 1) + b.reshape(1, -1, 1, 1)

    out = jnp.maximum(bn(conv(x, w1), g1, b1), 0.0)
    out = bn(conv(out, w2), g2, b2) + x
    return jnp.maximum(out, 0.0)


if __name__ == "__main__":
    B, C, H, W = 2, 4, 16, 16
    key = jax.random.PRNGKey(0)
    k_x, k_w1, k_w2 = jax.random.split(key, 3)

    x = jax.random.normal(k_x, (B, C, H, W), jnp.float32)             # NCHW, like PyTorch
    w1 = jax.random.normal(k_w1, (C, C, 3, 3), jnp.float32) * 0.1     # conv1 weight, OIHW
    w2 = jax.random.normal(k_w2, (C, C, 3, 3), jnp.float32) * 0.1     # conv2 weight, OIHW
    g1, b1 = jnp.ones((C,), jnp.float32), jnp.zeros((C,), jnp.float32)  # bn1 affine
    g2, b2 = jnp.ones((C,), jnp.float32), jnp.zeros((C,), jnp.float32)  # bn2 affine

    # Optimized path: bf16 MXU operands + bf16 inter-pass intermediates, f32 accumulation
    # and f32 BN statistics/elementwise.  The bf16 rounding of z1/z2 before the BN apply
    # (a deliberate bandwidth optimization) means a looser tolerance vs the f32-intermediate
    # reference.
    out_bf16 = jax.block_until_ready(basic_block(x, w1, g1, b1, w2, g2, b2))
    ref_bf16 = basic_block_ref(x, w1, g1, b1, w2, g2, b2, conv_dtype=jnp.bfloat16)
    err_bf16 = float(jnp.max(jnp.abs(out_bf16 - ref_bf16)))
    assert out_bf16.shape == (B, C, H, W)
    assert err_bf16 < 5e-2, f"bf16 path max abs error {err_bf16}"

    # Exact-precision path: f32 operands and f32 intermediates throughout.
    out_f32 = jax.block_until_ready(
        basic_block(x, w1, g1, b1, w2, g2, b2, conv_dtype=jnp.float32))
    ref_f32 = basic_block_ref(x, w1, g1, b1, w2, g2, b2, conv_dtype=jnp.float32)
    err_f32 = float(jnp.max(jnp.abs(out_f32 - ref_f32)))
    assert err_f32 < 5e-4, f"f32 path max abs error {err_f32}"

    print("KERNEL_OK")
</pallas_src>

<mosaic_0001>
module attributes {stable_mosaic.version = 11 : i64} {
  func.func @_conv1_stats_kernel(%arg0: i32, %arg1: memref<1x16x16x4xf32, #tpu.memory_space<vmem>>, %arg2: memref<36x4xbf16, #tpu.memory_space<vmem>>, %arg3: memref<1x16x16x4xbf16, #tpu.memory_space<vmem>>, %arg4: memref<1x2x4xf32, #tpu.memory_space<vmem>>, %arg5: memref<18x18x4xbf16, #tpu.memory_space<vmem>>) attributes {dimension_semantics = [#tpu.dimension_semantics<parallel>], iteration_bounds = array<i64: 2>, scalar_prefetch = 0 : i64, scratch_operands = 1 : i64, tpu.core_type = #tpu.core_type<tc>, window_params = [{transform_indices = @transform_0, window_bounds = array<i64: 1, 16, 16, 4>}, {pipeline_mode = #tpu.pipeline_mode<synchronous>, transform_indices = @transform_1, window_bounds = array<i64: 36, 4>}, {transform_indices = @transform_2, window_bounds = array<i64: 1, 16, 16, 4>}, {transform_indices = @transform_3, window_bounds = array<i64: 1, 2, 4>}]} {
    %cst = arith.constant 0.000000e+00 : bf16
    %0 = vector.broadcast %cst : bf16 to vector<1x18x4xbf16>
    %c0 = arith.constant 0 : index
    %c0_0 = arith.constant 0 : index
    %c0_1 = arith.constant 0 : index
    %1 = vector.load %arg5[%c0, %c0_0, %c0_1] : memref<18x18x4xbf16, #tpu.memory_space<vmem>>, vector<1x18x4xbf16>
    tpu.vector_store %arg5[%c0, %c0_0, %c0_1], %0 {strides = array<i32>} : memref<18x18x4xbf16, #tpu.memory_space<vmem>>, vector<1x18x4xbf16>,
    %cst_2 = arith.constant 0.000000e+00 : bf16
    %2 = vector.broadcast %cst_2 : bf16 to vector<1x18x4xbf16>
    %c17 = arith.constant 17 : index
    %c0_3 = arith.constant 0 : index
    %c0_4 = arith.constant 0 : index
    %3 = vector.load %arg5[%c17, %c0_3, %c0_4] : memref<18x18x4xbf16, #tpu.memory_space<vmem>>, vector<1x18x4xbf16>
    tpu.vector_store %arg5[%c17, %c0_3, %c0_4], %2 {strides = array<i32>} : memref<18x18x4xbf16, #tpu.memory_space<vmem>>, vector<1x18x4xbf16>,
    %cst_5 = arith.constant 0.000000e+00 : bf16
    %4 = vector.broadcast %cst_5 : bf16 to vector<18x1x4xbf16>
    %c0_6 = arith.constant 0 : index
    %c0_7 = arith.constant 0 : index
    %c0_8 = arith.constant 0 : index
    %5 = vector.load %arg5[%c0_6, %c0_7, %c0_8] : memref<18x18x4xbf16, #tpu.memory_space<vmem>>, vector<18x1x4xbf16>
    tpu.vector_store %arg5[%c0_6, %c0_7, %c0_8], %4 {strides = array<i32>} : memref<18x18x4xbf16, #tpu.memory_space<vmem>>, vector<18x1x4xbf16>,
    %cst_9 = arith.constant 0.000000e+00 : bf16
    %6 = vector.broadcast %cst_9 : bf16 to vector<18x1x4xbf16>
    %c0_10 = arith.constant 0 : index
    %c17_11 = arith.constant 17 : index
    %c0_12 = arith.constant 0 : index
    %7 = vector.load %arg5[%c0_10, %c17_11, %c0_12] : memref<18x18x4xbf16, #tpu.memory_space<vmem>>, vector<18x1x4xbf16>
    tpu.vector_store %arg5[%c0_10, %c17_11, %c0_12], %6 {strides = array<i32>} : memref<18x18x4xbf16, #tpu.memory_space<vmem>>, vector<18x1x4xbf16>,
    %c0_13 = arith.constant 0 : index
    %c0_14 = arith.constant 0 : index
    %c0_15 = arith.constant 0 : index
    %c0_16 = arith.constant 0 : index
    %8 = vector.load %arg1[%c0_13, %c0_14, %c0_15, %c0_16] : memref<1x16x16x4xf32, #tpu.memory_space<vmem>>, vector<1x16x16x4xf32>
    %9 = vector.shape_cast %8 : vector<1x16x16x4xf32> to vector<16x16x4xf32>
    %10 = arith.truncf %9 : vector<16x16x4xf32> to vector<16x16x4xbf16>
    %c1 = arith.constant 1 : index
    %c1_17 = arith.constant 1 : index
    %c0_18 = arith.constant 0 : index
    %11 = vector.load %arg5[%c1, %c1_17, %c0_18] : memref<18x18x4xbf16, #tpu.memory_space<vmem>>, vector<16x16x4xbf16>
    tpu.vector_store %arg5[%c1, %c1_17, %c0_18], %10 {strides = array<i32>} : memref<18x18x4xbf16, #tpu.memory_space<vmem>>, vector<16x16x4xbf16>,
    %c0_19 = arith.constant 0 : index
    %c0_20 = arith.constant 0 : index
    %c0_21 = arith.constant 0 : index
    %12 = vector.load %arg5[%c0_19, %c0_20, %c0_21] : memref<18x18x4xbf16, #tpu.memory_space<vmem>>, vector<16x16x4xbf16>
    %13 = vector.shape_cast %12 : vector<16x16x4xbf16> to vector<256x4xbf16>
    %c0_22 = arith.constant 0 : index
    %c0_23 = arith.constant 0 : index
    %14 = vector.load %arg2[%c0_22, %c0_23] : memref<36x4xbf16, #tpu.memory_space<vmem>>, vector<4x4xbf16>
    %cst_24 = arith.constant dense<0.000000e+00> : vector<256x4xf32>
    %15 = tpu.matmul %13, %14, %cst_24 {dimension_numbers = #tpu.dot_dimension_numbers<[1], [0], [0], [1], [0, 0, 1, 1], [], []>} : vector<256x4xbf16>, vector<4x4xbf16>, vector<256x4xf32> -> vector<256x4xf32>
    %c0_25 = arith.constant 0 : index
    %c1_26 = arith.constant 1 : index
    %c0_27 = arith.constant 0 : index
    %16 = vector.load %arg5[%c0_25, %c1_26, %c0_27] : memref<18x18x4xbf16, #tpu.memory_space<vmem>>, vector<16x16x4xbf16>
    %17 = vector.shape_cast %16 : vector<16x16x4xbf16> to vector<256x4xbf16>
    %c4 = arith.constant 4 : index
    %c0_28 = arith.constant 0 : index
    %18 = vector.load %arg2[%c4, %c0_28] : memref<36x4xbf16, #tpu.memory_space<vmem>>, vector<4x4xbf16>
    %cst_29 = arith.constant dense<0.000000e+00> : vector<256x4xf32>
    %19 = tpu.matmul %17, %18, %cst_29 {dimension_numbers = #tpu.dot_dimension_numbers<[1], [0], [0], [1], [0, 0, 1, 1], [], []>} : vector<256x4xbf16>, vector<4x4xbf16>, vector<256x4xf32> -> vector<256x4xf32>
    %20 = arith.addf %15, %19 : vector<256x4xf32>
    %c0_30 = arith.constant 0 : index
    %c2 = arith.constant 2 : index
    %c0_31 = arith.constant 0 : index
    %21 = vector.load %arg5[%c0_30, %c2, %c0_31] : memref<18x18x4xbf16, #tpu.memory_space<vmem>>, vector<16x16x4xbf16>
    %22 = vector.shape_cast %21 : vector<16x16x4xbf16> to vector<256x4xbf16>
    %c8 = arith.constant 8 : index
    %c0_32 = arith.constant 0 : index
    %23 = vector.load %arg2[%c8, %c0_32] : memref<36x4xbf16, #tpu.memory_space<vmem>>, vector<4x4xbf16>
    %cst_33 = arith.constant dense<0.000000e+00> : vector<256x4xf32>
    %24 = tpu.matmul %22, %23, %cst_33 {dimension_numbers = #tpu.dot_dimension_numbers<[1], [0], [0], [1], [0, 0, 1, 1], [], []>} : vector<256x4xbf16>, vector<4x4xbf16>, vector<256x4xf32> -> vector<256x4xf32>
    %25 = arith.addf %20, %24 : vector<256x4xf32>
    %c1_34 = arith.constant 1 : index
    %c0_35 = arith.constant 0 : index
    %c0_36 = arith.constant 0 : index
    %26 = vector.load %arg5[%c1_34, %c0_35, %c0_36] : memref<18x18x4xbf16, #tpu.memory_space<vmem>>, vector<16x16x4xbf16>
    %27 = vector.shape_cast %26 : vector<16x16x4xbf16> to vector<256x4xbf16>
    %c12 = arith.constant 12 : index
    %c0_37 = arith.constant 0 : index
    %28 = vector.load %arg2[%c12, %c0_37] : memref<36x4xbf16, #tpu.memory_space<vmem>>, vector<4x4xbf16>
    %cst_38 = arith.constant dense<0.000000e+00> : vector<256x4xf32>
    %29 = tpu.matmul %27, %28, %cst_38 {dimension_numbers = #tpu.dot_dimension_numbers<[1], [0], [0], [1], [0, 0, 1, 1], [], []>} : vector<256x4xbf16>, vector<4x4xbf16>, vector<256x4xf32> -> vector<256x4xf32>
    %30 = arith.addf %25, %29 : vector<256x4xf32>
    %c1_39 = arith.constant 1 : index
    %c1_40 = arith.constant 1 : index
    %c0_41 = arith.constant 0 : index
    %31 = vector.load %arg5[%c1_39, %c1_40, %c0_41] : memref<18x18x4xbf16, #tpu.memory_space<vmem>>, vector<16x16x4xbf16>
    %32 = vector.shape_cast %31 : vector<16x16x4xbf16> to vector<256x4xbf16>
    %c16 = arith.constant 16 : index
    %c0_42 = arith.constant 0 : index
    %33 = vector.load %arg2[%c16, %c0_42] : memref<36x4xbf16, #tpu.memory_space<vmem>>, vector<4x4xbf16>
    %cst_43 = arith.constant dense<0.000000e+00> : vector<256x4xf32>
    %34 = tpu.matmul %32, %33, %cst_43 {dimension_numbers = #tpu.dot_dimension_numbers<[1], [0], [0], [1], [0, 0, 1, 1], [], []>} : vector<256x4xbf16>, vector<4x4xbf16>, vector<256x4xf32> -> vector<256x4xf32>
    %35 = arith.addf %30, %34 : vector<256x4xf32>
    %c1_44 = arith.constant 1 : index
    %c2_45 = arith.constant 2 : index
    %c0_46 = arith.constant 0 : index
    %36 = vector.load %arg5[%c1_44, %c2_45, %c0_46] : memref<18x18x4xbf16, #tpu.memory_space<vmem>>, vector<16x16x4xbf16>
    %37 = vector.shape_cast %36 : vector<16x16x4xbf16> to vector<256x4xbf16>
    %c20 = arith.constant 20 : index
    %c0_47 = arith.constant 0 : index
    %38 = vector.load %arg2[%c20, %c0_47] : memref<36x4xbf16, #tpu.memory_space<vmem>>, vector<4x4xbf16>
    %cst_48 = arith.constant dense<0.000000e+00> : vector<256x4xf32>
    %39 = tpu.matmul %37, %38, %cst_48 {dimension_numbers = #tpu.dot_dimension_numbers<[1], [0], [0], [1], [0, 0, 1, 1], [], []>} : vector<256x4xbf16>, vector<4x4xbf16>, vector<256x4xf32> -> vector<256x4xf32>
    %40 = arith.addf %35, %39 : vector<256x4xf32>
    %c2_49 = arith.constant 2 : index
    %c0_50 = arith.constant 0 : index
    %c0_51 = arith.constant 0 : index
    %41 = vector.load %arg5[%c2_49, %c0_50, %c0_51] : memref<18x18x4xbf16, #tpu.memory_space<vmem>>, vector<16x16x4xbf16>
    %42 = vector.shape_cast %41 : vector<16x16x4xbf16> to vector<256x4xbf16>
    %c24 = arith.constant 24 : index
    %c0_52 = arith.constant 0 : index
    %43 = vector.load %arg2[%c24, %c0_52] : memref<36x4xbf16, #tpu.memory_space<vmem>>, vector<4x4xbf16>
    %cst_53 = arith.constant dense<0.000000e+00> : vector<256x4xf32>
    %44 = tpu.matmul %42, %43, %cst_53 {dimension_numbers = #tpu.dot_dimension_numbers<[1], [0], [0], [1], [0, 0, 1, 1], [], []>} : vector<256x4xbf16>, vector<4x4xbf16>, vector<256x4xf32> -> vector<256x4xf32>
    %45 = arith.addf %40, %44 : vector<256x4xf32>
    %c2_54 = arith.constant 2 : index
    %c1_55 = arith.constant 1 : index
    %c0_56 = arith.constant 0 : index
    %46 = vector.load %arg5[%c2_54, %c1_55, %c0_56] : memref<18x18x4xbf16, #tpu.memory_space<vmem>>, vector<16x16x4xbf16>
    %47 = vector.shape_cast %46 : vector<16x16x4xbf16> to vector<256x4xbf16>
    %c28 = arith.constant 28 : index
    %c0_57 = arith.constant 0 : index
    %48 = vector.load %arg2[%c28, %c0_57] : memref<36x4xbf16, #tpu.memory_space<vmem>>, vector<4x4xbf16>
    %cst_58 = arith.constant dense<0.000000e+00> : vector<256x4xf32>
    %49 = tpu.matmul %47, %48, %cst_58 {dimension_numbers = #tpu.dot_dimension_numbers<[1], [0], [0], [1], [0, 0, 1, 1], [], []>} : vector<256x4xbf16>, vector<4x4xbf16>, vector<256x4xf32> -> vector<256x4xf32>
    %50 = arith.addf %45, %49 : vector<256x4xf32>
    %c2_59 = arith.constant 2 : index
    %c2_60 = arith.constant 2 : index
    %c0_61 = arith.constant 0 : index
    %51 = vector.load %arg5[%c2_59, %c2_60, %c0_61] : memref<18x18x4xbf16, #tpu.memory_space<vmem>>, vector<16x16x4xbf16>
    %52 = vector.shape_cast %51 : vector<16x16x4xbf16> to vector<256x4xbf16>
    %c32 = arith.constant 32 : index
    %c0_62 = arith.constant 0 : index
    %53 = vector.load %arg2[%c32, %c0_62] : memref<36x4xbf16, #tpu.memory_space<vmem>>, vector<4x4xbf16>
    %cst_63 = arith.constant dense<0.000000e+00> : vector<256x4xf32>
    %54 = tpu.matmul %52, %53, %cst_63 {dimension_numbers = #tpu.dot_dimension_numbers<[1], [0], [0], [1], [0, 0, 1, 1], [], []>} : vector<256x4xbf16>, vector<4x4xbf16>, vector<256x4xf32> -> vector<256x4xf32>
    %55 = arith.addf %50, %54 : vector<256x4xf32>
    %56 = vector.shape_cast %55 : vector<256x4xf32> to vector<1x16x16x4xf32>
    %57 = arith.truncf %56 : vector<1x16x16x4xf32> to vector<1x16x16x4xbf16>
    %c0_64 = arith.constant 0 : index
    %c0_65 = arith.constant 0 : index
    %c0_66 = arith.constant 0 : index
    %c0_67 = arith.constant 0 : index
    %58 = vector.load %arg3[%c0_64, %c0_65, %c0_66, %c0_67] : memref<1x16x16x4xbf16, #tpu.memory_space<vmem>>, vector<1x16x16x4xbf16>
    tpu.vector_store %arg3[%c0_64, %c0_65, %c0_66, %c0_67], %57 {strides = array<i32>} : memref<1x16x16x4xbf16, #tpu.memory_space<vmem>>, vector<1x16x16x4xbf16>,
    %cst_68 = arith.constant dense<0.000000e+00> : vector<4xf32>
    %59 = vector.multi_reduction <add>, %55, %cst_68 [0] : vector<256x4xf32> to vector<4xf32>
    %60 = vector.shape_cast %59 : vector<4xf32> to vector<1x4xf32>
    %61 = arith.mulf %55, %55 : vector<256x4xf32>
    %cst_69 = arith.constant dense<0.000000e+00> : vector<4xf32>
    %62 = vector.multi_reduction <add>, %61, %cst_69 [0] : vector<256x4xf32> to vector<4xf32>
    %63 = vector.shape_cast %62 : vector<4xf32> to vector<1x4xf32>
    %64 = tpu.concatenate %60, %63 in 0 : vector<1x4xf32>, vector<1x4xf32> -> vector<2x4xf32>
    %65 = vector.shape_cast %64 : vector<2x4xf32> to vector<1x2x4xf32>
    %c0_70 = arith.constant 0 : index
    %c0_71 = arith.constant 0 : index
    %c0_72 = arith.constant 0 : index
    %66 = vector.load %arg4[%c0_70, %c0_71, %c0_72] : memref<1x2x4xf32, #tpu.memory_space<vmem>>, vector<1x2x4xf32>
    tpu.vector_store %arg4[%c0_70, %c0_71, %c0_72], %65 {strides = array<i32>} : memref<1x2x4xf32, #tpu.memory_space<vmem>>, vector<1x2x4xf32>,
    return
  }
  func.func @transform_0(%arg0: i32) -> (i32, i32, i32, i32) {
    %c0_i32 = arith.constant 0 : i32
    %c0_i32_0 = arith.constant 0 : i32
    %c0_i32_1 = arith.constant 0 : i32
    %c0_i32_2 = arith.constant 0 : i32
    return %arg0, %c0_i32, %c0_i32_0, %c0_i32_1 : i32, i32, i32, i32
  }
  func.func @transform_1(%arg0: i32) -> (i32, i32) {
    %c0_i32 = arith.constant 0 : i32
    %c0_i32_0 = arith.constant 0 : i32
    %c0_i32_1 = arith.constant 0 : i32
    return %c0_i32, %c0_i32_0 : i32, i32
  }
  func.func @transform_2(%arg0: i32) -> (i32, i32, i32, i32) {
    %c0_i32 = arith.constant 0 : i32
    %c0_i32_0 = arith.constant 0 : i32
    %c0_i32_1 = arith.constant 0 : i32
    %c0_i32_2 = arith.constant 0 : i32
    return %arg0, %c0_i32, %c0_i32_0, %c0_i32_1 : i32, i32, i32, i32
  }
  func.func @transform_3(%arg0: i32) -> (i32, i32, i32) {
    %c0_i32 = arith.constant 0 : i32
    %c0_i32_0 = arith.constant 0 : i32
    %c0_i32_1 = arith.constant 0 : i32
    return %arg0, %c0_i32, %c0_i32_0 : i32, i32, i32
  }
}

module attributes {stable_mosaic.version = 11 : i64} {
  func.func @_bn2_add_relu_kernel(%arg0: i32, %arg1: memref<2x16x16x4xbf16, #tpu.memory_space<vmem>>, %arg2: memref<2x16x16x4xf32, #tpu.memory_space<vmem>>, %arg3: memref<2x4xf32, #tpu.memory_space<vmem>>, %arg4: memref<2x16x16x4xf32, #tpu.memory_space<vmem>>) attributes {dimension_semantics = [#tpu.dimension_semantics<parallel>], iteration_bounds = array<i64: 1>, scalar_prefetch = 0 : i64, scratch_operands = 0 : i64, tpu.core_type = #tpu.core_type<tc>, window_params = [{transform_indices = @transform_0, window_bounds = array<i64: 2, 16, 16, 4>}, {transform_indices = @transform_1, window_bounds = array<i64: 2, 16, 16, 4>}, {pipeline_mode = #tpu.pipeline_mode<synchronous>, transform_indices = @transform_2, window_bounds = array<i64: 2, 4>}, {transform_indices = @transform_3, window_bounds = array<i64: 2, 16, 16, 4>}]} {
    %c0 = arith.constant 0 : index
    %c0_0 = arith.constant 0 : index
    %0 = vector.load %arg3[%c0, %c0_0] : memref<2x4xf32, #tpu.memory_space<vmem>>, vector<1x4xf32>
    %1 = vector.shape_cast %0 : vector<1x4xf32> to vector<1x1x1x4xf32>
    %c1 = arith.constant 1 : index
    %c0_1 = arith.constant 0 : index
    %2 = vector.load %arg3[%c1, %c0_1] : memref<2x4xf32, #tpu.memory_space<vmem>>, vector<1x4xf32>
    %3 = vector.shape_cast %2 : vector<1x4xf32> to vector<1x1x1x4xf32>
    %c0_2 = arith.constant 0 : index
    %c0_3 = arith.constant 0 : index
    %c0_4 = arith.constant 0 : index
    %c0_5 = arith.constant 0 : index
    %4 = vector.load %arg1[%c0_2, %c0_3, %c0_4, %c0_5] : memref<2x16x16x4xbf16, #tpu.memory_space<vmem>>, vector<2x16x16x4xbf16>
    %5 = arith.extf %4 : vector<2x16x16x4xbf16> to vector<2x16x16x4xf32>
    %6 = vector.broadcast %1 : vector<1x1x1x4xf32> to vector<2x16x16x4xf32>
    %7 = arith.mulf %5, %6 : vector<2x16x16x4xf32>
    %8 = vector.broadcast %3 : vector<1x1x1x4xf32> to vector<2x16x16x4xf32>
    %9 = arith.addf %7, %8 : vector<2x16x16x4xf32>
    %c0_6 = arith.constant 0 : index
    %c0_7 = arith.constant 0 : index
    %c0_8 = arith.constant 0 : index
    %c0_9 = arith.constant 0 : index
    %10 = vector.load %arg2[%c0_6, %c0_7, %c0_8, %c0_9] : memref<2x16x16x4xf32, #tpu.memory_space<vmem>>, vector<2x16x16x4xf32>
    %11 = arith.addf %9, %10 : vector<2x16x16x4xf32>
    %cst = arith.constant 0.000000e+00 : f32
    %12 = vector.broadcast %cst : f32 to vector<2x16x16x4xf32>
    %13 = arith.maximumf %11, %12 : vector<2x16x16x4xf32>
    %c0_10 = arith.constant 0 : index
    %c0_11 = arith.constant 0 : index
    %c0_12 = arith.constant 0 : index
    %c0_13 = arith.constant 0 : index
    %14 = vector.load %arg4[%c0_10, %c0_11, %c0_12, %c0_13] : memref<2x16x16x4xf32, #tpu.memory_space<vmem>>, vector<2x16x16x4xf32>
    tpu.vector_store %arg4[%c0_10, %c0_11, %c0_12, %c0_13], %13 {strides = array<i32>} : memref<2x16x16x4xf32, #tpu.memory_space<vmem>>, vector<2x16x16x4xf32>,
    return
  }
  func.func @transform_0(%arg0: i32) -> (i32, i32, i32, i32) {
    %c0_i32 = arith.constant 0 : i32
    %c0_i32_0 = arith.constant 0 : i32
    %c0_i32_1 = arith.constant 0 : i32
    %c0_i32_2 = arith.constant 0 : i32
    return %arg0, %c0_i32, %c0_i32_0, %c0_i32_1 : i32, i32, i32, i32
  }
  func.func @transform_1(%arg0: i32) -> (i32, i32, i32, i32) {
    %c0_i32 = arith.constant 0 : i32
    %c0_i32_0 = arith.constant 0 : i32
    %c0_i32_1 = arith.constant 0 : i32
    %c0_i32_2 = arith.constant 0 : i32
    return %arg0, %c0_i32, %c0_i32_0, %c0_i32_1 : i32, i32, i32, i32
  }
  func.func @transform_2(%arg0: i32) -> (i32, i32) {
    %c0_i32 = arith.constant 0 : i32
    %c0_i32_0 = arith.constant 0 : i32
    %c0_i32_1 = arith.constant 0 : i32
    return %c0_i32, %c0_i32_0 : i32, i32
  }
  func.func @transform_3(%arg0: i32) -> (i32, i32, i32, i32) {
    %c0_i32 = arith.constant 0 : i32
    %c0_i32_0 = arith.constant 0 : i32
    %c0_i32_1 = arith.constant 0 : i32
    %c0_i32_2 = arith.constant 0 : i32
    return %arg0, %c0_i32, %c0_i32_0, %c0_i32_1 : i32, i32, i32, i32
  }
}

module attributes {stable_mosaic.version = 11 : i64} {
  func.func @_bn1_relu_conv2_stats_kernel(%arg0: i32, %arg1: memref<1x16x16x4xbf16, #tpu.memory_space<vmem>>, %arg2: memref<2x4xf32, #tpu.memory_space<vmem>>, %arg3: memref<36x4xbf16, #tpu.memory_space<vmem>>, %arg4: memref<1x16x16x4xbf16, #tpu.memory_space<vmem>>, %arg5: memref<1x2x4xf32, #tpu.memory_space<vmem>>, %arg6: memref<18x18x4xbf16, #tpu.memory_space<vmem>>) attributes {dimension_semantics = [#tpu.dimension_semantics<parallel>], iteration_bounds = array<i64: 2>, scalar_prefetch = 0 : i64, scratch_operands = 1 : i64, tpu.core_type = #tpu.core_type<tc>, window_params = [{transform_indices = @transform_0, window_bounds = array<i64: 1, 16, 16, 4>}, {pipeline_mode = #tpu.pipeline_mode<synchronous>, transform_indices = @transform_1, window_bounds = array<i64: 2, 4>}, {pipeline_mode = #tpu.pipeline_mode<synchronous>, transform_indices = @transform_2, window_bounds = array<i64: 36, 4>}, {transform_indices = @transform_3, window_bounds = array<i64: 1, 16, 16, 4>}, {transform_indices = @transform_4, window_bounds = array<i64: 1, 2, 4>}]} {
    %c0 = arith.constant 0 : index
    %c0_0 = arith.constant 0 : index
    %0 = vector.load %arg2[%c0, %c0_0] : memref<2x4xf32, #tpu.memory_space<vmem>>, vector<1x4xf32>
    %1 = vector.shape_cast %0 : vector<1x4xf32> to vector<1x1x4xf32>
    %c1 = arith.constant 1 : index
    %c0_1 = arith.constant 0 : index
    %2 = vector.load %arg2[%c1, %c0_1] : memref<2x4xf32, #tpu.memory_space<vmem>>, vector<1x4xf32>
    %3 = vector.shape_cast %2 : vector<1x4xf32> to vector<1x1x4xf32>
    %c0_2 = arith.constant 0 : index
    %c0_3 = arith.constant 0 : index
    %c0_4 = arith.constant 0 : index
    %c0_5 = arith.constant 0 : index
    %4 = vector.load %arg1[%c0_2, %c0_3, %c0_4, %c0_5] : memref<1x16x16x4xbf16, #tpu.memory_space<vmem>>, vector<1x16x16x4xbf16>
    %5 = vector.shape_cast %4 : vector<1x16x16x4xbf16> to vector<16x16x4xbf16>
    %6 = arith.extf %5 : vector<16x16x4xbf16> to vector<16x16x4xf32>
    %7 = vector.broadcast %1 : vector<1x1x4xf32> to vector<16x16x4xf32>
    %8 = arith.mulf %6, %7 : vector<16x16x4xf32>
    %9 = vector.broadcast %3 : vector<1x1x4xf32> to vector<16x16x4xf32>
    %10 = arith.addf %8, %9 : vector<16x16x4xf32>
    %cst = arith.constant 0.000000e+00 : f32
    %11 = vector.broadcast %cst : f32 to vector<16x16x4xf32>
    %12 = arith.maximumf %10, %11 : vector<16x16x4xf32>
    %cst_6 = arith.constant 0.000000e+00 : bf16
    %13 = vector.broadcast %cst_6 : bf16 to vector<1x18x4xbf16>
    %c0_7 = arith.constant 0 : index
    %c0_8 = arith.constant 0 : index
    %c0_9 = arith.constant 0 : index
    %14 = vector.load %arg6[%c0_7, %c0_8, %c0_9] : memref<18x18x4xbf16, #tpu.memory_space<vmem>>, vector<1x18x4xbf16>
    tpu.vector_store %arg6[%c0_7, %c0_8, %c0_9], %13 {strides = array<i32>} : memref<18x18x4xbf16, #tpu.memory_space<vmem>>, vector<1x18x4xbf16>,
    %cst_10 = arith.constant 0.000000e+00 : bf16
    %15 = vector.broadcast %cst_10 : bf16 to vector<1x18x4xbf16>
    %c17 = arith.constant 17 : index
    %c0_11 = arith.constant 0 : index
    %c0_12 = arith.constant 0 : index
    %16 = vector.load %arg6[%c17, %c0_11, %c0_12] : memref<18x18x4xbf16, #tpu.memory_space<vmem>>, vector<1x18x4xbf16>
    tpu.vector_store %arg6[%c17, %c0_11, %c0_12], %15 {strides = array<i32>} : memref<18x18x4xbf16, #tpu.memory_space<vmem>>, vector<1x18x4xbf16>,
    %cst_13 = arith.constant 0.000000e+00 : bf16
    %17 = vector.broadcast %cst_13 : bf16 to vector<18x1x4xbf16>
    %c0_14 = arith.constant 0 : index
    %c0_15 = arith.constant 0 : index
    %c0_16 = arith.constant 0 : index
    %18 = vector.load %arg6[%c0_14, %c0_15, %c0_16] : memref<18x18x4xbf16, #tpu.memory_space<vmem>>, vector<18x1x4xbf16>
    tpu.vector_store %arg6[%c0_14, %c0_15, %c0_16], %17 {strides = array<i32>} : memref<18x18x4xbf16, #tpu.memory_space<vmem>>, vector<18x1x4xbf16>,
    %cst_17 = arith.constant 0.000000e+00 : bf16
    %19 = vector.broadcast %cst_17 : bf16 to vector<18x1x4xbf16>
    %c0_18 = arith.constant 0 : index
    %c17_19 = arith.constant 17 : index
    %c0_20 = arith.constant 0 : index
    %20 = vector.load %arg6[%c0_18, %c17_19, %c0_20] : memref<18x18x4xbf16, #tpu.memory_space<vmem>>, vector<18x1x4xbf16>
    tpu.vector_store %arg6[%c0_18, %c17_19, %c0_20], %19 {strides = array<i32>} : memref<18x18x4xbf16, #tpu.memory_space<vmem>>, vector<18x1x4xbf16>,
    %21 = arith.truncf %12 : vector<16x16x4xf32> to vector<16x16x4xbf16>
    %c1_21 = arith.constant 1 : index
    %c1_22 = arith.constant 1 : index
    %c0_23 = arith.constant 0 : index
    %22 = vector.load %arg6[%c1_21, %c1_22, %c0_23] : memref<18x18x4xbf16, #tpu.memory_space<vmem>>, vector<16x16x4xbf16>
    tpu.vector_store %arg6[%c1_21, %c1_22, %c0_23], %21 {strides = array<i32>} : memref<18x18x4xbf16, #tpu.memory_space<vmem>>, vector<16x16x4xbf16>,
    %c0_24 = arith.constant 0 : index
    %c0_25 = arith.constant 0 : index
    %c0_26 = arith.constant 0 : index
    %23 = vector.load %arg6[%c0_24, %c0_25, %c0_26] : memref<18x18x4xbf16, #tpu.memory_space<vmem>>, vector<16x16x4xbf16>
    %24 = vector.shape_cast %23 : vector<16x16x4xbf16> to vector<256x4xbf16>
    %c0_27 = arith.constant 0 : index
    %c0_28 = arith.constant 0 : index
    %25 = vector.load %arg3[%c0_27, %c0_28] : memref<36x4xbf16, #tpu.memory_space<vmem>>, vector<4x4xbf16>
    %cst_29 = arith.constant dense<0.000000e+00> : vector<256x4xf32>
    %26 = tpu.matmul %24, %25, %cst_29 {dimension_numbers = #tpu.dot_dimension_numbers<[1], [0], [0], [1], [0, 0, 1, 1], [], []>} : vector<256x4xbf16>, vector<4x4xbf16>, vector<256x4xf32> -> vector<256x4xf32>
    %c0_30 = arith.constant 0 : index
    %c1_31 = arith.constant 1 : index
    %c0_32 = arith.constant 0 : index
    %27 = vector.load %arg6[%c0_30, %c1_31, %c0_32] : memref<18x18x4xbf16, #tpu.memory_space<vmem>>, vector<16x16x4xbf16>
    %28 = vector.shape_cast %27 : vector<16x16x4xbf16> to vector<256x4xbf16>
    %c4 = arith.constant 4 : index
    %c0_33 = arith.constant 0 : index
    %29 = vector.load %arg3[%c4, %c0_33] : memref<36x4xbf16, #tpu.memory_space<vmem>>, vector<4x4xbf16>
    %cst_34 = arith.constant dense<0.000000e+00> : vector<256x4xf32>
    %30 = tpu.matmul %28, %29, %cst_34 {dimension_numbers = #tpu.dot_dimension_numbers<[1], [0], [0], [1], [0, 0, 1, 1], [], []>} : vector<256x4xbf16>, vector<4x4xbf16>, vector<256x4xf32> -> vector<256x4xf32>
    %31 = arith.addf %26, %30 : vector<256x4xf32>
    %c0_35 = arith.constant 0 : index
    %c2 = arith.constant 2 : index
    %c0_36 = arith.constant 0 : index
    %32 = vector.load %arg6[%c0_35, %c2, %c0_36] : memref<18x18x4xbf16, #tpu.memory_space<vmem>>, vector<16x16x4xbf16>
    %33 = vector.shape_cast %32 : vector<16x16x4xbf16> to vector<256x4xbf16>
    %c8 = arith.constant 8 : index
    %c0_37 = arith.constant 0 : index
    %34 = vector.load %arg3[%c8, %c0_37] : memref<36x4xbf16, #tpu.memory_space<vmem>>, vector<4x4xbf16>
    %cst_38 = arith.constant dense<0.000000e+00> : vector<256x4xf32>
    %35 = tpu.matmul %33, %34, %cst_38 {dimension_numbers = #tpu.dot_dimension_numbers<[1], [0], [0], [1], [0, 0, 1, 1], [], []>} : vector<256x4xbf16>, vector<4x4xbf16>, vector<256x4xf32> -> vector<256x4xf32>
    %36 = arith.addf %31, %35 : vector<256x4xf32>
    %c1_39 = arith.constant 1 : index
    %c0_40 = arith.constant 0 : index
    %c0_41 = arith.constant 0 : index
    %37 = vector.load %arg6[%c1_39, %c0_40, %c0_41] : memref<18x18x4xbf16, #tpu.memory_space<vmem>>, vector<16x16x4xbf16>
    %38 = vector.shape_cast %37 : vector<16x16x4xbf16> to vector<256x4xbf16>
    %c12 = arith.constant 12 : index
    %c0_42 = arith.constant 0 : index
    %39 = vector.load %arg3[%c12, %c0_42] : memref<36x4xbf16, #tpu.memory_space<vmem>>, vector<4x4xbf16>
    %cst_43 = arith.constant dense<0.000000e+00> : vector<256x4xf32>
    %40 = tpu.matmul %38, %39, %cst_43 {dimension_numbers = #tpu.dot_dimension_numbers<[1], [0], [0], [1], [0, 0, 1, 1], [], []>} : vector<256x4xbf16>, vector<4x4xbf16>, vector<256x4xf32> -> vector<256x4xf32>
    %41 = arith.addf %36, %40 : vector<256x4xf32>
    %c1_44 = arith.constant 1 : index
    %c1_45 = arith.constant 1 : index
    %c0_46 = arith.constant 0 : index
    %42 = vector.load %arg6[%c1_44, %c1_45, %c0_46] : memref<18x18x4xbf16, #tpu.memory_space<vmem>>, vector<16x16x4xbf16>
    %43 = vector.shape_cast %42 : vector<16x16x4xbf16> to vector<256x4xbf16>
    %c16 = arith.constant 16 : index
    %c0_47 = arith.constant 0 : index
    %44 = vector.load %arg3[%c16, %c0_47] : memref<36x4xbf16, #tpu.memory_space<vmem>>, vector<4x4xbf16>
    %cst_48 = arith.constant dense<0.000000e+00> : vector<256x4xf32>
    %45 = tpu.matmul %43, %44, %cst_48 {dimension_numbers = #tpu.dot_dimension_numbers<[1], [0], [0], [1], [0, 0, 1, 1], [], []>} : vector<256x4xbf16>, vector<4x4xbf16>, vector<256x4xf32> -> vector<256x4xf32>
    %46 = arith.addf %41, %45 : vector<256x4xf32>
    %c1_49 = arith.constant 1 : index
    %c2_50 = arith.constant 2 : index
    %c0_51 = arith.constant 0 : index
    %47 = vector.load %arg6[%c1_49, %c2_50, %c0_51] : memref<18x18x4xbf16, #tpu.memory_space<vmem>>, vector<16x16x4xbf16>
    %48 = vector.shape_cast %47 : vector<16x16x4xbf16> to vector<256x4xbf16>
    %c20 = arith.constant 20 : index
    %c0_52 = arith.constant 0 : index
    %49 = vector.load %arg3[%c20, %c0_52] : memref<36x4xbf16, #tpu.memory_space<vmem>>, vector<4x4xbf16>
    %cst_53 = arith.constant dense<0.000000e+00> : vector<256x4xf32>
    %50 = tpu.matmul %48, %49, %cst_53 {dimension_numbers = #tpu.dot_dimension_numbers<[1], [0], [0], [1], [0, 0, 1, 1], [], []>} : vector<256x4xbf16>, vector<4x4xbf16>, vector<256x4xf32> -> vector<256x4xf32>
    %51 = arith.addf %46, %50 : vector<256x4xf32>
    %c2_54 = arith.constant 2 : index
    %c0_55 = arith.constant 0 : index
    %c0_56 = arith.constant 0 : index
    %52 = vector.load %arg6[%c2_54, %c0_55, %c0_56] : memref<18x18x4xbf16, #tpu.memory_space<vmem>>, vector<16x16x4xbf16>
    %53 = vector.shape_cast %52 : vector<16x16x4xbf16> to vector<256x4xbf16>
    %c24 = arith.constant 24 : index
    %c0_57 = arith.constant 0 : index
    %54 = vector.load %arg3[%c24, %c0_57] : memref<36x4xbf16, #tpu.memory_space<vmem>>, vector<4x4xbf16>
    %cst_58 = arith.constant dense<0.000000e+00> : vector<256x4xf32>
    %55 = tpu.matmul %53, %54, %cst_58 {dimension_numbers = #tpu.dot_dimension_numbers<[1], [0], [0], [1], [0, 0, 1, 1], [], []>} : vector<256x4xbf16>, vector<4x4xbf16>, vector<256x4xf32> -> vector<256x4xf32>
    %56 = arith.addf %51, %55 : vector<256x4xf32>
    %c2_59 = arith.constant 2 : index
    %c1_60 = arith.constant 1 : index
    %c0_61 = arith.constant 0 : index
    %57 = vector.load %arg6[%c2_59, %c1_60, %c0_61] : memref<18x18x4xbf16, #tpu.memory_space<vmem>>, vector<16x16x4xbf16>
    %58 = vector.shape_cast %57 : vector<16x16x4xbf16> to vector<256x4xbf16>
    %c28 = arith.constant 28 : index
    %c0_62 = arith.constant 0 : index
    %59 = vector.load %arg3[%c28, %c0_62] : memref<36x4xbf16, #tpu.memory_space<vmem>>, vector<4x4xbf16>
    %cst_63 = arith.constant dense<0.000000e+00> : vector<256x4xf32>
    %60 = tpu.matmul %58, %59, %cst_63 {dimension_numbers = #tpu.dot_dimension_numbers<[1], [0], [0], [1], [0, 0, 1, 1], [], []>} : vector<256x4xbf16>, vector<4x4xbf16>, vector<256x4xf32> -> vector<256x4xf32>
    %61 = arith.addf %56, %60 : vector<256x4xf32>
    %c2_64 = arith.constant 2 : index
    %c2_65 = arith.constant 2 : index
    %c0_66 = arith.constant 0 : index
    %62 = vector.load %arg6[%c2_64, %c2_65, %c0_66] : memref<18x18x4xbf16, #tpu.memory_space<vmem>>, vector<16x16x4xbf16>
    %63 = vector.shape_cast %62 : vector<16x16x4xbf16> to vector<256x4xbf16>
    %c32 = arith.constant 32 : index
    %c0_67 = arith.constant 0 : index
    %64 = vector.load %arg3[%c32, %c0_67] : memref<36x4xbf16, #tpu.memory_space<vmem>>, vector<4x4xbf16>
    %cst_68 = arith.constant dense<0.000000e+00> : vector<256x4xf32>
    %65 = tpu.matmul %63, %64, %cst_68 {dimension_numbers = #tpu.dot_dimension_numbers<[1], [0], [0], [1], [0, 0, 1, 1], [], []>} : vector<256x4xbf16>, vector<4x4xbf16>, vector<256x4xf32> -> vector<256x4xf32>
    %66 = arith.addf %61, %65 : vector<256x4xf32>
    %67 = vector.shape_cast %66 : vector<256x4xf32> to vector<1x16x16x4xf32>
    %68 = arith.truncf %67 : vector<1x16x16x4xf32> to vector<1x16x16x4xbf16>
    %c0_69 = arith.constant 0 : index
    %c0_70 = arith.constant 0 : index
    %c0_71 = arith.constant 0 : index
    %c0_72 = arith.constant 0 : index
    %69 = vector.load %arg4[%c0_69, %c0_70, %c0_71, %c0_72] : memref<1x16x16x4xbf16, #tpu.memory_space<vmem>>, vector<1x16x16x4xbf16>
    tpu.vector_store %arg4[%c0_69, %c0_70, %c0_71, %c0_72], %68 {strides = array<i32>} : memref<1x16x16x4xbf16, #tpu.memory_space<vmem>>, vector<1x16x16x4xbf16>,
    %cst_73 = arith.constant dense<0.000000e+00> : vector<4xf32>
    %70 = vector.multi_reduction <add>, %66, %cst_73 [0] : vector<256x4xf32> to vector<4xf32>
    %71 = vector.shape_cast %70 : vector<4xf32> to vector<1x4xf32>
    %72 = arith.mulf %66, %66 : vector<256x4xf32>
    %cst_74 = arith.constant dense<0.000000e+00> : vector<4xf32>
    %73 = vector.multi_reduction <add>, %72, %cst_74 [0] : vector<256x4xf32> to vector<4xf32>
    %74 = vector.shape_cast %73 : vector<4xf32> to vector<1x4xf32>
    %75 = tpu.concatenate %71, %74 in 0 : vector<1x4xf32>, vector<1x4xf32> -> vector<2x4xf32>
    %76 = vector.shape_cast %75 : vector<2x4xf32> to vector<1x2x4xf32>
    %c0_75 = arith.constant 0 : index
    %c0_76 = arith.constant 0 : index
    %c0_77 = arith.constant 0 : index
    %77 = vector.load %arg5[%c0_75, %c0_76, %c0_77] : memref<1x2x4xf32, #tpu.memory_space<vmem>>, vector<1x2x4xf32>
    tpu.vector_store %arg5[%c0_75, %c0_76, %c0_77], %76 {strides = array<i32>} : memref<1x2x4xf32, #tpu.memory_space<vmem>>, vector<1x2x4xf32>,
    return
  }
  func.func @transform_0(%arg0: i32) -> (i32, i32, i32, i32) {
    %c0_i32 = arith.constant 0 : i32
    %c0_i32_0 = arith.constant 0 : i32
    %c0_i32_1 = arith.constant 0 : i32
    %c0_i32_2 = arith.constant 0 : i32
    return %arg0, %c0_i32, %c0_i32_0, %c0_i32_1 : i32, i32, i32, i32
  }
  func.func @transform_1(%arg0: i32) -> (i32, i32) {
    %c0_i32 = arith.constant 0 : i32
    %c0_i32_0 = arith.constant 0 : i32
    %c0_i32_1 = arith.constant 0 : i32
    return %c0_i32, %c0_i32_0 : i32, i32
  }
  func.func @transform_2(%arg0: i32) -> (i32, i32) {
    %c0_i32 = arith.constant 0 : i32
    %c0_i32_0 = arith.constant 0 : i32
    %c0_i32_1 = arith.constant 0 : i32
    return %c0_i32, %c0_i32_0 : i32, i32
  }
  func.func @transform_3(%arg0: i32) -> (i32, i32, i32, i32) {
    %c0_i32 = arith.constant 0 : i32
    %c0_i32_0 = arith.constant 0 : i32
    %c0_i32_1 = arith.constant 0 : i32
    %c0_i32_2 = arith.constant 0 : i32
    return %arg0, %c0_i32, %c0_i32_0, %c0_i32_1 : i32, i32, i32, i32
  }
  func.func @transform_4(%arg0: i32) -> (i32, i32, i32) {
    %c0_i32 = arith.constant 0 : i32
    %c0_i32_0 = arith.constant 0 : i32
    %c0_i32_1 = arith.constant 0 : i32
    return %arg0, %c0_i32, %c0_i32_0 : i32, i32, i32
  }
}

</mosaic_0001>

<bundles_post_ra>
// kernel: basic_block.5
= control target key start
LH: loop header
LB: loop body
LE: loop exit
PB: predicated region body
PF: predicated region fallthrough
CT: control target
= control target key end

     0   :  { %vm472_vm0 = vcmask 31744   ;;  %s1404_s0 = inlined_call_operand.vmem [shape: bf16[2,16,16,4], index: 0, kind: input, shape index: {}]   ;;  %s1405_s2 = inlined_call_operand.vmem [shape: f32[2,4], index: 2, kind: input, shape index: {}]   ;;  %s1406_s1 = inlined_call_operand.vmem [shape: f32[2,16,16,4], index: 1, kind: input, shape index: {}]   ;;  %s1407_s3 = inlined_call_operand.vmem [shape: f32[2,16,16,4], index: 3, kind: output, shape index: {}]  }
   0x1   :  { %v725_v0 = vld [vmem:[%s1405_s2] ss:$0 sm:$0xff]  ;;  %v671_v4 = vld [vmem:[%s1404_s0 + $0x8] sm:$0xff]   ;;  %v736_v5 = vld [vmem:[%s1405_s2 + $0x1] ss:$0 sm:$0xff] }
   0x2   :  { %v544_v1 = vld [vmem:[%s1404_s0] sm:$0xff]   ;;  %v549_v6 = vunpack.c.l.bf16 %v671_v4  ;;  %v550_v7 = vunpack.c.h.bf16 %v671_v4  ;;  %v672_v8 = vld [vmem:[%s1404_s0 + $0x10] sm:$0xff]   ;;  %v673_v13 = vld [vmem:[%s1404_s0 + $0x18] sm:$0xff]  }
   0x3   :  { %v545_v2 = vunpack.c.l.bf16 %v544_v1  ;;  %v546_v3 = vunpack.c.h.bf16 %v544_v1  ;;  %v553_v11 = vunpack.c.l.bf16 %v672_v8  ;;  %v554_v12 = vunpack.c.h.bf16 %v672_v8  ;;  %v280_v14 = vld [vmem:[%s1406_s1] sm:$0xff]  ;;  %v281_v15 = vld [vmem:[%s1406_s1 + $0x8] sm:$0xff]  ;;  %v282_v22 = vld [vmem:[%s1406_s1 + $0x10] sm:$0xff] }
   0x4   :  { %v150_v16 = vmul.f32 %v549_v6, %v725_v0  ;;  %v151_v17 = vmul.f32 %v550_v7, %v725_v0  ;;  %v557_v18 = vunpack.c.l.bf16 %v673_v13  ;;  %v558_v19 = vunpack.c.h.bf16 %v673_v13  ;;  %v283_v23 = vld [vmem:[%s1406_s1 + $0x18] sm:$0xff]  ;;  %v284_v28 = vld [vmem:[%s1406_s1 + $0x20] sm:$0xff]  ;;  %v285_v29 = vld [vmem:[%s1406_s1 + $0x28] sm:$0xff] }
   0x5   :  { %v148_v9 = vmul.f32 %v545_v2, %v725_v0  ;;  %v149_v10 = vmul.f32 %v546_v3, %v725_v0  ;;  %v152_v24 = vmul.f32 %v553_v11, %v725_v0  ;;  %v153_v25 = vmul.f32 %v554_v12, %v725_v0  ;;  %v286_v36 = vld [vmem:[%s1406_s1 + $0x30] sm:$0xff]  ;;  %v287_v37 = vld [vmem:[%s1406_s1 + $0x38] sm:$0xff]  ;;  %v674_v42 = vld [vmem:[%s1404_s0 + $0x20] sm:$0xff]  }
   0x6   :  { %v218_v26 = vadd.f32 %v736_v5, %v150_v16  ;;  %v219_v27 = vadd.f32 %v736_v5, %v151_v17  ;;  %v154_v30 = vmul.f32 %v557_v18, %v725_v0  ;;  %v155_v31 = vmul.f32 %v558_v19, %v725_v0  ;;  %v675_v47 = vld [vmem:[%s1404_s0 + $0x28] sm:$0xff]   ;;  %v676_v52 = vld [vmem:[%s1404_s0 + $0x30] sm:$0xff]   ;;  %v677_v57 = vld [vmem:[%s1404_s0 + $0x38] sm:$0xff]  }
   0x7   :  { %v216_v20 = vadd.f32 %v736_v5, %v148_v9  ;;  %v217_v21 = vadd.f32 %v736_v5, %v149_v10  ;;  %v220_v34 = vadd.f32 %v736_v5, %v152_v24  ;;  %v221_v35 = vadd.f32 %v736_v5, %v153_v25  ;;  %v288_v3 = vld [vmem:[%s1406_s1 + $0x40] sm:$0xff]  ;;  %v289_v4 = vld [vmem:[%s1406_s1 + $0x48] sm:$0xff]  ;;  %v290_v12 = vld [vmem:[%s1406_s1 + $0x50] sm:$0xff] }
   0x8   :  { %v346_v38 = vadd.f32 %v282_v22, %v218_v26  ;;  %v347_v39 = vadd.f32 %v283_v23, %v219_v27  ;;  %v222_v40 = vadd.f32 %v736_v5, %v154_v30  ;;  %v223_v41 = vadd.f32 %v736_v5, %v155_v31  ;;  %v291_v13 = vld [vmem:[%s1406_s1 + $0x58] sm:$0xff]  ;;  %v292_v18 = vld [vmem:[%s1406_s1 + $0x60] sm:$0xff]  ;;  %v293_v19 = vld [vmem:[%s1406_s1 + $0x68] sm:$0xff] }
   0x9   :  { %v344_v32 = vadd.f32 %v280_v14, %v216_v20  ;;  %v345_v33 = vadd.f32 %v281_v15, %v217_v21  ;;  %v348_v45 = vadd.f32 %v284_v28, %v220_v34  ;;  %v349_v46 = vadd.f32 %v285_v29, %v221_v35  ;;  %v294_v26 = vld [vmem:[%s1406_s1 + $0x70] sm:$0xff]  ;;  %v295_v27 = vld [vmem:[%s1406_s1 + $0x78] sm:$0xff] }
   0xa   :  { %v410_v48 = vmax.f32 %v346_v38, 0.0  ;;  %v411_v49 = vmax.f32 %v347_v39, 0.0  ;;  %v350_v50 = vadd.f32 %v286_v36, %v222_v40  ;;  %v351_v51 = vadd.f32 %v287_v37, %v223_v41  ;;  %v679_v37 = vld [vmem:[%s1404_s0 + $0x48] sm:$0xff]  }
   0xb   :  { %v408_v43 = vmax.f32 %v344_v32, 0.0  ;;  %v409_v44 = vmax.f32 %v345_v33, 0.0  ;;  %v412_v53 = vmax.f32 %v348_v45, 0.0  ;;  %v413_v54 = vmax.f32 %v349_v46, 0.0  ;;  %v678_v32 = vld [vmem:[%s1404_s0 + $0x40] sm:$0xff]  }
   0xc   :  { %v561_v55 = vunpack.c.l.bf16 %v674_v42  ;;  %v562_v56 = vunpack.c.h.bf16 %v674_v42  ;;  %475 = vst.msk [vmem:[%s1407_s3 + $0x10] sm:$0xff] %vm472_vm0, %v410_v48  ;;  %476 = vst.msk [vmem:[%s1407_s3 + $0x18] sm:$0xff] %vm472_vm0, %v411_v49  ;;  %v414_v58 = vmax.f32 %v350_v50, 0.0  ;;  %v415_v59 = vmax.f32 %v351_v51, 0.0  ;;  %v680_v42 = vld [vmem:[%s1404_s0 + $0x50] sm:$0xff]  }
   0xd   :  { %473 = vst.msk [vmem:[%s1407_s3] sm:$0xff] %vm472_vm0, %v408_v43  ;;  %474 = vst.msk [vmem:[%s1407_s3 + $0x8] sm:$0xff] %vm472_vm0, %v409_v44  ;;  %v565_v60 = vunpack.c.l.bf16 %v675_v47  ;;  %v566_v61 = vunpack.c.h.bf16 %v675_v47  ;;  %v569_v1 = vunpack.c.l.bf16 %v676_v52  ;;  %v570_v2 = vunpack.c.h.bf16 %v676_v52  ;;  %v681_v47 = vld [vmem:[%s1404_s0 + $0x58] sm:$0xff]  }
   0xe   :  { %477 = vst.msk [vmem:[%s1407_s3 + $0x20] sm:$0xff] %vm472_vm0, %v412_v53  ;;  %478 = vst.msk [vmem:[%s1407_s3 + $0x28] sm:$0xff] %vm472_vm0, %v413_v54  ;;  %v156_v62 = vmul.f32 %v561_v55, %v725_v0  ;;  %v157_v63 = vmul.f32 %v562_v56, %v725_v0  ;;  %v573_v8 = vunpack.c.l.bf16 %v677_v57  ;;  %v574_v9 = vunpack.c.h.bf16 %v677_v57  ;;  %v296_v56 = vld [vmem:[%s1406_s1 + $0x80] sm:$0xff]  ;;  %v297_v57 = vld [vmem:[%s1406_s1 + $0x88] sm:$0xff] }
   0xf   :  { %479 = vst.msk [vmem:[%s1407_s3 + $0x30] sm:$0xff] %vm472_vm0, %v414_v58  ;;  %480 = vst.msk [vmem:[%s1407_s3 + $0x38] sm:$0xff] %vm472_vm0, %v415_v59  ;;  %v158_v6 = vmul.f32 %v565_v60, %v725_v0  ;;  %v159_v7 = vmul.f32 %v566_v61, %v725_v0  ;;  %v160_v14 = vmul.f32 %v569_v1, %v725_v0  ;;  %v577_v45 = vunpack.c.l.bf16 %v678_v32  ;;  %v298_v1 = vld [vmem:[%s1406_s1 + $0x90] sm:$0xff] }
  0x10   :  { %v224_v10 = vadd.f32 %v736_v5, %v156_v62  ;;  %v225_v11 = vadd.f32 %v736_v5, %v157_v63  ;;  %v161_v15 = vmul.f32 %v570_v2, %v725_v0  ;;  %v162_v20 = vmul.f32 %v573_v8, %v725_v0  ;;  %v299_v2 = vld [vmem:[%s1406_s1 + $0x98] sm:$0xff]  ;;  %v300_v8 = vld [vmem:[%s1406_s1 + $0xa0] sm:$0xff] }
  0x11   :  { %v226_v16 = vadd.f32 %v736_v5, %v158_v6  ;;  %v227_v17 = vadd.f32 %v736_v5, %v159_v7  ;;  %v163_v21 = vmul.f32 %v574_v9, %v725_v0  ;;  %v228_v24 = vadd.f32 %v736_v5, %v160_v14  ;;  %v301_v9 = vld [vmem:[%s1406_s1 + $0xa8] sm:$0xff] }
  0x12   :  { %v352_v22 = vadd.f32 %v288_v3, %v224_v10  ;;  %v353_v23 = vadd.f32 %v289_v4, %v225_v11  ;;  %v229_v25 = vadd.f32 %v736_v5, %v161_v15  ;;  %v230_v30 = vadd.f32 %v736_v5, %v162_v20 }
  0x13   :  { %v354_v28 = vadd.f32 %v290_v12, %v226_v16  ;;  %v355_v29 = vadd.f32 %v291_v13, %v227_v17  ;;  %v231_v31 = vadd.f32 %v736_v5, %v163_v21  ;;  %v356_v35 = vadd.f32 %v292_v18, %v228_v24  ;;  %v302_v16 = vld [vmem:[%s1406_s1 + $0xb0] sm:$0xff]  ;;  %v303_v17 = vld [vmem:[%s1406_s1 + $0xb8] sm:$0xff] }
  0x14   :  { %v416_v33 = vmax.f32 %v352_v22, 0.0  ;;  %v417_v34 = vmax.f32 %v353_v23, 0.0  ;;  %v357_v36 = vadd.f32 %v293_v19, %v229_v25  ;;  %v358_v40 = vadd.f32 %v294_v26, %v230_v30  ;;  %v682_v22 = vld [vmem:[%s1404_s0 + $0x60] sm:$0xff]  }
  0x15   :  { %v418_v38 = vmax.f32 %v354_v28, 0.0  ;;  %v419_v39 = vmax.f32 %v355_v29, 0.0  ;;  %v359_v41 = vadd.f32 %v295_v27, %v231_v31  ;;  %v420_v43 = vmax.f32 %v356_v35, 0.0  ;;  %v683_v27 = vld [vmem:[%s1404_s0 + $0x68] sm:$0xff]  }
  0x16   :  { %481 = vst.msk [vmem:[%s1407_s3 + $0x40] sm:$0xff] %vm472_vm0, %v416_v33  ;;  %482 = vst.msk [vmem:[%s1407_s3 + $0x48] sm:$0xff] %vm472_vm0, %v417_v34  ;;  %v421_v44 = vmax.f32 %v357_v36, 0.0  ;;  %v578_v46 = vunpack.c.h.bf16 %v678_v32  ;;  %v422_v48 = vmax.f32 %v358_v40, 0.0  ;;  %v581_v50 = vunpack.c.l.bf16 %v679_v37  ;;  %v684_v32 = vld [vmem:[%s1404_s0 + $0x70] sm:$0xff]  }
  0x17   :  { %483 = vst.msk [vmem:[%s1407_s3 + $0x50] sm:$0xff] %vm472_vm0, %v418_v38  ;;  %484 = vst.msk [vmem:[%s1407_s3 + $0x58] sm:$0xff] %vm472_vm0, %v419_v39  ;;  %v423_v49 = vmax.f32 %v359_v41, 0.0  ;;  %v582_v51 = vunpack.c.h.bf16 %v679_v37  ;;  %v164_v52 = vmul.f32 %v577_v45, %v725_v0  ;;  %v585_v54 = vunpack.c.l.bf16 %v680_v42  ;;  %v685_v37 = vld [vmem:[%s1404_s0 + $0x78] sm:$0xff]  }
  0x18   :  { %485 = vst.msk [vmem:[%s1407_s3 + $0x60] sm:$0xff] %vm472_vm0, %v420_v43  ;;  %486 = vst.msk [vmem:[%s1407_s3 + $0x68] sm:$0xff] %vm472_vm0, %v421_v44  ;;  %v165_v53 = vmul.f32 %v578_v46, %v725_v0  ;;  %v586_v55 = vunpack.c.h.bf16 %v680_v42  ;;  %v166_v58 = vmul.f32 %v581_v50, %v725_v0  ;;  %v589_v60 = vunpack.c.l.bf16 %v681_v47  ;;  %v304_v46 = vld [vmem:[%s1406_s1 + $0xc0] sm:$0xff] }
  0x19   :  { %487 = vst.msk [vmem:[%s1407_s3 + $0x70] sm:$0xff] %vm472_vm0, %v422_v48  ;;  %488 = vst.msk [vmem:[%s1407_s3 + $0x78] sm:$0xff] %vm472_vm0, %v423_v49  ;;  %v167_v59 = vmul.f32 %v582_v51, %v725_v0  ;;  %v590_v61 = vunpack.c.h.bf16 %v681_v47  ;;  %v232_v62 = vadd.f32 %v736_v5, %v164_v52  ;;  %v168_v3 = vmul.f32 %v585_v54, %v725_v0  ;;  %v305_v47 = vld [vmem:[%s1406_s1 + $0xc8] sm:$0xff]  ;;  %v306_v54 = vld [vmem:[%s1406_s1 + $0xd0] sm:$0xff] }
  0x1a   :  { %v233_v63 = vadd.f32 %v736_v5, %v165_v53  ;;  %v169_v4 = vmul.f32 %v586_v55, %v725_v0  ;;  %v234_v6 = vadd.f32 %v736_v5, %v166_v58  ;;  %v170_v10 = vmul.f32 %v589_v60, %v725_v0  ;;  %v307_v55 = vld [vmem:[%s1406_s1 + $0xd8] sm:$0xff]  ;;  %v308_v60 = vld [vmem:[%s1406_s1 + $0xe0] sm:$0xff] }
  0x1b   :  { %v235_v7 = vadd.f32 %v736_v5, %v167_v59  ;;  %v171_v11 = vmul.f32 %v590_v61, %v725_v0  ;;  %v360_v12 = vadd.f32 %v296_v56, %v232_v62  ;;  %v236_v14 = vadd.f32 %v736_v5, %v168_v3  ;;  %v309_v61 = vld [vmem:[%s1406_s1 + $0xe8] sm:$0xff] }
  0x1c   :  { %v361_v13 = vadd.f32 %v297_v57, %v233_v63  ;;  %v237_v15 = vadd.f32 %v736_v5, %v169_v4  ;;  %v362_v18 = vadd.f32 %v298_v1, %v234_v6  ;;  %v238_v20 = vadd.f32 %v736_v5, %v170_v10  ;;  %v310_v6 = vld [vmem:[%s1406_s1 + $0xf0] sm:$0xff] }
  0x1d   :  { %v363_v19 = vadd.f32 %v299_v2, %v235_v7  ;;  %v239_v21 = vadd.f32 %v736_v5, %v171_v11  ;;  %v424_v23 = vmax.f32 %v360_v12, 0.0  ;;  %v364_v25 = vadd.f32 %v300_v8, %v236_v14  ;;  %v311_v7 = vld [vmem:[%s1406_s1 + $0xf8] sm:$0xff]  ;;  %v686_v12 = vld [vmem:[%s1404_s0 + $0x80] sm:$0xff]  }
  0x1e   :  { %v425_v24 = vmax.f32 %v361_v13, 0.0  ;;  %v365_v26 = vadd.f32 %v301_v9, %v237_v15  ;;  %v426_v28 = vmax.f32 %v362_v18, 0.0  ;;  %v366_v30 = vadd.f32 %v302_v16, %v238_v20 }
  0x1f   :  { %v427_v29 = vmax.f32 %v363_v19, 0.0  ;;  %v367_v31 = vadd.f32 %v303_v17, %v239_v21  ;;  %489 = vst.msk [vmem:[%s1407_s3 + $0x80] sm:$0xff] %vm472_vm0, %v424_v23  ;;  %v428_v33 = vmax.f32 %v364_v25, 0.0  ;;  %v593_v35 = vunpack.c.l.bf16 %v682_v22  ;;  %v687_v17 = vld [vmem:[%s1404_s0 + $0x88] sm:$0xff]  }
  0x20   :  { %490 = vst.msk [vmem:[%s1407_s3 + $0x88] sm:$0xff] %vm472_vm0, %v425_v24  ;;  %v429_v34 = vmax.f32 %v365_v26, 0.0  ;;  %v594_v36 = vunpack.c.h.bf16 %v682_v22  ;;  %491 = vst.msk [vmem:[%s1407_s3 + $0x90] sm:$0xff] %vm472_vm0, %v426_v28  ;;  %v430_v38 = vmax.f32 %v366_v30, 0.0  ;;  %v597_v40 = vunpack.c.l.bf16 %v683_v27  ;;  %v688_v22 = vld [vmem:[%s1404_s0 + $0x90] sm:$0xff]  }
  0x21   :  { %492 = vst.msk [vmem:[%s1407_s3 + $0x98] sm:$0xff] %vm472_vm0, %v427_v29  ;;  %v431_v39 = vmax.f32 %v367_v31, 0.0  ;;  %v598_v41 = vunpack.c.h.bf16 %v683_v27  ;;  %493 = vst.msk [vmem:[%s1407_s3 + $0xa0] sm:$0xff] %vm472_vm0, %v428_v33  ;;  %v172_v42 = vmul.f32 %v593_v35, %v725_v0  ;;  %v601_v44 = vunpack.c.l.bf16 %v684_v32  ;;  %v689_v27 = vld [vmem:[%s1404_s0 + $0x98] sm:$0xff]  }
  0x22   :  { %494 = vst.msk [vmem:[%s1407_s3 + $0xa8] sm:$0xff] %vm472_vm0, %v429_v34  ;;  %v173_v43 = vmul.f32 %v594_v36, %v725_v0  ;;  %v602_v45 = vunpack.c.h.bf16 %v684_v32  ;;  %495 = vst.msk [vmem:[%s1407_s3 + $0xb0] sm:$0xff] %vm472_vm0, %v430_v38  ;;  %v174_v48 = vmul.f32 %v597_v40, %v725_v0  ;;  %v605_v50 = vunpack.c.l.bf16 %v685_v37  ;;  %v312_v36 = vld [vmem:[%s1406_s1 + $0x100] sm:$0xff] }
  0x23   :  { %496 = vst.msk [vmem:[%s1407_s3 + $0xb8] sm:$0xff] %vm472_vm0, %v431_v39  ;;  %v175_v49 = vmul.f32 %v598_v41, %v725_v0  ;;  %v606_v51 = vunpack.c.h.bf16 %v685_v37  ;;  %v240_v52 = vadd.f32 %v736_v5, %v172_v42  ;;  %v176_v56 = vmul.f32 %v601_v44, %v725_v0  ;;  %v313_v37 = vld [vmem:[%s1406_s1 + $0x108] sm:$0xff]  ;;  %v314_v44 = vld [vmem:[%s1406_s1 + $0x110] sm:$0xff] }
  0x24   :  { %v241_v53 = vadd.f32 %v736_v5, %v173_v43  ;;  %v177_v57 = vmul.f32 %v602_v45, %v725_v0  ;;  %v242_v58 = vadd.f32 %v736_v5, %v174_v48  ;;  %v178_v62 = vmul.f32 %v605_v50, %v725_v0  ;;  %v315_v45 = vld [vmem:[%s1406_s1 + $0x118] sm:$0xff]  ;;  %v316_v50 = vld [vmem:[%s1406_s1 + $0x120] sm:$0xff] }
  0x25   :  { %v243_v59 = vadd.f32 %v736_v5, %v175_v49  ;;  %v179_v63 = vmul.f32 %v606_v51, %v725_v0  ;;  %v368_v1 = vadd.f32 %v304_v46, %v240_v52  ;;  %v244_v3 = vadd.f32 %v736_v5, %v176_v56  ;;  %v317_v51 = vld [vmem:[%s1406_s1 + $0x128] sm:$0xff] }
  0x26   :  { %v369_v2 = vadd.f32 %v305_v47, %v241_v53  ;;  %v245_v4 = vadd.f32 %v736_v5, %v177_v57  ;;  %v370_v8 = vadd.f32 %v306_v54, %v242_v58  ;;  %v246_v10 = vadd.f32 %v736_v5, %v178_v62  ;;  %v318_v58 = vld [vmem:[%s1406_s1 + $0x130] sm:$0xff] }
  0x27   :  { %v371_v9 = vadd.f32 %v307_v55, %v243_v59  ;;  %v247_v11 = vadd.f32 %v736_v5, %v179_v63  ;;  %v432_v13 = vmax.f32 %v368_v1, 0.0  ;;  %v372_v15 = vadd.f32 %v308_v60, %v244_v3  ;;  %v319_v59 = vld [vmem:[%s1406_s1 + $0x138] sm:$0xff]  ;;  %v690_v1 = vld [vmem:[%s1404_s0 + $0xa0] sm:$0xff]  }
  0x28   :  { %v433_v14 = vmax.f32 %v369_v2, 0.0  ;;  %v373_v16 = vadd.f32 %v309_v61, %v245_v4  ;;  %v434_v18 = vmax.f32 %v370_v8, 0.0  ;;  %v374_v20 = vadd.f32 %v310_v6, %v246_v10 }
  0x29   :  { %v435_v19 = vmax.f32 %v371_v9, 0.0  ;;  %v375_v21 = vadd.f32 %v311_v7, %v247_v11  ;;  %497 = vst.msk [vmem:[%s1407_s3 + $0xc0] sm:$0xff] %vm472_vm0, %v432_v13  ;;  %v436_v23 = vmax.f32 %v372_v15, 0.0  ;;  %v609_v25 = vunpack.c.l.bf16 %v686_v12  ;;  %v691_v7 = vld [vmem:[%s1404_s0 + $0xa8] sm:$0xff]  }
  0x2a   :  { %498 = vst.msk [vmem:[%s1407_s3 + $0xc8] sm:$0xff] %vm472_vm0, %v433_v14  ;;  %v437_v24 = vmax.f32 %v373_v16, 0.0  ;;  %v610_v26 = vunpack.c.h.bf16 %v686_v12  ;;  %499 = vst.msk [vmem:[%s1407_s3 + $0xd0] sm:$0xff] %vm472_vm0, %v434_v18  ;;  %v438_v28 = vmax.f32 %v374_v20, 0.0  ;;  %v613_v30 = vunpack.c.l.bf16 %v687_v17  ;;  %v692_v12 = vld [vmem:[%s1404_s0 + $0xb0] sm:$0xff]  }
  0x2b   :  { %500 = vst.msk [vmem:[%s1407_s3 + $0xd8] sm:$0xff] %vm472_vm0, %v435_v19  ;;  %v439_v29 = vmax.f32 %v375_v21, 0.0  ;;  %v614_v31 = vunpack.c.h.bf16 %v687_v17  ;;  %501 = vst.msk [vmem:[%s1407_s3 + $0xe0] sm:$0xff] %vm472_vm0, %v436_v23  ;;  %v180_v32 = vmul.f32 %v609_v25, %v725_v0  ;;  %v617_v34 = vunpack.c.l.bf16 %v688_v22  ;;  %v693_v17 = vld [vmem:[%s1404_s0 + $0xb8] sm:$0xff]  }
  0x2c   :  { %502 = vst.msk [vmem:[%s1407_s3 + $0xe8] sm:$0xff] %vm472_vm0, %v437_v24  ;;  %v181_v33 = vmul.f32 %v610_v26, %v725_v0  ;;  %v618_v35 = vunpack.c.h.bf16 %v688_v22  ;;  %503 = vst.msk [vmem:[%s1407_s3 + $0xf0] sm:$0xff] %vm472_vm0, %v438_v28  ;;  %v182_v38 = vmul.f32 %v613_v30, %v725_v0  ;;  %v621_v40 = vunpack.c.l.bf16 %v689_v27  ;;  %v320_v26 = vld [vmem:[%s1406_s1 + $0x140] sm:$0xff] }
  0x2d   :  { %504 = vst.msk [vmem:[%s1407_s3 + $0xf8] sm:$0xff] %vm472_vm0, %v439_v29  ;;  %v183_v39 = vmul.f32 %v614_v31, %v725_v0  ;;  %v622_v41 = vunpack.c.h.bf16 %v689_v27  ;;  %v248_v42 = vadd.f32 %v736_v5, %v180_v32  ;;  %v184_v46 = vmul.f32 %v617_v34, %v725_v0  ;;  %v321_v27 = vld [vmem:[%s1406_s1 + $0x148] sm:$0xff]  ;;  %v322_v34 = vld [vmem:[%s1406_s1 + $0x150] sm:$0xff] }
  0x2e   :  { %v249_v43 = vadd.f32 %v736_v5, %v181_v33  ;;  %v185_v47 = vmul.f32 %v618_v35, %v725_v0  ;;  %v250_v48 = vadd.f32 %v736_v5, %v182_v38  ;;  %v186_v52 = vmul.f32 %v621_v40, %v725_v0  ;;  %v323_v35 = vld [vmem:[%s1406_s1 + $0x158] sm:$0xff]  ;;  %v324_v40 = vld [vmem:[%s1406_s1 + $0x160] sm:$0xff] }
  0x2f   :  { %v251_v49 = vadd.f32 %v736_v5, %v183_v39  ;;  %v187_v53 = vmul.f32 %v622_v41, %v725_v0  ;;  %v376_v54 = vadd.f32 %v312_v36, %v248_v42  ;;  %v252_v56 = vadd.f32 %v736_v5, %v184_v46  ;;  %v325_v41 = vld [vmem:[%s1406_s1 + $0x168] sm:$0xff] }
  0x30   :  { %v377_v55 = vadd.f32 %v313_v37, %v249_v43  ;;  %v253_v57 = vadd.f32 %v736_v5, %v185_v47  ;;  %v378_v60 = vadd.f32 %v314_v44, %v250_v48  ;;  %v254_v62 = vadd.f32 %v736_v5, %v186_v52  ;;  %v326_v48 = vld [vmem:[%s1406_s1 + $0x170] sm:$0xff] }
  0x31   :  { %v379_v61 = vadd.f32 %v315_v45, %v251_v49  ;;  %v255_v63 = vadd.f32 %v736_v5, %v187_v53  ;;  %v440_v2 = vmax.f32 %v376_v54, 0.0  ;;  %v380_v4 = vadd.f32 %v316_v50, %v252_v56  ;;  %v327_v49 = vld [vmem:[%s1406_s1 + $0x178] sm:$0xff]  ;;  %v694_v54 = vld [vmem:[%s1404_s0 + $0xc0] sm:$0xff]  }
  0x32   :  { %v441_v3 = vmax.f32 %v377_v55, 0.0  ;;  %v381_v6 = vadd.f32 %v317_v51, %v253_v57  ;;  %v442_v8 = vmax.f32 %v378_v60, 0.0  ;;  %v382_v10 = vadd.f32 %v318_v58, %v254_v62 }
  0x33   :  { %v443_v9 = vmax.f32 %v379_v61, 0.0  ;;  %v383_v11 = vadd.f32 %v319_v59, %v255_v63  ;;  %505 = vst.msk [vmem:[%s1407_s3 + $0x100] sm:$0xff] %vm472_vm0, %v440_v2  ;;  %v444_v13 = vmax.f32 %v380_v4, 0.0  ;;  %v625_v15 = vunpack.c.l.bf16 %v690_v1  ;;  %v695_v59 = vld [vmem:[%s1404_s0 + $0xc8] sm:$0xff]  }
  0x34   :  { %506 = vst.msk [vmem:[%s1407_s3 + $0x108] sm:$0xff] %vm472_vm0, %v441_v3  ;;  %v445_v14 = vmax.f32 %v381_v6, 0.0  ;;  %v626_v16 = vunpack.c.h.bf16 %v690_v1  ;;  %507 = vst.msk [vmem:[%s1407_s3 + $0x110] sm:$0xff] %vm472_vm0, %v442_v8  ;;  %v446_v18 = vmax.f32 %v382_v10, 0.0  ;;  %v629_v20 = vunpack.c.l.bf16 %v691_v7  ;;  %v696_v1 = vld [vmem:[%s1404_s0 + $0xd0] sm:$0xff]  }
  0x35   :  { %508 = vst.msk [vmem:[%s1407_s3 + $0x118] sm:$0xff] %vm472_vm0, %v443_v9  ;;  %v447_v19 = vmax.f32 %v383_v11, 0.0  ;;  %v630_v21 = vunpack.c.h.bf16 %v691_v7  ;;  %509 = vst.msk [vmem:[%s1407_s3 + $0x120] sm:$0xff] %vm472_vm0, %v444_v13  ;;  %v188_v22 = vmul.f32 %v625_v15, %v725_v0  ;;  %v633_v24 = vunpack.c.l.bf16 %v692_v12  ;;  %v697_v7 = vld [vmem:[%s1404_s0 + $0xd8] sm:$0xff]  }
  0x36   :  { %510 = vst.msk [vmem:[%s1407_s3 + $0x128] sm:$0xff] %vm472_vm0, %v445_v14  ;;  %v189_v23 = vmul.f32 %v626_v16, %v725_v0  ;;  %v634_v25 = vunpack.c.h.bf16 %v692_v12  ;;  %511 = vst.msk [vmem:[%s1407_s3 + $0x130] sm:$0xff] %vm472_vm0, %v446_v18  ;;  %v190_v28 = vmul.f32 %v629_v20, %v725_v0  ;;  %v637_v30 = vunpack.c.l.bf16 %v693_v17  ;;  %v328_v16 = vld [vmem:[%s1406_s1 + $0x180] sm:$0xff] }
  0x37   :  { %512 = vst.msk [vmem:[%s1407_s3 + $0x138] sm:$0xff] %vm472_vm0, %v447_v19  ;;  %v191_v29 = vmul.f32 %v630_v21, %v725_v0  ;;  %v638_v31 = vunpack.c.h.bf16 %v693_v17  ;;  %v256_v32 = vadd.f32 %v736_v5, %v188_v22  ;;  %v192_v36 = vmul.f32 %v633_v24, %v725_v0  ;;  %v329_v17 = vld [vmem:[%s1406_s1 + $0x188] sm:$0xff]  ;;  %v330_v24 = vld [vmem:[%s1406_s1 + $0x190] sm:$0xff] }
  0x38   :  { %v257_v33 = vadd.f32 %v736_v5, %v189_v23  ;;  %v193_v37 = vmul.f32 %v634_v25, %v725_v0  ;;  %v258_v38 = vadd.f32 %v736_v5, %v190_v28  ;;  %v194_v42 = vmul.f32 %v637_v30, %v725_v0  ;;  %v331_v25 = vld [vmem:[%s1406_s1 + $0x198] sm:$0xff]  ;;  %v332_v30 = vld [vmem:[%s1406_s1 + $0x1a0] sm:$0xff] }
  0x39   :  { %v259_v39 = vadd.f32 %v736_v5, %v191_v29  ;;  %v195_v43 = vmul.f32 %v638_v31, %v725_v0  ;;  %v384_v44 = vadd.f32 %v320_v26, %v256_v32  ;;  %v260_v46 = vadd.f32 %v736_v5, %v192_v36  ;;  %v333_v31 = vld [vmem:[%s1406_s1 + $0x1a8] sm:$0xff] }
  0x3a   :  { %v385_v45 = vadd.f32 %v321_v27, %v257_v33  ;;  %v261_v47 = vadd.f32 %v736_v5, %v193_v37  ;;  %v386_v50 = vadd.f32 %v322_v34, %v258_v38  ;;  %v262_v52 = vadd.f32 %v736_v5, %v194_v42  ;;  %v334_v38 = vld [vmem:[%s1406_s1 + $0x1b0] sm:$0xff] }
  0x3b   :  { %v387_v51 = vadd.f32 %v323_v35, %v259_v39  ;;  %v263_v53 = vadd.f32 %v736_v5, %v195_v43  ;;  %v448_v55 = vmax.f32 %v384_v44, 0.0  ;;  %v388_v57 = vadd.f32 %v324_v40, %v260_v46  ;;  %v335_v39 = vld [vmem:[%s1406_s1 + $0x1b8] sm:$0xff]  ;;  %v698_v44 = vld [vmem:[%s1404_s0 + $0xe0] sm:$0xff]  }
  0x3c   :  { %v449_v56 = vmax.f32 %v385_v45, 0.0  ;;  %v389_v58 = vadd.f32 %v325_v41, %v261_v47  ;;  %v450_v60 = vmax.f32 %v386_v50, 0.0  ;;  %v390_v62 = vadd.f32 %v326_v48, %v262_v52 }
  0x3d   :  { %v451_v61 = vmax.f32 %v387_v51, 0.0  ;;  %v391_v63 = vadd.f32 %v327_v49, %v263_v53  ;;  %513 = vst.msk [vmem:[%s1407_s3 + $0x140] sm:$0xff] %vm472_vm0, %v448_v55  ;;  %v452_v2 = vmax.f32 %v388_v57, 0.0  ;;  %v641_v4 = vunpack.c.l.bf16 %v694_v54  ;;  %v699_v49 = vld [vmem:[%s1404_s0 + $0xe8] sm:$0xff]  }
  0x3e   :  { %514 = vst.msk [vmem:[%s1407_s3 + $0x148] sm:$0xff] %vm472_vm0, %v449_v56  ;;  %v453_v3 = vmax.f32 %v389_v58, 0.0  ;;  %v642_v6 = vunpack.c.h.bf16 %v694_v54  ;;  %515 = vst.msk [vmem:[%s1407_s3 + $0x150] sm:$0xff] %vm472_vm0, %v450_v60  ;;  %v454_v8 = vmax.f32 %v390_v62, 0.0  ;;  %v645_v10 = vunpack.c.l.bf16 %v695_v59  ;;  %v700_v54 = vld [vmem:[%s1404_s0 + $0xf0] sm:$0xff]  }
  0x3f   :  { %516 = vst.msk [vmem:[%s1407_s3 + $0x158] sm:$0xff] %vm472_vm0, %v451_v61  ;;  %v455_v9 = vmax.f32 %v391_v63, 0.0  ;;  %v646_v11 = vunpack.c.h.bf16 %v695_v59  ;;  %517 = vst.msk [vmem:[%s1407_s3 + $0x160] sm:$0xff] %vm472_vm0, %v452_v2  ;;  %v196_v12 = vmul.f32 %v641_v4, %v725_v0  ;;  %v649_v14 = vunpack.c.l.bf16 %v696_v1  ;;  %v701_v59 = vld [vmem:[%s1404_s0 + $0xf8] sm:$0xff]  }
  0x40   :  { %518 = vst.msk [vmem:[%s1407_s3 + $0x168] sm:$0xff] %vm472_vm0, %v453_v3  ;;  %v197_v13 = vmul.f32 %v642_v6, %v725_v0  ;;  %v650_v15 = vunpack.c.h.bf16 %v696_v1  ;;  %519 = vst.msk [vmem:[%s1407_s3 + $0x170] sm:$0xff] %vm472_vm0, %v454_v8  ;;  %v198_v18 = vmul.f32 %v645_v10, %v725_v0  ;;  %v653_v20 = vunpack.c.l.bf16 %v697_v7  ;;  %v336_v6 = vld [vmem:[%s1406_s1 + $0x1c0] sm:$0xff] }
  0x41   :  { %520 = vst.msk [vmem:[%s1407_s3 + $0x178] sm:$0xff] %vm472_vm0, %v455_v9  ;;  %v199_v19 = vmul.f32 %v646_v11, %v725_v0  ;;  %v654_v21 = vunpack.c.h.bf16 %v697_v7  ;;  %v264_v22 = vadd.f32 %v736_v5, %v196_v12  ;;  %v200_v26 = vmul.f32 %v649_v14, %v725_v0  ;;  %v337_v7 = vld [vmem:[%s1406_s1 + $0x1c8] sm:$0xff]  ;;  %v338_v14 = vld [vmem:[%s1406_s1 + $0x1d0] sm:$0xff] }
  0x42   :  { %v265_v23 = vadd.f32 %v736_v5, %v197_v13  ;;  %v201_v27 = vmul.f32 %v650_v15, %v725_v0  ;;  %v266_v28 = vadd.f32 %v736_v5, %v198_v18  ;;  %v202_v32 = vmul.f32 %v653_v20, %v725_v0  ;;  %v339_v15 = vld [vmem:[%s1406_s1 + $0x1d8] sm:$0xff]  ;;  %v340_v20 = vld [vmem:[%s1406_s1 + $0x1e0] sm:$0xff] }
  0x43   :  { %v267_v29 = vadd.f32 %v736_v5, %v199_v19  ;;  %v203_v33 = vmul.f32 %v654_v21, %v725_v0  ;;  %v392_v34 = vadd.f32 %v328_v16, %v264_v22  ;;  %v268_v36 = vadd.f32 %v736_v5, %v200_v26  ;;  %v341_v21 = vld [vmem:[%s1406_s1 + $0x1e8] sm:$0xff] }
  0x44   :  { %v393_v35 = vadd.f32 %v329_v17, %v265_v23  ;;  %v269_v37 = vadd.f32 %v736_v5, %v201_v27  ;;  %v394_v40 = vadd.f32 %v330_v24, %v266_v28  ;;  %v270_v42 = vadd.f32 %v736_v5, %v202_v32  ;;  %v342_v28 = vld [vmem:[%s1406_s1 + $0x1f0] sm:$0xff] }
  0x45   :  { %v395_v41 = vadd.f32 %v331_v25, %v267_v29  ;;  %v271_v43 = vadd.f32 %v736_v5, %v203_v33  ;;  %v456_v45 = vmax.f32 %v392_v34, 0.0  ;;  %v396_v47 = vadd.f32 %v332_v30, %v268_v36  ;;  %v343_v29 = vld [vmem:[%s1406_s1 + $0x1f8] sm:$0xff] }
  0x46   :  { %v457_v46 = vmax.f32 %v393_v35, 0.0  ;;  %v397_v48 = vadd.f32 %v333_v31, %v269_v37  ;;  %v458_v50 = vmax.f32 %v394_v40, 0.0  ;;  %v398_v52 = vadd.f32 %v334_v38, %v270_v42 }
  0x47   :  { %v459_v51 = vmax.f32 %v395_v41, 0.0  ;;  %v399_v53 = vadd.f32 %v335_v39, %v271_v43  ;;  %521 = vst.msk [vmem:[%s1407_s3 + $0x180] sm:$0xff] %vm472_vm0, %v456_v45  ;;  %v460_v55 = vmax.f32 %v396_v47, 0.0  ;;  %v657_v57 = vunpack.c.l.bf16 %v698_v44 }
  0x48   :  { %522 = vst.msk [vmem:[%s1407_s3 + $0x188] sm:$0xff] %vm472_vm0, %v457_v46  ;;  %v461_v56 = vmax.f32 %v397_v48, 0.0  ;;  %v658_v58 = vunpack.c.h.bf16 %v698_v44  ;;  %523 = vst.msk [vmem:[%s1407_s3 + $0x190] sm:$0xff] %vm472_vm0, %v458_v50  ;;  %v462_v60 = vmax.f32 %v398_v52, 0.0  ;;  %v661_v62 = vunpack.c.l.bf16 %v699_v49 }
  0x49   :  { %524 = vst.msk [vmem:[%s1407_s3 + $0x198] sm:$0xff] %vm472_vm0, %v459_v51  ;;  %v463_v61 = vmax.f32 %v399_v53, 0.0  ;;  %v662_v63 = vunpack.c.h.bf16 %v699_v49  ;;  %525 = vst.msk [vmem:[%s1407_s3 + $0x1a0] sm:$0xff] %vm472_vm0, %v460_v55  ;;  %v204_v1 = vmul.f32 %v657_v57, %v725_v0  ;;  %v665_v3 = vunpack.c.l.bf16 %v700_v54 }
  0x4a   :  { %526 = vst.msk [vmem:[%s1407_s3 + $0x1a8] sm:$0xff] %vm472_vm0, %v461_v56  ;;  %v205_v2 = vmul.f32 %v658_v58, %v725_v0  ;;  %v666_v4 = vunpack.c.h.bf16 %v700_v54  ;;  %527 = vst.msk [vmem:[%s1407_s3 + $0x1b0] sm:$0xff] %vm472_vm0, %v462_v60  ;;  %v206_v8 = vmul.f32 %v661_v62, %v725_v0  ;;  %v669_v10 = vunpack.c.l.bf16 %v701_v59 }
  0x4b   :  { %528 = vst.msk [vmem:[%s1407_s3 + $0x1b8] sm:$0xff] %vm472_vm0, %v463_v61  ;;  %v207_v9 = vmul.f32 %v662_v63, %v725_v0  ;;  %v670_v11 = vunpack.c.h.bf16 %v701_v59  ;;  %v272_v12 = vadd.f32 %v736_v5, %v204_v1  ;;  %v208_v16 = vmul.f32 %v665_v3, %v725_v0 }
  0x4c   :  { %v273_v13 = vadd.f32 %v736_v5, %v205_v2  ;;  %v209_v17 = vmul.f32 %v666_v4, %v725_v0  ;;  %v274_v18 = vadd.f32 %v736_v5, %v206_v8  ;;  %v210_v22 = vmul.f32 %v669_v10, %v725_v0 }
  0x4d   :  { %v275_v19 = vadd.f32 %v736_v5, %v207_v9  ;;  %v211_v23 = vmul.f32 %v670_v11, %v725_v0  ;;  %v400_v24 = vadd.f32 %v336_v6, %v272_v12  ;;  %v276_v26 = vadd.f32 %v736_v5, %v208_v16 }
  0x4e   :  { %v401_v25 = vadd.f32 %v337_v7, %v273_v13  ;;  %v277_v27 = vadd.f32 %v736_v5, %v209_v17  ;;  %v402_v30 = vadd.f32 %v338_v14, %v274_v18  ;;  %v278_v32 = vadd.f32 %v736_v5, %v210_v22 }
  0x4f   :  { %v403_v31 = vadd.f32 %v339_v15, %v275_v19  ;;  %v279_v0 = vadd.f32 %v736_v5, %v211_v23  ;;  %v464_v33 = vmax.f32 %v400_v24, 0.0  ;;  %v404_v35 = vadd.f32 %v340_v20, %v276_v26 }
  0x50   :  { %v465_v34 = vmax.f32 %v401_v25, 0.0  ;;  %v405_v36 = vadd.f32 %v341_v21, %v277_v27  ;;  %v466_v37 = vmax.f32 %v402_v30, 0.0  ;;  %v406_v39 = vadd.f32 %v342_v28, %v278_v32 }
  0x51   :  { %v467_v38 = vmax.f32 %v403_v31, 0.0  ;;  %v407_v40 = vadd.f32 %v343_v29, %v279_v0  ;;  %529 = vst.msk [vmem:[%s1407_s3 + $0x1c0] sm:$0xff] %vm472_vm0, %v464_v33  ;;  %v468_v41 = vmax.f32 %v404_v35, 0.0 }
  0x52   :  { %530 = vst.msk [vmem:[%s1407_s3 + $0x1c8] sm:$0xff] %vm472_vm0, %v465_v34  ;;  %v469_v5 = vmax.f32 %v405_v36, 0.0  ;;  %531 = vst.msk [vmem:[%s1407_s3 + $0x1d0] sm:$0xff] %vm472_vm0, %v466_v37  ;;  %v470_v42 = vmax.f32 %v406_v39, 0.0 }
  0x53   :  { %532 = vst.msk [vmem:[%s1407_s3 + $0x1d8] sm:$0xff] %vm472_vm0, %v467_v38  ;;  %v471_v43 = vmax.f32 %v407_v40, 0.0  ;;  %533 = vst.msk [vmem:[%s1407_s3 + $0x1e0] sm:$0xff] %vm472_vm0, %v468_v41 }
  0x54   :  { %534 = vst.msk [vmem:[%s1407_s3 + $0x1e8] sm:$0xff] %vm472_vm0, %v469_v5  ;;  %535 = vst.msk [vmem:[%s1407_s3 + $0x1f0] sm:$0xff] %vm472_vm0, %v470_v42 }
  0x55   :  { %536 = vst.msk [vmem:[%s1407_s3 + $0x1f8] sm:$0xff] %vm472_vm0, %v471_v43 }

// kernel: basic_block.3
= control target key start
LH: loop header
LB: loop body
LE: loop exit
PB: predicated region body
PF: predicated region fallthrough
CT: control target
= control target key end

     0   :  { %s7198_s12 = smov 0   ;;  %s9206_s0 = inlined_call_operand.vmem [shape: f32[2,16,16,4], index: 0, kind: input, shape index: {}]   ;;  %s9207_s1 = inlined_call_operand.vmem [shape: bf16[36,4], index: 1, kind: input, shape index: {}]   ;;  %s9208_s2 = inlined_call_operand.vmem [shape: bf16[2,16,16,4], index: 2, kind: output, shape index: {0}]   ;;  %s9209_s3 = inlined_call_operand.vmem [shape: f32[2,2,4], index: 3, kind: output, shape index: {1}]  }
   0x1 LB: > { %s5856_s13 = sadd.s32 4294967295, %s7175_s12   ;;  %p5860_p0 = scmp.ge.s32.totalorder %s7175_s12, 1  ;;  %s7175_s12 = sphi %s7198_s12, %s14_s12  }
   0x2   : > { %p140_p1 = scmp.lt.s32.totalorder %s7175_s12, 3 }
   0x4   : > { %p141_p2 = pnand %p5860_p0, %p140_p1 }
   0x6   : > { %144 = sbr.rel (%p141_p2) target bundleno = 683 (0x2ab), region = 28 }
   0xd   : > { %v7074_v0 = vld [vmem:[%s9207_s1] ss:$0 sps:$4 sm:$0xcc]   ;;  %vm1408_vm0 = vcmask 1041408   ;;  %v3114_v1 = vld [vmem:[%s9207_s1 + $0x8] sm:$0x3] }
   0xe   : > { %vm183_vm1 = vcmask 27648   ;;  %vm186_vm2 = vcmask 24576   ;;  %v1358_v2 = vrot.slane %v7074_v0, 2  ;;  %7059 = vmatprep.subr.msk.bf16.mxu0 %vm1408_vm0, %v3114_v1  ;;  %v7214_v3 = vsel %vm1408_vm0, %v3114_v1, 0  ;;  %p168_p3 = scmp.lt.s32.totalorder %s5856_s13, 1 }
   0xf   : > { %9227 = vst [vmem:[#allocation3_spill] sm:$0xff] %v7214_v3  ;;  %v7177_v4 = vmov 0   ;;  %vm193_vm3 = vsmask.f32 256  ;;  %vm249_vm4 = vsmask.f32 7938  ;;  %6628 = vmatpush3.bf16.msra.mxu0 %v7214_v3 }
  0x10   : > { %184 = vst.msk [vmem:[#allocation2] sm:$0xf] %vm183_vm1, %v7177_v4  ;;  %185 = vst.msk [vmem:[#allocation2 + $0x4] sm:$0xf] %vm183_vm1, %v7177_v4  ;;  %7055 = vmatprep.subr.msk.bf16.mxu1 %vm1408_vm0, %v1358_v2  ;;  %v1410_v6 = vsel %vm1408_vm0, %v1358_v2, 0  ;;  %v9230_v7 = vmov 0 }
  0x11   : > { %187 = vst.msk [vmem:[#allocation2 + $0x8] sm:$0x1] %vm186_vm2, %v7177_v4  ;;  %191 = vst.msk [vmem:[#allocation2 + $0xd4] sm:$0x1] %vm186_vm2, %v7177_v4  ;;  %v198_v8 = vld [vmem:[#allocation2 + $0xc] sm:$0x1]  ;;  %6492 = vmatpush3.bf16.msra.mxu1 %v1410_v6 }
  0x12   : > { %189 = vst.msk [vmem:[#allocation2 + $0xcc] sm:$0xf] %vm183_vm1, %v7177_v4  ;;  %190 = vst.msk [vmem:[#allocation2 + $0xd0] sm:$0xf] %vm183_vm1, %v7177_v4  ;;  %v254_v9 = vld [vmem:[#allocation2 + $0x14] sm:$0x1] }
  0x13   : > { %vm7225_vm5 = vmand %vm186_vm2, %vm193_vm3  ;;  %s9303_s13 = smov (!%p168_p3, %s5856_s13), 1  ;;  %v7250_v12 = vld [vmem:[%s9207_s1] sm:$0x3]  ;;  %v7258_v13 = vld [vmem:[%s9207_s1 + $0x8] ss:$0 sps:$4 sm:$0xcc]  }
  0x14   : > { %vm7235_vm6 = vmand %vm186_vm2, %vm249_vm4  ;;  %v199_v10 = vsel %vm7225_vm5, 0, %v198_v8  ;;  %s6272_s20 = sshll.u32 %s9303_s13, 8  ;;  %7056 = vmatprep.subr.msk.bf16.mxu1 %vm1408_vm0, %v7250_v12  ;;  %vm433_vm7 = vsmask.f32 4368  ;;  %v201_v14 = vld [vmem:[#allocation2 + $0x18] sm:$0x1] }
  0x15   : > { %v9231_v7 = vsel %vm7235_vm6, 4294967295, %v9230_v7  ;;  %v255_v11 = vsel %vm7235_vm6, 0, %v254_v9  ;;  %200 = vst [vmem:[#allocation2 + $0xc] sm:$0x1] %v199_v10  ;;  %s7263_s25 = scalar_lea.vmem %s9206_s0, %s6272_s20  ;;  %v257_v15 = vld [vmem:[#allocation2 + $0x20] sm:$0x1]  ;;  %vm7288_vm10 = vmand %vm183_vm1, %vm249_vm4 }
  0x16   : > { %9232 = vst [vmem:[#allocation4_spill] sm:$0xff] %v9231_v7  ;;  %256 = vst [vmem:[#allocation2 + $0x14] sm:$0x1] %v255_v11  ;;  %vm919_vm8 = vsmask.f32 3328  ;;  %v305_v23 = vld [vmem:[%s7263_s25] sm:$0xff] }
  0x17   : > { %v195_v16 = vld [vmem:[#allocation2] sm:$0x1]  ;;  %v871_v18 = vld [vmem:[#allocation2 + $0x4] sm:$0xf]  ;;  %v306_v24 = vld [vmem:[%s7263_s25 + $0x8] sm:$0xff]  ;;  %v6274_v25 = vpack.c.bf16 %v305_v23, %v305_v23  ;;  %v3635_v27 = vrot.slane %v7258_v13, 2 }
  0x18   : > { %v251_v17 = vld [vmem:[#allocation2 + $0x8] sm:$0x1]  ;;  %v196_v19 = vsel %vm7225_vm5, 0, %v195_v16  ;;  %v932_v21 = vshll.u32 %v871_v18, 16  ;;  %v936_v22 = vshrl.u32 %v871_v18, 16  ;;  %v6275_v26 = vpack.c.bf16 %v306_v24, %v306_v24  ;;  %v307_v29 = vld [vmem:[%s7263_s25 + $0x10] sm:$0xff]  ;;  %vm7297_vm11 = vmor %vm193_vm3, %vm433_vm7 }
  0x19   : > { %v252_v20 = vsel %vm7235_vm6, 0, %v251_v17  ;;  %197 = vst [vmem:[#allocation2] sm:$0x1] %v196_v19  ;;  %v202_v28 = vsel %vm7225_vm5, 0, %v201_v14  ;;  %v308_v30 = vld [vmem:[%s7263_s25 + $0x18] sm:$0xff]  ;;  %v258_v33 = vsel %vm7235_vm6, 0, %v257_v15  ;;  %v6276_v34 = vpack.c.bf16 %v307_v29, %v307_v29  ;;  %7061 = vmatprep.subr.msk.bf16.mxu0 %vm1408_vm0, %v3635_v27 }
  0x1a   : > { %253 = vst [vmem:[#allocation2 + $0x8] sm:$0x1] %v252_v20  ;;  %v7276_v31 = vrot.slane %v932_v21, 5  ;;  %v938_v32 = vrot.slane %v936_v22, 4  ;;  %203 = vst [vmem:[#allocation2 + $0x18] sm:$0x1] %v202_v28  ;;  %v6277_v41 = vpack.c.bf16 %v308_v30, %v308_v30 }
  0x1b   : > { %v204_v35 = vld [vmem:[#allocation2 + $0x24] sm:$0x1]  ;;  %v436_v36 = vshrl.u32 %v6274_v25, 16  ;;  %v439_v37 = vshll.u32 %v6274_v25, 16  ;;  %v444_v38 = vshrl.u32 %v6275_v26, 16  ;;  %v447_v39 = vshll.u32 %v6275_v26, 16 }
  0x1c   : > { %259 = vst [vmem:[#allocation2 + $0x20] sm:$0x1] %v258_v33  ;;  %v939_v40 = vor.u32 %v938_v32, %v7276_v31  ;;  %v453_v42 = vshrl.u32 %v6276_v34, 16  ;;  %v456_v43 = vshll.u32 %v6276_v34, 16  ;;  %vm920_vm9 = vsmask.f32 7440 }
  0x1d   : > { %v438_v44 = vrot.slane %v436_v36, 7  ;;  %v446_v45 = vrot.slane %v444_v38, 7  ;;  %v205_v46 = vsel %vm7225_vm5, 0, %v204_v35  ;;  %v461_v50 = vshrl.u32 %v6277_v41, 16  ;;  %v309_v52 = vld [vmem:[%s7263_s25 + $0x20] sm:$0xff]  ;;  %v310_v9 = vld [vmem:[%s7263_s25 + $0x28] sm:$0xff]  ;;  %vm7304_vm13 = vmor %vm919_vm8, %vm920_vm9 }
  0x1e   : > { %v7292_v48 = vrot.slane %v939_v40, 4  ;;  %v455_v49 = vrot.slane %v453_v42, 7  ;;  %v464_v51 = vshll.u32 %v6277_v41, 16  ;;  %206 = vst [vmem:[#allocation2 + $0x24] sm:$0x1] %v205_v46  ;;  %vm1359_vm12 = vcmask 31744  }
  0x1f   : > { %v441_v54 = vor.u32 %v439_v37, %v438_v44  ;;  %v442_v55 = vrot.slane %v438_v44, 4  ;;  %v449_v56 = vor.u32 %v447_v39, %v446_v45  ;;  %v451_v57 = vrot.slane %v446_v45, 4  ;;  %v758_v58 = vld [vmem:[#allocation2 + $0xc] sm:$0xf]  ;;  %v762_v59 = vld [vmem:[#allocation2 + $0x14] sm:$0x1] }
  0x20   : > { %v260_v60 = vld [vmem:[#allocation2 + $0x2c] sm:$0x1]  ;;  %v870_v61 = vld [vmem:[#allocation2] sm:$0xf]  ;;  %v458_v63 = vor.u32 %v456_v43, %v455_v49  ;;  %v459_v0 = vrot.slane %v455_v49, 4  ;;  %v463_v1 = vrot.slane %v461_v50, 7  ;;  %v6278_v10 = vpack.c.bf16 %v309_v52, %v309_v52 }
  0x21   : > { %v903_v62 = vld [vmem:[#allocation2 + $0x8] sm:$0x1]  ;;  %v923_v2 = vshrl.u32 %v870_v61, 16  ;;  %v926_v4 = vshll.u32 %v870_v61, 16  ;;  %v765_v8 = vld [vmem:[#allocation2 + $0x18] sm:$0xf]  ;;  %v450_v14 = vsel %vm7297_vm11, %v442_v55, %v449_v56  ;;  %v759_v15 = vsel %vm7288_vm10, %v441_v54, %v758_v58 }
  0x22   : > { %v942_v6 = vshll.u32 %v903_v62, 16  ;;  %v763_v16 = vsel %vm7225_vm5, %v451_v57, %v762_v59  ;;  %v466_v17 = vor.u32 %v464_v51, %v463_v1  ;;  %760 = vst [vmem:[#allocation2 + $0xc] sm:$0xf] %v759_v15  ;;  %761 = vst.msk [vmem:[#allocation2 + $0x10] sm:$0xf] %vm183_vm1, %v450_v14  ;;  %v468_v22 = vrot.slane %v463_v1, 4 }
  0x23   : > { %v769_v18 = vld [vmem:[#allocation2 + $0x20] sm:$0x1]  ;;  %v925_v19 = vrot.slane %v923_v2, 4  ;;  %v928_v20 = vrot.slane %v926_v4, 5  ;;  %764 = vst [vmem:[#allocation2 + $0x14] sm:$0x1] %v763_v16  ;;  %v766_v25 = vsel %vm7288_vm10, %v458_v63, %v765_v8  ;;  %v6279_v28 = vpack.c.bf16 %v310_v9, %v310_v9 }
  0x24   : > { %v944_v21 = vrot.slane %v942_v6, 5  ;;  %v207_v23 = vld [vmem:[#allocation2 + $0x30] sm:$0x1]  ;;  %v467_v24 = vsel %vm7297_vm11, %v459_v0, %v466_v17  ;;  %v261_v26 = vsel %vm7235_vm6, 0, %v260_v60  ;;  %v263_v29 = vld [vmem:[#allocation2 + $0x38] sm:$0x1]  ;;  %v770_v34 = vsel %vm7225_vm5, %v468_v22, %v769_v18 }
  0x25   : > { %v311_v30 = vld [vmem:[%s7263_s25 + $0x30] sm:$0xff]  ;;  %v929_v32 = vor.u32 %v928_v20, %v925_v19  ;;  %767 = vst [vmem:[#allocation2 + $0x18] sm:$0xf] %v766_v25  ;;  %768 = vst.msk [vmem:[#allocation2 + $0x1c] sm:$0xf] %vm183_vm1, %v467_v24  ;;  %v470_v35 = vshrl.u32 %v6278_v10, 16 }
  0x26   : > { %v945_v33 = vsel %vm7304_vm13, %v7292_v48, %v944_v21  ;;  %262 = vst [vmem:[#allocation2 + $0x2c] sm:$0x1] %v261_v26  ;;  %v210_v36 = vld [vmem:[#allocation2 + $0x3c] sm:$0x1]  ;;  %v266_v37 = vld [vmem:[#allocation2 + $0x44] sm:$0x1]  ;;  %v7335_v46 = vpack.c.bf16 %v311_v30, %v311_v30 }
  0x27   : > { %771 = vst [vmem:[#allocation2 + $0x20] sm:$0x1] %v770_v34  ;;  %v473_v38 = vshll.u32 %v6278_v10, 16  ;;  %v478_v39 = vshrl.u32 %v6279_v28, 16  ;;  %v481_v40 = vshll.u32 %v6279_v28, 16  ;;  %v208_v41 = vsel %vm7225_vm5, 0, %v207_v23 }
  0x28   : > { %v930_v42 = vrot.slane %v929_v32, 4  ;;  %v7330_v43 = vrot.slane %v470_v35, 7  ;;  %209 = vst [vmem:[#allocation2 + $0x30] sm:$0x1] %v208_v41  ;;  %v264_v44 = vsel %vm7235_vm6, 0, %v263_v29  ;;  %v312_v45 = vld [vmem:[%s7263_s25 + $0x38] sm:$0xff] }
  0x29   : > { %v7339_v48 = vsel %vm1408_vm0, %v7250_v12, 0  ;;  %v7341_v49 = vrot.slane %v478_v39, 7  ;;  %265 = vst [vmem:[#allocation2 + $0x38] sm:$0x1] %v264_v44  ;;  %v211_v50 = vsel %vm7225_vm5, 0, %v210_v36  ;;  %v267_v51 = vsel %vm7235_vm6, 0, %v266_v37 }
  0x2a   : > { %v935_v52 = vsel %vm7304_vm13, %v930_v42, %v7276_v31  ;;  %v7353_v54 = vsel %vm1408_vm0, %v3635_v27, 0  ;;  %v476_v12 = vrot.slane %v7330_v43, 4  ;;  %v487_v55 = vshrl.u32 %v7335_v46, 16  ;;  %212 = vst [vmem:[#allocation2 + $0x3c] sm:$0x1] %v211_v50  ;;  %v313_v56 = vld [vmem:[%s7263_s25 + $0x40] sm:$0xff] }
  0x2b   : > { %268 = vst [vmem:[#allocation2 + $0x44] sm:$0x1] %v267_v51  ;;  %v314_v57 = vld [vmem:[%s7263_s25 + $0x48] sm:$0xff]  ;;  %v5898_v58 = vcombine.low %v935_v52, %v945_v33  ;;  %v873_v60 = vld [vmem:[#allocation2 + $0x10] sm:$0xf]  ;;  %v7360_v62 = vor.u32 %v473_v38, %v7330_v43  ;;  %v7363_v13 = vor.u32 %v481_v40, %v7341_v49  ;;  %v7365_v27 = vpack.c.bf16 %v312_v45, %v312_v45  ;;  %s6273_s15 = sshll.u32 %s9303_s13, 7 }
  0x2c   : > { %v872_v59 = vld [vmem:[#allocation2 + $0xc] sm:$0xf]  ;;  %v904_v61 = vld [vmem:[#allocation2 + $0x14] sm:$0x1]  ;;  %v956_v0 = vshll.u32 %v873_v60, 16  ;;  %v960_v1 = vshrl.u32 %v873_v60, 16  ;;  %v7370_v9 = vpack.c.bf16 %v313_v56, %v313_v56  ;;  %v7372_v10 = vpack.c.bf16 %v314_v57, %v314_v57  ;;  %s9061_s18 = scalar_lea.vmem %s9208_s2, %s6273_s15 }
  0x2d   : > { %v947_v31 = vshrl.u32 %v872_v59, 16  ;;  %v950_v63 = vshll.u32 %v872_v59, 16  ;;  %v2682_v2 = vld [vmem:[#allocation2 + $0xc] sm:$0xf]  ;;  %6493 = vmatprep.mubr.msk.bf16.mxu1 %vm1359_vm12, %v5898_v58  ;;  %v966_v4 = vshll.u32 %v904_v61, 16  ;;  %vm1913_vm14 = vcmask 1042432  }
  0x2e   : > { %v7368_v6 = vld [vmem:[#allocation2 + $0x10] sm:$0xf]  ;;  %v2731_v8 = vshrl.u32 %v2682_v2, 16  ;;  %v958_v16 = vrot.slane %v956_v0, 5  ;;  %v962_v17 = vrot.slane %v960_v1, 4  ;;  %v2734_v21 = vshll.u32 %v2682_v2, 16 }
  0x2f   : > { %v949_v14 = vrot.slane %v947_v31, 4  ;;  %v952_v15 = vrot.slane %v950_v63, 5  ;;  %v7374_v18 = vld [vmem:[#allocation2 + $0x14] sm:$0x1]  ;;  %v968_v19 = vrot.slane %v966_v4, 5  ;;  %v2740_v22 = vshll.u32 %v7368_v6, 16 }
  0x30   : > { %v2733_v20 = vrot.slane %v2731_v8, 4  ;;  %v963_v24 = vor.u32 %v962_v17, %v958_v16  ;;  %v2744_v25 = vshrl.u32 %v7368_v6, 16  ;;  %v2750_v26 = vshll.u32 %v7374_v18, 16  ;;  %v2685_v28 = vld [vmem:[#allocation2 + $0x18] sm:$0xf]  ;;  %s5865_s19 = sshll.u32 %s9303_s13, 1 }
  0x31   : > { %v953_v23 = vor.u32 %v952_v15, %v949_v14  ;;  %v7379_v29 = vld [vmem:[#allocation2 + $0x1c] sm:$0xf]  ;;  %v2736_v30 = vrot.slane %v2734_v21, 5  ;;  %v2742_v32 = vrot.slane %v2740_v22, 5  ;;  %v3473_v33 = vrot.slane %v7368_v6, 5  ;;  %s181_s22 = scalar_lea.vmem %s9209_s3, %s5865_s19 }
  0x32   : > { %v3476_v34 = vrot.slane %v7374_v18, 5  ;;  %v964_v36 = vrot.slane %v963_v24, 4  ;;  %v2746_v37 = vrot.slane %v2744_v25, 4  ;;  %v2752_v38 = vrot.slane %v2750_v26, 5  ;;  %v7383_v40 = vld [vmem:[#allocation2 + $0x20] sm:$0x1] }
  0x33   : > { %v954_v35 = vrot.slane %v953_v23, 4  ;;  %v2737_v39 = vor.u32 %v2736_v30, %v2733_v20  ;;  %v2755_v41 = vshrl.u32 %v2685_v28, 16  ;;  %v2758_v42 = vshll.u32 %v2685_v28, 16  ;;  %v874_v60 = vld [vmem:[#allocation2 + $0x18] sm:$0xf] }
  0x34   : > { %v2764_v44 = vshll.u32 %v7379_v29, 16  ;;  %v969_v50 = vsel %vm7304_vm13, %v964_v36, %v968_v19  ;;  %v2747_v51 = vor.u32 %v2746_v37, %v2742_v32  ;;  %v2768_v52 = vshrl.u32 %v7379_v29, 16  ;;  %v875_v14 = vld [vmem:[#allocation2 + $0x1c] sm:$0xf]  ;;  %v905_v19 = vld [vmem:[#allocation2 + $0x20] sm:$0x1] }
  0x35   : > { %v959_v45 = vsel %vm7304_vm13, %v954_v35, %v958_v16  ;;  %v2738_v57 = vrot.slane %v2737_v39, 4  ;;  %v2757_v58 = vrot.slane %v2755_v41, 4  ;;  %v2760_v59 = vrot.slane %v2758_v42, 5 }
  0x36   : > { %v5899_v56 = vcombine.low %v959_v45, %v969_v50  ;;  %v2748_v61 = vrot.slane %v2747_v51, 4  ;;  %v2766_v31 = vrot.slane %v2764_v44, 5  ;;  %v2770_v63 = vrot.slane %v2768_v52, 4 }
  0x37   : > { %v2774_v0 = vshll.u32 %v7383_v40, 16  ;;  %v2743_v1 = vsel %vm7304_vm13, %v2738_v57, %v2742_v32  ;;  %v2761_v2 = vor.u32 %v2760_v59, %v2757_v58  ;;  %v3480_v4 = vrot.slane %v7379_v29, 5  ;;  %v772_v32 = vld [vmem:[#allocation2 + $0x24] sm:$0xf]  ;;  %v7427_v57 = vld [vmem:[%s9207_s1 + $0xc] sm:$0x3] }
  0x38   : > { %6494 = vmatmul.mubr.msk.bf16.vlgmr.msra.gmra.mrb[0].mxu1 %vm1359_vm12, %v5899_v56  ;;  %v3483_v8 = vrot.slane %v7383_v40, 5  ;;  %v2753_v15 = vsel %vm7304_vm13, %v2748_v61, %v2752_v38  ;;  %v2771_v16 = vor.u32 %v2770_v63, %v2766_v31  ;;  %v971_v20 = vshrl.u32 %v874_v60, 16  ;;  %v776_v38 = vld [vmem:[#allocation2 + $0x2c] sm:$0x1] }
  0x39   : > { %6526 = vmatpush3.bf16.msra.mxu1 %v7339_v48  ;;  %v2776_v17 = vrot.slane %v2774_v0, 5  ;;  %v6044_v21 = vcombine.low %v2743_v1, %v2753_v15  ;;  %v2762_v22 = vrot.slane %v2761_v2, 4  ;;  %v7402_v23 = vrot.slane %v3480_v4, 4  ;;  %v783_v15 = vld [vmem:[#allocation2 + $0x38] sm:$0x1] }
  0x3a   : > { %v974_v24 = vshll.u32 %v874_v60, 16  ;;  %v2772_v25 = vrot.slane %v2771_v16, 4  ;;  %v973_v26 = vrot.slane %v971_v20, 4  ;;  %v980_v28 = vshll.u32 %v875_v14, 16  ;;  %v779_v60 = vld [vmem:[#allocation2 + $0x30] sm:$0xf] }
  0x3b   : > { %v984_v30 = vshrl.u32 %v875_v14, 16  ;;  %6629 = vmatprep.mubr.msk.bf16.mxu0 %vm1359_vm12, %v6044_v21  ;;  %v2767_v48 = vsel %vm7304_vm13, %v2762_v22, %v2766_v31  ;;  %v990_v36 = vshll.u32 %v905_v19, 16  ;;  %v484_v37 = vsel %vm7297_vm11, %v476_v12, %v7363_v13 }
  0x3c   : > { %v976_v35 = vrot.slane %v974_v24, 5  ;;  %v2777_v39 = vsel %vm7304_vm13, %v2772_v25, %v2776_v17  ;;  %v982_v41 = vrot.slane %v980_v28, 5  ;;  %v485_v44 = vrot.slane %v7341_v49, 4  ;;  %775 = vst.msk [vmem:[#allocation2 + $0x28] sm:$0xf] %vm183_vm1, %v484_v37 }
  0x3d   : > { %v986_v42 = vrot.slane %v984_v30, 4  ;;  %v6045_v45 = vcombine.low %v2767_v48, %v2777_v39  ;;  %v992_v51 = vrot.slane %v990_v36, 5  ;;  %v773_v43 = vsel %vm7288_vm10, %v7360_v62, %v772_v32  ;;  %v213_v49 = vld [vmem:[#allocation2 + $0x48] sm:$0x1] }
  0x3e   : > { %v977_v50 = vor.u32 %v976_v35, %v973_v26  ;;  %774 = vst [vmem:[#allocation2 + $0x24] sm:$0xf] %v773_v43  ;;  %v777_v12 = vsel %vm7225_vm5, %v485_v44, %v776_v38  ;;  %v489_v13 = vrot.slane %v487_v55, 7  ;;  %v490_v56 = vshll.u32 %v7335_v46, 16 }
  0x3f   : > { %v987_v52 = vor.u32 %v986_v42, %v982_v41  ;;  %6630 = vmatmul.mubr.msk.bf16.vlgmr.msra.gmra.mrb[0].mxu0 %vm1359_vm12, %v6045_v45  ;;  %778 = vst [vmem:[#allocation2 + $0x2c] sm:$0x1] %v777_v12  ;;  %v495_v62 = vshrl.u32 %v7365_v27, 16  ;;  %v498_v59 = vshll.u32 %v7365_v27, 16  ;;  %v504_v61 = vshrl.u32 %v7370_v9, 16 }
  0x40   : > { %v978_v58 = vrot.slane %v977_v50, 4  ;;  %6662 = vmatpush3.bf16.msra.mxu0 %v7353_v54  ;;  %v492_v55 = vor.u32 %v490_v56, %v489_v13  ;;  %v493_v31 = vrot.slane %v489_v13, 4  ;;  %v507_v63 = vshll.u32 %v7370_v9, 16 }
  0x41   : > { %v988_v46 = vrot.slane %v987_v52, 4  ;;  %v497_v1 = vrot.slane %v495_v62, 7  ;;  %v7437_v2 = vrot.slane %v504_v61, 7  ;;  %v512_v14 = vshrl.u32 %v7372_v10, 16  ;;  %7062 = vmatprep.subr.msk.bf16.mxu0 %vm1408_vm0, %v7427_v57 }
  0x42   : > { %v983_v0 = vsel %vm7304_vm13, %v978_v58, %v982_v41  ;;  %v780_v54 = vsel %vm7288_vm10, %v492_v55, %v779_v60  ;;  %v515_v9 = vshll.u32 %v7372_v10, 16  ;;  %v214_v16 = vsel %vm7225_vm5, 0, %v213_v49  ;;  %v786_v58 = vld [vmem:[#allocation2 + $0x3c] sm:$0xf] }
  0x43   : > { %v993_v27 = vsel %vm7304_vm13, %v988_v46, %v992_v51  ;;  %v877_v19 = vld [vmem:[#allocation2 + $0x28] sm:$0xf]  ;;  %v500_v21 = vor.u32 %v498_v59, %v497_v1  ;;  %v502_v22 = vrot.slane %v497_v1, 4  ;;  %781 = vst [vmem:[#allocation2 + $0x30] sm:$0xf] %v780_v54  ;;  %v509_v24 = vor.u32 %v507_v63, %v7437_v2 }
  0x44   : > { %v5900_v17 = vcombine.low %v983_v0, %v993_v27  ;;  %v2689_v20 = vld [vmem:[#allocation2 + $0x28] sm:$0xf]  ;;  %215 = vst [vmem:[#allocation2 + $0x48] sm:$0x1] %v214_v16  ;;  %v1004_v25 = vshll.u32 %v877_v19, 16  ;;  %v1008_v26 = vshrl.u32 %v877_v19, 16 }
  0x45   : > { %v2788_v28 = vshll.u32 %v2689_v20, 16  ;;  %v2792_v30 = vshrl.u32 %v2689_v20, 16  ;;  %v876_v32 = vld [vmem:[#allocation2 + $0x24] sm:$0xf]  ;;  %v501_v48 = vsel %vm7297_vm11, %v493_v31, %v500_v21  ;;  %v784_v35 = vsel %vm7225_vm5, %v502_v22, %v783_v15 }
  0x46   : > { %6497 = vmatprep.mubr.msk.bf16.mxu1 %vm1359_vm12, %v5900_v17  ;;  %v2688_v10 = vld [vmem:[#allocation2 + $0x24] sm:$0xf]  ;;  %v510_v36 = vrot.slane %v7437_v2, 4  ;;  %v7456_v37 = vrot.slane %v512_v14, 7  ;;  %v906_v38 = vld [vmem:[#allocation2 + $0x2c] sm:$0x1] }
  0x47   : > { %v995_v39 = vshrl.u32 %v876_v32, 16  ;;  %v998_v41 = vshll.u32 %v876_v32, 16  ;;  %v1006_v42 = vrot.slane %v1004_v25, 5  ;;  %v1010_v44 = vrot.slane %v1008_v26, 4  ;;  %782 = vst.msk [vmem:[#allocation2 + $0x34] sm:$0xf] %vm183_vm1, %v501_v48 }
  0x48   : > { %785 = vst [vmem:[#allocation2 + $0x38] sm:$0x1] %v784_v35  ;;  %v1014_v45 = vshll.u32 %v906_v38, 16  ;;  %v7459_v50 = vld [vmem:[#allocation2 + $0x2c] sm:$0x1]  ;;  %v2779_v51 = vshrl.u32 %v2688_v10, 16  ;;  %v517_v1 = vor.u32 %v515_v9, %v7456_v37  ;;  %v787_v9 = vsel %vm7288_vm10, %v509_v24, %v786_v58 }
  0x49   : > { %v2782_v43 = vshll.u32 %v2688_v10, 16  ;;  %v2790_v52 = vrot.slane %v2788_v28, 5  ;;  %v997_v12 = vrot.slane %v995_v39, 4  ;;  %v1000_v13 = vrot.slane %v998_v41, 5  ;;  %788 = vst [vmem:[#allocation2 + $0x3c] sm:$0xf] %v787_v9 }
  0x4a   : > { %v1011_v56 = vor.u32 %v1010_v44, %v1006_v42  ;;  %v2794_v49 = vrot.slane %v2792_v30, 4  ;;  %v1016_v62 = vrot.slane %v1014_v45, 5  ;;  %v2781_v59 = vrot.slane %v2779_v51, 4  ;;  %v2691_v63 = vld [vmem:[#allocation2 + $0x30] sm:$0xf] }
  0x4b   : > { %v2784_v60 = vrot.slane %v2782_v43, 5  ;;  %v2798_v61 = vshll.u32 %v7459_v50, 16  ;;  %v1001_v46 = vor.u32 %v1000_v13, %v997_v12  ;;  %v878_v0 = vld [vmem:[#allocation2 + $0x30] sm:$0xf]  ;;  %v2803_v27 = vshrl.u32 %v2691_v63, 16  ;;  %v316_v13 = vld [vmem:[%s7263_s25 + $0x58] sm:$0xff] }
  0x4c   : > { %v1012_v55 = vrot.slane %v1011_v56, 4  ;;  %v2795_v31 = vor.u32 %v2794_v49, %v2790_v52  ;;  %v2806_v54 = vshll.u32 %v2691_v63, 16  ;;  %v1019_v19 = vshrl.u32 %v878_v0, 16  ;;  %v315_v12 = vld [vmem:[%s7263_s25 + $0x50] sm:$0xff] }
  0x4d   : > { %v2785_v2 = vor.u32 %v2784_v60, %v2781_v59  ;;  %v2800_v14 = vrot.slane %v2798_v61, 5  ;;  %v1002_v15 = vrot.slane %v1001_v46, 4  ;;  %v2805_v25 = vrot.slane %v2803_v27, 4 }
  0x4e   : > { %v1017_v16 = vsel %vm7304_vm13, %v1012_v55, %v1016_v62  ;;  %v2796_v17 = vrot.slane %v2795_v31, 4  ;;  %v7465_v21 = vld [vmem:[#allocation2 + $0x34] sm:$0xf]  ;;  %v518_v26 = vsel %vm7297_vm11, %v510_v36, %v517_v1  ;;  %v2808_v32 = vrot.slane %v2806_v54, 5  ;;  %v269_v36 = vld [vmem:[#allocation2 + $0x50] sm:$0x1] }
  0x4f   : > { %v2786_v20 = vrot.slane %v2785_v2, 4  ;;  %v7467_v22 = vld [vmem:[#allocation2 + $0x38] sm:$0x1]  ;;  %v1007_v28 = vsel %vm7304_vm13, %v1002_v15, %v1006_v42  ;;  %v2812_v10 = vshll.u32 %v7465_v21, 16  ;;  %v879_v48 = vld [vmem:[#allocation2 + $0x34] sm:$0xf] }
  0x50   : > { %v2801_v30 = vsel %vm7304_vm13, %v2796_v17, %v2800_v14  ;;  %v907_v35 = vld [vmem:[#allocation2 + $0x38] sm:$0x1]  ;;  %789 = vst.msk [vmem:[#allocation2 + $0x40] sm:$0xf] %vm183_vm1, %v518_v26  ;;  %v5901_v38 = vcombine.low %v1007_v28, %v1017_v16  ;;  %v2816_v39 = vshrl.u32 %v7465_v21, 16  ;;  %v2822_v41 = vshll.u32 %v7467_v22, 16 }
  0x51   : > { %v2791_v24 = vsel %vm7304_vm13, %v2786_v20, %v2790_v52  ;;  %v790_v42 = vld [vmem:[#allocation2 + $0x44] sm:$0x1]  ;;  %v2809_v45 = vor.u32 %v2808_v32, %v2805_v25  ;;  %v2814_v51 = vrot.slane %v2812_v10, 5  ;;  %v1021_v43 = vrot.slane %v1019_v19, 4  ;;  %v880_v15 = vld [vmem:[#allocation2 + $0x3c] sm:$0xf] }
  0x52   : > { %v6046_v44 = vcombine.low %v2791_v24, %v2801_v30  ;;  %6498 = vmatmul.mubr.msk.bf16.gmra.mrb[4].mxu1 %vm1359_vm12, %v5901_v38  ;;  %v2818_v56 = vrot.slane %v2816_v39, 4  ;;  %v2824_v49 = vrot.slane %v2822_v41, 5  ;;  %v1022_v58 = vshll.u32 %v878_v0, 16  ;;  %v2694_v9 = vld [vmem:[#allocation2 + $0x3c] sm:$0xf]  ;;  %v317_v39 = vld [vmem:[%s7263_s25 + $0x60] sm:$0xff] }
  0x53   : > { %v1028_v62 = vshll.u32 %v879_v48, 16  ;;  %v2810_v52 = vrot.slane %v2809_v45, 4  ;;  %v1032_v59 = vshrl.u32 %v879_v48, 16  ;;  %v1038_v60 = vshll.u32 %v907_v35, 16  ;;  %v7122_v47 = vld [vmem:[#allocation2 + $0x3c] sm:$0xf] }
  0x54   : > { %6633 = vmatprep.mubr.msk.bf16.mxu0 %vm1359_vm12, %v6046_v44  ;;  %v519_v61 = vrot.slane %v7456_v37, 4  ;;  %v2819_v46 = vor.u32 %v2818_v56, %v2814_v51  ;;  %v1024_v55 = vrot.slane %v1022_v58, 5  ;;  %v270_v63 = vsel %vm7235_vm6, 0, %v269_v36 }
  0x55   : > { %v1030_v31 = vrot.slane %v1028_v62, 5  ;;  %v2815_v1 = vsel %vm7304_vm13, %v2810_v52, %v2814_v51  ;;  %v1034_v2 = vrot.slane %v1032_v59, 4  ;;  %v1040_v14 = vrot.slane %v1038_v60, 5  ;;  %271 = vst [vmem:[#allocation2 + $0x50] sm:$0x1] %v270_v63  ;;  %v318_v51 = vld [vmem:[%s7263_s25 + $0x68] sm:$0xff] }
  0x56   : > { %v791_v0 = vsel %vm7225_vm5, %v519_v61, %v790_v42  ;;  %v2820_v27 = vrot.slane %v2819_v46, 4  ;;  %v1025_v54 = vor.u32 %v1024_v55, %v1021_v43  ;;  %v7494_v16 = vpack.c.bf16 %v315_v12, %v315_v12 }
  0x57   : > { %792 = vst [vmem:[#allocation2 + $0x44] sm:$0x1] %v791_v0  ;;  %v881_v37 = vld [vmem:[#allocation2 + $0x40] sm:$0xf]  ;;  %v7496_v17 = vpack.c.bf16 %v316_v13, %v316_v13  ;;  %v1035_v19 = vor.u32 %v1034_v2, %v1030_v31  ;;  %v1043_v20 = vshrl.u32 %v880_v15, 16  ;;  %v1046_v25 = vshll.u32 %v880_v15, 16 }
  0x58   : > { %v1052_v26 = vshll.u32 %v881_v37, 16  ;;  %v2825_v28 = vsel %vm7304_vm13, %v2820_v27, %v2824_v49  ;;  %v1026_v30 = vrot.slane %v1025_v54, 4  ;;  %v1056_v32 = vshrl.u32 %v881_v37, 16  ;;  %v7500_v10 = vld [vmem:[#allocation2 + $0x40] sm:$0xf] }
  0x59   : > { %v2827_v48 = vshrl.u32 %v2694_v9, 16  ;;  %v6047_v35 = vcombine.low %v2815_v1, %v2825_v28  ;;  %v1036_v36 = vrot.slane %v1035_v19, 4  ;;  %v1045_v38 = vrot.slane %v1043_v20, 4  ;;  %v216_v0 = vld [vmem:[#allocation2 + $0x54] sm:$0x1] }
  0x5a   : > { %v1048_v24 = vrot.slane %v1046_v25, 5  ;;  %v1031_v41 = vsel %vm7304_vm13, %v1026_v30, %v1030_v31  ;;  %v1054_v42 = vrot.slane %v1052_v26, 5  ;;  %v1058_v44 = vrot.slane %v1056_v32, 4  ;;  %v272_v27 = vld [vmem:[#allocation2 + $0x5c] sm:$0x1] }
  0x5b   : > { %v2829_v45 = vrot.slane %v2827_v48, 4  ;;  %6634 = vmatmul.mubr.msk.bf16.gmra.mrb[4].mxu0 %vm1359_vm12, %v6047_v35  ;;  %v1041_v43 = vsel %vm7304_vm13, %v1036_v36, %v1040_v14  ;;  %v2830_v13 = vshll.u32 %v2694_v9, 16  ;;  %v2836_v56 = vshll.u32 %v7500_v10, 16  ;;  %v2028_v28 = vld [vmem:[%s9207_s1 + $0x4] sm:$0x3] }
  0x5c   : > { %v1049_v12 = vor.u32 %v1048_v24, %v1045_v38  ;;  %v5902_v49 = vcombine.low %v1031_v41, %v1041_v43  ;;  %v1059_v58 = vor.u32 %v1058_v44, %v1054_v42  ;;  %v2840_v62 = vshrl.u32 %v7500_v10, 16  ;;  %v793_v36 = vld [vmem:[#allocation2 + $0x48] sm:$0xf]  ;;  %v219_v38 = vld [vmem:[#allocation2 + $0x60] sm:$0x1]  ;;  %7057 = vmatprep.subr.msk.bf16.mxu1 %vm1408_vm0, %v2028_v28 }
  0x5d   : > { %v521_v52 = vshrl.u32 %v7494_v16, 16  ;;  %v2832_v46 = vrot.slane %v2830_v13, 5  ;;  %v7514_v55 = vpack.c.bf16 %v317_v39, %v317_v39  ;;  %v7516_v31 = vpack.c.bf16 %v318_v51, %v318_v51  ;;  %v275_v44 = vld [vmem:[#allocation2 + $0x68] sm:$0x1]  ;;  %v222_v13 = vld [vmem:[#allocation2 + $0x6c] sm:$0x1] }
  0x5e   : > { %v908_v59 = vld [vmem:[#allocation2 + $0x44] sm:$0x1]  ;;  %v1050_v60 = vrot.slane %v1049_v12, 4  ;;  %6501 = vmatprep.mubr.msk.bf16.mxu1 %vm1359_vm12, %v5902_v49  ;;  %v1060_v63 = vrot.slane %v1059_v58, 4  ;;  %v2838_v2 = vrot.slane %v2836_v56, 5  ;;  %v2842_v14 = vrot.slane %v2840_v62, 4 }
  0x5f   : > { %v7512_v61 = vld [vmem:[#allocation2 + $0x44] sm:$0x1]  ;;  %v1062_v1 = vshll.u32 %v908_v59, 16  ;;  %v2833_v15 = vor.u32 %v2832_v46, %v2829_v45  ;;  %v523_v19 = vrot.slane %v521_v52, 7  ;;  %v524_v26 = vshll.u32 %v7494_v16, 16  ;;  %v319_v45 = vld [vmem:[%s7263_s25 + $0x70] sm:$0xff] }
  0x60   : > { %v1055_v54 = vsel %vm7304_vm13, %v1050_v60, %v1054_v42  ;;  %v2846_v37 = vshll.u32 %v7512_v61, 16  ;;  %v2843_v25 = vor.u32 %v2842_v14, %v2838_v2  ;;  %v529_v9 = vshrl.u32 %v7496_v17, 16  ;;  %v797_v42 = vld [vmem:[#allocation2 + $0x50] sm:$0x1]  ;;  %v320_v52 = vld [vmem:[%s7263_s25 + $0x78] sm:$0xff] }
  0x61   : > { %v1064_v20 = vrot.slane %v1062_v1, 5  ;;  %v2834_v30 = vrot.slane %v2833_v15, 4  ;;  %v527_v48 = vrot.slane %v523_v19, 4  ;;  %v532_v35 = vshll.u32 %v7496_v17, 16  ;;  %v278_v1 = vld [vmem:[#allocation2 + $0x74] sm:$0x1] }
  0x62   : > { %v2848_v32 = vrot.slane %v2846_v37, 5  ;;  %v2844_v16 = vrot.slane %v2843_v25, 4  ;;  %v526_v39 = vor.u32 %v524_v26, %v523_v19  ;;  %v531_v41 = vrot.slane %v529_v9, 7  ;;  %v322_v26 = vld [vmem:[%s7263_s25 + $0x88] sm:$0xff]  ;;  %v8043_v53 = vld [vmem:[#allocation2 + $0x40] sm:$0xf] }
  0x63   : > { %v1065_v24 = vsel %vm7304_vm13, %v1060_v63, %v1064_v20  ;;  %v2839_v43 = vsel %vm7304_vm13, %v2834_v30, %v2838_v2  ;;  %v217_v17 = vsel %vm7225_vm5, 0, %v216_v0  ;;  %v273_v12 = vsel %vm7235_vm6, 0, %v272_v27  ;;  %v321_v2 = vld [vmem:[%s7263_s25 + $0x80] sm:$0xff] }
  0x64   : > { %v5903_v51 = vcombine.low %v1055_v54, %v1065_v24  ;;  %v2849_v56 = vsel %vm7304_vm13, %v2844_v16, %v2848_v32  ;;  %v534_v49 = vor.u32 %v532_v35, %v531_v41  ;;  %v536_v58 = vrot.slane %v531_v41, 4  ;;  %218 = vst [vmem:[#allocation2 + $0x54] sm:$0x1] %v217_v17  ;;  %274 = vst [vmem:[#allocation2 + $0x5c] sm:$0x1] %v273_v12  ;;  %v323_v16 = vld [vmem:[%s7263_s25 + $0x90] sm:$0xff] }
  0x65   : > { %v794_v62 = vsel %vm7288_vm10, %v526_v39, %v793_v36  ;;  %v6048_v59 = vcombine.low %v2839_v43, %v2849_v56  ;;  %v538_v60 = vshrl.u32 %v7514_v55, 16  ;;  %v541_v46 = vshll.u32 %v7514_v55, 16  ;;  %v324_v39 = vld [vmem:[%s7263_s25 + $0x98] sm:$0xff] }
  0x66   : > { %6502 = vmatmul.mubr.msk.bf16.gmra.mrb[8].mxu1 %vm1359_vm12, %v5903_v51  ;;  %795 = vst [vmem:[#allocation2 + $0x48] sm:$0xf] %v794_v62  ;;  %v546_v63 = vshrl.u32 %v7516_v31, 16  ;;  %v535_v14 = vsel %vm7297_vm11, %v527_v48, %v534_v49  ;;  %v798_v0 = vsel %vm7225_vm5, %v536_v58, %v797_v42  ;;  %v549_v27 = vshll.u32 %v7516_v31, 16 }
  0x67   : > { %v220_v54 = vsel %vm7225_vm5, 0, %v219_v38  ;;  %6637 = vmatprep.mubr.msk.bf16.mxu0 %vm1359_vm12, %v6048_v59  ;;  %796 = vst.msk [vmem:[#allocation2 + $0x4c] sm:$0xf] %vm183_vm1, %v535_v14  ;;  %799 = vst [vmem:[#allocation2 + $0x50] sm:$0x1] %v798_v0  ;;  %v540_v55 = vrot.slane %v538_v60, 7  ;;  %v6288_v19 = vpack.c.bf16 %v319_v45, %v319_v45  ;;  %v6289_v20 = vpack.c.bf16 %v320_v52, %v320_v52 }
  0x68   : > { %v548_v15 = vrot.slane %v546_v63, 7  ;;  %221 = vst [vmem:[#allocation2 + $0x60] sm:$0x1] %v220_v54  ;;  %v276_v37 = vsel %vm7235_vm6, 0, %v275_v44  ;;  %v223_v31 = vsel %vm7225_vm5, 0, %v222_v13  ;;  %v279_v25 = vsel %vm7235_vm6, 0, %v278_v1 }
  0x69   : > { %277 = vst [vmem:[#allocation2 + $0x68] sm:$0x1] %v276_v37  ;;  %v7564_v9 = vpack.c.bf16 %v321_v2, %v321_v2  ;;  %v543_v28 = vor.u32 %v541_v46, %v540_v55  ;;  %v544_v30 = vrot.slane %v540_v55, 4  ;;  %224 = vst [vmem:[#allocation2 + $0x6c] sm:$0x1] %v223_v31  ;;  %v555_v35 = vshrl.u32 %v6288_v19, 16 }
  0x6a   : > { %v551_v32 = vor.u32 %v549_v27, %v548_v15  ;;  %v553_v48 = vrot.slane %v548_v15, 4  ;;  %280 = vst [vmem:[#allocation2 + $0x74] sm:$0x1] %v279_v25  ;;  %v558_v36 = vshll.u32 %v6288_v19, 16  ;;  %v563_v38 = vshrl.u32 %v6289_v20, 16 }
  0x6b   : > { %v566_v24 = vshll.u32 %v6289_v20, 16  ;;  %v800_v42 = vld [vmem:[#allocation2 + $0x54] sm:$0xf]  ;;  %v804_v44 = vld [vmem:[#allocation2 + $0x5c] sm:$0x1]  ;;  %v7570_v45 = vpack.c.bf16 %v322_v26, %v322_v26  ;;  %v572_v51 = vshrl.u32 %v7564_v9, 16  ;;  %v7591_v0 = vpack.c.bf16 %v323_v16, %v323_v16 }
  0x6c   : > { %v552_v41 = vsel %vm7297_vm11, %v544_v30, %v551_v32  ;;  %v575_v43 = vshll.u32 %v7564_v9, 16  ;;  %v801_v13 = vsel %vm7288_vm10, %v543_v28, %v800_v42  ;;  %v805_v56 = vsel %vm7225_vm5, %v553_v48, %v804_v44 }
  0x6d   : > { %v2697_v17 = vld [vmem:[#allocation2 + $0x48] sm:$0xf]  ;;  %803 = vst.msk [vmem:[#allocation2 + $0x58] sm:$0xf] %vm183_vm1, %v552_v41  ;;  %v7579_v49 = vrot.slane %v555_v35, 7  ;;  %v7581_v58 = vrot.slane %v563_v38, 7  ;;  %v7593_v27 = vpack.c.bf16 %v324_v39, %v324_v39 }
  0x6e   : > { %v882_v12 = vld [vmem:[#allocation2 + $0x48] sm:$0xf]  ;;  %v2851_v62 = vshrl.u32 %v2697_v17, 16  ;;  %v2854_v52 = vshll.u32 %v2697_v17, 16  ;;  %802 = vst [vmem:[#allocation2 + $0x54] sm:$0xf] %v801_v13 }
  0x6f   : > { %v1067_v59 = vshrl.u32 %v882_v12, 16  ;;  %v1070_v60 = vshll.u32 %v882_v12, 16  ;;  %806 = vst [vmem:[#allocation2 + $0x5c] sm:$0x1] %v805_v56  ;;  %v7583_v46 = vld [vmem:[#allocation2 + $0x4c] sm:$0xf]  ;;  %v560_v2 = vor.u32 %v558_v36, %v7579_v49  ;;  %v7589_v14 = vor.u32 %v566_v24, %v7581_v58 }
  0x70   : > { %v7585_v63 = vld [vmem:[#allocation2 + $0x50] sm:$0x1]  ;;  %v883_v1 = vld [vmem:[#allocation2 + $0x4c] sm:$0xf]  ;;  %v2853_v54 = vrot.slane %v2851_v62, 4  ;;  %v2856_v55 = vrot.slane %v2854_v52, 5 }
  0x71   : > { %v2860_v15 = vshll.u32 %v7583_v46, 16  ;;  %v2864_v37 = vshrl.u32 %v7583_v46, 16  ;;  %v909_v19 = vld [vmem:[#allocation2 + $0x50] sm:$0x1]  ;;  %v2870_v20 = vshll.u32 %v7585_v63, 16  ;;  %v1069_v31 = vrot.slane %v1067_v59, 4 }
  0x72   : > { %v1072_v25 = vrot.slane %v1070_v60, 5  ;;  %v1076_v26 = vshll.u32 %v883_v1, 16  ;;  %v807_v28 = vld [vmem:[#allocation2 + $0x60] sm:$0xf]  ;;  %v2857_v30 = vor.u32 %v2856_v55, %v2853_v54  ;;  %v1080_v35 = vshrl.u32 %v883_v1, 16  ;;  %v326_v38 = vld [vmem:[%s7263_s25 + $0xa8] sm:$0xff] }
  0x73   : > { %v2862_v32 = vrot.slane %v2860_v15, 5  ;;  %v2866_v48 = vrot.slane %v2864_v37, 4  ;;  %v325_v36 = vld [vmem:[%s7263_s25 + $0xa0] sm:$0xff]  ;;  %v2872_v24 = vrot.slane %v2870_v20, 5  ;;  %v1086_v41 = vshll.u32 %v909_v19, 16 }
  0x74   : > { %v1073_v16 = vor.u32 %v1072_v25, %v1069_v31  ;;  %v1078_v39 = vrot.slane %v1076_v26, 5  ;;  %v2858_v42 = vrot.slane %v2857_v30, 4  ;;  %v1082_v17 = vrot.slane %v1080_v35, 4  ;;  %v885_v12 = vld [vmem:[#allocation2 + $0x58] sm:$0xf] }
  0x75   : > { %v2867_v44 = vor.u32 %v2866_v48, %v2862_v32  ;;  %v808_v13 = vsel %vm7288_vm10, %v560_v2, %v807_v28  ;;  %v1088_v62 = vrot.slane %v1086_v41, 5  ;;  %v884_v52 = vld [vmem:[#allocation2 + $0x54] sm:$0xf]  ;;  %v7602_v60 = vpack.c.bf16 %v325_v36, %v325_v36  ;;  %v7608_v19 = vld [vmem:[#allocation2 + $0x58] sm:$0xf] }
  0x76   : > { %v1074_v56 = vrot.slane %v1073_v16, 4  ;;  %v910_v59 = vld [vmem:[#allocation2 + $0x5c] sm:$0x1]  ;;  %809 = vst [vmem:[#allocation2 + $0x60] sm:$0xf] %v808_v13  ;;  %v7604_v1 = vpack.c.bf16 %v326_v38, %v326_v38  ;;  %v2863_v54 = vsel %vm7304_vm13, %v2858_v42, %v2862_v32  ;;  %v1083_v15 = vor.u32 %v1082_v17, %v1078_v39 }
  0x77   : > { %v2868_v55 = vrot.slane %v2867_v44, 4  ;;  %v1091_v37 = vshrl.u32 %v884_v52, 16  ;;  %v1094_v20 = vshll.u32 %v884_v52, 16  ;;  %v1100_v31 = vshll.u32 %v885_v12, 16  ;;  %v2700_v26 = vld [vmem:[#allocation2 + $0x54] sm:$0xf] }
  0x78   : > { %v1079_v2 = vsel %vm7304_vm13, %v1074_v56, %v1078_v39  ;;  %v1104_v25 = vshrl.u32 %v885_v12, 16  ;;  %v1084_v30 = vrot.slane %v1083_v15, 4  ;;  %v1110_v35 = vshll.u32 %v910_v59, 16  ;;  %v7614_v36 = vld [vmem:[#allocation2 + $0x5c] sm:$0x1] }
  0x79   : > { %v2873_v28 = vsel %vm7304_vm13, %v2868_v55, %v2872_v24  ;;  %v1093_v48 = vrot.slane %v1091_v37, 4  ;;  %v1096_v38 = vrot.slane %v1094_v20, 5  ;;  %v1102_v16 = vrot.slane %v1100_v31, 5 }
  0x7a   : > { %v6049_v32 = vcombine.low %v2863_v54, %v2873_v28  ;;  %v1106_v41 = vrot.slane %v1104_v25, 4  ;;  %v1089_v42 = vsel %vm7304_vm13, %v1084_v30, %v1088_v62  ;;  %v1112_v39 = vrot.slane %v1110_v35, 5 }
  0x7b   : > { %v2875_v44 = vshrl.u32 %v2700_v26, 16  ;;  %v2878_v17 = vshll.u32 %v2700_v26, 16  ;;  %v5904_v12 = vcombine.low %v1079_v2, %v1089_v42  ;;  %v1097_v13 = vor.u32 %v1096_v38, %v1093_v48  ;;  %v811_v2 = vld [vmem:[#allocation2 + $0x68] sm:$0x1] }
  0x7c   : > { %6638 = vmatmul.mubr.msk.bf16.gmra.mrb[8].mxu0 %vm1359_vm12, %v6049_v32  ;;  %v1107_v24 = vor.u32 %v1106_v41, %v1102_v16  ;;  %v2884_v56 = vshll.u32 %v7608_v19, 16  ;;  %v2888_v54 = vshrl.u32 %v7608_v19, 16  ;;  %v2894_v55 = vshll.u32 %v7614_v36, 16 }
  0x7d   : > { %v2877_v52 = vrot.slane %v2875_v44, 4  ;;  %v2880_v59 = vrot.slane %v2878_v17, 5  ;;  %v2703_v15 = vld [vmem:[#allocation2 + $0x60] sm:$0xf]  ;;  %6505 = vmatprep.mubr.msk.bf16.mxu1 %vm1359_vm12, %v5904_v12  ;;  %v1098_v62 = vrot.slane %v1097_v13, 4  ;;  %v561_v31 = vrot.slane %v7579_v49, 4 }
  0x7e   : > { %v1108_v37 = vrot.slane %v1107_v24, 4  ;;  %v2886_v20 = vrot.slane %v2884_v56, 5  ;;  %v2890_v26 = vrot.slane %v2888_v54, 4  ;;  %v2896_v28 = vrot.slane %v2894_v55, 5  ;;  %v886_v48 = vld [vmem:[#allocation2 + $0x60] sm:$0xf] }
  0x7f   : > { %v2881_v25 = vor.u32 %v2880_v59, %v2877_v52  ;;  %v570_v30 = vrot.slane %v7581_v58, 4  ;;  %v1103_v35 = vsel %vm7304_vm13, %v1098_v62, %v1102_v16  ;;  %v569_v38 = vsel %vm7297_vm11, %v561_v31, %v7589_v14  ;;  %v814_v59 = vld [vmem:[#allocation2 + $0x6c] sm:$0xf] }
  0x80   : > { %v1113_v32 = vsel %vm7304_vm13, %v1108_v37, %v1112_v39  ;;  %v2899_v41 = vshrl.u32 %v2703_v15, 16  ;;  %v2891_v44 = vor.u32 %v2890_v26, %v2886_v20  ;;  %810 = vst.msk [vmem:[#allocation2 + $0x64] sm:$0xf] %vm183_vm1, %v569_v38  ;;  %v2902_v12 = vshll.u32 %v2703_v15, 16  ;;  %v3407_v39 = vld [vmem:[#allocation2 + $0xc] sm:$0xe] }
  0x81   : > { %v5905_v42 = vcombine.low %v1103_v35, %v1113_v32  ;;  %v2882_v49 = vrot.slane %v2881_v25, 4  ;;  %v812_v58 = vsel %vm7225_vm5, %v570_v30, %v811_v2  ;;  %v1115_v16 = vshrl.u32 %v886_v48, 16  ;;  %v327_v25 = vld [vmem:[%s7263_s25 + $0xb0] sm:$0xff] }
  0x82   : > { %813 = vst [vmem:[#allocation2 + $0x68] sm:$0x1] %v812_v58  ;;  %v2901_v17 = vrot.slane %v2899_v41, 4  ;;  %v1118_v13 = vshll.u32 %v886_v48, 16  ;;  %v2892_v24 = vrot.slane %v2891_v44, 4  ;;  %v574_v56 = vrot.slane %v572_v51, 7 }
  0x83   : > { %6506 = vmatmul.mubr.msk.bf16.gmra.mrb[12].mxu1 %vm1359_vm12, %v5905_v42  ;;  %v2887_v14 = vsel %vm7304_vm13, %v2882_v49, %v2886_v20  ;;  %v580_v52 = vshrl.u32 %v7570_v45, 16  ;;  %v2904_v54 = vrot.slane %v2902_v12, 5  ;;  %v1117_v55 = vrot.slane %v1115_v16, 4  ;;  %v818_v48 = vld [vmem:[#allocation2 + $0x74] sm:$0x1] }
  0x84   : > { %v1120_v62 = vrot.slane %v1118_v13, 5  ;;  %v583_v15 = vshll.u32 %v7570_v45, 16  ;;  %v2897_v37 = vsel %vm7304_vm13, %v2892_v24, %v2896_v28  ;;  %v577_v31 = vor.u32 %v575_v43, %v574_v56  ;;  %v3408_v49 = vld [vmem:[#allocation2 + $0x18] sm:$0xe] }
  0x85   : > { %v578_v2 = vrot.slane %v574_v56, 4  ;;  %v582_v20 = vrot.slane %v580_v52, 7  ;;  %v6050_v26 = vcombine.low %v2887_v14, %v2897_v37  ;;  %v2905_v30 = vor.u32 %v2904_v54, %v2901_v17  ;;  %v225_v56 = vld [vmem:[#allocation2 + $0x78] sm:$0x1]  ;;  %v281_v52 = vld [vmem:[#allocation2 + $0x80] sm:$0x1] }
  0x86   : > { %v1121_v51 = vor.u32 %v1120_v62, %v1117_v55  ;;  %vm1914_vm15 = vcmask 1046532   ;;  %v815_v38 = vsel %vm7288_vm10, %v577_v31, %v814_v59  ;;  %v6076_v9 = vrot.slane %v3407_v39, 9 }
  0x87   : > { %v585_v35 = vor.u32 %v583_v15, %v582_v20  ;;  %v587_v32 = vrot.slane %v582_v20, 4  ;;  %vm7650_vm2 = vmor %vm1913_vm14, %vm1914_vm15  ;;  %6641 = vmatprep.mubr.msk.bf16.mxu0 %vm1359_vm12, %v6050_v26  ;;  %v7655_v43 = vld [vmem:[#allocation2 + $0x64] sm:$0xf]  ;;  %v2906_v28 = vrot.slane %v2905_v30, 4  ;;  %816 = vst [vmem:[#allocation2 + $0x6c] sm:$0xf] %v815_v38  ;;  %v7664_v58 = vpack.c.bf16 %v327_v25, %v327_v25 }
  0x88   : > { %v887_v41 = vld [vmem:[#allocation2 + $0x64] sm:$0xf]  ;;  %v1122_v42 = vrot.slane %v1121_v51, 4  ;;  %v7662_v44 = vsel %vm7650_vm2, %v7402_v23, %v3483_v8  ;;  %v2908_v12 = vshll.u32 %v7655_v43, 16  ;;  %v2912_v16 = vshrl.u32 %v7655_v43, 16 }
  0x89   : > { %v7666_v17 = vld [vmem:[#allocation2 + $0x68] sm:$0x1]  ;;  %v586_v39 = vsel %vm7297_vm11, %v578_v2, %v585_v35  ;;  %v819_v40 = vsel %vm7225_vm5, %v587_v32, %v818_v48  ;;  %v1124_v24 = vshll.u32 %v887_v41, 16  ;;  %v1128_v8 = vshrl.u32 %v887_v41, 16  ;;  %v328_v35 = vld [vmem:[%s7263_s25 + $0xb8] sm:$0xff] }
  0x8a   : > { %v911_v13 = vld [vmem:[#allocation2 + $0x68] sm:$0x1]  ;;  %v2918_v14 = vshll.u32 %v7666_v17, 16  ;;  %817 = vst.msk [vmem:[#allocation2 + $0x70] sm:$0xf] %vm183_vm1, %v586_v39  ;;  %v2910_v59 = vrot.slane %v2908_v12, 5  ;;  %v3474_v55 = vsel %vm7650_vm2, %v6076_v9, %v3473_v33 }
  0x8b   : > { %v1134_v23 = vshll.u32 %v911_v13, 16  ;;  %820 = vst [vmem:[#allocation2 + $0x74] sm:$0x1] %v819_v40  ;;  %v2914_v54 = vrot.slane %v2912_v16, 4  ;;  %v3475_v62 = vrot.slane %v3473_v33, 4  ;;  %v1126_v37 = vrot.slane %v1124_v24, 5 }
  0x8c   : > { %v2920_v15 = vrot.slane %v2918_v14, 5  ;;  %v1130_v31 = vrot.slane %v1128_v8, 4  ;;  %v2911_v20 = vsel %vm7304_vm13, %v2906_v28, %v2910_v59  ;;  %v6077_v30 = vrot.slane %v3408_v49, 9  ;;  %v228_v8 = vld [vmem:[#allocation2 + $0x84] sm:$0x1] }
  0x8d   : > { %v1136_v2 = vrot.slane %v1134_v23, 5  ;;  %v2915_v25 = vor.u32 %v2914_v54, %v2910_v59  ;;  %v3477_v26 = vsel %vm7650_vm2, %v3475_v62, %v3476_v34  ;;  %v1127_v51 = vsel %vm7304_vm13, %v1122_v42, %v1126_v37  ;;  %v284_v23 = vld [vmem:[#allocation2 + $0x8c] sm:$0x1] }
  0x8e   : > { %v1131_v48 = vor.u32 %v1130_v31, %v1126_v37  ;;  %v6092_v6 = vcombine.low %v3474_v55, %v3477_v26  ;;  %v7692_v33 = vsel %vm1408_vm0, %v7427_v57, 0  ;;  %v888_v38 = vld [vmem:[#allocation2 + $0x6c] sm:$0xf]  ;;  %v7699_v18 = vsel %vm7650_vm2, %v6077_v30, %v3480_v4  ;;  %v329_v37 = vld [vmem:[%s7263_s25 + $0xc0] sm:$0xff] }
  0x8f   : > { %v2916_v32 = vrot.slane %v2915_v25, 4  ;;  %v226_v34 = vsel %vm7225_vm5, 0, %v225_v56  ;;  %v282_v9 = vsel %vm7235_vm6, 0, %v281_v52  ;;  %v1139_v41 = vshrl.u32 %v888_v38, 16  ;;  %v3409_v26 = vld [vmem:[#allocation2 + $0x24] sm:$0xe] }
  0x90   : > { %v1132_v28 = vrot.slane %v1131_v48, 4  ;;  %v1142_v42 = vshll.u32 %v888_v38, 16  ;;  %v6093_v57 = vcombine.low %v7699_v18, %v7662_v44  ;;  %227 = vst [vmem:[#allocation2 + $0x78] sm:$0x1] %v226_v34  ;;  %283 = vst [vmem:[#allocation2 + $0x80] sm:$0x1] %v282_v9  ;;  %v7711_v13 = vpack.c.bf16 %v328_v35, %v328_v35 }
  0x91   : > { %v2921_v29 = vsel %vm7304_vm13, %v2916_v32, %v2920_v15  ;;  %v889_v49 = vld [vmem:[#allocation2 + $0x70] sm:$0xf]  ;;  %v589_v12 = vshrl.u32 %v7591_v0, 16  ;;  %v592_v16 = vshll.u32 %v7591_v0, 16  ;;  %v1141_v14 = vrot.slane %v1139_v41, 4 }
  0x92   : > { %v912_v4 = vld [vmem:[#allocation2 + $0x74] sm:$0x1]  ;;  %v6051_v39 = vcombine.low %v2911_v20, %v2921_v29  ;;  %v1137_v40 = vsel %vm7304_vm13, %v1132_v28, %v1136_v2  ;;  %v1144_v24 = vrot.slane %v1142_v42, 5  ;;  %v1148_v52 = vshll.u32 %v889_v49, 16 }
  0x93   : > { %v5906_v56 = vcombine.low %v1127_v51, %v1137_v40  ;;  %v1152_v59 = vshrl.u32 %v889_v49, 16  ;;  %v1158_v54 = vshll.u32 %v912_v4, 16  ;;  %v591_v62 = vrot.slane %v589_v12, 7 }
  0x94   : > { %6642 = vmatmul.mubr.msk.bf16.gmra.mrb[12].mxu0 %vm1359_vm12, %v6051_v39  ;;  %v1145_v55 = vor.u32 %v1144_v24, %v1141_v14  ;;  %v597_v0 = vshrl.u32 %v7593_v27, 16  ;;  %v600_v15 = vshll.u32 %v7593_v27, 16  ;;  %v1150_v31 = vrot.slane %v1148_v52, 5  ;;  %v3410_v39 = vld [vmem:[#allocation2 + $0x30] sm:$0xe] }
  0x95   : > { %6509 = vmatprep.mubr.msk.bf16.mxu1 %vm1359_vm12, %v5906_v56  ;;  %v1154_v2 = vrot.slane %v1152_v59, 4  ;;  %v1160_v20 = vrot.slane %v1158_v54, 5  ;;  %6663 = vmatprep.mubr.msk.bf16.mxu0 %vm1359_vm12, %v6092_v6  ;;  %v229_v25 = vsel %vm7225_vm5, 0, %v228_v8  ;;  %v594_v51 = vor.u32 %v592_v16, %v591_v62  ;;  %v231_v59 = vld [vmem:[#allocation2 + $0x90] sm:$0x1] }
  0x96   : > { %v1146_v30 = vrot.slane %v1145_v55, 4  ;;  %v595_v48 = vrot.slane %v591_v62, 4  ;;  %v599_v35 = vrot.slane %v597_v0, 7  ;;  %230 = vst [vmem:[#allocation2 + $0x84] sm:$0x1] %v229_v25  ;;  %v285_v34 = vsel %vm7235_vm6, 0, %v284_v23 }
  0x97   : > { %v1155_v32 = vor.u32 %v1154_v2, %v1150_v31  ;;  %v821_v38 = vld [vmem:[#allocation2 + $0x78] sm:$0xf]  ;;  %v825_v27 = vld [vmem:[#allocation2 + $0x80] sm:$0x1]  ;;  %v606_v9 = vshrl.u32 %v7602_v60, 16  ;;  %v7726_v28 = vpack.c.bf16 %v329_v37, %v329_v37  ;;  %v609_v12 = vshll.u32 %v7602_v60, 16 }
  0x98   : > { %v1151_v6 = vsel %vm7304_vm13, %v1146_v30, %v1150_v31  ;;  %v602_v41 = vor.u32 %v600_v15, %v599_v35  ;;  %v604_v42 = vrot.slane %v599_v35, 4  ;;  %v822_v29 = vsel %vm7288_vm10, %v594_v51, %v821_v38  ;;  %286 = vst [vmem:[#allocation2 + $0x8c] sm:$0x1] %v285_v34  ;;  %v7110_v55 = vld [vmem:[#allocation2 + $0x28] sm:$0xf] }
  0x99   : > { %v1156_v49 = vrot.slane %v1155_v32, 4  ;;  %823 = vst [vmem:[#allocation2 + $0x78] sm:$0xf] %v822_v29  ;;  %v608_v4 = vrot.slane %v606_v9, 7  ;;  %v614_v16 = vshrl.u32 %v7604_v1, 16  ;;  %v617_v24 = vshll.u32 %v7604_v1, 16 }
  0x9a   : > { %v603_v40 = vsel %vm7297_vm11, %v595_v48, %v602_v41  ;;  %v826_v14 = vsel %vm7225_vm5, %v604_v42, %v825_v27  ;;  %v6078_v8 = vrot.slane %v3409_v26, 9  ;;  %v3487_v62 = vrot.slane %v7110_v55, 5  ;;  %v287_v15 = vld [vmem:[#allocation2 + $0x98] sm:$0x1]  ;;  %v330_v51 = vld [vmem:[%s7263_s25 + $0xc8] sm:$0xff] }
  0x9b   : > { %v1161_v23 = vsel %vm7304_vm13, %v1156_v49, %v1160_v20  ;;  %824 = vst.msk [vmem:[#allocation2 + $0x7c] sm:$0xf] %vm183_vm1, %v603_v40  ;;  %827 = vst [vmem:[#allocation2 + $0x80] sm:$0x1] %v826_v14  ;;  %v611_v56 = vor.u32 %v609_v12, %v608_v4  ;;  %v612_v60 = vrot.slane %v608_v4, 4  ;;  %v616_v52 = vrot.slane %v614_v16, 7 }
  0x9c   : > { %v5907_v54 = vcombine.low %v1151_v6, %v1161_v23  ;;  %6664 = vmatmul.mubr.msk.bf16.vlgmr.msra.gmra.mrb[0].mxu0 %vm1359_vm12, %v6093_v57  ;;  %v3490_v1 = vrot.slane %v7459_v50, 5  ;;  %v6079_v0 = vrot.slane %v3410_v39, 9  ;;  %v3494_v20 = vrot.slane %v7465_v21, 5 }
  0x9d   : > { %6696 = vmatpush3.bf16.msra.mxu0 %v7692_v33  ;;  %v619_v37 = vor.u32 %v617_v24, %v616_v52  ;;  %v621_v31 = vrot.slane %v616_v52, 4  ;;  %v828_v2 = vld [vmem:[#allocation2 + $0x84] sm:$0xf]  ;;  %v3497_v25 = vrot.slane %v7467_v22, 5  ;;  %v3488_v50 = vsel %vm7650_vm2, %v6078_v8, %v3487_v62  ;;  %v331_v24 = vld [vmem:[%s7263_s25 + $0xd0] sm:$0xff]  ;;  %v332_v8 = vld [vmem:[%s7263_s25 + $0xd8] sm:$0xff] }
  0x9e   : > { %6510 = vmatmul.mubr.msk.bf16.gmra.mrb[16].mxu1 %vm1359_vm12, %v5907_v54  ;;  %v829_v44 = vsel %vm7288_vm10, %v611_v56, %v828_v2  ;;  %v3489_v18 = vrot.slane %v3487_v62, 4  ;;  %v232_v33 = vsel %vm7225_vm5, 0, %v231_v59  ;;  %v3495_v21 = vsel %vm7650_vm2, %v6079_v0, %v3494_v20 }
  0x9f   : > { %v620_v57 = vsel %vm7297_vm11, %v612_v60, %v619_v37  ;;  %830 = vst [vmem:[#allocation2 + $0x84] sm:$0xf] %v829_v44  ;;  %v832_v26 = vld [vmem:[#allocation2 + $0x8c] sm:$0x1]  ;;  %v3496_v22 = vrot.slane %v3494_v20, 4  ;;  %v288_v30 = vsel %vm7235_vm6, 0, %v287_v15  ;;  %v7780_v16 = vpack.c.bf16 %v330_v51, %v330_v51 }
  0xa0   : > { %233 = vst [vmem:[#allocation2 + $0x90] sm:$0x1] %v232_v33  ;;  %v7764_v48 = vld [vmem:[#allocation2 + $0x78] sm:$0xf]  ;;  %831 = vst.msk [vmem:[#allocation2 + $0x88] sm:$0xf] %vm183_vm1, %v620_v57  ;;  %v833_v35 = vsel %vm7225_vm5, %v621_v31, %v832_v26  ;;  %v3491_v32 = vsel %vm7650_vm2, %v3489_v18, %v3490_v1  ;;  %v7791_v2 = vpack.c.bf16 %v331_v24, %v331_v24 }
  0xa1   : > { %289 = vst [vmem:[#allocation2 + $0x98] sm:$0x1] %v288_v30  ;;  %v623_v38 = vshrl.u32 %v7664_v58, 16  ;;  %v626_v27 = vshll.u32 %v7664_v58, 16  ;;  %v1163_v34 = vshrl.u32 %v7764_v48, 16  ;;  %v1166_v9 = vshll.u32 %v7764_v48, 16 }
  0xa2   : > { %834 = vst [vmem:[#allocation2 + $0x8c] sm:$0x1] %v833_v35  ;;  %v6094_v6 = vcombine.low %v3488_v50, %v3491_v32  ;;  %v3498_v41 = vsel %vm7650_vm2, %v3496_v22, %v3497_v25  ;;  %v7777_v42 = vld [vmem:[#allocation2 + $0x7c] sm:$0xf]  ;;  %v913_v29 = vld [vmem:[#allocation2 + $0x80] sm:$0x1]  ;;  %v7793_v20 = vpack.c.bf16 %v332_v8, %v332_v8 }
  0xa3   : > { %v6095_v49 = vcombine.low %v3495_v21, %v3498_v41  ;;  %v625_v4 = vrot.slane %v623_v38, 7  ;;  %v631_v12 = vshrl.u32 %v7711_v13, 16  ;;  %v1165_v58 = vrot.slane %v1163_v34, 4  ;;  %v234_v31 = vld [vmem:[#allocation2 + $0x9c] sm:$0x1] }
  0xa4   : > { %v1168_v39 = vrot.slane %v1166_v9, 5  ;;  %v1172_v40 = vshll.u32 %v7777_v42, 16  ;;  %v1176_v14 = vshrl.u32 %v7777_v42, 16  ;;  %6667 = vmatprep.mubr.msk.bf16.mxu0 %vm1359_vm12, %v6094_v6  ;;  %v1182_v23 = vshll.u32 %v913_v29, 16 }
  0xa5   : > { %6668 = vmatmul.mubr.msk.bf16.gmra.mrb[4].mxu0 %vm1359_vm12, %v6095_v49  ;;  %v628_v56 = vor.u32 %v626_v27, %v625_v4  ;;  %v629_v60 = vrot.slane %v625_v4, 4  ;;  %v633_v52 = vrot.slane %v631_v12, 7  ;;  %v634_v62 = vshll.u32 %v7711_v13, 16  ;;  %v290_v27 = vld [vmem:[#allocation2 + $0xa4] sm:$0x1] }
  0xa6   : > { %v1169_v59 = vor.u32 %v1168_v39, %v1165_v58  ;;  %v1174_v54 = vrot.slane %v1172_v40, 5  ;;  %v1178_v55 = vrot.slane %v1176_v14, 4  ;;  %v1184_v1 = vrot.slane %v1182_v23, 5  ;;  %v7789_v0 = vld [vmem:[#allocation2 + $0x84] sm:$0xf] }
  0xa7   : > { %v638_v15 = vrot.slane %v633_v52, 4  ;;  %v835_v37 = vld [vmem:[#allocation2 + $0x90] sm:$0xf]  ;;  %v7795_v50 = vld [vmem:[#allocation2 + $0x88] sm:$0xf]  ;;  %v1187_v18 = vshrl.u32 %v7789_v0, 16  ;;  %v636_v21 = vor.u32 %v634_v62, %v633_v52 }
  0xa8   : > { %v1170_v25 = vrot.slane %v1169_v59, 4  ;;  %v1179_v44 = vor.u32 %v1178_v55, %v1174_v54  ;;  %v1190_v33 = vshll.u32 %v7789_v0, 16  ;;  %v1196_v13 = vshll.u32 %v7795_v50, 16  ;;  %v839_v30 = vld [vmem:[#allocation2 + $0x98] sm:$0x1] }
  0xa9   : > { %v914_v57 = vld [vmem:[#allocation2 + $0x8c] sm:$0x1]  ;;  %v1200_v26 = vshrl.u32 %v7795_v50, 16  ;;  %v836_v22 = vsel %vm7288_vm10, %v628_v56, %v835_v37  ;;  %v1189_v32 = vrot.slane %v1187_v18, 4  ;;  %v637_v41 = vsel %vm7297_vm11, %v629_v60, %v636_v21  ;;  %v3411_v58 = vld [vmem:[#allocation2 + $0x3c] sm:$0xe] }
  0xaa   : > { %v1175_v51 = vsel %vm7304_vm13, %v1170_v25, %v1174_v54  ;;  %v1180_v35 = vrot.slane %v1179_v44, 4  ;;  %v1192_v38 = vrot.slane %v1190_v33, 5  ;;  %837 = vst [vmem:[#allocation2 + $0x90] sm:$0xf] %v836_v22  ;;  %v1198_v34 = vrot.slane %v1196_v13, 5 }
  0xab   : > { %v1202_v9 = vrot.slane %v1200_v26, 4  ;;  %v1206_v6 = vshll.u32 %v914_v57, 16  ;;  %838 = vst.msk [vmem:[#allocation2 + $0x94] sm:$0xf] %vm183_vm1, %v637_v41  ;;  %v840_v4 = vsel %vm7225_vm5, %v638_v15, %v839_v30  ;;  %v235_v12 = vsel %vm7225_vm5, 0, %v234_v31 }
  0xac   : > { %v1185_v29 = vsel %vm7304_vm13, %v1180_v35, %v1184_v1  ;;  %v1193_v49 = vor.u32 %v1192_v38, %v1189_v32  ;;  %841 = vst [vmem:[#allocation2 + $0x98] sm:$0x1] %v840_v4  ;;  %236 = vst [vmem:[#allocation2 + $0x9c] sm:$0x1] %v235_v12  ;;  %v291_v24 = vsel %vm7235_vm6, 0, %v290_v27  ;;  %v640_v23 = vshrl.u32 %v7726_v28, 16 }
  0xad   : > { %v5908_v39 = vcombine.low %v1175_v51, %v1185_v29  ;;  %v1203_v40 = vor.u32 %v1202_v9, %v1198_v34  ;;  %v1208_v14 = vrot.slane %v1206_v6, 5  ;;  %292 = vst [vmem:[#allocation2 + $0xa4] sm:$0x1] %v291_v24  ;;  %v643_v56 = vshll.u32 %v7726_v28, 16  ;;  %v3412_v52 = vld [vmem:[#allocation2 + $0x48] sm:$0xe] }
  0xae   : > { %v1194_v8 = vrot.slane %v1193_v49, 4  ;;  %v648_v60 = vshrl.u32 %v7780_v16, 16  ;;  %v651_v54 = vshll.u32 %v7780_v16, 16  ;;  %v6080_v55 = vrot.slane %v3411_v58, 9  ;;  %v237_v51 = vld [vmem:[#allocation2 + $0xa8] sm:$0x1] }
  0xaf   : > { %6513 = vmatprep.mubr.msk.bf16.mxu1 %vm1359_vm12, %v5908_v39  ;;  %v1204_v59 = vrot.slane %v1203_v40, 4  ;;  %v3501_v62 = vrot.slane %v7500_v10, 5  ;;  %v642_v15 = vrot.slane %v640_v23, 7  ;;  %v3504_v31 = vrot.slane %v7512_v61, 5 }
  0xb0   : > { %v1199_v1 = vsel %vm7304_vm13, %v1194_v8, %v1198_v34  ;;  %v650_v37 = vrot.slane %v648_v60, 7  ;;  %v6081_v16 = vrot.slane %v3412_v52, 9  ;;  %v3508_v4 = vrot.slane %v7583_v46, 5 }
  0xb1   : > { %v1209_v28 = vsel %vm7304_vm13, %v1204_v59, %v1208_v14  ;;  %v7827_v25 = vld [vmem:[#allocation2 + $0x90] sm:$0xf]  ;;  %v3502_v44 = vsel %vm7650_vm2, %v6080_v55, %v3501_v62  ;;  %v3503_v18 = vrot.slane %v3501_v62, 4  ;;  %v645_v13 = vor.u32 %v643_v56, %v642_v15  ;;  %v240_v56 = vld [vmem:[#allocation2 + $0xb4] sm:$0x1] }
  0xb2   : > { %v5909_v33 = vcombine.low %v1199_v1, %v1209_v28  ;;  %v1211_v10 = vshrl.u32 %v7827_v25, 16  ;;  %v1214_v57 = vshll.u32 %v7827_v25, 16  ;;  %v7833_v26 = vld [vmem:[#allocation2 + $0x94] sm:$0xf]  ;;  %v646_v21 = vrot.slane %v642_v15, 4  ;;  %v334_v28 = vld [vmem:[%s7263_s25 + $0xe8] sm:$0xff] }
  0xb3   : > { %v653_v61 = vor.u32 %v651_v54, %v650_v37  ;;  %v655_v22 = vrot.slane %v650_v37, 4  ;;  %v3505_v30 = vsel %vm7650_vm2, %v3503_v18, %v3504_v31  ;;  %v915_v35 = vld [vmem:[#allocation2 + $0x98] sm:$0x1]  ;;  %v1220_v27 = vshll.u32 %v7833_v26, 16  ;;  %v842_v41 = vld [vmem:[#allocation2 + $0x9c] sm:$0xf] }
  0xb4   : > { %6514 = vmatmul.mubr.msk.bf16.gmra.mrb[20].mxu1 %vm1359_vm12, %v5909_v33  ;;  %v1213_v32 = vrot.slane %v1211_v10, 4  ;;  %v1216_v38 = vrot.slane %v1214_v57, 5  ;;  %v1224_v34 = vshrl.u32 %v7833_v26, 16  ;;  %v1230_v9 = vshll.u32 %v915_v35, 16  ;;  %v846_v29 = vld [vmem:[#allocation2 + $0xa4] sm:$0x1] }
  0xb5   : > { %v654_v6 = vsel %vm7297_vm11, %v646_v21, %v653_v61  ;;  %v6096_v49 = vcombine.low %v3502_v44, %v3505_v30  ;;  %v1222_v58 = vrot.slane %v1220_v27, 5  ;;  %v843_v40 = vsel %vm7288_vm10, %v645_v13, %v842_v41  ;;  %v293_v14 = vld [vmem:[#allocation2 + $0xb0] sm:$0x1]  ;;  %v296_v55 = vld [vmem:[#allocation2 + $0xbc] sm:$0x1]  ;;  %v333_v31 = vld [vmem:[%s7263_s25 + $0xe0] sm:$0xff] }
  0xb6   : > { %v1217_v12 = vor.u32 %v1216_v38, %v1213_v32  ;;  %v1226_v39 = vrot.slane %v1224_v34, 4  ;;  %845 = vst.msk [vmem:[#allocation2 + $0xa0] sm:$0xf] %vm183_vm1, %v654_v6  ;;  %v1232_v24 = vrot.slane %v1230_v9, 5  ;;  %844 = vst [vmem:[#allocation2 + $0x9c] sm:$0xf] %v843_v40  ;;  %v847_v8 = vsel %vm7225_vm5, %v655_v22, %v846_v29 }
  0xb7   : > { %6671 = vmatprep.mubr.msk.bf16.mxu0 %vm1359_vm12, %v6096_v49  ;;  %v3509_v46 = vsel %vm7650_vm2, %v6081_v16, %v3508_v4  ;;  %v3510_v23 = vrot.slane %v3508_v4, 4  ;;  %848 = vst [vmem:[#allocation2 + $0xa4] sm:$0x1] %v847_v8  ;;  %v3511_v59 = vrot.slane %v7585_v63, 5  ;;  %v238_v54 = vsel %vm7225_vm5, 0, %v237_v51 }
  0xb8   : > { %v1218_v60 = vrot.slane %v1217_v12, 4  ;;  %v1227_v52 = vor.u32 %v1226_v39, %v1222_v58  ;;  %239 = vst [vmem:[#allocation2 + $0xa8] sm:$0x1] %v238_v54  ;;  %v294_v62 = vsel %vm7235_vm6, 0, %v293_v14  ;;  %v657_v1 = vshrl.u32 %v7791_v2, 16 }
  0xb9   : > { %v660_v15 = vshll.u32 %v7791_v2, 16  ;;  %v665_v37 = vshrl.u32 %v7793_v20, 16  ;;  %v3512_v18 = vsel %vm7650_vm2, %v3510_v23, %v3511_v59  ;;  %295 = vst [vmem:[#allocation2 + $0xb0] sm:$0x1] %v294_v62  ;;  %v668_v16 = vshll.u32 %v7793_v20, 16 }
  0xba   : > { %v1223_v44 = vsel %vm7304_vm13, %v1218_v60, %v1222_v58  ;;  %v1228_v63 = vrot.slane %v1227_v52, 4  ;;  %v6097_v33 = vcombine.low %v3509_v46, %v3512_v18  ;;  %v659_v10 = vrot.slane %v657_v1, 7  ;;  %v3413_v58 = vld [vmem:[#allocation2 + $0x54] sm:$0xe]  ;;  %v3414_v1 = vld [vmem:[#allocation2 + $0x60] sm:$0xe] }
  0xbb   : > { %v667_v57 = vrot.slane %v665_v37, 7  ;;  %v241_v2 = vsel %vm7225_vm5, 0, %v240_v56  ;;  %v297_v21 = vsel %vm7235_vm6, 0, %v296_v55  ;;  %v6302_v61 = vpack.c.bf16 %v333_v31, %v333_v31 }
  0xbc   : > { %v1233_v13 = vsel %vm7304_vm13, %v1228_v63, %v1232_v24  ;;  %242 = vst [vmem:[#allocation2 + $0xb4] sm:$0x1] %v241_v2  ;;  %v6303_v22 = vpack.c.bf16 %v334_v28, %v334_v28  ;;  %6672 = vmatmul.mubr.msk.bf16.gmra.mrb[8].mxu0 %vm1359_vm12, %v6097_v33  ;;  %v662_v20 = vor.u32 %v660_v15, %v659_v10  ;;  %v663_v35 = vrot.slane %v659_v10, 4 }
  0xbd   : > { %v5910_v30 = vcombine.low %v1223_v44, %v1233_v13  ;;  %v7872_v51 = vld [vmem:[#allocation2 + $0xa0] sm:$0xf]  ;;  %v670_v32 = vor.u32 %v668_v16, %v667_v57  ;;  %298 = vst [vmem:[#allocation2 + $0xbc] sm:$0x1] %v297_v21  ;;  %v7875_v38 = vld [vmem:[#allocation2 + $0x9c] sm:$0xf] }
  0xbe   : > { %v1244_v27 = vshll.u32 %v7872_v51, 16  ;;  %v1248_v34 = vshrl.u32 %v7872_v51, 16  ;;  %v672_v9 = vrot.slane %v667_v57, 4  ;;  %v674_v6 = vshrl.u32 %v6302_v61, 16  ;;  %v916_v41 = vld [vmem:[#allocation2 + $0xa4] sm:$0x1] }
  0xbf   : > { %6517 = vmatprep.mubr.msk.bf16.mxu1 %vm1359_vm12, %v5910_v30  ;;  %v1235_v29 = vshrl.u32 %v7875_v38, 16  ;;  %v1238_v49 = vshll.u32 %v7875_v38, 16  ;;  %v671_v4 = vsel %vm7297_vm11, %v663_v35, %v670_v32  ;;  %v677_v12 = vshll.u32 %v6302_v61, 16  ;;  %v849_v24 = vld [vmem:[#allocation2 + $0xa8] sm:$0xf] }
  0xc0   : > { %v1246_v39 = vrot.slane %v1244_v27, 5  ;;  %v1250_v40 = vrot.slane %v1248_v34, 4  ;;  %v1254_v14 = vshll.u32 %v916_v41, 16  ;;  %852 = vst.msk [vmem:[#allocation2 + $0xac] sm:$0xf] %vm183_vm1, %v671_v4  ;;  %v676_v8 = vrot.slane %v674_v6, 7 }
  0xc1   : > { %v1237_v46 = vrot.slane %v1235_v29, 4  ;;  %v1240_v23 = vrot.slane %v1238_v49, 5  ;;  %v850_v56 = vsel %vm7288_vm10, %v662_v20, %v849_v24  ;;  %v853_v60 = vld [vmem:[#allocation2 + $0xb0] sm:$0x1]  ;;  %v682_v52 = vshrl.u32 %v6303_v22, 16 }
  0xc2   : > { %v1251_v59 = vor.u32 %v1250_v40, %v1246_v39  ;;  %v1256_v54 = vrot.slane %v1254_v14, 5  ;;  %851 = vst [vmem:[#allocation2 + $0xa8] sm:$0xf] %v850_v56  ;;  %v854_v55 = vsel %vm7225_vm5, %v672_v9, %v853_v60  ;;  %v679_v62 = vor.u32 %v677_v12, %v676_v8  ;;  %v3415_v29 = vld [vmem:[#allocation2 + $0x6c] sm:$0xe] }
  0xc3   : > { %v1241_v15 = vor.u32 %v1240_v23, %v1237_v46  ;;  %855 = vst [vmem:[#allocation2 + $0xb0] sm:$0x1] %v854_v55  ;;  %v680_v37 = vrot.slane %v676_v8, 4  ;;  %v684_v31 = vrot.slane %v682_v52, 7  ;;  %v685_v28 = vshll.u32 %v6303_v22, 16 }
  0xc4   : > { %v856_v44 = vld [vmem:[#allocation2 + $0xb4] sm:$0xf]  ;;  %v1252_v63 = vrot.slane %v1251_v59, 4  ;;  %v860_v16 = vld [vmem:[#allocation2 + $0xbc] sm:$0x1]  ;;  %v6082_v33 = vrot.slane %v3413_v58, 9 }
  0xc5   : > { %v857_v18 = vsel %vm7288_vm10, %v679_v62, %v856_v44  ;;  %v3515_v10 = vrot.slane %v7608_v19, 5  ;;  %v1242_v57 = vrot.slane %v1241_v15, 4  ;;  %v687_v2 = vor.u32 %v685_v28, %v684_v31  ;;  %v2708_v60 = vld [vmem:[#allocation2 + $0x74] sm:$0x1] }
  0xc6   : > { %v689_v13 = vrot.slane %v684_v31, 4  ;;  %858 = vst [vmem:[#allocation2 + $0xb4] sm:$0xf] %v857_v18  ;;  %v3518_v21 = vrot.slane %v7614_v36, 5  ;;  %v1257_v61 = vsel %vm7304_vm13, %v1252_v63, %v1256_v54  ;;  %v6083_v20 = vrot.slane %v3414_v1, 9 }
  0xc7   : > { %v3516_v22 = vsel %vm7650_vm2, %v6082_v33, %v3515_v10  ;;  %v3517_v30 = vrot.slane %v3515_v10, 4  ;;  %v1247_v35 = vsel %vm7304_vm13, %v1242_v57, %v1246_v39  ;;  %v7899_v32 = vld [vmem:[#allocation2 + $0xac] sm:$0xf]  ;;  %v688_v19 = vsel %vm7297_vm11, %v680_v37, %v687_v2  ;;  %v2707_v39 = vld [vmem:[#allocation2 + $0x70] sm:$0xf] }
  0xc8   : > { %v861_v27 = vsel %vm7225_vm5, %v689_v13, %v860_v16  ;;  %v3522_v36 = vrot.slane %v7655_v43, 5  ;;  %v5911_v34 = vcombine.low %v1247_v35, %v1257_v61  ;;  %v1268_v9 = vshll.u32 %v7899_v32, 16  ;;  %859 = vst.msk [vmem:[#allocation2 + $0xb8] sm:$0xf] %vm183_vm1, %v688_v19 }
  0xc9   : > { %v1272_v6 = vshrl.u32 %v7899_v32, 16  ;;  %862 = vst [vmem:[#allocation2 + $0xbc] sm:$0x1] %v861_v27  ;;  %v3519_v41 = vsel %vm7650_vm2, %v3517_v30, %v3518_v21  ;;  %v7911_v49 = vld [vmem:[#allocation2 + $0xa8] sm:$0xf]  ;;  %v3525_v43 = vrot.slane %v7666_v17, 5 }
  0xca   : > { %v6098_v4 = vcombine.low %v3516_v22, %v3519_v41  ;;  %v3523_v12 = vsel %vm7650_vm2, %v6083_v20, %v3522_v36  ;;  %v3524_v58 = vrot.slane %v3522_v36, 4  ;;  %6518 = vmatmul.mubr.msk.bf16.gmra.mrb[24].mxu1 %vm1359_vm12, %v5911_v34  ;;  %v7917_v40 = vld [vmem:[#allocation2 + $0xb0] sm:$0x1]  ;;  %v1259_v14 = vshrl.u32 %v7911_v49, 16  ;;  %v7943_v36 = vld [vmem:[#allocation2 + $0x7c] sm:$0xf] }
  0xcb   : > { %v1262_v24 = vshll.u32 %v7911_v49, 16  ;;  %v1270_v8 = vrot.slane %v1268_v9, 5  ;;  %v1274_v46 = vrot.slane %v1272_v6, 4  ;;  %v1278_v23 = vshll.u32 %v7917_v40, 16  ;;  %v3416_v34 = vld [vmem:[#allocation2 + $0x78] sm:$0xe] }
  0xcc   : > { %6675 = vmatprep.mubr.msk.bf16.mxu0 %vm1359_vm12, %v6098_v4  ;;  %v3526_v56 = vsel %vm7650_vm2, %v3524_v58, %v3525_v43  ;;  %v1261_v17 = vrot.slane %v1259_v14, 4  ;;  %v6084_v37 = vrot.slane %v3415_v29, 9  ;;  %v3529_v44 = vrot.slane %v2707_v39, 5  ;;  %v7947_v29 = vld [vmem:[#allocation2 + $0x80] sm:$0x1] }
  0xcd   : > { %v1264_v52 = vrot.slane %v1262_v24, 5  ;;  %v1275_v59 = vor.u32 %v1274_v46, %v1270_v8  ;;  %v7925_v54 = vld [vmem:[#allocation2 + $0xb4] sm:$0xf]  ;;  %v6099_v55 = vcombine.low %v3523_v12, %v3526_v56  ;;  %v1280_v62 = vrot.slane %v1278_v23, 5  ;;  %v3417_v43 = vld [vmem:[#allocation2 + $0x84] sm:$0xe] }
  0xce   : > { %v1283_v1 = vshrl.u32 %v7925_v54, 16  ;;  %v1286_v15 = vshll.u32 %v7925_v54, 16  ;;  %v3532_v63 = vrot.slane %v2708_v60, 5  ;;  %v3530_v30 = vsel %vm7650_vm2, %v6084_v37, %v3529_v44  ;;  %v2713_v24 = vld [vmem:[#allocation2 + $0x88] sm:$0xf] }
  0xcf   : > { %v1265_v31 = vor.u32 %v1264_v52, %v1261_v17  ;;  %v1276_v28 = vrot.slane %v1275_v59, 4  ;;  %6676 = vmatmul.mubr.msk.bf16.gmra.mrb[12].mxu0 %vm1359_vm12, %v6099_v55  ;;  %v7930_v18 = vld [vmem:[#allocation2 + $0xb8] sm:$0xf]  ;;  %v3531_v20 = vrot.slane %v3529_v44, 4  ;;  %v6085_v39 = vrot.slane %v3416_v34, 9 }
  0xd0   : > { %v7932_v16 = vld [vmem:[#allocation2 + $0xbc] sm:$0x1]  ;;  %v1285_v33 = vrot.slane %v1283_v1, 4  ;;  %v1288_v10 = vrot.slane %v1286_v15, 5  ;;  %v1292_v13 = vshll.u32 %v7930_v18, 16  ;;  %v1296_v21 = vshrl.u32 %v7930_v18, 16 }
  0xd1   : > { %v1266_v57 = vrot.slane %v1265_v31, 4  ;;  %v1281_v2 = vsel %vm7304_vm13, %v1276_v28, %v1280_v62  ;;  %v1302_v22 = vshll.u32 %v7932_v16, 16  ;;  %v3533_v41 = vsel %vm7650_vm2, %v3531_v20, %v3532_v63  ;;  %v2716_v60 = vld [vmem:[#allocation2 + $0x94] sm:$0xf]  ;;  %v3418_v55 = vld [vmem:[#allocation2 + $0x90] sm:$0xe] }
  0xd2   : > { %v1289_v61 = vor.u32 %v1288_v10, %v1285_v33  ;;  %v1294_v19 = vrot.slane %v1292_v13, 5  ;;  %v1298_v27 = vrot.slane %v1296_v21, 4  ;;  %v6100_v58 = vcombine.low %v3530_v30, %v3533_v41  ;;  %v7959_v1 = vld [vmem:[#allocation2 + $0x4] sm:$0xf]  ;;  %v7112_v15 = vld [vmem:[#allocation2] sm:$0xf] }
  0xd3   : > { %v1271_v35 = vsel %vm7304_vm13, %v1266_v57, %v1270_v8  ;;  %v1304_v12 = vrot.slane %v1302_v22, 5  ;;  %v3536_v14 = vrot.slane %v7943_v36, 5  ;;  %v2714_v8 = vld [vmem:[#allocation2 + $0x8c] sm:$0x1]  ;;  %v3539_v56 = vrot.slane %v7947_v29, 5 }
  0xd4   : > { %v5912_v9 = vcombine.low %v1271_v35, %v1281_v2  ;;  %v1290_v6 = vrot.slane %v1289_v61, 4  ;;  %v1299_v4 = vor.u32 %v1298_v27, %v1294_v19  ;;  %6679 = vmatprep.mubr.msk.bf16.mxu0 %vm1359_vm12, %v6100_v58  ;;  %v6086_v59 = vrot.slane %v3417_v43, 9  ;;  %v2717_v44 = vld [vmem:[#allocation2 + $0x98] sm:$0x1]  ;;  %v2719_v57 = vld [vmem:[#allocation2 + $0xa0] sm:$0xf] }
  0xd5   : > { %v3537_v17 = vsel %vm7650_vm2, %v6085_v39, %v3536_v14  ;;  %v3538_v52 = vrot.slane %v3536_v14, 4  ;;  %v5931_v37 = vcombine.low %v7112_v15, %v7959_v1  ;;  %v3543_v31 = vrot.slane %v2713_v24, 5  ;;  %v3419_v2 = vld [vmem:[#allocation2 + $0x9c] sm:$0xe]  ;;  %v2720_v30 = vld [vmem:[#allocation2 + $0xa4] sm:$0x1] }
  0xd6   : > { %6521 = vmatprep.mubr.msk.bf16.mxu1 %vm1359_vm12, %v5912_v9  ;;  %v1295_v46 = vsel %vm7304_vm13, %v1290_v6, %v1294_v19  ;;  %v1300_v23 = vrot.slane %v1299_v4, 4  ;;  %v3546_v28 = vrot.slane %v2714_v8, 5  ;;  %v3550_v10 = vrot.slane %v2716_v60, 5  ;;  %v2722_v19 = vld [vmem:[#allocation2 + $0xac] sm:$0xf]  ;;  %v335_v58 = vld [vmem:[%s7263_s25 + $0xf0] sm:$0xff] }
  0xd7   : > { %v3540_v33 = vsel %vm7650_vm2, %v3538_v52, %v3539_v56  ;;  %v3544_v21 = vsel %vm7650_vm2, %v6086_v59, %v3543_v31  ;;  %v3545_v61 = vrot.slane %v3543_v31, 4  ;;  %v6087_v22 = vrot.slane %v3418_v55, 9  ;;  %v2725_v4 = vld [vmem:[#allocation2 + $0xb8] sm:$0xf]  ;;  %v3420_v24 = vld [vmem:[#allocation2 + $0xa8] sm:$0xe] }
  0xd8   : > { %v1305_v62 = vsel %vm7304_vm13, %v1300_v23, %v1304_v12  ;;  %v6101_v13 = vcombine.low %v3537_v17, %v3540_v33  ;;  %v3552_v20 = vrot.slane %v3550_v10, 4  ;;  %v3553_v35 = vrot.slane %v2717_v44, 5  ;;  %v243_v12 = vld [vmem:[#allocation2 + $0xc0] sm:$0x1]  ;;  %v7113_v23 = vld [vmem:[#allocation2 + $0xc] sm:$0xf] }
  0xd9   : > { %v5913_v63 = vcombine.low %v1295_v46, %v1305_v62  ;;  %v3547_v27 = vsel %vm7650_vm2, %v3545_v61, %v3546_v28  ;;  %v6088_v34 = vrot.slane %v3419_v2, 9  ;;  %v3557_v9 = vrot.slane %v2719_v57, 5  ;;  %v299_v46 = vld [vmem:[#allocation2 + $0xc8] sm:$0x1]  ;;  %v7976_v56 = vld [vmem:[#allocation2 + $0x10] sm:$0xf] }
  0xda   : > { %6680 = vmatmul.mubr.msk.bf16.gmra.mrb[16].mxu0 %vm1359_vm12, %v6101_v13  ;;  %v6102_v6 = vcombine.low %v3544_v21, %v3547_v27  ;;  %v3560_v41 = vrot.slane %v2720_v30, 5  ;;  %v3551_v43 = vsel %vm7650_vm2, %v6087_v22, %v3550_v10  ;;  %v3554_v39 = vsel %vm7650_vm2, %v3552_v20, %v3553_v35  ;;  %v2723_v52 = vld [vmem:[#allocation2 + $0xb0] sm:$0x1]  ;;  %v336_v59 = vld [vmem:[%s7263_s25 + $0xf8] sm:$0xff]  ;;  %v7115_v62 = vld [vmem:[%s9207_s1 + $0x4] sm:$0x3] }
  0xdb   : > { %6522 = vmatmul.mubr.msk.bf16.gmra.mrb[28].mxu1 %vm1359_vm12, %v5913_v63  ;;  %v3559_v14 = vrot.slane %v3557_v9, 4  ;;  %v3564_v8 = vrot.slane %v2722_v19, 5  ;;  %v5932_v60 = vcombine.low %v7113_v23, %v7976_v56  ;;  %v3558_v17 = vsel %vm7650_vm2, %v6088_v34, %v3557_v9  ;;  %v7986_v55 = vld [vmem:[%s9207_s1 + $0xc] ss:$0 sps:$4 sm:$0xcc]  }
  0xdc   : > { %6527 = vmatprep.mubr.msk.bf16.mxu1 %vm1359_vm12, %v5931_v37  ;;  %6683 = vmatprep.mubr.msk.bf16.mxu0 %vm1359_vm12, %v6102_v6  ;;  %v2126_v15 = vsel %vm1408_vm0, %v7115_v62, 0  ;;  %v7116_v37 = vld [vmem:[#allocation2 + $0x18] sm:$0xf]  ;;  %v7992_v31 = vld [vmem:[#allocation2 + $0x1c] sm:$0xf]  ;;  %v3571_v10 = vrot.slane %v2725_v4, 5  ;;  %v6103_v57 = vcombine.low %v3551_v43, %v3554_v39  ;;  %v6304_v20 = vpack.c.bf16 %v335_v58, %v335_v58 }
  0xdd   : > { %v5933_v28 = vcombine.low %v7116_v37, %v7992_v31  ;;  %v3561_v44 = vsel %vm7650_vm2, %v3559_v14, %v3560_v41  ;;  %v2726_v63 = vld [vmem:[#allocation2 + $0xbc] sm:$0x1]  ;;  %v3421_v33 = vld [vmem:[#allocation2 + $0xb4] sm:$0xe]  ;;  %v6089_v2 = vrot.slane %v3420_v24, 9  ;;  %v244_v13 = vsel %vm7225_vm5, 0, %v243_v12 }
  0xde   : > { %v300_v21 = vsel %vm7235_vm6, 0, %v299_v46  ;;  %v6104_v61 = vcombine.low %v3558_v17, %v3561_v44  ;;  %v3566_v22 = vrot.slane %v3564_v8, 4  ;;  %v3567_v30 = vrot.slane %v2723_v52, 5  ;;  %245 = vst [vmem:[#allocation2 + $0xc0] sm:$0x1] %v244_v13 }
  0xdf   : > { %301 = vst [vmem:[#allocation2 + $0xc8] sm:$0x1] %v300_v21  ;;  %v6090_v35 = vrot.slane %v3421_v33, 9  ;;  %v3573_v19 = vrot.slane %v3571_v10, 4  ;;  %v3574_v27 = vrot.slane %v2726_v63, 5  ;;  %v6305_v34 = vpack.c.bf16 %v336_v59, %v336_v59 }
  0xe0   : > { %v691_v9 = vshrl.u32 %v6304_v20, 16  ;;  %v694_v6 = vshll.u32 %v6304_v20, 16  ;;  %v4722_v41 = vrot.slane %v7986_v55, 2  ;;  %v3565_v58 = vsel %vm7650_vm2, %v6089_v2, %v3564_v8  ;;  %v8013_v14 = vld [vmem:[#allocation2 + $0x28] sm:$0xf]  ;;  %v7079_v55 = vld [vmem:[#allocation2 + $0x30] sm:$0xff]  }
  0xe1   : > { %v699_v4 = vshrl.u32 %v6305_v34, 16  ;;  %v702_v12 = vshll.u32 %v6305_v34, 16  ;;  %v3568_v43 = vsel %vm7650_vm2, %v3566_v22, %v3567_v30  ;;  %v7119_v24 = vld [vmem:[#allocation2 + $0x24] sm:$0xf]  ;;  %v3572_v23 = vsel %vm7650_vm2, %v6090_v35, %v3571_v10  ;;  %v7120_v52 = vld [vmem:[#allocation2 + $0x30] sm:$0xf] }
  0xe2   : > { %6684 = vmatmul.mubr.msk.bf16.gmra.mrb[20].mxu0 %vm1359_vm12, %v6103_v57  ;;  %v693_v39 = vrot.slane %v691_v9, 7  ;;  %7063 = vmatprep.subr.msk.bf16.mxu0 %vm1408_vm0, %v4722_v41  ;;  %v5934_v46 = vcombine.low %v7119_v24, %v8013_v14  ;;  %v8023_v17 = vld [vmem:[%s9207_s1 + $0x4] ss:$0 sps:$4 sm:$0xcc]   ;;  %v8025_v59 = vld [vmem:[#allocation2 + $0x34] sm:$0xf]  ;;  %v5936_v22 = vcombine.low %v7122_v47, %v8043_v53 }
  0xe3   : > { %6528 = vmatmul.mubr.msk.bf16.vlgmr.msra.gmra.mrb[0].mxu1 %vm1359_vm12, %v5932_v60  ;;  %6687 = vmatprep.mubr.msk.bf16.mxu0 %vm1359_vm12, %v6104_v61  ;;  %v3575_v60 = vsel %vm7650_vm2, %v3573_v19, %v3574_v27  ;;  %v701_v8 = vrot.slane %v699_v4, 7  ;;  %v5935_v62 = vcombine.low %v7120_v52, %v8025_v59  ;;  %v9210_v61 = vrot.slane %v8023_v17, 2  ;;  %v7124_v30 = vld [vmem:[#allocation2 + $0x48] sm:$0xf]  ;;  %v8046_v20 = vld [vmem:[#allocation2 + $0x4c] sm:$0xf] }
  0xe4   : > { %6560 = vmatpush3.bf16.msra.mxu1 %v2126_v15  ;;  %6531 = vmatprep.mubr.msk.bf16.mxu1 %vm1359_vm12, %v5933_v28  ;;  %v696_v15 = vor.u32 %v694_v6, %v693_v39  ;;  %v697_v37 = vrot.slane %v693_v39, 4  ;;  %v6105_v28 = vcombine.low %v3565_v58, %v3568_v43  ;;  %v6106_v57 = vcombine.low %v3572_v23, %v3575_v60  ;;  %v7127_v23 = vld [vmem:[#allocation2 + $0x54] sm:$0xf]  ;;  %v1866_v47 = vld [vmem:[#allocation2 + $0xc] sm:$0xe] }
  0xe5   : > { %v704_v44 = vor.u32 %v702_v12, %v701_v8  ;;  %v706_v63 = vrot.slane %v701_v8, 4  ;;  %v863_v33 = vld [vmem:[#allocation2 + $0xc0] sm:$0xf]  ;;  %7058 = vmatprep.subr.msk.bf16.mxu1 %vm1408_vm0, %v9210_v61  ;;  %v5937_v35 = vcombine.low %v7124_v30, %v8046_v20  ;;  %v246_v12 = vld [vmem:[#allocation2 + $0xcc] sm:$0x1]  ;;  %v2956_v58 = vshll.u32 %v7943_v36, 16 }
  0xe6   : > { %v867_v10 = vld [vmem:[#allocation2 + $0xc8] sm:$0x1]  ;;  %v864_v2 = vsel %vm7288_vm10, %v696_v15, %v863_v33  ;;  %v2960_v43 = vshrl.u32 %v7943_v36, 16  ;;  %v247_v8 = vsel %vm7225_vm5, 0, %v246_v12  ;;  %v8062_v15 = vld [vmem:[#allocation2 + $0x64] sm:$0xf] }
  0xe7   : > { %v705_v13 = vsel %vm7297_vm11, %v697_v37, %v704_v44  ;;  %865 = vst [vmem:[#allocation2 + $0xc0] sm:$0xf] %v864_v2  ;;  %v868_v21 = vsel %vm7225_vm5, %v706_v63, %v867_v10  ;;  %v7076_v37 = vld [vmem:[#allocation2 + $0x18] sm:$0xff]   ;;  %248 = vst [vmem:[#allocation2 + $0xcc] sm:$0x1] %v247_v8  ;;  %v1925_v5 = vrot.slane %v7976_v56, 5 }
  0xe8   : > { %866 = vst.msk [vmem:[#allocation2 + $0xc4] sm:$0xf] %vm183_vm1, %v705_v13  ;;  %869 = vst [vmem:[#allocation2 + $0xc8] sm:$0x1] %v868_v21  ;;  %v8067_v44 = vrot.slane %v2960_v43, 4  ;;  %v1918_v2 = vrot.slane %v7959_v1, 5  ;;  %v5943_v43 = vcombine.low %v7827_v25, %v7833_v26 }
  0xe9   : > { %v7130_v33 = vld [vmem:[#allocation2 + $0x8] sm:$0x1]  ;;  %v7131_v13 = vld [vmem:[#allocation2 + $0x14] sm:$0x1]  ;;  %v2966_v56 = vshll.u32 %v7947_v29, 16  ;;  %v1946_v12 = vrot.slane %v8025_v59, 5 }
  0xea   : > { %6688 = vmatmul.mubr.msk.bf16.gmra.mrb[24].mxu0 %vm1359_vm12, %v6105_v28  ;;  %v8065_v28 = vrot.slane %v2956_v58, 5  ;;  %9242 = vst [vmem:[#allocation6_spill] sm:$0xff] %v8067_v44  ;;  %v1921_v10 = vrot.slane %v7130_v33, 5  ;;  %v1928_v21 = vrot.slane %v7131_v13, 5  ;;  %v1867_v1 = vld [vmem:[#allocation2 + $0x18] sm:$0xe] }
  0xeb   : > { %6532 = vmatmul.mubr.msk.bf16.gmra.mrb[4].mxu1 %vm1359_vm12, %v5934_v46  ;;  %6691 = vmatprep.mubr.msk.bf16.mxu0 %vm1359_vm12, %v6106_v57  ;;  %v8055_v46 = vld [vmem:[#allocation2 + $0x58] sm:$0xf]  ;;  %v1865_v57 = vld [vmem:[#allocation2] sm:$0xe]  ;;  %v1869_v29 = vld [vmem:[#allocation2 + $0x30] sm:$0xe] }
  0xec   : > { %6535 = vmatprep.mubr.msk.bf16.mxu1 %vm1359_vm12, %v5935_v62  ;;  %v5938_v60 = vcombine.low %v7127_v23, %v8055_v46  ;;  %v7128_v62 = vld [vmem:[#allocation2 + $0x60] sm:$0xf]  ;;  %9241 = vst [vmem:[#allocation5_spill] sm:$0xff] %v8065_v28  ;;  %v7078_v58 = vld [vmem:[#allocation2 + $0x24] sm:$0xff]   ;;  %v1927_v23 = vrot.slane %v1925_v5, 4  ;;  %v1948_v33 = vrot.slane %v1946_v12, 4 }
  0xed   : > { %v5939_v36 = vcombine.low %v7128_v62, %v8062_v15  ;;  %v7134_v8 = vld [vmem:[#allocation2 + $0x20] sm:$0x1]  ;;  %v7135_v62 = vld [vmem:[#allocation2 + $0x2c] sm:$0x1]  ;;  %v7136_v13 = vld [vmem:[#allocation2 + $0x38] sm:$0x1] }
  0xee   : > { %v3422_v19 = vld [vmem:[#allocation2 + $0xc0] sm:$0xe]  ;;  %v1974_v25 = vrot.slane %v8062_v15, 5  ;;  %v1874_v26 = vld [vmem:[#allocation2 + $0x6c] sm:$0xe] }
  0xef   : > { %v2728_v27 = vld [vmem:[#allocation2 + $0xc4] sm:$0xf]  ;;  %v2729_v34 = vld [vmem:[#allocation2 + $0xc8] sm:$0x1]  ;;  %v6091_v9 = vrot.slane %v3422_v19, 9 }
  0xf0   : > { %v3578_v6 = vrot.slane %v2728_v27, 5  ;;  %v3581_v4 = vrot.slane %v2729_v34, 5  ;;  %v8079_v19 = vld [vmem:[#allocation2 + $0x70] sm:$0xf]  ;;  %v1939_v34 = vrot.slane %v8013_v14, 5  ;;  %v1920_v14 = vrot.slane %v1918_v2, 4 }
  0xf1   : > { %v7140_v61 = vld [vmem:[#allocation2 + $0x68] sm:$0x1]  ;;  %v8244_v28 = vld [vmem:[#allocation2 + $0x38] sm:$0x1] }
  0xf2   : > { %v3579_v39 = vsel %vm7650_vm2, %v6091_v9, %v3578_v6  ;;  %v3580_v24 = vrot.slane %v3578_v6, 4  ;;  %v4772_v9 = vsel %vm1408_vm0, %v4722_v41, 0  ;;  %v5942_v6 = vcombine.low %v7789_v0, %v7795_v50  ;;  %9247 = vst [vmem:[#allocation9_spill] sm:$0xff] %v8244_v28 }
  0xf3   : > { %6536 = vmatmul.mubr.msk.bf16.gmra.mrb[8].mxu1 %vm1359_vm12, %v5936_v22  ;;  %v1932_v22 = vrot.slane %v7992_v31, 5  ;;  %v5941_v31 = vcombine.low %v7764_v48, %v7777_v42  ;;  %v5965_v41 = vrot.slane %v1867_v1, 9  ;;  %v1935_v48 = vrot.slane %v7134_v8, 5  ;;  %v4239_v8 = vld [vmem:[#allocation2 + $0x1c] sm:$0xf] }
  0xf4   : > { %6539 = vmatprep.mubr.msk.bf16.mxu1 %vm1359_vm12, %v5937_v35  ;;  %v3582_v52 = vsel %vm7650_vm2, %v3580_v24, %v3581_v4  ;;  %v7132_v35 = vld [vmem:[#allocation2 + $0x6c] sm:$0xf]  ;;  %v1868_v4 = vld [vmem:[#allocation2 + $0x24] sm:$0xe]  ;;  %v5964_v24 = vrot.slane %v1866_v47, 9  ;;  %v1953_v47 = vrot.slane %v8043_v53, 5 }
  0xf5   : > { %v6107_v63 = vcombine.low %v3579_v39, %v3582_v52  ;;  %v5940_v27 = vcombine.low %v7132_v35, %v8079_v19  ;;  %v5963_v39 = vrot.slane %v1865_v57, 9  ;;  %v5966_v42 = vrot.slane %v1868_v4, 9  ;;  %v8099_v35 = vld [vmem:[%s9207_s1 + $0x10] sm:$0x3] }
  0xf6   : > { %v1941_v52 = vrot.slane %v1939_v34, 4  ;;  %v1949_v57 = vrot.slane %v7136_v13, 5  ;;  %v8109_v4 = vsel %vm7650_vm2, %v1920_v14, %v1921_v10  ;;  %v8113_v53 = vsel %vm7650_vm2, %v5964_v24, %v1925_v5  ;;  %v4238_v24 = vld [vmem:[#allocation2 + $0x18] sm:$0xf]  ;;  %v4241_v13 = vld [vmem:[#allocation2 + $0x24] sm:$0xf] }
  0xf7   : > { %6692 = vmatmul.mubr.msk.bf16.gmra.mrb[28].mxu0 %vm1359_vm12, %v6107_v63  ;;  %v1870_v63 = vld [vmem:[#allocation2 + $0x3c] sm:$0xe]  ;;  %v8105_v1 = vsel %vm7650_vm2, %v5963_v39, %v1918_v2  ;;  %v8124_v2 = vsel %vm7650_vm2, %v5965_v41, %v1932_v22  ;;  %v8133_v5 = vsel %vm7650_vm2, %v5966_v42, %v1939_v34  ;;  %v7137_v34 = vld [vmem:[#allocation2 + $0x44] sm:$0x1]  ;;  %v1960_v14 = vrot.slane %v8046_v20, 5 }
  0xf8   : > { %6697 = vmatprep.mubr.msk.bf16.mxu0 %vm1359_vm12, %v7076_v37  ;;  %v5967_v37 = vrot.slane %v1869_v29, 9  ;;  %v8115_v29 = vrot.slane %v2966_v56, 5  ;;  %v1956_v39 = vrot.slane %v7137_v34, 5  ;;  %v4296_v20 = vshll.u32 %v4239_v8, 16  ;;  %v7083_v41 = vld [vmem:[#allocation2 + $0x60] sm:$0xff]  }
  0xf9   : > { %v1962_v30 = vrot.slane %v1960_v14, 4  ;;  %v4314_v0 = vshll.u32 %v4241_v13, 16 }
  0xfa   : > { %9243 = vst [vmem:[#allocation7_spill] sm:$0xff] %v8115_v29 }
  0xfb   : > { %6540 = vmatmul.mubr.msk.bf16.gmra.mrb[12].mxu1 %vm1359_vm12, %v5938_v60  ;;  %v1934_v60 = vrot.slane %v1932_v22, 4  ;;  %v5968_v22 = vrot.slane %v1870_v63, 9 }
  0xfc   : > { %6543 = vmatprep.mubr.msk.bf16.mxu1 %vm1359_vm12, %v5939_v36  ;;  %v1942_v36 = vrot.slane %v7135_v62, 5 }
  0xfd   : > { %v8128_v10 = vsel %vm7650_vm2, %v1934_v60, %v1935_v48  ;;  %v1967_v60 = vrot.slane %v8055_v46, 5  ;;  %v7081_v48 = vld [vmem:[#allocation2 + $0x48] sm:$0xff]   ;;  %v8167_v63 = vsel %vm7650_vm2, %v5968_v22, %v1953_v47  ;;  %v4287_v46 = vshrl.u32 %v4238_v24, 16 }
  0xfe   : > { %v8137_v56 = vsel %vm7650_vm2, %v1941_v52, %v1942_v36  ;;  %v1872_v36 = vld [vmem:[#allocation2 + $0x54] sm:$0xe]  ;;  %v4300_v52 = vshrl.u32 %v4239_v8, 16 }
  0xff   : > { %6698 = vmatmul.mubr.msk.bf16.vlgmr.msra.gmra.mrb[0].mxu0 %vm1359_vm12, %v7078_v58  ;;  %v1955_v58 = vrot.slane %v1953_v47, 4  ;;  %v7138_v47 = vld [vmem:[#allocation2 + $0x50] sm:$0x1] }
 0x100   : > { %6730 = vmatpush3.bf16.msra.mxu0 %v4772_v9  ;;  %6701 = vmatprep.mubr.msk.bf16.mxu0 %vm1359_vm12, %v7079_v55  ;;  %v1871_v9 = vld [vmem:[#allocation2 + $0x48] sm:$0xe]  ;;  %v7080_v55 = vld [vmem:[#allocation2 + $0x3c] sm:$0xff]   ;;  %v1963_v22 = vrot.slane %v7138_v47, 5  ;;  %v4302_v47 = vrot.slane %v4300_v52, 4 }
 0x101   : > { %7064 = vmatprep.subr.msk.bf16.mxu0 %vm1408_vm0, %v8099_v35  ;;  %v5969_v62 = vrot.slane %v1871_v9, 9  ;;  %v8171_v34 = vsel %vm7650_vm2, %v1955_v58, %v1956_v39  ;;  %v5970_v9 = vrot.slane %v1872_v36, 9  ;;  %v1873_v58 = vld [vmem:[#allocation2 + $0x60] sm:$0xe]  ;;  %v4311_v39 = vshrl.u32 %v4241_v13, 16  ;;  %v7082_v13 = vld [vmem:[#allocation2 + $0x54] sm:$0xff]  }
 0x102   : > { %v4289_v36 = vrot.slane %v4287_v46, 4  ;;  %v5971_v15 = vrot.slane %v1873_v58, 9  ;;  %v4240_v46 = vld [vmem:[#allocation2 + $0x20] sm:$0x1]  ;;  %v9244_v58 = vcombine.low %v7875_v38, %v7872_v51 }
 0x103   : > { %6544 = vmatmul.mubr.msk.bf16.gmra.mrb[16].mxu1 %vm1359_vm12, %v5940_v27  ;;  %v8120_v27 = vsel %vm7650_vm2, %v1927_v23, %v1928_v21  ;;  %v8141_v21 = vsel %vm7650_vm2, %v5967_v37, %v1946_v12  ;;  %v7139_v37 = vld [vmem:[#allocation2 + $0x5c] sm:$0x1]  ;;  %v8187_v8 = vsel %vm7650_vm2, %v5969_v62, %v1960_v14  ;;  %v8199_v14 = vsel %vm7650_vm2, %v5970_v9, %v1967_v60 }
 0x104   : > { %6547 = vmatprep.mubr.msk.bf16.mxu1 %vm1359_vm12, %v5941_v31  ;;  %v8147_v31 = vsel %vm7650_vm2, %v1948_v33, %v1949_v57  ;;  %v4290_v33 = vshll.u32 %v4238_v24, 16  ;;  %v4242_v57 = vld [vmem:[#allocation2 + $0x28] sm:$0xf]  ;;  %v1969_v24 = vrot.slane %v1967_v60, 4  ;;  %v1970_v42 = vrot.slane %v7139_v37, 5 }
 0x105   : > { %v4320_v50 = vshll.u32 %v4242_v57, 16  ;;  %v1977_v23 = vrot.slane %v7140_v61, 5  ;;  %v4244_v60 = vld [vmem:[#allocation2 + $0x30] sm:$0xf]  ;;  %v1976_v9 = vrot.slane %v1974_v25, 4 }
 0x106   : > { %v4292_v37 = vrot.slane %v4290_v33, 5  ;;  %v8203_v62 = vsel %vm7650_vm2, %v1969_v24, %v1970_v42  ;;  %v4316_v33 = vrot.slane %v4314_v0, 5  ;;  %v4306_v24 = vshll.u32 %v4240_v46, 16 }
 0x107   : > { %6702 = vmatmul.mubr.msk.bf16.gmra.mrb[4].mxu0 %vm1359_vm12, %v7080_v55  ;;  %v8205_v52 = vrot.slane %v4320_v50, 5  ;;  %v7142_v50 = vld [vmem:[#allocation2 + $0x7c] sm:$0xf]  ;;  %v8225_v46 = vsel %vm7650_vm2, %v5971_v15, %v1974_v25  ;;  %v8239_v25 = vld [vmem:[#allocation2 + $0x34] sm:$0xf] }
 0x108   : > { %6705 = vmatprep.mubr.msk.bf16.mxu0 %vm1359_vm12, %v7081_v48  ;;  %v8191_v48 = vrot.slane %v4296_v20, 5  ;;  %v4313_v20 = vrot.slane %v4311_v39, 4  ;;  %v4293_v59 = vor.u32 %v4292_v37, %v4289_v36  ;;  %v9245_v36 = vcombine.low %v7911_v49, %v7899_v32  ;;  %v1875_v37 = vld [vmem:[#allocation2 + $0x78] sm:$0xe]  ;;  %9246 = vst [vmem:[#allocation8_spill] sm:$0xff] %v8239_v25 }
 0x10a   : > { %v4303_v42 = vor.u32 %v4302_v47, %v8191_v48  ;;  %v4317_v51 = vor.u32 %v4316_v33, %v4313_v20  ;;  %v4338_v47 = vshll.u32 %v4244_v60, 16  ;;  %v4294_v49 = vrot.slane %v4293_v59, 4 }
 0x10b   : > { %6548 = vmatmul.mubr.msk.bf16.gmra.mrb[20].mxu1 %vm1359_vm12, %v5942_v6  ;;  %v4324_v6 = vshrl.u32 %v4242_v57, 16  ;;  %v8195_v57 = vsel %vm7650_vm2, %v1962_v30, %v1963_v22  ;;  %v5972_v30 = vrot.slane %v1874_v26, 9  ;;  %v7141_v22 = vld [vmem:[#allocation2 + $0x74] sm:$0x1]  ;;  %v4335_v26 = vshrl.u32 %v4244_v60, 16 }
 0x10c   : > { %6551 = vmatprep.mubr.msk.bf16.mxu1 %vm1359_vm12, %v5943_v43  ;;  %v1981_v43 = vrot.slane %v8079_v19, 5  ;;  %v4243_v19 = vld [vmem:[#allocation2 + $0x2c] sm:$0x1]  ;;  %v1984_v12 = vrot.slane %v7141_v22, 5  ;;  %v7143_v22 = vld [vmem:[#allocation2 + $0x88] sm:$0xf] }
 0x10d   : > { %v4326_v55 = vrot.slane %v4324_v6, 4  ;;  %v4330_v0 = vshll.u32 %v4243_v19, 16  ;;  %v1988_v6 = vrot.slane %v7142_v50, 5  ;;  %v4304_v20 = vrot.slane %v4303_v42, 4  ;;  %v1876_v60 = vld [vmem:[#allocation2 + $0x84] sm:$0xe] }
 0x10e   : > { %v1983_v3 = vrot.slane %v1981_v43, 4  ;;  %v8229_v19 = vsel %vm7650_vm2, %v5972_v30, %v1981_v43  ;;  %v4308_v33 = vrot.slane %v4306_v24, 5  ;;  %v5973_v50 = vrot.slane %v1875_v37, 9  ;;  %v7144_v30 = vld [vmem:[#allocation2 + $0x80] sm:$0x1] }
 0x10f   : > { %6706 = vmatmul.mubr.msk.bf16.gmra.mrb[8].mxu0 %vm1359_vm12, %v7082_v13  ;;  %v4327_v38 = vor.u32 %v4326_v55, %v8205_v52  ;;  %v7084_v13 = vld [vmem:[#allocation2 + $0x6c] sm:$0xff]   ;;  %v4332_v15 = vrot.slane %v4330_v0, 5  ;;  %v1990_v43 = vrot.slane %v1988_v6, 4  ;;  %v1991_v59 = vrot.slane %v7144_v30, 5  ;;  %v8248_v30 = vld [vmem:[#allocation2 + $0x40] sm:$0xf] }
 0x110   : > { %6709 = vmatprep.mubr.msk.bf16.mxu0 %vm1359_vm12, %v7083_v41  ;;  %v8233_v41 = vsel %vm7650_vm2, %v1976_v9, %v1977_v23  ;;  %v8237_v55 = vsel %vm7650_vm2, %v1983_v3, %v1984_v12  ;;  %v4318_v39 = vrot.slane %v4317_v51, 4  ;;  %v4337_v23 = vrot.slane %v4335_v26, 4  ;;  %v7145_v24 = vld [vmem:[#allocation2 + $0x8c] sm:$0x1]  ;;  %9248 = vst [vmem:[#allocation10_spill] sm:$0xff] %v8248_v30 }
 0x111   : > { %v4328_v61 = vrot.slane %v4327_v38, 4  ;;  %v4340_v9 = vrot.slane %v4338_v47, 5  ;;  %v4299_v3 = vsel %vm7304_vm13, %v4294_v49, %v8191_v48  ;;  %v5974_v12 = vrot.slane %v1876_v60, 9 }
 0x112   : > { %v1998_v29 = vrot.slane %v7145_v24, 5  ;;  %v4344_v0 = vshll.u32 %v8239_v25, 16  ;;  %v4348_v37 = vshrl.u32 %v8239_v25, 16  ;;  %v9249_v26 = vcombine.low %v7925_v54, %v7930_v18  ;;  %v7088_v24 = vld [vmem:[#allocation2 + $0x90] sm:$0xff]   ;;  %v7090_v25 = vld [vmem:[#allocation2 + $0xa8] sm:$0xff]  }
 0x113   : > { %6552 = vmatmul.mubr.msk.bf16.gmra.mrb[24].mxu1 %vm1359_vm12, %v9244_v58  ;;  %v1995_v58 = vrot.slane %v7143_v22, 5  ;;  %v7086_v22 = vld [vmem:[#allocation2 + $0x78] sm:$0xff]   ;;  %v9250_v48 = vrot.slane %v8023_v17, 2  ;;  %v4309_v49 = vsel %vm7304_vm13, %v4304_v20, %v4308_v33  ;;  %v8262_v60 = vsel %vm7650_vm2, %v5973_v50, %v1988_v6 }
 0x114   : > { %6555 = vmatprep.mubr.msk.bf16.mxu1 %vm1359_vm12, %v9245_v36  ;;  %v4247_v36 = vld [vmem:[#allocation2 + $0x3c] sm:$0xf]  ;;  %v9251_v54 = vcombine.low %v8105_v1, %v8109_v4  ;;  %v4323_v17 = vsel %vm7304_vm13, %v4318_v39, %v8205_v52  ;;  %v4341_v6 = vor.u32 %v4340_v9, %v4337_v23  ;;  %v4354_v20 = vshll.u32 %v8244_v28, 16  ;;  %v4250_v52 = vld [vmem:[#allocation2 + $0x48] sm:$0xf] }
 0x115   : > { %v1997_v42 = vrot.slane %v1995_v58, 4  ;;  %v4359_v51 = vshrl.u32 %v4247_v36, 16  ;;  %v4362_v38 = vshll.u32 %v4247_v36, 16  ;;  %v2487_v47 = vsel %vm1408_vm0, %v9250_v48, 0 }
 0x116   : > { %v8266_v36 = vsel %vm7650_vm2, %v1990_v43, %v1991_v59  ;;  %v8283_v1 = vsel %vm7650_vm2, %v5974_v12, %v1995_v58  ;;  %v4368_v50 = vshll.u32 %v8248_v30, 16  ;;  %v8290_v39 = vrot.slane %v4344_v0, 5  ;;  %v8292_v59 = vld [vmem:[#allocation2 + $0x4c] sm:$0xf]  ;;  %v8302_v12 = vld [vmem:[#allocation2 + $0x44] sm:$0x1] }
 0x117   : > { %6710 = vmatmul.mubr.msk.bf16.gmra.mrb[12].mxu0 %vm1359_vm12, %v7084_v13  ;;  %v4333_v13 = vsel %vm7304_vm13, %v4328_v61, %v4332_v15  ;;  %9252 = vst [vmem:[#allocation11_spill] sm:$0xff] %v8283_v1  ;;  %v8287_v4 = vsel %vm7650_vm2, %v1997_v42, %v1998_v29  ;;  %v4350_v61 = vrot.slane %v4348_v37, 4  ;;  %v4361_v15 = vrot.slane %v4359_v51, 4  ;;  %9254 = vst [vmem:[#allocation13_spill] sm:$0xff] %v8292_v59  ;;  %v4253_v42 = vld [vmem:[#allocation2 + $0x54] sm:$0xf] }
 0x118   : > { %6713 = vmatprep.mubr.msk.bf16.mxu0 %vm1359_vm12, %v7086_v22  ;;  %9253 = vst [vmem:[#allocation12_spill] sm:$0xff] %v8287_v4  ;;  %v4364_v43 = vrot.slane %v4362_v38, 5  ;;  %v7087_v22 = vld [vmem:[#allocation2 + $0x84] sm:$0xff]   ;;  %v8296_v58 = vcombine.low %v4299_v3, %v4309_v49  ;;  %v8298_v9 = vcombine.low %v4323_v17, %v4333_v13  ;;  %9255 = vst [vmem:[#allocation14_spill] sm:$0xff] %v8302_v12  ;;  %v8306_v37 = vrot.slane %v4341_v6, 4 }
 0x119   : > { %v8308_v51 = vrot.slane %v4354_v20, 5  ;;  %v4372_v38 = vshrl.u32 %v8248_v30, 16  ;;  %v8311_v3 = vld [vmem:[#allocation2 + $0x58] sm:$0xf]  ;;  %v4383_v48 = vshrl.u32 %v4250_v52, 16  ;;  %v4386_v49 = vshll.u32 %v4250_v52, 16 }
 0x11a   : > { %9256 = vst [vmem:[#allocation15_spill] sm:$0xff] %v8311_v3  ;;  %v4396_v17 = vshrl.u32 %v8292_v59, 16  ;;  %v4351_v13 = vor.u32 %v4350_v61, %v8290_v39  ;;  %v4365_v29 = vor.u32 %v4364_v43, %v4361_v15  ;;  %v8316_v23 = vrot.slane %v4368_v50, 5  ;;  %v7146_v15 = vld [vmem:[#allocation2 + $0x94] sm:$0xf] }
 0x11b   : > { %6556 = vmatmul.mubr.msk.bf16.gmra.mrb[28].mxu1 %vm1359_vm12, %v9249_v26  ;;  %v1877_v26 = vld [vmem:[#allocation2 + $0x90] sm:$0xe]  ;;  %v4378_v6 = vshll.u32 %v8302_v12, 16  ;;  %v9257_v20 = vcombine.low %v8113_v53, %v8120_v27  ;;  %v4407_v0 = vshrl.u32 %v4253_v42, 16  ;;  %v4410_v52 = vshll.u32 %v4253_v42, 16 }
 0x11c   : > { %6561 = vmatprep.mubr.msk.bf16.mxu1 %vm1359_vm12, %v9251_v54  ;;  %v4392_v54 = vshll.u32 %v8292_v59, 16  ;;  %v4416_v33 = vshll.u32 %v8311_v3, 16  ;;  %v4420_v30 = vshrl.u32 %v8311_v3, 16  ;;  %v9258_v50 = vcombine.low %v8124_v2, %v8128_v10  ;;  %v8335_v42 = vld [vmem:[#allocation2 + $0x9c] sm:$0xe] }
 0x11d   : > { %v4374_v27 = vrot.slane %v4372_v38, 4  ;;  %v5975_v61 = vrot.slane %v1877_v26, 9  ;;  %v2002_v43 = vrot.slane %v7146_v15, 5  ;;  %v4398_v2 = vrot.slane %v4396_v17, 4  ;;  %v7147_v10 = vld [vmem:[%s9207_s1 + $0x8] sm:$0x3] }
 0x11e   : > { %v8337_v12 = vrot.slane %v4392_v54, 5  ;;  %v8343_v38 = vrot.slane %v4351_v13, 4  ;;  %v8345_v26 = vrot.slane %v4365_v29, 4  ;;  %v8349_v53 = vld [vmem:[#allocation2 + $0x50] sm:$0x1]  ;;  %v4412_v54 = vrot.slane %v4410_v52, 5 }
 0x11f   : > { %6714 = vmatmul.mubr.msk.bf16.gmra.mrb[16].mxu0 %vm1359_vm12, %v7087_v22  ;;  %v7089_v22 = vld [vmem:[#allocation2 + $0x9c] sm:$0xff]   ;;  %9259 = vst [vmem:[#allocation16_spill] sm:$0xff] %v8349_v53  ;;  %v8353_v17 = vrot.slane %v4416_v33, 5  ;;  %v4422_v28 = vrot.slane %v4420_v30, 4  ;;  %v8358_v29 = vsel %vm7650_vm2, %v5975_v61, %v2002_v43  ;;  %v5976_v13 = vrot.slane %v8335_v42, 9 }
 0x120   : > { %6717 = vmatprep.mubr.msk.bf16.mxu0 %vm1359_vm12, %v7088_v24  ;;  %v7148_v24 = vld [vmem:[#allocation2 + $0x98] sm:$0x1]  ;;  %v2004_v3 = vrot.slane %v2002_v43, 4  ;;  %v4399_v4 = vor.u32 %v4398_v2, %v8337_v12  ;;  %v4256_v33 = vld [vmem:[#allocation2 + $0x60] sm:$0xf]  ;;  %v2016_v42 = vrot.slane %v7899_v32, 5  ;;  %v9261_v43 = vcombine.low %v8133_v5, %v8137_v56 }
 0x121   : > { %v2005_v15 = vrot.slane %v7148_v24, 5  ;;  %v7150_v52 = vld [vmem:[#allocation2 + $0xa4] sm:$0x1]  ;;  %v1879_v1 = vld [vmem:[#allocation2 + $0xa8] sm:$0xe]  ;;  %v4423_v2 = vor.u32 %v4422_v28, %v8353_v17  ;;  %v9262_v32 = vcombine.low %v8141_v21, %v8147_v31  ;;  %v7091_v21 = vld [vmem:[#allocation2 + $0xb4] sm:$0xff]  }
 0x123   : > { %6562 = vmatmul.mubr.msk.bf16.vlgmr.msra.gmra.mrb[0].mxu1 %vm1359_vm12, %v9257_v20  ;;  %v4388_v20 = vrot.slane %v4386_v49, 5  ;;  %v4409_v49 = vrot.slane %v4407_v0, 4  ;;  %v4402_v0 = vshll.u32 %v8349_v53, 16 }
 0x124   : > { %6594 = vmatpush3.bf16.msra.mxu1 %v2487_v47  ;;  %6565 = vmatprep.mubr.msk.bf16.mxu1 %vm1359_vm12, %v9258_v50  ;;  %v4385_v47 = vrot.slane %v4383_v48, 4  ;;  %v8347_v50 = vrot.slane %v4378_v6, 5  ;;  %v8351_v48 = vld [vmem:[#allocation2 + $0x5c] sm:$0x1]  ;;  %v7149_v6 = vld [vmem:[#allocation2 + $0xa0] sm:$0xf] }
 0x125   : > { %7060 = vmatprep.subr.msk.bf16.mxu1 %vm1408_vm0, %v7147_v10  ;;  %9260 = vst [vmem:[#allocation17_spill] sm:$0xff] %v8351_v48  ;;  %v4375_v10 = vor.u32 %v4374_v27, %v8316_v23  ;;  %v2009_v24 = vrot.slane %v7149_v6, 5  ;;  %v2012_v27 = vrot.slane %v7150_v52, 5  ;;  %v4426_v61 = vshll.u32 %v8351_v48, 16  ;;  %v1880_v6 = vld [vmem:[#allocation2 + $0xb4] sm:$0xe] }
 0x126   : > { %v4389_v59 = vor.u32 %v4388_v20, %v4385_v47  ;;  %v4371_v47 = vsel %vm7304_vm13, %v8345_v26, %v8316_v23  ;;  %v4413_v20 = vor.u32 %v4412_v54, %v4409_v49  ;;  %v2023_v52 = vrot.slane %v7930_v18, 5  ;;  %v8385_v49 = vld [vmem:[#allocation2 + $0x64] sm:$0xf] }
 0x127   : > { %6718 = vmatmul.mubr.msk.bf16.gmra.mrb[20].mxu0 %vm1359_vm12, %v7089_v22  ;;  %v4376_v5 = vrot.slane %v4375_v10, 4  ;;  %v2011_v56 = vrot.slane %v2009_v24, 4  ;;  %v4431_v22 = vshrl.u32 %v4256_v33, 16  ;;  %v4400_v48 = vrot.slane %v4399_v4, 4  ;;  %v7092_v10 = vld [vmem:[#allocation2 + $0xc0] sm:$0xff]  }
 0x128   : > { %6721 = vmatprep.mubr.msk.bf16.mxu0 %vm1359_vm12, %v7090_v25  ;;  %v4390_v30 = vrot.slane %v4389_v59, 4  ;;  %v4404_v23 = vrot.slane %v4402_v0, 5  ;;  %v5977_v26 = vrot.slane %v1879_v1, 9  ;;  %v4428_v28 = vrot.slane %v4426_v61, 5 }
 0x129   : > { %v2018_v54 = vrot.slane %v2016_v42, 4  ;;  %v2019_v18 = vrot.slane %v7917_v40, 5  ;;  %v5978_v53 = vrot.slane %v1880_v6, 9  ;;  %v4414_v31 = vrot.slane %v4413_v20, 4 }
 0x12a   : > { %v2025_v44 = vrot.slane %v2023_v52, 4  ;;  %v2026_v25 = vrot.slane %v7932_v16, 5  ;;  %v4433_v7 = vrot.slane %v4431_v22, 4  ;;  %v4440_v4 = vshll.u32 %v8385_v49, 16 }
 0x12b   : > { %6566 = vmatmul.mubr.msk.bf16.gmra.mrb[4].mxu1 %vm1359_vm12, %v9261_v43  ;;  %v4434_v43 = vshll.u32 %v4256_v33, 16  ;;  %v4444_v1 = vshrl.u32 %v8385_v49, 16  ;;  %v4381_v59 = vsel %vm7304_vm13, %v4376_v5, %v8347_v50  ;;  %v8396_v40 = vsel %vm7650_vm2, %v2004_v3, %v2005_v15  ;;  %v8419_v15 = vld [vmem:[#allocation2 + $0x68] sm:$0x1]  ;;  %v8453_v5 = vld [vmem:[#allocation2 + $0x74] sm:$0x1] }
 0x12c   : > { %6569 = vmatprep.mubr.msk.bf16.mxu1 %vm1359_vm12, %v9262_v32  ;;  %v4424_v32 = vrot.slane %v4423_v2, 4  ;;  %v8400_v0 = vsel %vm7650_vm2, %v5976_v13, %v2009_v24  ;;  %v8404_v16 = vsel %vm7650_vm2, %v2011_v56, %v2012_v27  ;;  %v4395_v61 = vsel %vm7304_vm13, %v4390_v30, %v8337_v12  ;;  %v4259_v13 = vld [vmem:[#allocation2 + $0x6c] sm:$0xf]  ;;  %v8421_v24 = vld [vmem:[#allocation2 + $0x70] sm:$0xf] }
 0x12d   : > { %v4436_v33 = vrot.slane %v4434_v43, 5  ;;  %v4405_v20 = vsel %vm7304_vm13, %v4400_v48, %v4404_v23  ;;  %v8413_v50 = vsel %vm7650_vm2, %v5977_v26, %v2016_v42  ;;  %v8417_v3 = vsel %vm7650_vm2, %v2018_v54, %v2019_v18  ;;  %v4262_v23 = vld [vmem:[#allocation2 + $0x78] sm:$0xf]  ;;  %v7093_v26 = vld [vmem:[#allocation2 + $0xcc] sm:$0xff]  }
 0x12e   : > { %v9263_v27 = vcombine.low %v8167_v63, %v8171_v34  ;;  %v8430_v12 = vsel %vm1408_vm0, %v8099_v35, 0  ;;  %v4419_v48 = vsel %vm7304_vm13, %v4414_v31, %v8353_v17  ;;  %v4429_v30 = vsel %vm7304_vm13, %v4424_v32, %v4428_v28  ;;  %v8489_v32 = vld [vmem:[#allocation2 + $0x88] sm:$0xf]  ;;  %v8531_v43 = vld [vmem:[#allocation2 + $0x8c] sm:$0x1] }
 0x12f   : > { %6722 = vmatmul.mubr.msk.bf16.gmra.mrb[24].mxu0 %vm1359_vm12, %v7091_v21  ;;  %v8439_v42 = vsel %vm7650_vm2, %v5978_v53, %v2023_v52  ;;  %v9264_v63 = vcombine.low %v8187_v8, %v8195_v57  ;;  %v8448_v35 = vsel %vm7650_vm2, %v2025_v44, %v2026_v25  ;;  %v4437_v34 = vor.u32 %v4436_v33, %v4433_v7 }
 0x130   : > { %6725 = vmatprep.mubr.msk.bf16.mxu0 %vm1359_vm12, %v7092_v10  ;;  %v8450_v17 = vrot.slane %v4440_v4, 5  ;;  %v4446_v2 = vrot.slane %v4444_v1, 4  ;;  %v4450_v6 = vshll.u32 %v8419_v15, 16  ;;  %v4455_v53 = vshrl.u32 %v4259_v13, 16  ;;  %v4268_v1 = vld [vmem:[#allocation2 + $0x90] sm:$0xf] }
 0x131   : > { %v4458_v52 = vshll.u32 %v4259_v13, 16  ;;  %v4464_v8 = vshll.u32 %v8421_v24, 16  ;;  %v9265_v57 = vsel %vm7304_vm13, %v8343_v38, %v8308_v51  ;;  %v9266_v7 = vsel %vm7304_vm13, %v8306_v37, %v8290_v39  ;;  %v8482_v37 = vld [vmem:[#allocation2 + $0x7c] sm:$0xf] }
 0x132   : > { %v8466_v44 = vcombine.low %v9266_v7, %v9265_v57  ;;  %v8468_v56 = vcombine.low %v4371_v47, %v4381_v59  ;;  %v8474_v28 = vcombine.low %v4395_v61, %v4405_v20  ;;  %v8476_v51 = vcombine.low %v4419_v48, %v4429_v30  ;;  %v4265_v47 = vld [vmem:[#allocation2 + $0x84] sm:$0xf] }
 0x133   : > { %6570 = vmatmul.mubr.msk.bf16.gmra.mrb[8].mxu1 %vm1359_vm12, %v9263_v27  ;;  %v8484_v54 = vrot.slane %v4437_v34, 4  ;;  %v4447_v18 = vor.u32 %v4446_v2, %v8450_v17  ;;  %v4468_v21 = vshrl.u32 %v8421_v24, 16  ;;  %v4474_v31 = vshll.u32 %v8453_v5, 16  ;;  %v8497_v27 = vld [vmem:[#allocation2 + $0x94] sm:$0xf] }
 0x134   : > { %6573 = vmatprep.mubr.msk.bf16.mxu1 %vm1359_vm12, %v9264_v63  ;;  %v8491_v25 = vrot.slane %v4450_v6, 5  ;;  %v4457_v10 = vrot.slane %v4455_v53, 4  ;;  %v4460_v33 = vrot.slane %v4458_v52, 5  ;;  %v8493_v4 = vrot.slane %v4464_v8, 5  ;;  %9267 = vst [vmem:[#allocation18_spill] sm:$0xff] %v8497_v27 }
 0x135   : > { %v4479_v59 = vshrl.u32 %v4262_v23, 16  ;;  %v4482_v61 = vshll.u32 %v4262_v23, 16  ;;  %v4488_v20 = vshll.u32 %v8482_v37, 16  ;;  %v4492_v13 = vshrl.u32 %v8482_v37, 16  ;;  %v8522_v23 = vld [vmem:[#allocation2 + $0x80] sm:$0x1] }
 0x136   : > { %v9268_v48 = vcombine.low %v8199_v14, %v8203_v62  ;;  %v4503_v30 = vshrl.u32 %v4265_v47, 16  ;;  %v4506_v63 = vshll.u32 %v4265_v47, 16  ;;  %v4512_v34 = vshll.u32 %v8489_v32, 16 }
 0x137   : > { %6726 = vmatmul.mubr.msk.bf16.gmra.mrb[28].mxu0 %vm1359_vm12, %v7093_v26  ;;  %v4516_v2 = vshrl.u32 %v8489_v32, 16  ;;  %v9269_v6 = vcombine.low %v8225_v46, %v8233_v41  ;;  %v8516_v62 = vrot.slane %v4447_v18, 4  ;;  %v4470_v53 = vrot.slane %v4468_v21, 4  ;;  %v4271_v41 = vld [vmem:[#allocation2 + $0x9c] sm:$0xf] }
 0x138   : > { %6731 = vmatprep.mubr.msk.bf16.mxu0 %vm1359_vm12, %v8296_v58  ;;  %v8518_v52 = vrot.slane %v4474_v31, 5  ;;  %v4527_v8 = vshrl.u32 %v4268_v1, 16  ;;  %v4530_v57 = vshll.u32 %v4268_v1, 16  ;;  %v4536_v7 = vshll.u32 %v8497_v27, 16  ;;  %v8528_v31 = vld [vmem:[#allocation2 + $0xa0] sm:$0xf] }
 0x139   : > { %v4540_v46 = vshrl.u32 %v8497_v27, 16  ;;  %v4481_v58 = vrot.slane %v4479_v59, 4  ;;  %v4484_v26 = vrot.slane %v4482_v61, 5  ;;  %v8524_v47 = vrot.slane %v4488_v20, 5  ;;  %v8533_v27 = vld [vmem:[#allocation2 + $0x98] sm:$0x1] }
 0x13a   : > { %v4508_v18 = vrot.slane %v4506_v63, 5  ;;  %v8526_v39 = vrot.slane %v4512_v34, 5  ;;  %v4518_v21 = vrot.slane %v4516_v2, 4  ;;  %v4461_v1 = vor.u32 %v4460_v33, %v4457_v10  ;;  %v302_v33 = vld [vmem:[#allocation2 + $0xd4] sm:$0x1] }
 0x13b   : > { %6574 = vmatmul.mubr.msk.bf16.gmra.mrb[12].mxu1 %vm1359_vm12, %v9268_v48  ;;  %v4494_v48 = vrot.slane %v4492_v13, 4  ;;  %v4471_v38 = vor.u32 %v4470_v53, %v8493_v4  ;;  %v4551_v14 = vshrl.u32 %v4271_v41, 16  ;;  %v4554_v22 = vshll.u32 %v4271_v41, 16 }
 0x13c   : > { %6577 = vmatprep.mubr.msk.bf16.mxu1 %vm1359_vm12, %v9269_v6  ;;  %v4505_v6 = vrot.slane %v4503_v30, 4  ;;  %v4529_v59 = vrot.slane %v4527_v8, 4  ;;  %v4532_v61 = vrot.slane %v4530_v57, 5  ;;  %v8535_v20 = vrot.slane %v4536_v7, 5 }
 0x13d   : > { %v4542_v13 = vrot.slane %v4540_v46, 4  ;;  %v4485_v30 = vor.u32 %v4484_v26, %v4481_v58  ;;  %v4498_v63 = vshll.u32 %v8522_v23, 16  ;;  %v4560_v34 = vshll.u32 %v8528_v31, 16 }
 0x13e   : > { %v4564_v10 = vshrl.u32 %v8528_v31, 16  ;;  %v9270_v2 = vcombine.low %v8229_v19, %v8237_v55  ;;  %v4495_v53 = vor.u32 %v4494_v48, %v8524_v47  ;;  %v4509_v8 = vor.u32 %v4508_v18, %v4505_v6  ;;  %v4274_v6 = vld [vmem:[#allocation2 + $0xa8] sm:$0xf] }
 0x13f   : > { %6732 = vmatmul.mubr.msk.bf16.vlgmr.msra.gmra.mrb[0].mxu0 %vm1359_vm12, %v8298_v9  ;;  %v4519_v57 = vor.u32 %v4518_v21, %v8526_v39  ;;  %v4522_v7 = vshll.u32 %v8531_v43, 16  ;;  %v9271_v46 = vcombine.low %v8262_v60, %v8266_v36  ;;  %v4462_v19 = vrot.slane %v4461_v1, 4 }
 0x140   : > { %6764 = vmatpush3.bf16.msra.mxu0 %v8430_v12  ;;  %v4472_v55 = vrot.slane %v4471_v38, 4  ;;  %v4553_v41 = vrot.slane %v4551_v14, 4  ;;  %v4556_v58 = vrot.slane %v4554_v22, 5  ;;  %6735 = vmatprep.mubr.msk.bf16.mxu0 %vm1359_vm12, %v8466_v44  ;;  %v4533_v9 = vor.u32 %v4532_v61, %v4529_v59  ;;  %v8562_v44 = vld [vmem:[#allocation2 + $0xa4] sm:$0x1] }
 0x141   : > { %v4543_v26 = vor.u32 %v4542_v13, %v8535_v20  ;;  %v4546_v48 = vshll.u32 %v8533_v27, 16  ;;  %v303_v12 = vsel %vm7235_vm6, 0, %v302_v33  ;;  %v4486_v21 = vrot.slane %v4485_v30, 4 }
 0x142   : > { %v4500_v60 = vrot.slane %v4498_v63, 5  ;;  %v8560_v36 = vrot.slane %v4560_v34, 5  ;;  %v4566_v1 = vrot.slane %v4564_v10, 4  ;;  %304 = vst [vmem:[#allocation2 + $0xd4] sm:$0x1] %v303_v12  ;;  %v4496_v38 = vrot.slane %v4495_v53, 4 }
 0x143   : > { %6578 = vmatmul.mubr.msk.bf16.gmra.mrb[16].mxu1 %vm1359_vm12, %v9270_v2  ;;  %v4510_v22 = vrot.slane %v4509_v8, 4  ;;  %v4520_v14 = vrot.slane %v4519_v57, 4  ;;  %v4524_v2 = vrot.slane %v4522_v7, 5  ;;  %v4453_v59 = vsel %vm7304_vm13, %v8516_v62, %v8491_v25  ;;  %v8571_v53 = vld [vmem:[#allocation2 + $0xac] sm:$0xf] }
 0x144   : > { %6581 = vmatprep.mubr.msk.bf16.mxu1 %vm1359_vm12, %v9271_v46  ;;  %v4557_v61 = vor.u32 %v4556_v58, %v4553_v41  ;;  %v4575_v13 = vshrl.u32 %v4274_v6, 16  ;;  %v4578_v33 = vshll.u32 %v4274_v6, 16  ;;  %v4467_v30 = vsel %vm7304_vm13, %v4462_v19, %v8493_v4  ;;  %v8581_v7 = vld [vmem:[#allocation2 + $0xb0] sm:$0x1]  ;;  %v9274_v46 = vld [vmem:[#allocation5_spill] sm:$0xff]  ;;  %v9276_v58 = vld [vmem:[#allocation11_spill] sm:$0xff] }
 0x145   : > { %v4534_v63 = vrot.slane %v4533_v9, 4  ;;  %v4544_v34 = vrot.slane %v4543_v26, 4  ;;  %v4548_v10 = vrot.slane %v4546_v48, 5  ;;  %v4477_v8 = vsel %vm7304_vm13, %v4472_v55, %v8518_v52  ;;  %v9273_v4 = vld [vmem:[#allocation6_spill] sm:$0xff]  ;;  %v9277_v9 = vld [vmem:[#allocation12_spill] sm:$0xff] }
 0x146   : > { %v4491_v25 = vsel %vm7304_vm13, %v4486_v21, %v8524_v47  ;;  %v4567_v62 = vor.u32 %v4566_v1, %v8560_v36  ;;  %v4570_v57 = vshll.u32 %v8562_v44, 16  ;;  %v9275_v19 = vor.u32 %v9273_v4, %v9274_v46  ;;  %v4277_v48 = vld [vmem:[#allocation2 + $0xb4] sm:$0xf] }
 0x147   : > { %v9278_v26 = vcombine.low %v9276_v58, %v9277_v9  ;;  %6736 = vmatmul.mubr.msk.bf16.gmra.mrb[4].mxu0 %vm1359_vm12, %v8468_v56  ;;  %v4501_v52 = vsel %vm7304_vm13, %v4496_v38, %v4500_v60  ;;  %v4515_v47 = vsel %vm7304_vm13, %v4510_v22, %v8526_v39  ;;  %v4525_v55 = vsel %vm7304_vm13, %v4520_v14, %v4524_v2  ;;  %v4971_v14 = vld [vmem:[#allocation2 + $0x48] sm:$0xe] }
 0x148   : > { %v8586_v41 = vrot.slane %v9275_v19, 4  ;;  %v9279_v6 = vcombine.low %v8358_v29, %v8396_v40  ;;  %6739 = vmatprep.mubr.msk.bf16.mxu0 %vm1359_vm12, %v8474_v28  ;;  %v8607_v56 = vrot.slane %v4557_v61, 4  ;;  %v4577_v18 = vrot.slane %v4575_v13, 4 }
 0x149   : > { %v4580_v12 = vrot.slane %v4578_v33, 5  ;;  %v4584_v21 = vshll.u32 %v8571_v53, 16  ;;  %v4539_v39 = vsel %vm7304_vm13, %v4534_v63, %v8535_v20  ;;  %v4549_v60 = vsel %vm7304_vm13, %v4544_v34, %v4548_v10  ;;  %v8630_v63 = vld [vmem:[#allocation2 + $0xb8] sm:$0xf] }
 0x14a   : > { %v4588_v29 = vshrl.u32 %v8571_v53, 16  ;;  %v4594_v40 = vshll.u32 %v8581_v7, 16  ;;  %v8617_v1 = vrot.slane %v4567_v62, 4  ;;  %v8619_v28 = vrot.slane %v4570_v57, 5 }
 0x14b   : > { %6582 = vmatmul.mubr.msk.bf16.gmra.mrb[20].mxu1 %vm1359_vm12, %v9278_v26  ;;  %v4599_v38 = vshrl.u32 %v4277_v48, 16  ;;  %v4602_v22 = vshll.u32 %v4277_v48, 16  ;;  %v9280_v2 = vsel %vm7304_vm13, %v8484_v54, %v8450_v17  ;;  %v6164_v61 = vcombine.low %v4467_v30, %v4477_v8  ;;  %v4972_v8 = vld [vmem:[#allocation2 + $0x54] sm:$0xe]  ;;  %v4973_v26 = vld [vmem:[#allocation2 + $0x60] sm:$0xe] }
 0x14c   : > { %6585 = vmatprep.mubr.msk.bf16.mxu1 %vm1359_vm12, %v9279_v6  ;;  %v6163_v20 = vcombine.low %v9280_v2, %v4453_v59  ;;  %v8626_v13 = vcombine.low %v4491_v25, %v4501_v52  ;;  %v8628_v33 = vcombine.low %v4515_v47, %v4525_v55  ;;  %v8632_v34 = vcombine.low %v4539_v39, %v4549_v60  ;;  %v9281_v59 = vld [vmem:[#allocation13_spill] sm:$0xff]  ;;  %v9283_v6 = vld [vmem:[#allocation16_spill] sm:$0xff] }
 0x14d   : > { %v4563_v10 = vsel %vm7304_vm13, %v8607_v56, %v8560_v36  ;;  %v4581_v62 = vor.u32 %v4580_v12, %v4577_v18  ;;  %v8638_v57 = vrot.slane %v4584_v21, 5  ;;  %v4590_v4 = vrot.slane %v4588_v29, 4  ;;  %v9286_v39 = vld [vmem:[#allocation17_spill] sm:$0xff] }
 0x14e   : > { %v8640_v17 = vrot.slane %v4594_v40, 5  ;;  %v6194_v54 = vrot.slane %v4971_v14, 9  ;;  %v5061_v30 = vrot.slane %v9281_v59, 5  ;;  %v4573_v25 = vsel %vm7304_vm13, %v8617_v1, %v8619_v28  ;;  %v4974_v29 = vld [vmem:[#allocation2 + $0x6c] sm:$0xe]  ;;  %v7098_v28 = vld [vmem:[#allocation2 + $0x3c] sm:$0xff]  }
 0x14f   : > { %v8647_v19 = vrot.slane %v4599_v38, 4  ;;  %v8649_v58 = vrot.slane %v4602_v22, 5  ;;  %v4608_v9 = vshll.u32 %v8630_v63, 16  ;;  %v9282_v52 = vcombine.low %v8400_v0, %v8404_v16  ;;  %6740 = vmatmul.mubr.msk.bf16.gmra.mrb[8].mxu0 %vm1359_vm12, %v8476_v51  ;;  %v9285_v51 = vld [vmem:[#allocation15_spill] sm:$0xff]  ;;  %v4977_v1 = vld [vmem:[#allocation2 + $0x90] sm:$0xe] }
 0x150   : > { %v4612_v47 = vshrl.u32 %v8630_v63, 16  ;;  %v8661_v55 = vsel %vm7650_vm2, %v6194_v54, %v5061_v30  ;;  %v5063_v48 = vrot.slane %v5061_v30, 4  ;;  %v5064_v18 = vrot.slane %v9283_v6, 5  ;;  %6743 = vmatprep.mubr.msk.bf16.mxu0 %vm1359_vm12, %v6163_v20  ;;  %v2709_v6 = vld [vmem:[#allocation2 + $0x78] sm:$0xf] }
 0x151   : > { %v9284_v12 = vcombine.low %v8413_v50, %v8417_v3  ;;  %v8669_v0 = vrot.slane %v4581_v62, 4  ;;  %v6195_v16 = vrot.slane %v4972_v8, 9  ;;  %v5068_v21 = vrot.slane %v9285_v51, 5  ;;  %v8679_v3 = vld [vmem:[#allocation2 + $0xbc] sm:$0x1]  ;;  %v7094_v8 = vld [vmem:[#allocation2 + $0xc] sm:$0xff]  }
 0x152   : > { %v5071_v60 = vrot.slane %v9286_v39, 5  ;;  %v4591_v40 = vor.u32 %v4590_v4, %v8638_v57  ;;  %v8676_v38 = vsel %vm7650_vm2, %v5063_v48, %v5064_v18  ;;  %v6196_v22 = vrot.slane %v4973_v26, 9  ;;  %v4280_v4 = vld [vmem:[#allocation2 + $0xc0] sm:$0xf]  ;;  %v8702_v18 = vld [vmem:[#allocation2 + $0xc4] sm:$0xf] }
 0x153   : > { %6586 = vmatmul.mubr.msk.bf16.gmra.mrb[24].mxu1 %vm1359_vm12, %v9282_v52  ;;  %v5075_v50 = vrot.slane %v8385_v49, 5  ;;  %v8685_v2 = vsel %vm7650_vm2, %v6195_v16, %v5068_v21  ;;  %v5070_v20 = vrot.slane %v5068_v21, 4  ;;  %v5078_v62 = vrot.slane %v8419_v15, 5 }
 0x154   : > { %6589 = vmatprep.mubr.msk.bf16.mxu1 %vm1359_vm12, %v9284_v12  ;;  %v6197_v30 = vrot.slane %v4974_v29, 9  ;;  %v5082_v49 = vrot.slane %v8421_v24, 5  ;;  %v8693_v26 = vrot.slane %v4608_v9, 5  ;;  %v8695_v52 = vrot.slane %v4612_v47, 4 }
 0x155   : > { %v8690_v54 = vsel %vm7650_vm2, %v6196_v22, %v5075_v50  ;;  %v5077_v59 = vrot.slane %v5075_v50, 4  ;;  %v8699_v48 = vsel %vm7650_vm2, %v5070_v20, %v5071_v60  ;;  %v5085_v15 = vrot.slane %v8453_v5, 5  ;;  %v4975_v20 = vld [vmem:[#allocation2 + $0x78] sm:$0xe]  ;;  %v7096_v60 = vld [vmem:[#allocation2 + $0x24] sm:$0xff]  }
 0x156   : > { %v8712_v9 = vsel %vm7650_vm2, %v6197_v30, %v5082_v49  ;;  %v5084_v47 = vrot.slane %v5082_v49, 4  ;;  %v4623_v51 = vshrl.u32 %v4280_v4, 16  ;;  %v9287_v39 = vcombine.low %v8439_v42, %v8448_v35  ;;  %v8750_v5 = vld [vmem:[#allocation2 + $0xd0] sm:$0xf] }
 0x157   : > { %v8708_v24 = vsel %vm7650_vm2, %v5077_v59, %v5078_v62  ;;  %6744 = vmatmul.mubr.msk.bf16.gmra.mrb[12].mxu0 %vm1359_vm12, %v6164_v61  ;;  %v4626_v29 = vshll.u32 %v4280_v4, 16  ;;  %v2947_v50 = vshrl.u32 %v2709_v6, 16  ;;  %v4592_v42 = vrot.slane %v4591_v40, 4  ;;  %v4976_v59 = vld [vmem:[#allocation2 + $0x84] sm:$0xe] }
 0x158   : > { %v8730_v22 = vsel %vm7650_vm2, %v5084_v47, %v5085_v15  ;;  %6747 = vmatprep.mubr.msk.bf16.mxu0 %vm1359_vm12, %v8626_v13  ;;  %v4632_v35 = vshll.u32 %v8702_v18, 16  ;;  %v2950_v62 = vshll.u32 %v2709_v6, 16  ;;  %v4615_v4 = vor.u32 %v8695_v52, %v8693_v26  ;;  %v9288_v15 = vld [vmem:[#allocation7_spill] sm:$0xff]  ;;  %v4283_v6 = vld [vmem:[#allocation2 + $0xcc] sm:$0xf] }
 0x159   : > { %v4636_v30 = vshrl.u32 %v8702_v18, 16  ;;  %v2949_v49 = vrot.slane %v2947_v50, 4  ;;  %v7095_v13 = vld [vmem:[#allocation2 + $0x18] sm:$0xff]   ;;  %v4625_v40 = vrot.slane %v4623_v51, 4  ;;  %v5089_v21 = vrot.slane %v8482_v37, 5 }
 0x15a   : > { %v2952_v47 = vrot.slane %v2950_v62, 5  ;;  %v4628_v61 = vrot.slane %v4626_v29, 5  ;;  %v5092_v12 = vrot.slane %v8522_v23, 5  ;;  %v6199_v14 = vrot.slane %v4976_v59, 9 }
 0x15b   : > { %6590 = vmatmul.mubr.msk.bf16.gmra.mrb[28].mxu1 %vm1359_vm12, %v9287_v39  ;;  %v6198_v39 = vrot.slane %v4975_v20, 9  ;;  %v5096_v52 = vrot.slane %v8489_v32, 5  ;;  %v8748_v50 = vrot.slane %v4632_v35, 5  ;;  %v5091_v51 = vrot.slane %v5089_v21, 4  ;;  %v8761_v32 = vld [vmem:[#allocation2 + $0xc8] sm:$0x1] }
 0x15c   : > { %6595 = vmatprep.mubr.msk.bf16.mxu1 %vm1359_vm12, %v7094_v8  ;;  %v2969_v8 = vsel %vm7304_vm13, %v8586_v41, %v9288_v15  ;;  %v2953_v16 = vor.u32 %v2952_v47, %v2949_v49  ;;  %v4638_v20 = vrot.slane %v4636_v30, 4  ;;  %v5099_v29 = vrot.slane %v8531_v43, 5 }
 0x15d   : > { %v8754_v41 = vsel %vm7650_vm2, %v6198_v39, %v5089_v21  ;;  %v8758_v37 = vsel %vm7650_vm2, %v6199_v14, %v5096_v52  ;;  %v5098_v23 = vrot.slane %v5096_v52, 4  ;;  %v4647_v35 = vshrl.u32 %v4283_v6, 16 }
 0x15e   : > { %v4650_v62 = vshll.u32 %v4283_v6, 16  ;;  %v2954_v59 = vrot.slane %v2953_v16, 4  ;;  %v8765_v49 = vsel %vm7650_vm2, %v5091_v51, %v5092_v12  ;;  %v4656_v14 = vshll.u32 %v8750_v5, 16  ;;  %v9289_v16 = vld [vmem:[#allocation3_spill] sm:$0xff]  ;;  %v7097_v6 = vld [vmem:[#allocation2 + $0x30] sm:$0xff]  }
 0x15f   : > { %6748 = vmatmul.mubr.msk.bf16.gmra.mrb[16].mxu0 %vm1359_vm12, %v8628_v33  ;;  %v4660_v21 = vshrl.u32 %v8750_v5, 16  ;;  %v6214_v43 = vcombine.low %v8754_v41, %v8765_v49  ;;  %v8776_v30 = vsel %vm7650_vm2, %v5098_v23, %v5099_v29  ;;  %v4597_v12 = vsel %vm7304_vm13, %v4592_v42, %v8640_v17 }
 0x160   : > { %v2959_v33 = vsel %vm7304_vm13, %v2954_v59, %v9274_v46  ;;  %v6215_v15 = vcombine.low %v8758_v37, %v8776_v30  ;;  %6751 = vmatprep.mubr.msk.bf16.mxu0 %vm1359_vm12, %v8632_v34  ;;  %v4639_v47 = vor.u32 %v4638_v20, %v8748_v50  ;;  %v4642_v39 = vshll.u32 %v8761_v32, 16 }
 0x161   : > { %v6168_v46 = vcombine.low %v4563_v10, %v4573_v25  ;;  %v9290_v34 = vor.u32 %v8649_v58, %v8647_v19  ;;  %v4616_v42 = vrot.slane %v4615_v4, 4  ;;  %v4652_v52 = vrot.slane %v4650_v62, 5  ;;  %v4978_v10 = vld [vmem:[#allocation2 + $0x9c] sm:$0xe]  ;;  %v8816_v4 = vld [vmem:[#allocation2 + $0xd4] sm:$0x1] }
 0x162   : > { %v8809_v51 = vrot.slane %v4656_v14, 5  ;;  %v4662_v20 = vrot.slane %v4660_v21, 4  ;;  %v9292_v36 = vsel %vm7304_vm13, %v8669_v0, %v8638_v57  ;;  %v4640_v19 = vrot.slane %v4639_v47, 4 }
 0x163   : > { %6596 = vmatmul.mubr.msk.bf16.vlgmr.msra.gmra.mrb[0].mxu1 %vm1359_vm12, %v7095_v13  ;;  %v4629_v13 = vor.u32 %v4628_v61, %v4625_v40  ;;  %v4606_v17 = vrot.slane %v9290_v34, 4  ;;  %v9291_v61 = vshll.u32 %v8679_v3, 16  ;;  %v4649_v40 = vrot.slane %v4647_v35, 4  ;;  %v9293_v35 = vld [vmem:[#allocation18_spill] sm:$0xff] }
 0x164   : > { %6798 = vmatpush3.bf16.msra.mxu1 %v9289_v16  ;;  %6599 = vmatprep.mubr.msk.bf16.mxu1 %vm1359_vm12, %v7096_v60  ;;  %v8792_v60 = vcombine.low %v2959_v33, %v2969_v8  ;;  %v6169_v56 = vcombine.low %v9292_v36, %v4597_v12  ;;  %v4644_v58 = vrot.slane %v4642_v39, 5  ;;  %v6200_v29 = vrot.slane %v4977_v1, 9  ;;  %v4967_v16 = vld [vmem:[#allocation2 + $0x18] sm:$0xe]  ;;  %v7151_v39 = vld [vmem:[#allocation2 + $0x1c] sm:$0xf] }
 0x165   : > { %v4620_v8 = vrot.slane %v9291_v61, 5  ;;  %v4630_v25 = vrot.slane %v4629_v13, 4  ;;  %v4611_v23 = vsel %vm7304_vm13, %v4606_v17, %v8693_v26  ;;  %v5103_v62 = vrot.slane %v9293_v35, 5  ;;  %v7152_v36 = vld [vmem:[#allocation2 + $0x20] sm:$0x1] }
 0x166   : > { %v5106_v59 = vrot.slane %v8533_v27, 5  ;;  %v4653_v0 = vor.u32 %v4652_v52, %v4649_v40  ;;  %v4663_v14 = vor.u32 %v4662_v20, %v8809_v51  ;;  %v6201_v21 = vrot.slane %v4978_v10, 9  ;;  %v7100_v40 = vld [vmem:[#allocation2 + $0x54] sm:$0xff]  }
 0x167   : > { %6752 = vmatmul.mubr.msk.bf16.gmra.mrb[20].mxu0 %vm1359_vm12, %v6168_v46  ;;  %v4621_v57 = vsel %vm7304_vm13, %v4616_v42, %v4620_v8  ;;  %v4666_v26 = vshll.u32 %v8816_v4, 16  ;;  %v8833_v27 = vsel %vm7650_vm2, %v6200_v29, %v5103_v62  ;;  %v5105_v12 = vrot.slane %v5103_v62, 4  ;;  %v7099_v42 = vld [vmem:[#allocation2 + $0x48] sm:$0xff]  }
 0x168   : > { %6755 = vmatprep.mubr.msk.bf16.mxu0 %vm1359_vm12, %v6169_v56  ;;  %v5110_v33 = vrot.slane %v8528_v31, 5  ;;  %v4635_v13 = vsel %vm7304_vm13, %v4630_v25, %v8748_v50  ;;  %v4645_v47 = vsel %vm7304_vm13, %v4640_v19, %v4644_v58  ;;  %v5113_v46 = vrot.slane %v8562_v44, 5  ;;  %v4979_v19 = vld [vmem:[#allocation2 + $0xa8] sm:$0xe]  ;;  %v4968_v58 = vld [vmem:[#allocation2 + $0x24] sm:$0xe] }
 0x169   : > { %v6170_v34 = vcombine.low %v4611_v23, %v4621_v57  ;;  %v8844_v17 = vsel %vm7650_vm2, %v5105_v12, %v5106_v59  ;;  %v6190_v61 = vrot.slane %v4967_v16, 9  ;;  %v6171_v52 = vcombine.low %v4635_v13, %v4645_v47  ;;  %v7153_v62 = vld [vmem:[#allocation2 + $0x28] sm:$0xf]  ;;  %v4969_v57 = vld [vmem:[#allocation2 + $0x30] sm:$0xe]  ;;  %v7101_v47 = vld [vmem:[#allocation2 + $0x60] sm:$0xff]  }
 0x16a   : > { %v6216_v31 = vcombine.low %v8833_v27, %v8844_v17  ;;  %v8850_v50 = vsel %vm7650_vm2, %v6201_v21, %v5110_v33  ;;  %v5112_v8 = vrot.slane %v5110_v33, 4  ;;  %v4654_v20 = vrot.slane %v4653_v0, 4  ;;  %v4980_v12 = vld [vmem:[#allocation2 + $0xb4] sm:$0xe] }
 0x16b   : > { %6600 = vmatmul.mubr.msk.bf16.gmra.mrb[4].mxu1 %vm1359_vm12, %v7097_v6  ;;  %v5033_v6 = vrot.slane %v7151_v39, 5  ;;  %v4664_v1 = vrot.slane %v4663_v14, 4  ;;  %v4668_v44 = vrot.slane %v4666_v26, 5  ;;  %v5036_v56 = vrot.slane %v7152_v36, 5  ;;  %v9294_v14 = vld [vmem:[#allocation8_spill] sm:$0xff] }
 0x16c   : > { %6603 = vmatprep.mubr.msk.bf16.mxu1 %vm1359_vm12, %v7098_v28  ;;  %v8854_v10 = vsel %vm7650_vm2, %v5112_v8, %v5113_v46  ;;  %v4659_v23 = vsel %vm7304_vm13, %v4654_v20, %v8809_v51  ;;  %v5040_v59 = vrot.slane %v7153_v62, 5  ;;  %v5047_v21 = vrot.slane %v9294_v14, 5  ;;  %v7154_v51 = vld [vmem:[#allocation2 + $0x2c] sm:$0x1]  ;;  %v7103_v14 = vld [vmem:[#allocation2 + $0x78] sm:$0xff]  }
 0x16d   : > { %v5035_v28 = vrot.slane %v5033_v6, 4  ;;  %v6217_v25 = vcombine.low %v8850_v50, %v8854_v10  ;;  %v4669_v29 = vsel %vm7304_vm13, %v4664_v1, %v4668_v44  ;;  %v5034_v35 = vsel %vm7650_vm2, %v6190_v61, %v5033_v6 }
 0x16e   : > { %v6202_v26 = vrot.slane %v4979_v19, 9  ;;  %v5117_v16 = vrot.slane %v8571_v53, 5  ;;  %v6191_v33 = vrot.slane %v4968_v58, 9  ;;  %v5043_v13 = vrot.slane %v7154_v51, 5  ;;  %v9295_v53 = vld [vmem:[#allocation9_spill] sm:$0xff] }
 0x16f   : > { %6756 = vmatmul.mubr.msk.bf16.gmra.mrb[24].mxu0 %vm1359_vm12, %v6170_v34  ;;  %v5037_v0 = vsel %vm7650_vm2, %v5035_v28, %v5036_v56  ;;  %v6172_v39 = vcombine.low %v4659_v23, %v4669_v29  ;;  %v5120_v34 = vrot.slane %v8581_v7, 5  ;;  %v5042_v8 = vrot.slane %v5040_v59, 4  ;;  %v9296_v23 = vld [vmem:[#allocation10_spill] sm:$0xff] }
 0x170   : > { %6759 = vmatprep.mubr.msk.bf16.mxu0 %vm1359_vm12, %v6171_v52  ;;  %v8875_v6 = vsel %vm7650_vm2, %v6202_v26, %v5117_v16  ;;  %v5119_v46 = vrot.slane %v5117_v16, 4  ;;  %v6206_v61 = vcombine.low %v5034_v35, %v5037_v0  ;;  %v6203_v52 = vrot.slane %v4980_v12, 9  ;;  %v7104_v12 = vld [vmem:[#allocation2 + $0x84] sm:$0xff]  }
 0x171   : > { %v5049_v20 = vrot.slane %v5047_v21, 4  ;;  %v5050_v1 = vrot.slane %v9295_v53, 5  ;;  %v5124_v28 = vrot.slane %v8630_v63, 5  ;;  %v5127_v56 = vrot.slane %v8679_v3, 5  ;;  %v4970_v3 = vld [vmem:[#allocation2 + $0x3c] sm:$0xe] }
 0x172   : > { %v8881_v44 = vsel %vm7650_vm2, %v5119_v46, %v5120_v34  ;;  %v5041_v63 = vsel %vm7650_vm2, %v6191_v33, %v5040_v59  ;;  %v5044_v58 = vsel %vm7650_vm2, %v5042_v8, %v5043_v13  ;;  %v5054_v29 = vrot.slane %v9296_v23, 5  ;;  %v9297_v13 = vld [vmem:[#allocation14_spill] sm:$0xff] }
 0x173   : > { %6604 = vmatmul.mubr.msk.bf16.gmra.mrb[8].mxu1 %vm1359_vm12, %v7099_v42  ;;  %v7102_v42 = vld [vmem:[#allocation2 + $0x6c] sm:$0xff]   ;;  %v6218_v36 = vcombine.low %v8875_v6, %v8881_v44  ;;  %v8891_v7 = vsel %vm7650_vm2, %v6203_v52, %v5124_v28  ;;  %v5126_v19 = vrot.slane %v5124_v28, 4  ;;  %v5051_v62 = vsel %vm7650_vm2, %v5049_v20, %v5050_v1 }
 0x174   : > { %6607 = vmatprep.mubr.msk.bf16.mxu1 %vm1359_vm12, %v7100_v40  ;;  %v6192_v40 = vrot.slane %v4969_v57, 9  ;;  %v2706_v57 = vld [vmem:[#allocation2 + $0x6c] sm:$0xf]  ;;  %v6207_v26 = vcombine.low %v5041_v63, %v5044_v58  ;;  %v6193_v16 = vrot.slane %v4970_v3, 9  ;;  %v5056_v51 = vrot.slane %v5054_v29, 4  ;;  %v7105_v3 = vld [vmem:[#allocation2 + $0x90] sm:$0xff]  }
 0x175   : > { %v8906_v0 = vsel %vm7650_vm2, %v5126_v19, %v5127_v56  ;;  %v2926_v46 = vshll.u32 %v2706_v57, 16  ;;  %v7155_v34 = vld [vmem:[#allocation2 + $0x70] sm:$0xf]  ;;  %v5138_v53 = vrot.slane %v8750_v5, 5  ;;  %v5141_v19 = vrot.slane %v8816_v4, 5 }
 0x176   : > { %v5048_v35 = vsel %vm7650_vm2, %v6192_v40, %v5047_v21  ;;  %v6219_v59 = vcombine.low %v8891_v7, %v8906_v0  ;;  %v2923_v21 = vshrl.u32 %v2706_v57, 16  ;;  %v5055_v40 = vsel %vm7650_vm2, %v6193_v16, %v5054_v29  ;;  %v7156_v5 = vld [vmem:[#allocation2 + $0x74] sm:$0x1] }
 0x177   : > { %6760 = vmatmul.mubr.msk.bf16.gmra.mrb[28].mxu0 %vm1359_vm12, %v6172_v39  ;;  %v6208_v33 = vcombine.low %v5048_v35, %v5051_v62  ;;  %v4982_v39 = vld [vmem:[#allocation2 + $0xcc] sm:$0xe]  ;;  %v2928_v1 = vrot.slane %v2926_v46, 5  ;;  %v5140_v58 = vrot.slane %v5138_v53, 4  ;;  %v7106_v35 = vld [vmem:[#allocation2 + $0x9c] sm:$0xff]   ;;  %v9298_v16 = vcombine.low %v8661_v55, %v8676_v38 }
 0x178   : > { %6765 = vmatprep.mubr.msk.bf16.mxu0 %vm1359_vm12, %v6206_v61  ;;  %v2936_v61 = vshrl.u32 %v7155_v34, 16  ;;  %v6205_v8 = vrot.slane %v4982_v39, 9  ;;  %v2925_v20 = vrot.slane %v2923_v21, 4  ;;  %vm5766_vm0 = vcmask 1040384  }
 0x179   : > { %v8927_v29 = vsel %vm7650_vm2, %v5140_v58, %v5141_v19  ;;  %v7158_v19 = vld [vmem:[#allocation2 + $0x94] sm:$0xf] }
 0x17a   : > { %v2938_v56 = vrot.slane %v2936_v61, 4  ;;  %v8923_v63 = vsel %vm7650_vm2, %v6205_v8, %v5138_v53  ;;  %v2929_v62 = vor.u32 %v2928_v1, %v2925_v20  ;;  %v2715_v61 = vld [vmem:[#allocation2 + $0x90] sm:$0xf]  ;;  %v2718_v53 = vld [vmem:[#allocation2 + $0x9c] sm:$0xf]  ;;  %v3004_v58 = vshll.u32 %v7158_v19, 16 }
 0x17b   : > { %6608 = vmatmul.mubr.msk.bf16.gmra.mrb[12].mxu1 %vm1359_vm12, %v7101_v47  ;;  %v5057_v47 = vrot.slane %v9297_v13, 5  ;;  %v6221_v4 = vcombine.low %v8923_v63, %v8927_v29  ;;  %v2995_v1 = vshrl.u32 %v2715_v61, 16 }
 0x17c   : > { %6611 = vmatprep.mubr.msk.bf16.mxu1 %vm1359_vm12, %v7102_v42  ;;  %v2932_v42 = vshll.u32 %v7155_v34, 16  ;;  %v2930_v21 = vrot.slane %v2929_v62, 4  ;;  %v7107_v34 = vld [vmem:[#allocation2 + $0xa8] sm:$0xff]  }
 0x17d   : > { %v5058_v52 = vsel %vm7650_vm2, %v5056_v51, %v5057_v47  ;;  %v7157_v51 = vld [vmem:[#allocation2 + $0x88] sm:$0xf] }
 0x17e   : > { %v2934_v28 = vrot.slane %v2932_v42, 5  ;;  %v6209_v23 = vcombine.low %v5055_v40, %v5058_v52  ;;  %v2980_v13 = vshll.u32 %v7157_v51, 16  ;;  %v2984_v47 = vshrl.u32 %v7157_v51, 16  ;;  %v7108_v42 = vld [vmem:[#allocation2 + $0xb4] sm:$0xff]  }
 0x17f   : > { %6766 = vmatmul.mubr.msk.bf16.vlgmr.msra.gmra.mrb[0].mxu0 %vm1359_vm12, %v6207_v26  ;;  %v2712_v26 = vld [vmem:[#allocation2 + $0x84] sm:$0xf]  ;;  %v2997_v51 = vrot.slane %v2995_v1, 4 }
 0x180   : > { %6769 = vmatprep.mubr.msk.bf16.mxu0 %vm1359_vm12, %v6208_v33  ;;  %v2939_v57 = vor.u32 %v2938_v56, %v2934_v28  ;;  %v2974_v33 = vshll.u32 %v2712_v26, 16  ;;  %v8938_v52 = vrot.slane %v2980_v13, 5  ;;  %v2986_v20 = vrot.slane %v2984_v47, 4 }
 0x181   : > { %v2935_v55 = vsel %vm7304_vm13, %v2930_v21, %v2934_v28  ;;  %v2998_v56 = vshll.u32 %v2715_v61, 16  ;;  %v9300_v28 = vcombine.low %v8690_v54, %v8708_v24  ;;  %v8955_v47 = vrot.slane %v3004_v58, 5  ;;  %v2721_v24 = vld [vmem:[#allocation2 + $0xa8] sm:$0xf] }
 0x182   : > { %v2940_v39 = vrot.slane %v2939_v57, 4  ;;  %v2976_v40 = vrot.slane %v2974_v33, 5  ;;  %v3019_v57 = vshrl.u32 %v2718_v53, 16  ;;  %v3046_v1 = vshll.u32 %v2721_v24, 16 }
 0x183   : > { %6612 = vmatmul.mubr.msk.bf16.gmra.mrb[16].mxu1 %vm1359_vm12, %v7103_v14  ;;  %v2942_v14 = vshll.u32 %v7156_v5, 16  ;;  %v3022_v5 = vshll.u32 %v2718_v53, 16  ;;  %v3000_v13 = vrot.slane %v2998_v56, 5  ;;  %v2724_v56 = vld [vmem:[#allocation2 + $0xb4] sm:$0xf] }
 0x184   : > { %6615 = vmatprep.mubr.msk.bf16.mxu1 %vm1359_vm12, %v7104_v12  ;;  %v2971_v12 = vshrl.u32 %v2712_v26, 16  ;;  %v2987_v26 = vor.u32 %v2986_v20, %v8938_v52 }
 0x185   : > { %v2944_v46 = vrot.slane %v2942_v14, 5  ;;  %v3024_v54 = vrot.slane %v3022_v5, 5  ;;  %v3001_v53 = vor.u32 %v3000_v13, %v2997_v51  ;;  %v7163_v5 = vld [vmem:[#allocation2 + $0xa4] sm:$0x1] }
 0x186   : > { %v2973_v8 = vrot.slane %v2971_v12, 4 }
 0x187   : > { %6770 = vmatmul.mubr.msk.bf16.gmra.mrb[4].mxu0 %vm1359_vm12, %v6209_v23  ;;  %v2945_v38 = vsel %vm7304_vm13, %v2940_v39, %v2944_v46  ;;  %v9299_v23 = vcombine.low %v8685_v2, %v8699_v48  ;;  %v7109_v48 = vld [vmem:[#allocation2 + $0xc0] sm:$0xff]   ;;  %v7161_v46 = vld [vmem:[#allocation2 + $0x98] sm:$0x1] }
 0x188   : > { %6773 = vmatprep.mubr.msk.bf16.mxu0 %vm1359_vm12, %v9298_v16  ;;  %v2977_v14 = vor.u32 %v2976_v40, %v2973_v8  ;;  %v7160_v16 = vld [vmem:[#allocation2 + $0xa0] sm:$0xf]  ;;  %v6052_v2 = vcombine.low %v2935_v55, %v2945_v38  ;;  %v2988_v8 = vrot.slane %v2987_v26, 4  ;;  %v3043_v38 = vshrl.u32 %v2721_v24, 16 }
 0x189   : > { %v3028_v12 = vshll.u32 %v7160_v16, 16  ;;  %v3032_v33 = vshrl.u32 %v7160_v16, 16  ;;  %v3070_v26 = vshll.u32 %v2724_v56, 16  ;;  %v7164_v16 = vld [vmem:[#allocation2 + $0xb8] sm:$0xf] }
 0x18a   : > { %v2978_v61 = vrot.slane %v2977_v14, 4  ;;  %v3067_v14 = vshrl.u32 %v2724_v56, 16  ;;  %v3045_v49 = vrot.slane %v3043_v38, 4 }
 0x18b   : > { %6616 = vmatmul.mubr.msk.bf16.gmra.mrb[20].mxu1 %vm1359_vm12, %v7105_v3  ;;  %v3008_v3 = vshrl.u32 %v7158_v19, 16  ;;  %v8957_v40 = vrot.slane %v3028_v12, 5  ;;  %v3034_v20 = vrot.slane %v3032_v33, 4  ;;  %v9301_v19 = vcombine.low %v8712_v9, %v8730_v22 }
 0x18c   : > { %6619 = vmatprep.mubr.msk.bf16.mxu1 %vm1359_vm12, %v7106_v35  ;;  %v7159_v35 = vld [vmem:[#allocation2 + $0x8c] sm:$0x1]  ;;  %v3076_v12 = vshll.u32 %v7164_v16, 16  ;;  %v3080_v33 = vshrl.u32 %v7164_v16, 16 }
 0x18d   : > { %v2990_v62 = vshll.u32 %v7159_v35, 16  ;;  %v3010_v21 = vrot.slane %v3008_v3, 4  ;;  %v3035_v22 = vor.u32 %v3034_v20, %v8957_v40 }
 0x18e   : > { %v3082_v24 = vrot.slane %v3080_v33, 4 }
 0x18f   : > { %6774 = vmatmul.mubr.msk.bf16.gmra.mrb[8].mxu0 %vm1359_vm12, %v9299_v23  ;;  %v2992_v39 = vrot.slane %v2990_v62, 5  ;;  %v3011_v55 = vor.u32 %v3010_v21, %v8955_v47  ;;  %v7162_v23 = vld [vmem:[#allocation2 + $0xac] sm:$0xf]  ;;  %v3036_v21 = vrot.slane %v3035_v22, 4 }
 0x190   : > { %6777 = vmatprep.mubr.msk.bf16.mxu0 %vm1359_vm12, %v9300_v28  ;;  %v3052_v35 = vshll.u32 %v7162_v23, 16  ;;  %v3056_v62 = vshrl.u32 %v7162_v23, 16  ;;  %v3038_v28 = vshll.u32 %v7163_v5, 16  ;;  %v4981_v23 = vld [vmem:[#allocation2 + $0xc0] sm:$0xe] }
 0x191   : > { %v2993_v9 = vsel %vm7304_vm13, %v2988_v8, %v2992_v39  ;;  %v3012_v41 = vrot.slane %v3011_v55, 4 }
 0x192   : > { %v8976_v51 = vrot.slane %v3052_v35, 5  ;;  %v3040_v39 = vrot.slane %v3038_v28, 5  ;;  %v5131_v35 = vrot.slane %v8702_v18, 5 }
 0x193   : > { %6620 = vmatmul.mubr.msk.bf16.gmra.mrb[24].mxu1 %vm1359_vm12, %v7107_v34  ;;  %v3014_v34 = vshll.u32 %v7161_v46, 16  ;;  %v2727_v46 = vld [vmem:[#allocation2 + $0xc0] sm:$0xf] }
 0x194   : > { %6623 = vmatprep.mubr.msk.bf16.mxu1 %vm1359_vm12, %v7108_v42  ;;  %v3021_v42 = vrot.slane %v3019_v57, 4  ;;  %v2983_v57 = vsel %vm7304_vm13, %v2978_v61, %v8938_v52  ;;  %v3058_v52 = vrot.slane %v3056_v62, 4  ;;  %v3041_v37 = vsel %vm7304_vm13, %v3036_v21, %v3040_v39 }
 0x195   : > { %v3016_v58 = vrot.slane %v3014_v34, 5  ;;  %v6054_v13 = vcombine.low %v2983_v57, %v2993_v9  ;;  %v3069_v34 = vrot.slane %v3067_v14, 4  ;;  %v3094_v30 = vshll.u32 %v2727_v46, 16 }
 0x196   : > { %v3025_v3 = vor.u32 %v3024_v54, %v3021_v42  ;;  %v3072_v42 = vrot.slane %v3070_v26, 5  ;;  %v3078_v54 = vrot.slane %v3076_v12, 5  ;;  %v6204_v26 = vrot.slane %v4981_v23, 9 }
 0x197   : > { %6778 = vmatmul.mubr.msk.bf16.gmra.mrb[12].mxu0 %vm1359_vm12, %v9301_v19  ;;  %v3017_v8 = vsel %vm7304_vm13, %v3012_v41, %v3016_v58  ;;  %v3091_v19 = vshrl.u32 %v2727_v46, 16  ;;  %v5133_v33 = vrot.slane %v5131_v35, 4  ;;  %v7168_v41 = vld [vmem:[#allocation2 + $0xc8] sm:$0x1] }
 0x198   : > { %6781 = vmatprep.mubr.msk.bf16.mxu0 %vm1359_vm12, %v6214_v43  ;;  %v3048_v43 = vrot.slane %v3046_v1, 5  ;;  %v7166_v1 = vld [vmem:[#allocation2 + $0xbc] sm:$0x1] }
 0x199   : > { %v3086_v56 = vshll.u32 %v7166_v1, 16  ;;  %v3093_v17 = vrot.slane %v3091_v19, 4 }
 0x19a   : > { %v3049_v20 = vor.u32 %v3048_v43, %v3045_v49  ;;  %v3110_v49 = vshll.u32 %v7168_v41, 16 }
 0x19b   : > { %6624 = vmatmul.mubr.msk.bf16.gmra.mrb[28].mxu1 %vm1359_vm12, %v7109_v48  ;;  %v3026_v48 = vrot.slane %v3025_v3, 4  ;;  %v3083_v3 = vor.u32 %v3082_v24, %v3078_v54  ;;  %v3088_v27 = vrot.slane %v3086_v56, 5 }
 0x19c   : > { %6645 = vmatprep.mubr.msk.bf16.mxu1 %vm1359_vm12, %v6052_v2  ;;  %v3002_v2 = vrot.slane %v3001_v53, 4  ;;  %v7165_v53 = vld [vmem:[#allocation2 + $0xb0] sm:$0x1]  ;;  %v3050_v57 = vrot.slane %v3049_v20, 4 }
 0x19d   : > { %v3062_v55 = vshll.u32 %v7165_v53, 16  ;;  %v3031_v38 = vsel %vm7304_vm13, %v3026_v48, %v8957_v40  ;;  %v3073_v40 = vor.u32 %v3072_v42, %v3069_v34  ;;  %v3084_v12 = vrot.slane %v3083_v3, 4 }
 0x19e   : > { %v3007_v61 = vsel %vm7304_vm13, %v3002_v2, %v8955_v47  ;;  %v3059_v47 = vor.u32 %v3058_v52, %v8976_v51  ;;  %v6056_v22 = vcombine.low %v3031_v38, %v3041_v37  ;;  %v5134_v2 = vrot.slane %v8761_v32, 5 }
 0x19f   : > { %6782 = vmatmul.mubr.msk.bf16.gmra.mrb[16].mxu0 %vm1359_vm12, %v6215_v15  ;;  %v7167_v15 = vld [vmem:[#allocation2 + $0xc4] sm:$0xf]  ;;  %v6055_v62 = vcombine.low %v3007_v61, %v3017_v8  ;;  %v3064_v9 = vrot.slane %v3062_v55, 5  ;;  %v3074_v16 = vrot.slane %v3073_v40, 4  ;;  %v3055_v18 = vsel %vm7304_vm13, %v3050_v57, %v8976_v51 }
 0x1a0   : > { %6785 = vmatprep.mubr.msk.bf16.mxu0 %vm1359_vm12, %v6216_v31  ;;  %v3104_v58 = vshrl.u32 %v7167_v15, 16  ;;  %v3060_v5 = vrot.slane %v3059_v47, 4  ;;  %v3096_v31 = vrot.slane %v3094_v30, 5  ;;  %v5132_v48 = vsel %vm7650_vm2, %v6204_v26, %v5131_v35 }
 0x1a1   : > { %v3079_v10 = vsel %vm7304_vm13, %v3074_v16, %v3078_v54  ;;  %v5135_v51 = vsel %vm7650_vm2, %v5133_v33, %v5134_v2 }
 0x1a2   : > { %v3106_v14 = vrot.slane %v3104_v58, 4  ;;  %v3065_v43 = vsel %vm7304_vm13, %v3060_v5, %v3064_v9  ;;  %v3097_v32 = vor.u32 %v3096_v31, %v3093_v17 }
 0x1a3   : > { %6646 = vmatmul.mubr.msk.bf16.vlgmr.msra.gmra.mrb[16].mxu1 %vm1359_vm12, %v8792_v60  ;;  %v3100_v60 = vshll.u32 %v7167_v15, 16  ;;  %v6057_v52 = vcombine.low %v3055_v18, %v3065_v43 }
 0x1a4   : > { %6649 = vmatprep.mubr.msk.bf16.mxu1 %vm1359_vm12, %v6054_v13  ;;  %v3112_v13 = vrot.slane %v3110_v49, 5  ;;  %v3098_v6 = vrot.slane %v3097_v32, 4 }
 0x1a5   : > { %v3102_v28 = vrot.slane %v3100_v60, 5 }
 0x1a7   : > { %6786 = vmatmul.mubr.msk.bf16.gmra.mrb[20].mxu0 %vm1359_vm12, %v6217_v25  ;;  %v3107_v50 = vor.u32 %v3106_v14, %v3102_v28  ;;  %v3089_v25 = vsel %vm7304_vm13, %v3084_v12, %v3088_v27  ;;  %v3103_v39 = vsel %vm7304_vm13, %v3098_v6, %v3102_v28 }
 0x1a8   : > { %6789 = vmatprep.mubr.msk.bf16.mxu0 %vm1359_vm12, %v6218_v36  ;;  %v6058_v21 = vcombine.low %v3079_v10, %v3089_v25  ;;  %v6220_v36 = vcombine.low %v5132_v48, %v5135_v51 }
 0x1a9   : > { %v3108_v44 = vrot.slane %v3107_v50, 4 }
 0x1ab   : > { %6650 = vmatmul.mubr.msk.bf16.gmra.mrb[20].mxu1 %vm1359_vm12, %v6055_v62  ;;  %v3113_v45 = vsel %vm7304_vm13, %v3108_v44, %v3112_v13 }
 0x1ac   : > { %6653 = vmatprep.mubr.msk.bf16.mxu1 %vm1359_vm12, %v6056_v22  ;;  %v6059_v46 = vcombine.low %v3103_v39, %v3113_v45 }
 0x1af   : > { %6790 = vmatmul.mubr.msk.bf16.gmra.mrb[24].mxu0 %vm1359_vm12, %v6219_v59 }
 0x1b0   : > { %6793 = vmatprep.mubr.msk.bf16.mxu0 %vm1359_vm12, %v6220_v36 }
 0x1b3   : > { %6654 = vmatmul.mubr.msk.bf16.gmra.mrb[24].mxu1 %vm1359_vm12, %v6057_v52 }
 0x1b4   : > { %6657 = vmatprep.mubr.msk.bf16.mxu1 %vm1359_vm12, %v6058_v21 }
 0x1b7   : > { %6794 = vmatmul.mubr.msk.bf16.gmra.mrb[28].mxu0 %vm1359_vm12, %v6221_v4 }
 0x1bb   : > { %6658 = vmatmul.mubr.msk.bf16.gmra.mrb[28].mxu1 %vm1359_vm12, %v6059_v46 }
 0x236   : > { %v6597_v7 = vpop.f32.mrb[0].mxu1 }
 0x237   : > { %v2523_v0 = vpop.f32.mrb[1].mxu1 }
 0x238   : > { %v6598_v59 = vpop.f32.mrb[2].mxu1 }
 0x239   : > { %v2526_v34 = vpop.f32.mrb[3].mxu1 }
 0x23e   : > { %v6601_v42 = vpop.f32.mrb[4].mxu1 }
 0x23f   : > { %v2539_v54 = vpop.f32.mrb[5].mxu1 }
 0x240   : > { %v6602_v24 = vpop.f32.mrb[6].mxu1 }
 0x241   : > { %v2542_v11 = vpop.f32.mrb[7].mxu1 }
 0x246   : > { %v9041_v61 = vpop.f32.mrb[8].mxu1 }
 0x247   : > { %v9043_v8 = vpop.f32.mrb[9].mxu1 }
 0x248   : > { %v9045_v20 = vpop.f32.mrb[10].mxu1 }
 0x249   : > { %v9047_v53 = vpop.f32.mrb[11].mxu1 }
 0x24e   : > { %v9049_v63 = vpop.f32.mrb[12].mxu1 }
 0x24f   : > { %v9051_v29 = vpop.f32.mrb[13].mxu1 }
 0x250   : > { %v9053_v4 = vpop.f32.mrb[14].mxu1 }
 0x251   : > { %v9055_v55 = vpop.f32.mrb[15].mxu1 }
 0x252   : > { %v6767_v38 = vpop.f32.mrb[0].mxu0 }
 0x253   : > { %v6799_v47 = vadd.f32 %v6767_v38, %v6597_v7  ;;  %v5277_v1 = vpop.f32.mrb[1].mxu0 }
 0x254   : > { %v6800_v56 = vadd.f32 %v5277_v1, %v2523_v0  ;;  %v6768_v19 = vpop.f32.mrb[2].mxu0 }
 0x255   : > { %v6308_v37 = vpack.c.bf16 %v6799_v47, %v6799_v47  ;;  %v6801_v30 = vadd.f32 %v6768_v19, %v6598_v59  ;;  %v5280_v15 = vpop.f32.mrb[3].mxu0  ;;  %v5667_v3 = vmul.f32 %v6799_v47, %v6799_v47  ;;  %v5599_v27 = vsel %vm1359_vm12, %v6799_v47, 0.0 }
 0x256   : > { %v6306_v60 = vpack.c.bf16 %v6800_v56, %v6800_v56  ;;  %v5665_v58 = vmul.f32 %v6800_v56, %v6800_v56  ;;  %v6802_v40 = vadd.f32 %v5280_v15, %v2526_v34  ;;  %v5596_v35 = vsel %vm1359_vm12, %v6800_v56, 0.0 }
 0x257   : > { %5566 = vst.msk [vmem:[%s9061_s18 + $0x8] sm:$0xf] %vm183_vm1, %v6308_v37  ;;  %v6309_v23 = vpack.c.bf16 %v6801_v30, %v6801_v30  ;;  %v5668_v22 = vmul.f32 %v6801_v30, %v6801_v30  ;;  %v5700_v33 = vsel %vm1359_vm12, %v5667_v3, 0.0  ;;  %v5601_v41 = vsel %vm1359_vm12, %v6801_v30, 0.0 }
 0x258   : > { %5564 = vst.msk [vmem:[%s9061_s18] sm:$0xf] %vm183_vm1, %v6306_v60  ;;  %v6307_v62 = vpack.c.bf16 %v6802_v40, %v6802_v40  ;;  %v5597_v57 = vsel %vm1359_vm12, %v6802_v40, 0.0  ;;  %v5666_v9 = vmul.f32 %v6802_v40, %v6802_v40  ;;  %v5697_v17 = vsel %vm1359_vm12, %v5665_v58, 0.0 }
 0x259   : > { %5567 = vst.msk [vmem:[%s9061_s18 + $0xc] sm:$0xf] %vm183_vm1, %v6309_v23  ;;  %v5598_v5 = vadd.f32 %v5597_v57, %v5596_v35  ;;  %v5702_v49 = vsel %vm1359_vm12, %v5668_v22, 0.0 }
 0x25a   : > { %5565 = vst.msk [vmem:[%s9061_s18 + $0x4] sm:$0xf] %vm183_vm1, %v6307_v62  ;;  %v5698_v31 = vsel %vm1359_vm12, %v5666_v9, 0.0  ;;  %v6771_v28 = vpop.f32.mrb[4].mxu0 }
 0x25b   : > { %v5600_v14 = vadd.f32 %v5599_v27, %v5598_v5  ;;  %v5699_v26 = vadd.f32 %v5698_v31, %v5697_v17  ;;  %v6803_v16 = vadd.f32 %v6771_v28, %v6601_v42  ;;  %v5293_v12 = vpop.f32.mrb[5].mxu0 }
 0x25c   : > { %v6804_v2 = vadd.f32 %v5293_v12, %v2539_v54  ;;  %v6772_v18 = vpop.f32.mrb[6].mxu0 }
 0x25d   : > { %v5701_v43 = vadd.f32 %v5700_v33, %v5699_v26  ;;  %v6312_v32 = vpack.c.bf16 %v6803_v16, %v6803_v16  ;;  %v5296_v50 = vpop.f32.mrb[7].mxu0  ;;  %v5602_v25 = vadd.f32 %v5601_v41, %v5600_v14  ;;  %v6805_v13 = vadd.f32 %v6772_v18, %v6602_v24 }
 0x25e   : > { %v6310_v10 = vpack.c.bf16 %v6804_v2, %v6804_v2  ;;  %v5603_v48 = vsel %vm1359_vm12, %v6804_v2, 0.0  ;;  %v5669_v51 = vmul.f32 %v6804_v2, %v6804_v2  ;;  %v6806_v21 = vadd.f32 %v5296_v50, %v2542_v11 }
 0x25f   : > { %5570 = vst.msk [vmem:[%s9061_s18 + $0x18] sm:$0xf] %vm183_vm1, %v6312_v32  ;;  %v5703_v52 = vadd.f32 %v5702_v49, %v5701_v43  ;;  %v5604_v6 = vadd.f32 %v5603_v48, %v5602_v25  ;;  %v5671_v36 = vmul.f32 %v6803_v16, %v6803_v16  ;;  %v6313_v45 = vpack.c.bf16 %v6805_v13, %v6805_v13 }
 0x260   : > { %5568 = vst.msk [vmem:[%s9061_s18 + $0x10] sm:$0xf] %vm183_vm1, %v6310_v10  ;;  %v5704_v44 = vsel %vm1359_vm12, %v5669_v51, 0.0  ;;  %v6311_v46 = vpack.c.bf16 %v6806_v21, %v6806_v21  ;;  %v5605_v7 = vsel %vm1359_vm12, %v6806_v21, 0.0  ;;  %v5670_v0 = vmul.f32 %v6806_v21, %v6806_v21 }
 0x261   : > { %v5705_v39 = vadd.f32 %v5704_v44, %v5703_v52  ;;  %5571 = vst.msk [vmem:[%s9061_s18 + $0x1c] sm:$0xf] %vm183_vm1, %v6313_v45  ;;  %v5606_v34 = vadd.f32 %v5605_v7, %v5604_v6  ;;  %v5607_v24 = vsel %vm1359_vm12, %v6803_v16, 0.0  ;;  %v5672_v11 = vmul.f32 %v6805_v13, %v6805_v13 }
 0x262   : > { %v6775_v59 = vpop.f32.mrb[8].mxu0  ;;  %5569 = vst.msk [vmem:[%s9061_s18 + $0x14] sm:$0xf] %vm183_vm1, %v6311_v46  ;;  %v5706_v38 = vsel %vm1359_vm12, %v5670_v0, 0.0  ;;  %v5708_v56 = vsel %vm1359_vm12, %v5671_v36, 0.0 }
 0x263   : > { %v6807_v42 = vadd.f32 %v6775_v59, %v9041_v61  ;;  %v5309_v54 = vpop.f32.mrb[9].mxu0  ;;  %v5608_v19 = vadd.f32 %v5607_v24, %v5606_v34  ;;  %v5707_v37 = vadd.f32 %v5706_v38, %v5705_v39  ;;  %v5609_v61 = vsel %vm1359_vm12, %v6805_v13, 0.0 }
 0x264   : > { %v6808_v47 = vadd.f32 %v5309_v54, %v9043_v8  ;;  %v6776_v1 = vpop.f32.mrb[10].mxu0  ;;  %v5710_v62 = vsel %vm1359_vm12, %v5672_v11, 0.0 }
 0x265   : > { %v6316_v30 = vpack.c.bf16 %v6807_v42, %v6807_v42  ;;  %v5312_v15 = vpop.f32.mrb[11].mxu0  ;;  %v5709_v3 = vadd.f32 %v5708_v56, %v5707_v37  ;;  %v5610_v23 = vadd.f32 %v5609_v61, %v5608_v19  ;;  %v6809_v8 = vadd.f32 %v6776_v1, %v9045_v20 }
 0x266   : > { %v6314_v60 = vpack.c.bf16 %v6808_v47, %v6808_v47  ;;  %v5611_v58 = vsel %vm1359_vm12, %v6808_v47, 0.0  ;;  %v5673_v40 = vmul.f32 %v6808_v47, %v6808_v47  ;;  %v6810_v35 = vadd.f32 %v5312_v15, %v9047_v53 }
 0x267   : > { %5574 = vst.msk [vmem:[%s9061_s18 + $0x28] sm:$0xf] %vm183_vm1, %v6316_v30  ;;  %v5675_v9 = vmul.f32 %v6807_v42, %v6807_v42  ;;  %v5612_v22 = vadd.f32 %v5611_v58, %v5610_v23  ;;  %v5711_v5 = vadd.f32 %v5710_v62, %v5709_v3  ;;  %v6317_v27 = vpack.c.bf16 %v6809_v8, %v6809_v8 }
 0x268   : > { %5572 = vst.msk [vmem:[%s9061_s18 + $0x20] sm:$0xf] %vm183_vm1, %v6314_v60  ;;  %v5712_v57 = vsel %vm1359_vm12, %v5673_v40, 0.0  ;;  %v6315_v17 = vpack.c.bf16 %v6810_v35, %v6810_v35  ;;  %v5613_v31 = vsel %vm1359_vm12, %v6810_v35, 0.0  ;;  %v5674_v28 = vmul.f32 %v6810_v35, %v6810_v35 }
 0x269   : > { %v5713_v26 = vadd.f32 %v5712_v57, %v5711_v5  ;;  %5575 = vst.msk [vmem:[%s9061_s18 + $0x2c] sm:$0xf] %vm183_vm1, %v6317_v27  ;;  %v5614_v20 = vadd.f32 %v5613_v31, %v5612_v22  ;;  %v5615_v12 = vsel %vm1359_vm12, %v6807_v42, 0.0  ;;  %v5676_v33 = vmul.f32 %v6809_v8, %v6809_v8 }
 0x26a   : > { %v6779_v14 = vpop.f32.mrb[12].mxu0  ;;  %5573 = vst.msk [vmem:[%s9061_s18 + $0x24] sm:$0xf] %vm183_vm1, %v6315_v17  ;;  %v5714_v2 = vsel %vm1359_vm12, %v5674_v28, 0.0  ;;  %v5716_v49 = vsel %vm1359_vm12, %v5675_v9, 0.0 }
 0x26b   : > { %v6811_v53 = vadd.f32 %v6779_v14, %v9049_v63  ;;  %v5325_v16 = vpop.f32.mrb[13].mxu0  ;;  %v5616_v43 = vadd.f32 %v5615_v12, %v5614_v20  ;;  %v5715_v32 = vadd.f32 %v5714_v2, %v5713_v26  ;;  %v5617_v63 = vsel %vm1359_vm12, %v6809_v8, 0.0 }
 0x26c   : > { %v6812_v18 = vadd.f32 %v5325_v16, %v9051_v29  ;;  %v6780_v41 = vpop.f32.mrb[14].mxu0  ;;  %v5718_v6 = vsel %vm1359_vm12, %v5676_v33, 0.0 }
 0x26d   : > { %v6320_v50 = vpack.c.bf16 %v6811_v53, %v6811_v53  ;;  %v5328_v10 = vpop.f32.mrb[15].mxu0  ;;  %v5717_v52 = vadd.f32 %v5716_v49, %v5715_v32  ;;  %v5618_v13 = vadd.f32 %v5617_v63, %v5616_v43  ;;  %v6813_v29 = vadd.f32 %v6780_v41, %v9053_v4 }
 0x26e   : > { %v6318_v25 = vpack.c.bf16 %v6812_v18, %v6812_v18  ;;  %v5619_v48 = vsel %vm1359_vm12, %v6812_v18, 0.0  ;;  %v5677_v51 = vmul.f32 %v6812_v18, %v6812_v18  ;;  %v6814_v21 = vadd.f32 %v5328_v10, %v9055_v55 }
 0x26f   : > { %5578 = vst.msk [vmem:[%s9061_s18 + $0x38] sm:$0xf] %vm183_vm1, %v6320_v50  ;;  %v5679_v36 = vmul.f32 %v6811_v53, %v6811_v53  ;;  %v5620_v39 = vadd.f32 %v5619_v48, %v5618_v13  ;;  %v5719_v45 = vadd.f32 %v5718_v6, %v5717_v52  ;;  %v6321_v46 = vpack.c.bf16 %v6813_v29, %v6813_v29 }
 0x270   : > { %5576 = vst.msk [vmem:[%s9061_s18 + $0x30] sm:$0xf] %vm183_vm1, %v6318_v25  ;;  %v5720_v44 = vsel %vm1359_vm12, %v5677_v51, 0.0  ;;  %v6319_v7 = vpack.c.bf16 %v6814_v21, %v6814_v21  ;;  %v5621_v0 = vsel %vm1359_vm12, %v6814_v21, 0.0  ;;  %v5678_v59 = vmul.f32 %v6814_v21, %v6814_v21 }
 0x271   : > { %v5721_v4 = vadd.f32 %v5720_v44, %v5719_v45  ;;  %5579 = vst.msk [vmem:[%s9061_s18 + $0x3c] sm:$0xf] %vm183_vm1, %v6321_v46  ;;  %v5622_v55 = vadd.f32 %v5621_v0, %v5620_v39  ;;  %v5623_v38 = vsel %vm1359_vm12, %v6811_v53, 0.0  ;;  %v5680_v47 = vmul.f32 %v6813_v29, %v6813_v29 }
 0x272   : > { %v6783_v42 = vpop.f32.mrb[16].mxu0  ;;  %5577 = vst.msk [vmem:[%s9061_s18 + $0x34] sm:$0xf] %vm183_vm1, %v6319_v7  ;;  %v5722_v1 = vsel %vm1359_vm12, %v5678_v59, 0.0  ;;  %v5724_v30 = vsel %vm1359_vm12, %v5679_v36, 0.0  ;;  %v5625_v3 = vsel %vm1359_vm12, %v6813_v29, 0.0 }
 0x273   : > { %v5341_v11 = vpop.f32.mrb[17].mxu0  ;;  %v5624_v15 = vadd.f32 %v5623_v38, %v5622_v55  ;;  %v5723_v61 = vadd.f32 %v5722_v1, %v5721_v4  ;;  %v5726_v5 = vsel %vm1359_vm12, %v5680_v47, 0.0 }
 0x274   : > { %v6784_v37 = vpop.f32.mrb[18].mxu0 }
 0x275   : > { %v5344_v40 = vpop.f32.mrb[19].mxu0  ;;  %v5725_v62 = vadd.f32 %v5724_v30, %v5723_v61  ;;  %v5626_v57 = vadd.f32 %v5625_v3, %v5624_v15 }
 0x276   : > { %v6647_v34 = vpop.f32.mrb[16].mxu1 }
 0x277   : > { %v3312_v54 = vpop.f32.mrb[17].mxu1  ;;  %v6815_v24 = vadd.f32 %v6783_v42, %v6647_v34  ;;  %v5727_v28 = vadd.f32 %v5726_v5, %v5725_v62 }
 0x278   : > { %v6648_v56 = vpop.f32.mrb[18].mxu1  ;;  %v6816_v19 = vadd.f32 %v5341_v11, %v3312_v54 }
 0x279   : > { %v6324_v60 = vpack.c.bf16 %v6815_v24, %v6815_v24  ;;  %v3315_v58 = vpop.f32.mrb[19].mxu1  ;;  %v6817_v9 = vadd.f32 %v6784_v37, %v6648_v56  ;;  %v5683_v17 = vmul.f32 %v6815_v24, %v6815_v24  ;;  %v5631_v43 = vsel %vm1359_vm12, %v6815_v24, 0.0 }
 0x27a   : > { %v6322_v23 = vpack.c.bf16 %v6816_v19, %v6816_v19  ;;  %v5627_v8 = vsel %vm1359_vm12, %v6816_v19, 0.0  ;;  %v5681_v35 = vmul.f32 %v6816_v19, %v6816_v19  ;;  %v6818_v22 = vadd.f32 %v5344_v40, %v3315_v58  ;;  %v6787_v12 = vpop.f32.mrb[20].mxu0 }
 0x27b   : > { %5582 = vst.msk [vmem:[%s9061_s18 + $0x48] sm:$0xf] %vm183_vm1, %v6324_v60  ;;  %v5628_v31 = vadd.f32 %v5627_v8, %v5626_v57  ;;  %v6325_v14 = vpack.c.bf16 %v6817_v9, %v6817_v9  ;;  %v5357_v49 = vpop.f32.mrb[21].mxu0  ;;  %v5684_v32 = vmul.f32 %v6817_v9, %v6817_v9  ;;  %v5732_v48 = vsel %vm1359_vm12, %v5683_v17, 0.0 }
 0x27c   : > { %5580 = vst.msk [vmem:[%s9061_s18 + $0x40] sm:$0xf] %vm183_vm1, %v6322_v23  ;;  %v5728_v27 = vsel %vm1359_vm12, %v5681_v35, 0.0  ;;  %v6323_v26 = vpack.c.bf16 %v6818_v22, %v6818_v22  ;;  %v5629_v20 = vsel %vm1359_vm12, %v6818_v22, 0.0  ;;  %v5682_v53 = vmul.f32 %v6818_v22, %v6818_v22  ;;  %v6788_v25 = vpop.f32.mrb[22].mxu0 }
 0x27d   : > { %v5729_v33 = vadd.f32 %v5728_v27, %v5727_v28  ;;  %5583 = vst.msk [vmem:[%s9061_s18 + $0x4c] sm:$0xf] %vm183_vm1, %v6325_v14  ;;  %v5630_v2 = vadd.f32 %v5629_v20, %v5628_v31  ;;  %v5360_v21 = vpop.f32.mrb[23].mxu0  ;;  %v5633_v6 = vsel %vm1359_vm12, %v6817_v9, 0.0  ;;  %v5734_v59 = vsel %vm1359_vm12, %v5684_v32, 0.0 }
 0x27e   : > { %v6651_v16 = vpop.f32.mrb[20].mxu1  ;;  %5581 = vst.msk [vmem:[%s9061_s18 + $0x44] sm:$0xf] %vm183_vm1, %v6323_v26  ;;  %v5730_v50 = vsel %vm1359_vm12, %v5682_v53, 0.0 }
 0x27f   : > { %v3328_v18 = vpop.f32.mrb[21].mxu1  ;;  %v6819_v41 = vadd.f32 %v6787_v12, %v6651_v16  ;;  %v5632_v51 = vadd.f32 %v5631_v43, %v5630_v2  ;;  %v5731_v52 = vadd.f32 %v5730_v50, %v5729_v33 }
 0x280   : > { %v6652_v10 = vpop.f32.mrb[22].mxu1  ;;  %v6820_v63 = vadd.f32 %v5357_v49, %v3328_v18 }
 0x281   : > { %v6328_v13 = vpack.c.bf16 %v6819_v41, %v6819_v41  ;;  %v3331_v29 = vpop.f32.mrb[23].mxu1  ;;  %v5733_v45 = vadd.f32 %v5732_v48, %v5731_v52  ;;  %v5634_v46 = vadd.f32 %v5633_v6, %v5632_v51  ;;  %v6821_v7 = vadd.f32 %v6788_v25, %v6652_v10 }
 0x282   : > { %v6326_v44 = vpack.c.bf16 %v6820_v63, %v6820_v63  ;;  %v5635_v36 = vsel %vm1359_vm12, %v6820_v63, 0.0  ;;  %v5685_v39 = vmul.f32 %v6820_v63, %v6820_v63  ;;  %v6822_v0 = vadd.f32 %v5360_v21, %v3331_v29  ;;  %v6791_v1 = vpop.f32.mrb[24].mxu0 }
 0x283   : > { %5586 = vst.msk [vmem:[%s9061_s18 + $0x58] sm:$0xf] %vm183_vm1, %v6328_v13  ;;  %v5687_v42 = vmul.f32 %v6819_v41, %v6819_v41  ;;  %v5636_v4 = vadd.f32 %v5635_v36, %v5634_v46  ;;  %v5735_v55 = vadd.f32 %v5734_v59, %v5733_v45  ;;  %v6329_v54 = vpack.c.bf16 %v6821_v7, %v6821_v7  ;;  %v5373_v15 = vpop.f32.mrb[25].mxu0 }
 0x284   : > { %5584 = vst.msk [vmem:[%s9061_s18 + $0x50] sm:$0xf] %vm183_vm1, %v6326_v44  ;;  %v5736_v34 = vsel %vm1359_vm12, %v5685_v39, 0.0  ;;  %v6327_v24 = vpack.c.bf16 %v6822_v0, %v6822_v0  ;;  %v5637_v11 = vsel %vm1359_vm12, %v6822_v0, 0.0  ;;  %v5686_v38 = vmul.f32 %v6822_v0, %v6822_v0  ;;  %v6792_v23 = vpop.f32.mrb[26].mxu0 }
 0x285   : > { %v5737_v56 = vadd.f32 %v5736_v34, %v5735_v55  ;;  %5587 = vst.msk [vmem:[%s9061_s18 + $0x5c] sm:$0xf] %vm183_vm1, %v6329_v54  ;;  %v5638_v19 = vadd.f32 %v5637_v11, %v5636_v4  ;;  %v5639_v61 = vsel %vm1359_vm12, %v6819_v41, 0.0  ;;  %v5688_v60 = vmul.f32 %v6821_v7, %v6821_v7  ;;  %v5376_v22 = vpop.f32.mrb[27].mxu0 }
 0x286   : > { %v6655_v47 = vpop.f32.mrb[24].mxu1  ;;  %5585 = vst.msk [vmem:[%s9061_s18 + $0x54] sm:$0xf] %vm183_vm1, %v6327_v24  ;;  %v5738_v58 = vsel %vm1359_vm12, %v5686_v38, 0.0  ;;  %v5740_v8 = vsel %vm1359_vm12, %v5687_v42, 0.0  ;;  %v5641_v5 = vsel %vm1359_vm12, %v6821_v7, 0.0 }
 0x287   : > { %v3344_v37 = vpop.f32.mrb[25].mxu1  ;;  %v6823_v30 = vadd.f32 %v6791_v1, %v6655_v47  ;;  %v5640_v35 = vadd.f32 %v5639_v61, %v5638_v19  ;;  %v5739_v62 = vadd.f32 %v5738_v58, %v5737_v56  ;;  %v5742_v53 = vsel %vm1359_vm12, %v5688_v60, 0.0 }
 0x288   : > { %v6656_v40 = vpop.f32.mrb[26].mxu1  ;;  %v6824_v3 = vadd.f32 %v5373_v15, %v3344_v37 }
 0x289   : > { %v6332_v57 = vpack.c.bf16 %v6823_v30, %v6823_v30  ;;  %v3347_v9 = vpop.f32.mrb[27].mxu1  ;;  %v5741_v28 = vadd.f32 %v5740_v8, %v5739_v62  ;;  %v5642_v14 = vadd.f32 %v5641_v5, %v5640_v35  ;;  %v6825_v26 = vadd.f32 %v6792_v23, %v6656_v40 }
 0x28a   : > { %v6330_v27 = vpack.c.bf16 %v6824_v3, %v6824_v3  ;;  %v5643_v17 = vsel %vm1359_vm12, %v6824_v3, 0.0  ;;  %v5689_v31 = vmul.f32 %v6824_v3, %v6824_v3  ;;  %v6826_v20 = vadd.f32 %v5376_v22, %v3347_v9  ;;  %v6795_v50 = vpop.f32.mrb[28].mxu0 }
 0x28b   : > { %5590 = vst.msk [vmem:[%s9061_s18 + $0x68] sm:$0xf] %vm183_vm1, %v6332_v57  ;;  %v5691_v12 = vmul.f32 %v6823_v30, %v6823_v30  ;;  %v5644_v33 = vadd.f32 %v5643_v17, %v5642_v14  ;;  %v5743_v2 = vadd.f32 %v5742_v53, %v5741_v28  ;;  %v6333_v18 = vpack.c.bf16 %v6825_v26, %v6825_v26  ;;  %v5389_v51 = vpop.f32.mrb[29].mxu0 }
 0x28c   : > { %5588 = vst.msk [vmem:[%s9061_s18 + $0x60] sm:$0xf] %vm183_vm1, %v6330_v27  ;;  %v5744_v16 = vsel %vm1359_vm12, %v5689_v31, 0.0  ;;  %v6331_v41 = vpack.c.bf16 %v6826_v20, %v6826_v20  ;;  %v5645_v49 = vsel %vm1359_vm12, %v6826_v20, 0.0  ;;  %v5690_v43 = vmul.f32 %v6826_v20, %v6826_v20  ;;  %v6796_v44 = vpop.f32.mrb[30].mxu0 }
 0x28d   : > { %v5745_v10 = vadd.f32 %v5744_v16, %v5743_v2  ;;  %5591 = vst.msk [vmem:[%s9061_s18 + $0x6c] sm:$0xf] %vm183_vm1, %v6333_v18  ;;  %v5646_v63 = vadd.f32 %v5645_v49, %v5644_v33  ;;  %v5647_v52 = vsel %vm1359_vm12, %v6823_v30, 0.0  ;;  %v5692_v13 = vmul.f32 %v6825_v26, %v6825_v26  ;;  %v5392_v0 = vpop.f32.mrb[31].mxu0 }
 0x28e   : > { %v6659_v32 = vpop.f32.mrb[28].mxu1  ;;  %5589 = vst.msk [vmem:[%s9061_s18 + $0x64] sm:$0xf] %vm183_vm1, %v6331_v41  ;;  %v5746_v29 = vsel %vm1359_vm12, %v5690_v43, 0.0  ;;  %v5748_v36 = vsel %vm1359_vm12, %v5691_v12, 0.0  ;;  %v5649_v59 = vsel %vm1359_vm12, %v6825_v26, 0.0 }
 0x28f   : > { %v3360_v25 = vpop.f32.mrb[29].mxu1  ;;  %v6827_v48 = vadd.f32 %v6795_v50, %v6659_v32  ;;  %v5648_v39 = vadd.f32 %v5647_v52, %v5646_v63  ;;  %v5747_v45 = vadd.f32 %v5746_v29, %v5745_v10  ;;  %v5750_v38 = vsel %vm1359_vm12, %v5692_v13, 0.0 }
 0x290   : > { %v6660_v21 = vpop.f32.mrb[30].mxu1  ;;  %v6828_v6 = vadd.f32 %v5389_v51, %v3360_v25 }
 0x291   : > { %v6336_v46 = vpack.c.bf16 %v6827_v48, %v6827_v48  ;;  %v3363_v7 = vpop.f32.mrb[31].mxu1  ;;  %v5749_v55 = vadd.f32 %v5748_v36, %v5747_v45  ;;  %v5650_v54 = vadd.f32 %v5649_v59, %v5648_v39  ;;  %v6829_v24 = vadd.f32 %v6796_v44, %v6660_v21 }
 0x292   : > { %v6334_v34 = vpack.c.bf16 %v6828_v6, %v6828_v6  ;;  %v5651_v42 = vsel %vm1359_vm12, %v6828_v6, 0.0  ;;  %v5693_v4 = vmul.f32 %v6828_v6, %v6828_v6  ;;  %v6830_v11 = vadd.f32 %v5392_v0, %v3363_v7 }
 0x293   : > { %5594 = vst.msk [vmem:[%s9061_s18 + $0x78] sm:$0xf] %vm183_vm1, %v6336_v46  ;;  %v5652_v1 = vadd.f32 %v5651_v42, %v5650_v54  ;;  %v5751_v56 = vadd.f32 %v5750_v38, %v5749_v55  ;;  %v6337_v19 = vpack.c.bf16 %v6829_v24, %v6829_v24  ;;  %v5695_v37 = vmul.f32 %v6827_v48, %v6827_v48 }
 0x294   : > { %5592 = vst.msk [vmem:[%s9061_s18 + $0x70] sm:$0xf] %vm183_vm1, %v6334_v34  ;;  %v5752_v47 = vsel %vm1359_vm12, %v5693_v4, 0.0  ;;  %v6335_v30 = vpack.c.bf16 %v6830_v11, %v6830_v11  ;;  %v5653_v15 = vsel %vm1359_vm12, %v6830_v11, 0.0  ;;  %v5694_v61 = vmul.f32 %v6830_v11, %v6830_v11 }
 0x295   : > { %v5753_v60 = vadd.f32 %v5752_v47, %v5751_v56  ;;  %5595 = vst.msk [vmem:[%s9061_s18 + $0x7c] sm:$0xf] %vm183_vm1, %v6337_v19  ;;  %v5654_v58 = vadd.f32 %v5653_v15, %v5652_v1  ;;  %v5655_v40 = vsel %vm1359_vm12, %v6827_v48, 0.0  ;;  %v5696_v3 = vmul.f32 %v6829_v24, %v6829_v24 }
 0x296   : > { %5593 = vst.msk [vmem:[%s9061_s18 + $0x74] sm:$0xf] %vm183_vm1, %v6335_v30  ;;  %v5754_v23 = vsel %vm1359_vm12, %v5694_v61, 0.0  ;;  %v5756_v62 = vsel %vm1359_vm12, %v5695_v37, 0.0  ;;  %v5657_v57 = vsel %vm1359_vm12, %v6829_v24, 0.0  ;;  %vm5768_vm1 = vcmask 25600  }
 0x297   : > { %v5656_v8 = vadd.f32 %v5655_v40, %v5654_v58  ;;  %v5755_v35 = vadd.f32 %v5754_v23, %v5753_v60  ;;  %v5758_v5 = vsel %vm1359_vm12, %v5696_v3, 0.0 }
 0x299   : > { %v5658_v9 = vadd.f32 %v5657_v57, %v5656_v8  ;;  %v5757_v22 = vadd.f32 %v5756_v62, %v5755_v35 }
 0x29b   : > { %v5659_v27 = vrot.slane %v5658_v9, 4  ;;  %v5759_v17 = vadd.f32 %v5758_v5, %v5757_v22 }
 0x29d   : > { %v5660_v31 = vadd.f32 %v5659_v27, %v5658_v9  ;;  %v5760_v28 = vrot.slane %v5759_v17, 4 }
 0x29f   : > { %v5661_v14 = vrot.slane %v5660_v31, 2  ;;  %v5761_v26 = vadd.f32 %v5760_v28, %v5759_v17 }
 0x2a1   : > { %v5662_v20 = vadd.f32 %v5661_v14, %v5660_v31  ;;  %v5762_v53 = vrot.slane %v5761_v26, 2 }
 0x2a3   : > { %v5663_v16 = vrot.slane %v5662_v20, 1  ;;  %v5763_v12 = vadd.f32 %v5762_v53, %v5761_v26 }
 0x2a5   : > { %v5764_v33 = vrot.slane %v5763_v12, 1  ;;  %v5664_v2 = vadd.f32 %v5663_v16, %v5662_v20 }
 0x2a7   : > { %v5765_v18 = vadd.f32 %v5764_v33, %v5763_v12 }
 0x2a9   : > { %v5767_v41 = vsel %vm5766_vm0, %v5664_v2, %v5765_v18 }
 0x2aa   : > { %5769 = vst.msk [vmem:[%s181_s22] sm:$0x3] %vm5768_vm1, %v5767_v41 }
 0x2ab PF: > { %s14_s12 = sadd.s32 1, %s7175_s12  }
 0x2ac   : > { %p11_p4 = scmp.ge.s32.totalorder %s14_s12, 4  }
 0x2ae   :  { %13 = sbr.rel (!%p11_p4) target bundleno = 1 (0x1), region = 73 }

// kernel: basic_block.4
= control target key start
LH: loop header
LB: loop body
LE: loop exit
PB: predicated region body
PF: predicated region fallthrough
CT: control target
= control target key end

     0   :  { %s7453_s15 = smov 0   ;;  %s9502_s0 = inlined_call_operand.vmem [shape: bf16[2,16,16,4], index: 0, kind: input, shape index: {}]   ;;  %s9503_s1 = inlined_call_operand.vmem [shape: f32[2,4], index: 1, kind: input, shape index: {}]   ;;  %s9504_s2 = inlined_call_operand.vmem [shape: bf16[36,4], index: 2, kind: input, shape index: {}]   ;;  %s9505_s3 = inlined_call_operand.vmem [shape: bf16[2,16,16,4], index: 3, kind: output, shape index: {0}]   ;;  %s9506_s4 = inlined_call_operand.vmem [shape: f32[2,2,4], index: 4, kind: output, shape index: {1}]  }
   0x1 LB: > { %s6021_s16 = sadd.s32 4294967295, %s7425_s15   ;;  %p6025_p0 = scmp.ge.s32.totalorder %s7425_s15, 1  ;;  %s7425_s15 = sphi %s7453_s15, %s15_s15  }
   0x2   : > { %p165_p1 = scmp.lt.s32.totalorder %s7425_s15, 3 }
   0x4   : > { %p166_p2 = pnand %p6025_p0, %p165_p1 }
   0x6   : > { %169 = sbr.rel (%p166_p2) target bundleno = 713 (0x2c9), region = 32 }
   0xd   : > { %v7320_v0 = vld [vmem:[%s9504_s2] ss:$0 sps:$4 sm:$0xcc]   ;;  %vm1573_vm0 = vcmask 1041408   ;;  %v3279_v1 = vld [vmem:[%s9504_s2 + $0x8] sm:$0x3] }
   0xe   : > { %vm380_vm1 = vcmask 27648   ;;  %vm383_vm2 = vcmask 24576   ;;  %v1523_v2 = vrot.slane %v7320_v0, 2  ;;  %7305 = vmatprep.subr.msk.bf16.mxu0 %vm1573_vm0, %v3279_v1  ;;  %v7469_v3 = vsel %vm1573_vm0, %v3279_v1, 0  ;;  %p195_p3 = scmp.lt.s32.totalorder %s6021_s16, 1 }
   0xf   : > { %9520 = vst [vmem:[#allocation3_spill] sm:$0xff] %v7469_v3  ;;  %v7427_v4 = vmov 0   ;;  %vm390_vm3 = vsmask.f32 256  ;;  %vm446_vm4 = vsmask.f32 7938  ;;  %6874 = vmatpush3.bf16.msra.mxu0 %v7469_v3 }
  0x10   : > { %381 = vst.msk [vmem:[#allocation2] sm:$0xf] %vm380_vm1, %v7427_v4  ;;  %382 = vst.msk [vmem:[#allocation2 + $0x4] sm:$0xf] %vm380_vm1, %v7427_v4  ;;  %7301 = vmatprep.subr.msk.bf16.mxu1 %vm1573_vm0, %v1523_v2  ;;  %v1575_v6 = vsel %vm1573_vm0, %v1523_v2, 0  ;;  %s9586_s16 = smov (!%p195_p3, %s6021_s16), 1 }
  0x11   : > { %384 = vst.msk [vmem:[#allocation2 + $0x8] sm:$0x1] %vm383_vm2, %v7427_v4  ;;  %388 = vst.msk [vmem:[#allocation2 + $0xd4] sm:$0x1] %vm383_vm2, %v7427_v4  ;;  %6738 = vmatpush3.bf16.msra.mxu1 %v1575_v6  ;;  %v395_v8 = vld [vmem:[#allocation2 + $0xc] sm:$0x1] }
  0x12   : > { %386 = vst.msk [vmem:[#allocation2 + $0xcc] sm:$0xf] %vm380_vm1, %v7427_v4  ;;  %387 = vst.msk [vmem:[#allocation2 + $0xd0] sm:$0xf] %vm380_vm1, %v7427_v4  ;;  %v451_v9 = vld [vmem:[#allocation2 + $0x14] sm:$0x1] }
  0x13   : > { %vm7480_vm5 = vmand %vm383_vm2, %vm390_vm3  ;;  %v7501_v12 = vld [vmem:[%s9504_s2] sm:$0x3]  ;;  %s6439_s23 = sshll.u32 %s9586_s16, 7  ;;  %v7509_v13 = vld [vmem:[%s9504_s2 + $0x8] ss:$0 sps:$4 sm:$0xcc]  }
  0x14   : > { %vm7488_vm6 = vmand %vm383_vm2, %vm446_vm4  ;;  %v396_v10 = vsel %vm7480_vm5, 0, %v395_v8  ;;  %7302 = vmatprep.subr.msk.bf16.mxu1 %vm1573_vm0, %v7501_v12  ;;  %s7516_s28 = scalar_lea.vmem %s9502_s0, %s6439_s23  ;;  %v7521_v14 = vld [vmem:[%s9503_s1] ss:$0 sm:$0xff]  ;;  %v398_v15 = vld [vmem:[#allocation2 + $0x18] sm:$0x1]  ;;  %v3800_v28 = vrot.slane %v7509_v13, 2  ;;  %s9357_s8 = scalar_lea.vmem %s9505_s3, %s6439_s23 }
  0x15   : > { %v452_v11 = vsel %vm7488_vm6, 0, %v451_v9  ;;  %397 = vst [vmem:[#allocation2 + $0xc] sm:$0x1] %v396_v10  ;;  %v454_v16 = vld [vmem:[#allocation2 + $0x20] sm:$0x1]  ;;  %v6569_v25 = vld [vmem:[%s7516_s28 + $0x8] sm:$0xff]   ;;  %vm7576_vm12 = vmand %vm380_vm1, %vm446_vm4 }
  0x16   : > { %453 = vst [vmem:[#allocation2 + $0x14] sm:$0x1] %v452_v11  ;;  %vm1084_vm7 = vsmask.f32 3328  ;;  %vm1085_vm8 = vsmask.f32 7440  ;;  %v6511_v29 = vunpack.c.l.bf16 %v6569_v25  ;;  %v6512_v34 = vunpack.c.h.bf16 %v6569_v25  ;;  %7307 = vmatprep.subr.msk.bf16.mxu0 %vm1573_vm0, %v3800_v28 }
  0x17   : > { %v392_v17 = vld [vmem:[#allocation2] sm:$0x1]  ;;  %v1036_v19 = vld [vmem:[#allocation2 + $0x4] sm:$0xf]  ;;  %v6570_v30 = vld [vmem:[%s7516_s28 + $0x10] sm:$0xff]   ;;  %v399_v35 = vsel %vm7480_vm5, 0, %v398_v15 }
  0x18   : > { %v448_v18 = vld [vmem:[#allocation2 + $0x8] sm:$0x1]  ;;  %v393_v20 = vsel %vm7480_vm5, 0, %v392_v17  ;;  %v1097_v22 = vshll.u32 %v1036_v19, 16  ;;  %v1101_v23 = vshrl.u32 %v1036_v19, 16  ;;  %v6506_v24 = vld [vmem:[%s7516_s28] sm:$0xff]   ;;  %v282_v38 = vmul.f32 %v6511_v29, %v7521_v14  ;;  %vm7567_vm11 = vmor %vm1084_vm7, %vm1085_vm8 }
  0x19   : > { %v449_v21 = vsel %vm7488_vm6, 0, %v448_v18  ;;  %394 = vst [vmem:[#allocation2] sm:$0x1] %v393_v20  ;;  %v6507_v26 = vunpack.c.l.bf16 %v6506_v24  ;;  %v6508_v27 = vunpack.c.h.bf16 %v6506_v24  ;;  %v7536_v33 = vld [vmem:[%s9503_s1 + $0x1] ss:$0 sm:$0xff]  ;;  %v455_v39 = vsel %vm7488_vm6, 0, %v454_v16 }
  0x1a   : > { %450 = vst [vmem:[#allocation2 + $0x8] sm:$0x1] %v449_v21  ;;  %v7531_v31 = vrot.slane %v1097_v22, 5  ;;  %v1103_v32 = vrot.slane %v1101_v23, 4  ;;  %400 = vst [vmem:[#allocation2 + $0x18] sm:$0x1] %v399_v35  ;;  %v283_v42 = vmul.f32 %v6512_v34, %v7521_v14  ;;  %v6515_v43 = vunpack.c.l.bf16 %v6570_v30 }
  0x1b   : > { %v280_v36 = vmul.f32 %v6507_v26, %v7521_v14  ;;  %v281_v37 = vmul.f32 %v6508_v27, %v7521_v14  ;;  %v401_v40 = vld [vmem:[#allocation2 + $0x24] sm:$0x1]  ;;  %vm598_vm9 = vsmask.f32 4368  ;;  %456 = vst [vmem:[#allocation2 + $0x20] sm:$0x1] %v455_v39  ;;  %v318_v46 = vadd.f32 %v7536_v33, %v282_v38 }
  0x1c   : > { %v1104_v41 = vor.u32 %v1103_v32, %v7531_v31  ;;  %v6516_v47 = vunpack.c.h.bf16 %v6570_v30  ;;  %v457_v48 = vld [vmem:[#allocation2 + $0x2c] sm:$0x1]  ;;  %v319_v50 = vadd.f32 %v7536_v33, %v283_v42  ;;  %v284_v51 = vmul.f32 %v6515_v43, %v7521_v14  ;;  %v7558_v53 = vld [vmem:[%s7516_s28 + $0x18] sm:$0xff]   ;;  %vm7582_vm13 = vmor %vm390_vm3, %vm598_vm9  ;;  %s6030_s23 = sshll.u32 %s9586_s16, 1 }
  0x1d   : > { %v316_v44 = vadd.f32 %v7536_v33, %v280_v36  ;;  %v317_v45 = vadd.f32 %v7536_v33, %v281_v37  ;;  %v402_v52 = vsel %vm7480_vm5, 0, %v401_v40  ;;  %v350_v56 = vmax.f32 %v318_v46, 0.0  ;;  %v923_v30 = vld [vmem:[#allocation2 + $0xc] sm:$0xf]  ;;  %v927_v37 = vld [vmem:[#allocation2 + $0x14] sm:$0x1]  ;;  %s208_s11 = scalar_lea.vmem %s9506_s4, %s6030_s23 }
  0x1e   : > { %v1105_v49 = vrot.slane %v1104_v41, 4  ;;  %v285_v57 = vmul.f32 %v6516_v47, %v7521_v14  ;;  %403 = vst [vmem:[#allocation2 + $0x24] sm:$0x1] %v402_v52  ;;  %v351_v60 = vmax.f32 %v319_v50, 0.0  ;;  %v320_v61 = vadd.f32 %v7536_v33, %v284_v51  ;;  %v404_v50 = vld [vmem:[#allocation2 + $0x30] sm:$0x1] }
  0x1f   : > { %v348_v54 = vmax.f32 %v316_v44, 0.0  ;;  %v349_v55 = vmax.f32 %v317_v45, 0.0  ;;  %v458_v62 = vsel %vm7488_vm6, 0, %v457_v48  ;;  %vm1524_vm10 = vcmask 31744  }
  0x20   : > { %v1035_v58 = vld [vmem:[#allocation2] sm:$0xf]  ;;  %459 = vst [vmem:[#allocation2 + $0x2c] sm:$0x1] %v458_v62  ;;  %v6519_v2 = vunpack.c.l.bf16 %v7558_v53  ;;  %v6443_v9 = vpack.c.bf16 %v350_v56, %v350_v56  ;;  %v6444_v10 = vpack.c.bf16 %v351_v60, %v351_v60  ;;  %v321_v17 = vadd.f32 %v7536_v33, %v285_v57 }
  0x21   : > { %v1068_v59 = vld [vmem:[#allocation2 + $0x8] sm:$0x1]  ;;  %v1088_v63 = vshrl.u32 %v1035_v58, 16  ;;  %v1091_v0 = vshll.u32 %v1035_v58, 16  ;;  %v6441_v6 = vpack.c.bf16 %v348_v54, %v348_v54  ;;  %v6442_v8 = vpack.c.bf16 %v349_v55, %v349_v55  ;;  %v930_v45 = vld [vmem:[#allocation2 + $0x18] sm:$0xf] }
  0x22   : > { %v1107_v1 = vshll.u32 %v1068_v59, 16  ;;  %v618_v24 = vshrl.u32 %v6443_v9, 16  ;;  %v621_v25 = vshll.u32 %v6443_v9, 16  ;;  %v626_v32 = vshrl.u32 %v6444_v10, 16  ;;  %v934_v56 = vld [vmem:[#allocation2 + $0x20] sm:$0x1] }
  0x23   : > { %v1090_v11 = vrot.slane %v1088_v63, 4  ;;  %v1093_v15 = vrot.slane %v1091_v0, 5  ;;  %v601_v18 = vshrl.u32 %v6441_v6, 16  ;;  %v604_v19 = vshll.u32 %v6441_v6, 16  ;;  %v460_v0 = vld [vmem:[#allocation2 + $0x38] sm:$0x1] }
  0x24   : > { %v1109_v16 = vrot.slane %v1107_v1, 5  ;;  %v609_v20 = vshrl.u32 %v6442_v8, 16  ;;  %v612_v21 = vshll.u32 %v6442_v8, 16  ;;  %v629_v34 = vshll.u32 %v6444_v10, 16  ;;  %v6572_v1 = vld [vmem:[%s7516_s28 + $0x20] sm:$0xff]  }
  0x25   : > { %v1094_v22 = vor.u32 %v1093_v15, %v1090_v11  ;;  %v603_v27 = vrot.slane %v601_v18, 7  ;;  %v620_v38 = vrot.slane %v618_v24, 7  ;;  %v352_v39 = vmax.f32 %v320_v61, 0.0  ;;  %v407_v11 = vld [vmem:[#allocation2 + $0x3c] sm:$0x1] }
  0x26   : > { %v1110_v23 = vsel %vm7567_vm11, %v1105_v49, %v1109_v16  ;;  %v611_v29 = vrot.slane %v609_v20, 7  ;;  %v353_v40 = vmax.f32 %v321_v17, 0.0  ;;  %v628_v49 = vrot.slane %v626_v32, 7 }
  0x27   : > { %v1095_v35 = vrot.slane %v1094_v22, 4  ;;  %v606_v41 = vor.u32 %v604_v19, %v603_v27  ;;  %v607_v42 = vrot.slane %v603_v27, 4  ;;  %v623_v47 = vor.u32 %v621_v25, %v620_v38 }
  0x28   : > { %v614_v43 = vor.u32 %v612_v21, %v611_v29  ;;  %v616_v44 = vrot.slane %v611_v29, 4  ;;  %v624_v48 = vrot.slane %v620_v38, 4  ;;  %v633_v57 = vrot.slane %v628_v49, 4 }
  0x29   : > { %v1100_v46 = vsel %vm7567_vm11, %v1095_v35, %v7531_v31  ;;  %v924_v54 = vsel %vm7576_vm12, %v606_v41, %v923_v30  ;;  %v631_v31 = vor.u32 %v629_v34, %v628_v49  ;;  %v931_v58 = vsel %vm7576_vm12, %v623_v47, %v930_v45  ;;  %v7636_v30 = vld [vmem:[%s7516_s28 + $0x28] sm:$0xff]  }
  0x2a   : > { %v6065_v51 = vcombine.low %v1100_v46, %v1110_v23  ;;  %v615_v52 = vsel %vm7582_vm13, %v607_v42, %v614_v43  ;;  %v928_v55 = vsel %vm7480_vm5, %v616_v44, %v927_v37  ;;  %925 = vst [vmem:[#allocation2 + $0xc] sm:$0xf] %v924_v54  ;;  %v6445_v59 = vpack.c.bf16 %v352_v39, %v352_v39 }
  0x2b   : > { %926 = vst.msk [vmem:[#allocation2 + $0x10] sm:$0xf] %vm380_vm1, %v615_v52  ;;  %929 = vst [vmem:[#allocation2 + $0x14] sm:$0x1] %v928_v55  ;;  %v6446_v60 = vpack.c.bf16 %v353_v40, %v353_v40  ;;  %v6520_v61 = vunpack.c.h.bf16 %v7558_v53  ;;  %v286_v62 = vmul.f32 %v6519_v2, %v7521_v14  ;;  %v405_v63 = vsel %vm7480_vm5, 0, %v404_v50 }
  0x2c   : > { %6739 = vmatprep.mubr.msk.bf16.mxu1 %vm1524_vm10, %v6065_v51  ;;  %932 = vst [vmem:[#allocation2 + $0x18] sm:$0xf] %v931_v58  ;;  %v632_v6 = vsel %vm7582_vm13, %v624_v48, %v631_v31  ;;  %v935_v8 = vsel %vm7480_vm5, %v633_v57, %v934_v56  ;;  %v635_v9 = vshrl.u32 %v6445_v59, 16  ;;  %v638_v10 = vshll.u32 %v6445_v59, 16  ;;  %406 = vst [vmem:[#allocation2 + $0x30] sm:$0x1] %v405_v63 }
  0x2d   : > { %933 = vst.msk [vmem:[#allocation2 + $0x1c] sm:$0xf] %vm380_vm1, %v632_v6  ;;  %936 = vst [vmem:[#allocation2 + $0x20] sm:$0x1] %v935_v8  ;;  %v643_v53 = vshrl.u32 %v6446_v60, 16  ;;  %v646_v2 = vshll.u32 %v6446_v60, 16  ;;  %v287_v15 = vmul.f32 %v6520_v61, %v7521_v14  ;;  %v322_v16 = vadd.f32 %v7536_v33, %v286_v62 }
  0x2e   : > { %v7611_v17 = vrot.slane %v635_v9, 7  ;;  %v461_v18 = vsel %vm7488_vm6, 0, %v460_v0  ;;  %v6523_v19 = vunpack.c.l.bf16 %v6572_v1  ;;  %v6524_v20 = vunpack.c.h.bf16 %v6572_v1 }
  0x2f   : > { %v7617_v21 = vsel %vm1573_vm0, %v7501_v12, 0  ;;  %v7619_v22 = vrot.slane %v643_v53, 7  ;;  %v354_v23 = vmax.f32 %v322_v16, 0.0  ;;  %462 = vst [vmem:[#allocation2 + $0x38] sm:$0x1] %v461_v18  ;;  %v408_v24 = vsel %vm7480_vm5, 0, %v407_v11 }
  0x30   : > { %v7626_v25 = vsel %vm1573_vm0, %v3800_v28, 0  ;;  %v7629_v27 = vor.u32 %v638_v10, %v7611_v17  ;;  %v641_v29 = vrot.slane %v7611_v17, 4  ;;  %v7633_v12 = vadd.f32 %v7536_v33, %v287_v15  ;;  %409 = vst [vmem:[#allocation2 + $0x3c] sm:$0x1] %v408_v24 }
  0x31   : > { %v1037_v32 = vld [vmem:[#allocation2 + $0xc] sm:$0xf]  ;;  %v7639_v37 = vor.u32 %v646_v2, %v7619_v22  ;;  %v7641_v13 = vpack.c.bf16 %v354_v23, %v354_v23  ;;  %v7644_v28 = vmul.f32 %v6523_v19, %v7521_v14  ;;  %v7647_v38 = vmul.f32 %v6524_v20, %v7521_v14 }
  0x32   : > { %v1038_v34 = vld [vmem:[#allocation2 + $0x10] sm:$0xf]  ;;  %v1069_v35 = vld [vmem:[#allocation2 + $0x14] sm:$0x1]  ;;  %v1112_v39 = vshrl.u32 %v1037_v32, 16  ;;  %v1115_v40 = vshll.u32 %v1037_v32, 16  ;;  %v6527_v47 = vunpack.c.l.bf16 %v7636_v30  ;;  %v6528_v48 = vunpack.c.h.bf16 %v7636_v30 }
  0x33   : > { %v1121_v41 = vshll.u32 %v1038_v34, 16  ;;  %v1125_v42 = vshrl.u32 %v1038_v34, 16  ;;  %v2847_v43 = vld [vmem:[#allocation2 + $0xc] sm:$0xf]  ;;  %v1131_v44 = vshll.u32 %v1069_v35, 16  ;;  %vm2078_vm14 = vcmask 1042432  }
  0x34   : > { %v7649_v45 = vld [vmem:[#allocation2 + $0x10] sm:$0xf]  ;;  %v2896_v46 = vshrl.u32 %v2847_v43, 16  ;;  %v1114_v49 = vrot.slane %v1112_v39, 4  ;;  %v1117_v50 = vrot.slane %v1115_v40, 5  ;;  %v2899_v31 = vshll.u32 %v2847_v43, 16 }
  0x35   : > { %v1123_v51 = vrot.slane %v1121_v41, 5  ;;  %v1127_v52 = vrot.slane %v1125_v42, 4  ;;  %v7653_v54 = vld [vmem:[#allocation2 + $0x14] sm:$0x1]  ;;  %v1133_v55 = vrot.slane %v1131_v44, 5  ;;  %v2905_v57 = vshll.u32 %v7649_v45, 16 }
  0x36   : > { %v2898_v56 = vrot.slane %v2896_v46, 4  ;;  %v1118_v58 = vor.u32 %v1117_v50, %v1114_v49  ;;  %v2909_v60 = vshrl.u32 %v7649_v45, 16  ;;  %v2915_v61 = vshll.u32 %v7653_v54, 16  ;;  %v2850_v62 = vld [vmem:[#allocation2 + $0x18] sm:$0xf] }
  0x37   : > { %v1128_v59 = vor.u32 %v1127_v52, %v1123_v51  ;;  %v7658_v63 = vld [vmem:[#allocation2 + $0x1c] sm:$0xf]  ;;  %v2901_v0 = vrot.slane %v2899_v31, 5  ;;  %v2907_v1 = vrot.slane %v2905_v57, 5  ;;  %v3638_v6 = vrot.slane %v7649_v45, 5 }
  0x38   : > { %v3641_v8 = vrot.slane %v7653_v54, 5  ;;  %v1119_v9 = vrot.slane %v1118_v58, 4  ;;  %v2911_v11 = vrot.slane %v2909_v60, 4  ;;  %v2917_v53 = vrot.slane %v2915_v61, 5  ;;  %v7662_v15 = vld [vmem:[#allocation2 + $0x20] sm:$0x1] }
  0x39   : > { %v1129_v10 = vrot.slane %v1128_v59, 4  ;;  %v2902_v2 = vor.u32 %v2901_v0, %v2898_v56  ;;  %v2920_v16 = vshrl.u32 %v2850_v62, 16  ;;  %v2923_v18 = vshll.u32 %v2850_v62, 16  ;;  %v1039_v41 = vld [vmem:[#allocation2 + $0x18] sm:$0xf] }
  0x3a   : > { %v2929_v19 = vshll.u32 %v7658_v63, 16  ;;  %v1124_v20 = vsel %vm7567_vm11, %v1119_v9, %v1123_v51  ;;  %v2912_v24 = vor.u32 %v2911_v11, %v2907_v1  ;;  %v2933_v32 = vshrl.u32 %v7658_v63, 16  ;;  %v1070_v58 = vld [vmem:[#allocation2 + $0x20] sm:$0x1] }
  0x3b   : > { %v1134_v23 = vsel %vm7567_vm11, %v1129_v10, %v1133_v55  ;;  %v2903_v35 = vrot.slane %v2902_v2, 4  ;;  %v2922_v39 = vrot.slane %v2920_v16, 4  ;;  %v2925_v40 = vrot.slane %v2923_v18, 5  ;;  %v1040_v55 = vld [vmem:[#allocation2 + $0x1c] sm:$0xf] }
  0x3c   : > { %v6066_v34 = vcombine.low %v1124_v20, %v1134_v23  ;;  %v2913_v42 = vrot.slane %v2912_v24, 4  ;;  %v2931_v43 = vrot.slane %v2929_v19, 5  ;;  %v2935_v44 = vrot.slane %v2933_v32, 4  ;;  %v937_v2 = vld [vmem:[#allocation2 + $0x24] sm:$0xf] }
  0x3d   : > { %v2939_v46 = vshll.u32 %v7662_v15, 16  ;;  %v2908_v49 = vsel %vm7567_vm11, %v2903_v35, %v2907_v1  ;;  %v2926_v50 = vor.u32 %v2925_v40, %v2922_v39  ;;  %v3645_v51 = vrot.slane %v7658_v63, 5  ;;  %v941_v19 = vld [vmem:[#allocation2 + $0x2c] sm:$0x1]  ;;  %v463_v20 = vld [vmem:[#allocation2 + $0x44] sm:$0x1] }
  0x3e   : > { %6740 = vmatmul.mubr.msk.bf16.vlgmr.msra.gmra.mrb[0].mxu1 %vm1524_vm10, %v6066_v34  ;;  %v3648_v52 = vrot.slane %v7662_v15, 5  ;;  %v2918_v56 = vsel %vm7567_vm11, %v2913_v42, %v2917_v53  ;;  %v2936_v31 = vor.u32 %v2935_v44, %v2931_v43  ;;  %v1136_v59 = vshrl.u32 %v1039_v41, 16 }
  0x3f   : > { %6772 = vmatpush3.bf16.msra.mxu1 %v7617_v21  ;;  %v2941_v57 = vrot.slane %v2939_v46, 5  ;;  %v6211_v60 = vcombine.low %v2908_v49, %v2918_v56  ;;  %v2927_v61 = vrot.slane %v2926_v50, 4  ;;  %v7681_v62 = vrot.slane %v3645_v51, 4 }
  0x40   : > { %v1139_v0 = vshll.u32 %v1039_v41, 16  ;;  %v2937_v1 = vrot.slane %v2936_v31, 4  ;;  %v1138_v9 = vrot.slane %v1136_v59, 4  ;;  %v1145_v10 = vshll.u32 %v1040_v55, 16  ;;  %v944_v59 = vld [vmem:[#allocation2 + $0x30] sm:$0xf] }
  0x41   : > { %v1149_v11 = vshrl.u32 %v1040_v55, 16  ;;  %6875 = vmatprep.mubr.msk.bf16.mxu0 %vm1524_vm10, %v6211_v60  ;;  %v2932_v21 = vsel %vm7567_vm11, %v2927_v61, %v2931_v43  ;;  %v1155_v16 = vshll.u32 %v1070_v58, 16  ;;  %v649_v18 = vsel %vm7582_vm13, %v641_v29, %v7639_v37 }
  0x42   : > { %v1141_v53 = vrot.slane %v1139_v0, 5  ;;  %v2942_v23 = vsel %vm7567_vm11, %v2937_v1, %v2941_v57  ;;  %v1147_v24 = vrot.slane %v1145_v10, 5  ;;  %v650_v34 = vrot.slane %v7619_v22, 4  ;;  %940 = vst.msk [vmem:[#allocation2 + $0x28] sm:$0xf] %vm380_vm1, %v649_v18 }
  0x43   : > { %v1151_v32 = vrot.slane %v1149_v11, 4  ;;  %v6212_v35 = vcombine.low %v2932_v21, %v2942_v23  ;;  %v1157_v40 = vrot.slane %v1155_v16, 5  ;;  %v938_v17 = vsel %vm7576_vm12, %v7629_v27, %v937_v2  ;;  %v7705_v22 = vld [vmem:[%s9504_s2 + $0xc] sm:$0x3] }
  0x44   : > { %v1142_v39 = vor.u32 %v1141_v53, %v1138_v9  ;;  %939 = vst [vmem:[#allocation2 + $0x24] sm:$0xf] %v938_v17  ;;  %v942_v29 = vsel %vm7480_vm5, %v650_v34, %v941_v19  ;;  %v355_v37 = vmax.f32 %v7633_v12, 0.0  ;;  %v652_v42 = vshrl.u32 %v7641_v13, 16 }
  0x45   : > { %v1152_v41 = vor.u32 %v1151_v32, %v1147_v24  ;;  %6876 = vmatmul.mubr.msk.bf16.vlgmr.msra.gmra.mrb[0].mxu0 %vm1524_vm10, %v6212_v35  ;;  %943 = vst [vmem:[#allocation2 + $0x2c] sm:$0x1] %v942_v29  ;;  %v655_v27 = vshll.u32 %v7641_v13, 16  ;;  %v324_v44 = vadd.f32 %v7536_v33, %v7644_v28  ;;  %v325_v46 = vadd.f32 %v7536_v33, %v7647_v38 }
  0x46   : > { %v1143_v43 = vrot.slane %v1142_v39, 4  ;;  %6908 = vmatpush3.bf16.msra.mxu0 %v7626_v25  ;;  %v6448_v49 = vpack.c.bf16 %v355_v37, %v355_v37  ;;  %v7714_v50 = vrot.slane %v652_v42, 7  ;;  %v464_v55 = vsel %vm7488_vm6, 0, %v463_v20 }
  0x47   : > { %v1153_v12 = vrot.slane %v1152_v41, 4  ;;  %v356_v31 = vmax.f32 %v324_v44, 0.0  ;;  %v357_v13 = vmax.f32 %v325_v46, 0.0  ;;  %465 = vst [vmem:[#allocation2 + $0x44] sm:$0x1] %v464_v55  ;;  %v290_v28 = vmul.f32 %v6527_v47, %v7521_v14  ;;  %7308 = vmatprep.subr.msk.bf16.mxu0 %vm1573_vm0, %v7705_v22 }
  0x48   : > { %v1148_v56 = vsel %vm7567_vm11, %v1143_v43, %v1147_v24  ;;  %v657_v38 = vor.u32 %v655_v27, %v7714_v50  ;;  %v658_v57 = vrot.slane %v7714_v50, 4  ;;  %v660_v58 = vshrl.u32 %v6448_v49, 16 }
  0x49   : > { %v1158_v25 = vsel %vm7567_vm11, %v1153_v12, %v1157_v40  ;;  %v1042_v61 = vld [vmem:[#allocation2 + $0x28] sm:$0xf]  ;;  %v663_v1 = vshll.u32 %v6448_v49, 16  ;;  %v7731_v9 = vpack.c.bf16 %v356_v31, %v356_v31  ;;  %v7733_v47 = vpack.c.bf16 %v357_v13, %v357_v13  ;;  %v948_v49 = vld [vmem:[#allocation2 + $0x38] sm:$0x1] }
  0x4a   : > { %v6067_v60 = vcombine.low %v1148_v56, %v1158_v25  ;;  %v7729_v0 = vld [vmem:[#allocation2 + $0x28] sm:$0xf]  ;;  %v1169_v10 = vshll.u32 %v1042_v61, 16  ;;  %v1173_v11 = vshrl.u32 %v1042_v61, 16  ;;  %v662_v18 = vrot.slane %v660_v58, 7 }
  0x4b   : > { %v2953_v2 = vshll.u32 %v7729_v0, 16  ;;  %v2957_v21 = vshrl.u32 %v7729_v0, 16  ;;  %v1041_v53 = vld [vmem:[#allocation2 + $0x24] sm:$0xf]  ;;  %v945_v19 = vsel %vm7576_vm12, %v657_v38, %v944_v59  ;;  %v669_v20 = vshrl.u32 %v7731_v9, 16 }
  0x4c   : > { %6743 = vmatprep.mubr.msk.bf16.mxu1 %vm1524_vm10, %v6067_v60  ;;  %v2853_v16 = vld [vmem:[#allocation2 + $0x24] sm:$0xf]  ;;  %v7744_v23 = vmul.f32 %v6528_v48, %v7521_v14  ;;  %v1071_v24 = vld [vmem:[#allocation2 + $0x2c] sm:$0x1]  ;;  %v1160_v32 = vshrl.u32 %v1041_v53, 16  ;;  %v1163_v34 = vshll.u32 %v1041_v53, 16  ;;  %v665_v31 = vor.u32 %v663_v1, %v662_v18 }
  0x4d   : > { %v1171_v35 = vrot.slane %v1169_v10, 5  ;;  %v1175_v39 = vrot.slane %v1173_v11, 4  ;;  %946 = vst [vmem:[#allocation2 + $0x30] sm:$0xf] %v945_v19  ;;  %v1179_v40 = vshll.u32 %v1071_v24, 16  ;;  %v2944_v41 = vshrl.u32 %v2853_v16, 16 }
  0x4e   : > { %v7746_v17 = vld [vmem:[#allocation2 + $0x2c] sm:$0x1]  ;;  %v2947_v29 = vshll.u32 %v2853_v16, 16  ;;  %v2955_v37 = vrot.slane %v2953_v2, 5  ;;  %v1162_v42 = vrot.slane %v1160_v32, 4  ;;  %v1165_v43 = vrot.slane %v1163_v34, 5 }
  0x4f   : > { %v1176_v27 = vor.u32 %v1175_v39, %v1171_v35  ;;  %v2959_v44 = vrot.slane %v2957_v21, 4  ;;  %v1181_v46 = vrot.slane %v1179_v40, 5  ;;  %v2946_v30 = vrot.slane %v2944_v41, 4  ;;  %v951_v40 = vld [vmem:[#allocation2 + $0x3c] sm:$0xf] }
  0x50   : > { %v2949_v48 = vrot.slane %v2947_v29, 5  ;;  %v2963_v12 = vshll.u32 %v7746_v17, 16  ;;  %v1166_v50 = vor.u32 %v1165_v43, %v1162_v42  ;;  %v667_v38 = vrot.slane %v662_v18, 4 }
  0x51   : > { %v1177_v55 = vrot.slane %v1176_v27, 4  ;;  %v2960_v56 = vor.u32 %v2959_v44, %v2955_v37  ;;  %v7749_v58 = vrot.slane %v669_v20, 7  ;;  %v666_v10 = vsel %vm7582_vm13, %v658_v57, %v665_v31 }
  0x52   : > { %v2950_v13 = vor.u32 %v2949_v48, %v2946_v30  ;;  %v2965_v25 = vrot.slane %v2963_v12, 5  ;;  %v1167_v59 = vrot.slane %v1166_v50, 4  ;;  %947 = vst.msk [vmem:[#allocation2 + $0x34] sm:$0xf] %vm380_vm1, %v666_v10  ;;  %v949_v2 = vsel %vm7480_vm5, %v667_v38, %v948_v49 }
  0x53   : > { %v1182_v60 = vsel %vm7567_vm11, %v1177_v55, %v1181_v46  ;;  %v2961_v61 = vrot.slane %v2960_v56, 4  ;;  %v672_v53 = vshll.u32 %v7731_v9, 16  ;;  %v326_v16 = vadd.f32 %v7536_v33, %v290_v28  ;;  %950 = vst [vmem:[#allocation2 + $0x38] sm:$0x1] %v949_v2  ;;  %v7771_v46 = vld [vmem:[%s7516_s28 + $0x30] sm:$0xff]  }
  0x54   : > { %v2951_v11 = vrot.slane %v2950_v13, 4  ;;  %v2856_v1 = vld [vmem:[#allocation2 + $0x30] sm:$0xf]  ;;  %v1172_v18 = vsel %vm7567_vm11, %v1167_v59, %v1171_v35  ;;  %v410_v35 = vld [vmem:[#allocation2 + $0x48] sm:$0x1]  ;;  %v675_v27 = vrot.slane %v7749_v58, 4  ;;  %v327_v12 = vadd.f32 %v7536_v33, %v7744_v23 }
  0x55   : > { %v1043_v21 = vld [vmem:[#allocation2 + $0x30] sm:$0xf]  ;;  %v2966_v19 = vsel %vm7567_vm11, %v2961_v61, %v2965_v25  ;;  %v2968_v57 = vshrl.u32 %v2856_v1, 16  ;;  %v2971_v20 = vshll.u32 %v2856_v1, 16  ;;  %v6068_v24 = vcombine.low %v1172_v18, %v1182_v60  ;;  %v955_v18 = vld [vmem:[#allocation2 + $0x44] sm:$0x1] }
  0x56   : > { %v2956_v32 = vsel %vm7567_vm11, %v2951_v11, %v2955_v37  ;;  %v1184_v34 = vshrl.u32 %v1043_v21, 16  ;;  %v1187_v39 = vshll.u32 %v1043_v21, 16  ;;  %v674_v29 = vor.u32 %v672_v53, %v7749_v58 }
  0x57   : > { %v6213_v9 = vcombine.low %v2956_v32, %v2966_v19  ;;  %v2970_v41 = vrot.slane %v2968_v57, 4  ;;  %v2973_v28 = vrot.slane %v2971_v20, 5  ;;  %6744 = vmatmul.mubr.msk.bf16.gmra.mrb[4].mxu1 %vm1524_vm10, %v6068_v24  ;;  %v677_v44 = vshrl.u32 %v7733_v47, 16 }
  0x58   : > { %v1186_v42 = vrot.slane %v1184_v34, 4  ;;  %v1189_v43 = vrot.slane %v1187_v39, 5  ;;  %v680_v30 = vshll.u32 %v7733_v47, 16  ;;  %v952_v48 = vsel %vm7576_vm12, %v674_v29, %v951_v40  ;;  %v466_v47 = vld [vmem:[#allocation2 + $0x50] sm:$0x1] }
  0x59   : > { %6879 = vmatprep.mubr.msk.bf16.mxu0 %vm1524_vm10, %v6213_v9  ;;  %v2974_v37 = vor.u32 %v2973_v28, %v2970_v41  ;;  %v679_v50 = vrot.slane %v677_v44, 7  ;;  %953 = vst [vmem:[#allocation2 + $0x3c] sm:$0xf] %v952_v48  ;;  %v358_v55 = vmax.f32 %v326_v16, 0.0  ;;  %v411_v56 = vsel %vm7480_vm5, 0, %v410_v35 }
  0x5a   : > { %v1190_v49 = vor.u32 %v1189_v43, %v1186_v42  ;;  %v7781_v31 = vld [vmem:[#allocation2 + $0x34] sm:$0xf]  ;;  %v359_v38 = vmax.f32 %v327_v12, 0.0  ;;  %412 = vst [vmem:[#allocation2 + $0x48] sm:$0x1] %v411_v56  ;;  %v6531_v58 = vunpack.c.l.bf16 %v7771_v46  ;;  %v6532_v59 = vunpack.c.h.bf16 %v7771_v46 }
  0x5b   : > { %v2975_v13 = vrot.slane %v2974_v37, 4  ;;  %v1044_v25 = vld [vmem:[#allocation2 + $0x34] sm:$0xf]  ;;  %v7785_v60 = vld [vmem:[#allocation2 + $0x38] sm:$0x1]  ;;  %v2977_v23 = vshll.u32 %v7781_v31, 16  ;;  %v682_v11 = vor.u32 %v680_v30, %v679_v50  ;;  %v6451_v2 = vpack.c.bf16 %v358_v55, %v358_v55 }
  0x5c   : > { %v2981_v61 = vshrl.u32 %v7781_v31, 16  ;;  %v1072_v10 = vld [vmem:[#allocation2 + $0x38] sm:$0x1]  ;;  %v2987_v1 = vshll.u32 %v7785_v60, 16  ;;  %v1191_v21 = vrot.slane %v1190_v49, 4  ;;  %v1193_v53 = vshll.u32 %v1044_v25, 16 }
  0x5d   : > { %v1197_v16 = vshrl.u32 %v1044_v25, 16  ;;  %v2979_v19 = vrot.slane %v2977_v23, 5  ;;  %v1203_v20 = vshll.u32 %v1072_v10, 16  ;;  %v683_v24 = vsel %vm7582_vm13, %v675_v27, %v682_v11 }
  0x5e   : > { %v2983_v57 = vrot.slane %v2981_v61, 4  ;;  %v2989_v32 = vrot.slane %v2987_v1, 5  ;;  %v1195_v34 = vrot.slane %v1193_v53, 5  ;;  %v684_v40 = vrot.slane %v679_v50, 4  ;;  %954 = vst.msk [vmem:[#allocation2 + $0x40] sm:$0xf] %vm380_vm1, %v683_v24 }
  0x5f   : > { %v1199_v39 = vrot.slane %v1197_v16, 4  ;;  %v2980_v9 = vsel %vm7567_vm11, %v2975_v13, %v2979_v19  ;;  %v1205_v28 = vrot.slane %v1203_v20, 5  ;;  %v467_v29 = vsel %vm7488_vm6, 0, %v466_v47 }
  0x60   : > { %v2984_v41 = vor.u32 %v2983_v57, %v2979_v19  ;;  %v1196_v35 = vsel %vm7567_vm11, %v1191_v21, %v1195_v34  ;;  %v956_v43 = vsel %vm7480_vm5, %v684_v40, %v955_v18  ;;  %v1045_v27 = vld [vmem:[#allocation2 + $0x3c] sm:$0xf]  ;;  %468 = vst [vmem:[#allocation2 + $0x50] sm:$0x1] %v467_v29  ;;  %v6452_v37 = vpack.c.bf16 %v359_v38, %v359_v38 }
  0x61   : > { %v1200_v42 = vor.u32 %v1199_v39, %v1195_v34  ;;  %v2859_v44 = vld [vmem:[#allocation2 + $0x3c] sm:$0xf]  ;;  %957 = vst [vmem:[#allocation2 + $0x44] sm:$0x1] %v956_v43  ;;  %v1208_v48 = vshrl.u32 %v1045_v27, 16  ;;  %v1211_v12 = vshll.u32 %v1045_v27, 16  ;;  %v292_v43 = vmul.f32 %v6531_v58, %v7521_v14 }
  0x62   : > { %v2985_v30 = vrot.slane %v2984_v41, 4  ;;  %v2992_v49 = vshrl.u32 %v2859_v44, 16  ;;  %v2995_v55 = vshll.u32 %v2859_v44, 16  ;;  %v686_v56 = vshrl.u32 %v6451_v2, 16  ;;  %v958_v41 = vld [vmem:[#allocation2 + $0x48] sm:$0xf] }
  0x63   : > { %v1201_v50 = vrot.slane %v1200_v42, 4  ;;  %v689_v13 = vshll.u32 %v6451_v2, 16  ;;  %v1210_v47 = vrot.slane %v1208_v48, 4  ;;  %v1213_v23 = vrot.slane %v1211_v12, 5 }
  0x64   : > { %v2990_v25 = vsel %vm7567_vm11, %v2985_v30, %v2989_v32  ;;  %v2994_v61 = vrot.slane %v2992_v49, 4  ;;  %v2997_v38 = vrot.slane %v2995_v55, 5  ;;  %v688_v1 = vrot.slane %v686_v56, 7  ;;  %v413_v56 = vld [vmem:[#allocation2 + $0x54] sm:$0x1] }
  0x65   : > { %v6214_v10 = vcombine.low %v2980_v9, %v2990_v25  ;;  %v1206_v11 = vsel %vm7567_vm11, %v1201_v50, %v1205_v28  ;;  %v1046_v53 = vld [vmem:[#allocation2 + $0x40] sm:$0xf]  ;;  %v1214_v16 = vor.u32 %v1213_v23, %v1210_v47  ;;  %v694_v19 = vshrl.u32 %v6452_v37, 16 }
  0x66   : > { %v6069_v21 = vcombine.low %v1196_v35, %v1206_v11  ;;  %v2860_v18 = vld [vmem:[#allocation2 + $0x40] sm:$0xf]  ;;  %v697_v57 = vshll.u32 %v6452_v37, 16  ;;  %v1217_v2 = vshll.u32 %v1046_v53, 16  ;;  %v1221_v20 = vshrl.u32 %v1046_v53, 16  ;;  %v6575_v53 = vld [vmem:[%s7516_s28 + $0x38] sm:$0xff]  }
  0x67   : > { %6880 = vmatmul.mubr.msk.bf16.gmra.mrb[4].mxu0 %vm1524_vm10, %v6214_v10  ;;  %v2998_v24 = vor.u32 %v2997_v38, %v2994_v61  ;;  %v3001_v32 = vshll.u32 %v2860_v18, 16  ;;  %v1215_v34 = vrot.slane %v1214_v16, 4  ;;  %v3005_v39 = vshrl.u32 %v2860_v18, 16  ;;  %v962_v46 = vld [vmem:[#allocation2 + $0x50] sm:$0x1] }
  0x68   : > { %6747 = vmatprep.mubr.msk.bf16.mxu1 %vm1524_vm10, %v6069_v21  ;;  %v691_v40 = vor.u32 %v689_v13, %v688_v1  ;;  %v692_v9 = vrot.slane %v688_v1, 4  ;;  %v1073_v28 = vld [vmem:[#allocation2 + $0x44] sm:$0x1]  ;;  %v1219_v29 = vrot.slane %v1217_v2, 5  ;;  %v1223_v35 = vrot.slane %v1221_v20, 4 }
  0x69   : > { %v7807_v42 = vld [vmem:[#allocation2 + $0x44] sm:$0x1]  ;;  %v293_v27 = vmul.f32 %v6532_v59, %v7521_v14  ;;  %v1227_v44 = vshll.u32 %v1073_v28, 16  ;;  %v2999_v37 = vrot.slane %v2998_v24, 4  ;;  %v3003_v30 = vrot.slane %v3001_v32, 5 }
  0x6a   : > { %v3007_v48 = vrot.slane %v3005_v39, 4  ;;  %v1220_v12 = vsel %vm7567_vm11, %v1215_v34, %v1219_v29  ;;  %v1224_v49 = vor.u32 %v1223_v35, %v1219_v29  ;;  %v3011_v50 = vshll.u32 %v7807_v42, 16  ;;  %v469_v59 = vld [vmem:[#allocation2 + $0x5c] sm:$0x1]  ;;  %v416_v16 = vld [vmem:[#allocation2 + $0x60] sm:$0x1] }
  0x6b   : > { %v696_v55 = vrot.slane %v694_v19, 7  ;;  %v1229_v13 = vrot.slane %v1227_v44, 5  ;;  %v3004_v58 = vsel %vm7567_vm11, %v2999_v37, %v3003_v30  ;;  %v959_v14 = vsel %vm7576_vm12, %v691_v40, %v958_v41  ;;  %v472_v20 = vld [vmem:[#allocation2 + $0x68] sm:$0x1]  ;;  %v6576_v24 = vld [vmem:[%s7516_s28 + $0x40] sm:$0xff]  }
  0x6c   : > { %v3008_v25 = vor.u32 %v3007_v48, %v3003_v30  ;;  %v1225_v47 = vrot.slane %v1224_v49, 4  ;;  %v3013_v23 = vrot.slane %v3011_v50, 5  ;;  %960 = vst [vmem:[#allocation2 + $0x48] sm:$0xf] %v959_v14  ;;  %v328_v38 = vadd.f32 %v7536_v33, %v292_v43  ;;  %v7842_v43 = vld [vmem:[%s7516_s28 + $0x48] sm:$0xff]  }
  0x6d   : > { %v699_v61 = vor.u32 %v697_v57, %v696_v55  ;;  %v701_v10 = vrot.slane %v696_v55, 4  ;;  %v329_v1 = vadd.f32 %v7536_v33, %v293_v27  ;;  %v414_v21 = vsel %vm7480_vm5, 0, %v413_v56  ;;  %v7853_v48 = vld [vmem:[%s9503_s1] ss:$0 sm:$0xff] }
  0x6e   : > { %v3009_v11 = vrot.slane %v3008_v25, 4  ;;  %v1230_v18 = vsel %vm7567_vm11, %v1225_v47, %v1229_v13  ;;  %415 = vst [vmem:[#allocation2 + $0x54] sm:$0x1] %v414_v21  ;;  %v470_v2 = vsel %vm7488_vm6, 0, %v469_v59  ;;  %v360_v39 = vmax.f32 %v328_v38, 0.0 }
  0x6f   : > { %v700_v19 = vsel %vm7582_vm13, %v692_v9, %v699_v61  ;;  %v963_v57 = vsel %vm7480_vm5, %v701_v10, %v962_v46  ;;  %v6070_v32 = vcombine.low %v1220_v12, %v1230_v18  ;;  %v361_v40 = vmax.f32 %v329_v1, 0.0  ;;  %471 = vst [vmem:[#allocation2 + $0x5c] sm:$0x1] %v470_v2  ;;  %v419_v9 = vld [vmem:[#allocation2 + $0x6c] sm:$0x1] }
  0x70   : > { %v3014_v34 = vsel %vm7567_vm11, %v3009_v11, %v3013_v23  ;;  %961 = vst.msk [vmem:[#allocation2 + $0x4c] sm:$0xf] %vm380_vm1, %v700_v19  ;;  %964 = vst [vmem:[#allocation2 + $0x50] sm:$0x1] %v963_v57  ;;  %v6535_v28 = vunpack.c.l.bf16 %v6575_v53  ;;  %v6536_v29 = vunpack.c.h.bf16 %v6575_v53  ;;  %v417_v35 = vsel %vm7480_vm5, 0, %v416_v16 }
  0x71   : > { %v6215_v41 = vcombine.low %v3004_v58, %v3014_v34  ;;  %6748 = vmatmul.mubr.msk.bf16.gmra.mrb[8].mxu1 %vm1524_vm10, %v6070_v32  ;;  %v6453_v27 = vpack.c.bf16 %v360_v39, %v360_v39  ;;  %v7845_v44 = vpack.c.bf16 %v361_v40, %v361_v40  ;;  %418 = vst [vmem:[#allocation2 + $0x60] sm:$0x1] %v417_v35  ;;  %v473_v37 = vsel %vm7488_vm6, 0, %v472_v20  ;;  %v7871_v19 = vld [vmem:[%s9503_s1 + $0x1] ss:$0 sm:$0xff] }
  0x72   : > { %v6539_v30 = vunpack.c.l.bf16 %v6576_v24  ;;  %v294_v12 = vmul.f32 %v7853_v48, %v6535_v28  ;;  %v295_v49 = vmul.f32 %v7853_v48, %v6536_v29  ;;  %474 = vst [vmem:[#allocation2 + $0x68] sm:$0x1] %v473_v37  ;;  %v6540_v50 = vunpack.c.h.bf16 %v6576_v24 }
  0x73   : > { %6883 = vmatprep.mubr.msk.bf16.mxu0 %vm1524_vm10, %v6215_v41  ;;  %v420_v55 = vsel %vm7480_vm5, 0, %v419_v9  ;;  %v2862_v56 = vld [vmem:[#allocation2 + $0x48] sm:$0xf]  ;;  %v703_v58 = vshrl.u32 %v6453_v27, 16  ;;  %v706_v25 = vshll.u32 %v6453_v27, 16  ;;  %v6543_v46 = vunpack.c.l.bf16 %v7842_v43 }
  0x74   : > { %v1047_v13 = vld [vmem:[#allocation2 + $0x48] sm:$0xf]  ;;  %v296_v14 = vmul.f32 %v7853_v48, %v6539_v30  ;;  %421 = vst [vmem:[#allocation2 + $0x6c] sm:$0x1] %v420_v55  ;;  %v3016_v59 = vshrl.u32 %v2862_v56, 16  ;;  %v3019_v47 = vshll.u32 %v2862_v56, 16  ;;  %v330_v1 = vadd.f32 %v7536_v33, %v294_v12 }
  0x75   : > { %v1232_v23 = vshrl.u32 %v1047_v13, 16  ;;  %v1235_v61 = vshll.u32 %v1047_v13, 16  ;;  %v705_v10 = vrot.slane %v703_v58, 7  ;;  %v711_v11 = vshrl.u32 %v7845_v44, 16 }
  0x76   : > { %v714_v38 = vshll.u32 %v7845_v44, 16  ;;  %v3018_v16 = vrot.slane %v3016_v59, 4  ;;  %v3021_v18 = vrot.slane %v3019_v47, 5  ;;  %v331_v57 = vadd.f32 %v7871_v19, %v295_v49  ;;  %v969_v59 = vld [vmem:[#allocation2 + $0x5c] sm:$0x1] }
  0x77   : > { %v7864_v21 = vld [vmem:[#allocation2 + $0x4c] sm:$0xf]  ;;  %v7866_v53 = vld [vmem:[#allocation2 + $0x50] sm:$0x1]  ;;  %v297_v2 = vmul.f32 %v7853_v48, %v6540_v50  ;;  %v1234_v34 = vrot.slane %v1232_v23, 4  ;;  %v1237_v9 = vrot.slane %v1235_v61, 5  ;;  %v708_v13 = vor.u32 %v706_v25, %v705_v10 }
  0x78   : > { %v3025_v20 = vshll.u32 %v7864_v21, 16  ;;  %v3029_v24 = vshrl.u32 %v7864_v21, 16  ;;  %v3035_v33 = vshll.u32 %v7866_v53, 16  ;;  %v1048_v32 = vld [vmem:[#allocation2 + $0x4c] sm:$0xf]  ;;  %v3022_v39 = vor.u32 %v3021_v18, %v3018_v16 }
  0x79   : > { %v1074_v40 = vld [vmem:[#allocation2 + $0x50] sm:$0x1]  ;;  %v1241_v41 = vshll.u32 %v1048_v32, 16  ;;  %v1245_v28 = vshrl.u32 %v1048_v32, 16  ;;  %v1238_v30 = vor.u32 %v1237_v9, %v1234_v34  ;;  %v965_v50 = vld [vmem:[#allocation2 + $0x54] sm:$0xf] }
  0x7a   : > { %v3027_v29 = vrot.slane %v3025_v20, 5  ;;  %v3031_v35 = vrot.slane %v3029_v24, 4  ;;  %v3037_v27 = vrot.slane %v3035_v33, 5  ;;  %v1251_v44 = vshll.u32 %v1074_v40, 16 }
  0x7b   : > { %v3023_v37 = vrot.slane %v3022_v39, 4  ;;  %v1243_v12 = vrot.slane %v1241_v41, 5  ;;  %v1247_v49 = vrot.slane %v1245_v28, 4  ;;  %v709_v58 = vrot.slane %v705_v10, 4  ;;  %v2193_v10 = vld [vmem:[%s9504_s2 + $0x4] sm:$0x3] }
  0x7c   : > { %v3032_v55 = vor.u32 %v3031_v35, %v3027_v29  ;;  %v1253_v56 = vrot.slane %v1251_v44, 5  ;;  %v1239_v23 = vrot.slane %v1238_v30, 4  ;;  %v713_v16 = vrot.slane %v711_v11, 7  ;;  %7303 = vmatprep.subr.msk.bf16.mxu1 %vm1573_vm0, %v2193_v10 }
  0x7d   : > { %v3028_v47 = vsel %vm7567_vm11, %v3023_v37, %v3027_v29  ;;  %v1248_v61 = vor.u32 %v1247_v49, %v1243_v12  ;;  %v966_v20 = vsel %vm7576_vm12, %v708_v13, %v965_v50  ;;  %v362_v24 = vmax.f32 %v330_v1, 0.0  ;;  %v475_v1 = vld [vmem:[#allocation2 + $0x74] sm:$0x1]  ;;  %v3572_v37 = vld [vmem:[#allocation2 + $0xc] sm:$0xe] }
  0x7e   : > { %v3033_v18 = vrot.slane %v3032_v55, 4  ;;  %v363_v33 = vmax.f32 %v331_v57, 0.0  ;;  %v1244_v32 = vsel %vm7567_vm11, %v1239_v23, %v1243_v12  ;;  %v716_v39 = vor.u32 %v714_v38, %v713_v16  ;;  %967 = vst [vmem:[#allocation2 + $0x54] sm:$0xf] %v966_v20  ;;  %v972_v13 = vld [vmem:[#allocation2 + $0x60] sm:$0xf] }
  0x7f   : > { %v1249_v34 = vrot.slane %v1248_v61, 4  ;;  %v718_v25 = vrot.slane %v713_v16, 4  ;;  %v6455_v40 = vpack.c.bf16 %v362_v24, %v362_v24  ;;  %v332_v41 = vadd.f32 %v7871_v19, %v296_v14 }
  0x80   : > { %v3038_v11 = vsel %vm7567_vm11, %v3033_v18, %v3037_v27  ;;  %v6456_v9 = vpack.c.bf16 %v363_v33, %v363_v33  ;;  %v717_v28 = vsel %vm7582_vm13, %v709_v58, %v716_v39  ;;  %v333_v12 = vadd.f32 %v7871_v19, %v297_v2  ;;  %v976_v58 = vld [vmem:[#allocation2 + $0x68] sm:$0x1] }
  0x81   : > { %v6216_v57 = vcombine.low %v3028_v47, %v3038_v11  ;;  %v1254_v38 = vsel %vm7567_vm11, %v1249_v34, %v1253_v56  ;;  %v970_v29 = vsel %vm7480_vm5, %v718_v25, %v969_v59  ;;  %968 = vst.msk [vmem:[#allocation2 + $0x58] sm:$0xf] %vm380_vm1, %v717_v28  ;;  %v720_v27 = vshrl.u32 %v6455_v40, 16 }
  0x82   : > { %v6071_v35 = vcombine.low %v1244_v32, %v1254_v38  ;;  %971 = vst [vmem:[#allocation2 + $0x5c] sm:$0x1] %v970_v29  ;;  %v723_v44 = vshll.u32 %v6455_v40, 16  ;;  %v728_v14 = vshrl.u32 %v6456_v9, 16  ;;  %v731_v30 = vshll.u32 %v6456_v9, 16 }
  0x83   : > { %6884 = vmatmul.mubr.msk.bf16.gmra.mrb[8].mxu0 %vm1524_vm10, %v6216_v57  ;;  %v364_v49 = vmax.f32 %v332_v41, 0.0  ;;  %v476_v50 = vsel %vm7488_vm6, 0, %v475_v1  ;;  %v722_v55 = vrot.slane %v720_v27, 7  ;;  %vm2079_vm15 = vcmask 1046532  }
  0x84   : > { %6751 = vmatprep.mubr.msk.bf16.mxu1 %vm1524_vm10, %v6071_v35  ;;  %v730_v56 = vrot.slane %v728_v14, 7  ;;  %477 = vst [vmem:[#allocation2 + $0x74] sm:$0x1] %v476_v50  ;;  %v365_v59 = vmax.f32 %v333_v12, 0.0  ;;  %v6243_v23 = vrot.slane %v3572_v37, 9  ;;  %v3640_v2 = vrot.slane %v3638_v6, 4  ;;  %vm7907_vm2 = vmor %vm2078_vm14, %vm2079_vm15 }
  0x85   : > { %v7903_v47 = vpack.c.bf16 %v364_v49, %v364_v49  ;;  %v1049_v61 = vld [vmem:[#allocation2 + $0x54] sm:$0xf]  ;;  %v725_v18 = vor.u32 %v723_v44, %v722_v55  ;;  %v726_v20 = vrot.slane %v722_v55, 4 }
  0x86   : > { %v2865_v16 = vld [vmem:[#allocation2 + $0x54] sm:$0xf]  ;;  %v733_v24 = vor.u32 %v731_v30, %v730_v56  ;;  %v735_v33 = vrot.slane %v730_v56, 4  ;;  %v1256_v34 = vshrl.u32 %v1049_v61, 16  ;;  %v1259_v39 = vshll.u32 %v1049_v61, 16 }
  0x87   : > { %v3040_v25 = vshrl.u32 %v2865_v16, 16  ;;  %v3043_v10 = vshll.u32 %v2865_v16, 16  ;;  %v973_v40 = vsel %vm7576_vm12, %v725_v18, %v972_v13  ;;  %v7917_v41 = vpack.c.bf16 %v365_v59, %v365_v59 }
  0x88   : > { %v734_v11 = vsel %vm7582_vm13, %v726_v20, %v733_v24  ;;  %v977_v9 = vsel %vm7480_vm5, %v735_v33, %v976_v58  ;;  %v1050_v1 = vld [vmem:[#allocation2 + $0x58] sm:$0xf]  ;;  %v1258_v38 = vrot.slane %v1256_v34, 4  ;;  %v1261_v28 = vrot.slane %v1259_v39, 5  ;;  %974 = vst [vmem:[#allocation2 + $0x60] sm:$0xf] %v973_v40 }
  0x89   : > { %v1075_v57 = vld [vmem:[#allocation2 + $0x5c] sm:$0x1]  ;;  %975 = vst.msk [vmem:[#allocation2 + $0x64] sm:$0xf] %vm380_vm1, %v734_v11  ;;  %978 = vst [vmem:[#allocation2 + $0x68] sm:$0x1] %v977_v9  ;;  %v7924_v29 = vsel %vm7907_vm2, %v6243_v23, %v3638_v6  ;;  %v7930_v35 = vsel %vm7907_vm2, %v3640_v2, %v3641_v8 }
  0x8a   : > { %v1265_v27 = vshll.u32 %v1050_v1, 16  ;;  %v1269_v44 = vshrl.u32 %v1050_v1, 16  ;;  %v1275_v14 = vshll.u32 %v1075_v57, 16  ;;  %v7932_v37 = vld [vmem:[#allocation2 + $0x58] sm:$0xf]  ;;  %v3042_v30 = vrot.slane %v3040_v25, 4 }
  0x8b   : > { %v1262_v12 = vor.u32 %v1261_v28, %v1258_v38  ;;  %v7934_v49 = vld [vmem:[#allocation2 + $0x5c] sm:$0x1]  ;;  %v3045_v45 = vrot.slane %v3043_v10, 5  ;;  %v3049_v50 = vshll.u32 %v7932_v37, 16  ;;  %v3053_v6 = vshrl.u32 %v7932_v37, 16 }
  0x8c   : > { %v1267_v55 = vrot.slane %v1265_v27, 5  ;;  %v1271_v54 = vrot.slane %v1269_v44, 4  ;;  %v1277_v56 = vrot.slane %v1275_v14, 5  ;;  %v3059_v8 = vshll.u32 %v7934_v49, 16 }
  0x8d   : > { %v1263_v13 = vrot.slane %v1262_v12, 4  ;;  %v3046_v58 = vor.u32 %v3045_v45, %v3042_v30  ;;  %v3051_v59 = vrot.slane %v3049_v50, 5  ;;  %v3055_v23 = vrot.slane %v3053_v6, 4 }
  0x8e   : > { %v1272_v2 = vor.u32 %v1271_v54, %v1267_v55  ;;  %v3061_v61 = vrot.slane %v3059_v8, 5  ;;  %v737_v16 = vshrl.u32 %v7903_v47, 16  ;;  %v740_v18 = vshll.u32 %v7903_v47, 16 }
  0x8f   : > { %v1268_v20 = vsel %vm7567_vm11, %v1263_v13, %v1267_v55  ;;  %v3047_v24 = vrot.slane %v3046_v58, 4  ;;  %v3056_v33 = vor.u32 %v3055_v23, %v3051_v59  ;;  %v745_v34 = vshrl.u32 %v7917_v41, 16  ;;  %v2868_v25 = vld [vmem:[#allocation2 + $0x60] sm:$0xf] }
  0x90   : > { %v1273_v39 = vrot.slane %v1272_v2, 4  ;;  %v7944_v10 = vld [vmem:[#allocation2 + $0x64] sm:$0xf]  ;;  %v7946_v11 = vrot.slane %v737_v16, 7  ;;  %v6259_v40 = vcombine.low %v7924_v29, %v7930_v35  ;;  %v7955_v47 = vsel %vm7907_vm2, %v7681_v62, %v3648_v52  ;;  %v7959_v57 = vld [vmem:[#allocation2 + $0x68] sm:$0x1] }
  0x91   : > { %v3052_v9 = vsel %vm7567_vm11, %v3047_v24, %v3051_v59  ;;  %v3057_v1 = vrot.slane %v3056_v33, 4  ;;  %v3064_v38 = vshrl.u32 %v2868_v25, 16  ;;  %v3067_v28 = vshll.u32 %v2868_v25, 16  ;;  %v1051_v30 = vld [vmem:[#allocation2 + $0x60] sm:$0xf] }
  0x92   : > { %v1278_v27 = vsel %vm7567_vm11, %v1273_v39, %v1277_v56  ;;  %v3073_v44 = vshll.u32 %v7944_v10, 16  ;;  %v3077_v15 = vshrl.u32 %v7944_v10, 16  ;;  %v3083_v14 = vshll.u32 %v7959_v57, 16  ;;  %v1052_v50 = vld [vmem:[#allocation2 + $0x64] sm:$0xf] }
  0x93   : > { %v6072_v52 = vcombine.low %v1268_v20, %v1278_v27  ;;  %v3062_v62 = vsel %vm7567_vm11, %v3057_v1, %v3061_v61  ;;  %v3066_v12 = vrot.slane %v3064_v38, 4  ;;  %v3069_v45 = vrot.slane %v3067_v28, 5  ;;  %v1076_v6 = vld [vmem:[#allocation2 + $0x68] sm:$0x1]  ;;  %v979_v2 = vld [vmem:[#allocation2 + $0x6c] sm:$0xf] }
  0x94   : > { %v6217_v55 = vcombine.low %v3052_v9, %v3062_v62  ;;  %v3075_v54 = vrot.slane %v3073_v44, 5  ;;  %v3079_v8 = vrot.slane %v3077_v15, 4  ;;  %v3085_v13 = vrot.slane %v3083_v14, 5  ;;  %v3573_v16 = vld [vmem:[#allocation2 + $0x18] sm:$0xe] }
  0x95   : > { %6752 = vmatmul.mubr.msk.bf16.gmra.mrb[12].mxu1 %vm1524_vm10, %v6072_v52  ;;  %v3070_v56 = vor.u32 %v3069_v45, %v3066_v12  ;;  %v1280_v58 = vshrl.u32 %v1051_v30, 16  ;;  %v1283_v59 = vshll.u32 %v1051_v30, 16  ;;  %v1289_v23 = vshll.u32 %v1052_v50, 16  ;;  %v983_v45 = vld [vmem:[#allocation2 + $0x74] sm:$0x1] }
  0x96   : > { %6887 = vmatprep.mubr.msk.bf16.mxu0 %vm1524_vm10, %v6217_v55  ;;  %v3080_v20 = vor.u32 %v3079_v8, %v3075_v54  ;;  %v1293_v61 = vshrl.u32 %v1052_v50, 16  ;;  %v1299_v24 = vshll.u32 %v1076_v6, 16  ;;  %v742_v33 = vor.u32 %v740_v18, %v7946_v11  ;;  %v8010_v35 = vld [vmem:[#allocation2 + $0x30] sm:$0xe] }
  0x97   : > { %v3071_v39 = vrot.slane %v3070_v56, 4  ;;  %v1282_v25 = vrot.slane %v1280_v58, 4  ;;  %v1285_v9 = vrot.slane %v1283_v59, 5  ;;  %v1291_v1 = vrot.slane %v1289_v23, 5  ;;  %v478_v58 = vld [vmem:[#allocation2 + $0x80] sm:$0x1] }
  0x98   : > { %v3081_v38 = vrot.slane %v3080_v20, 4  ;;  %v1295_v28 = vrot.slane %v1293_v61, 4  ;;  %v1301_v27 = vrot.slane %v1299_v24, 5  ;;  %v743_v44 = vrot.slane %v7946_v11, 4  ;;  %v6578_v59 = vld [vmem:[%s7516_s28 + $0x50] sm:$0xff]  }
  0x99   : > { %v3076_v15 = vsel %vm7567_vm11, %v3071_v39, %v3075_v54  ;;  %v1286_v14 = vor.u32 %v1285_v9, %v1282_v25  ;;  %v747_v30 = vrot.slane %v745_v34, 7  ;;  %v748_v52 = vshll.u32 %v7917_v41, 16  ;;  %v422_v54 = vld [vmem:[#allocation2 + $0x78] sm:$0x1]  ;;  %v481_v20 = vld [vmem:[#allocation2 + $0x8c] sm:$0x1] }
  0x9a   : > { %v3086_v62 = vsel %vm7567_vm11, %v3081_v38, %v3085_v13  ;;  %v1296_v18 = vor.u32 %v1295_v28, %v1291_v1  ;;  %v980_v12 = vsel %vm7576_vm12, %v742_v33, %v979_v2  ;;  %v6244_v50 = vrot.slane %v3573_v16, 9  ;;  %v425_v16 = vld [vmem:[#allocation2 + $0x84] sm:$0x1]  ;;  %v3574_v33 = vld [vmem:[#allocation2 + $0x24] sm:$0xe] }
  0x9b   : > { %v6218_v6 = vcombine.low %v3076_v15, %v3086_v62  ;;  %v1287_v55 = vrot.slane %v1286_v14, 4  ;;  %v750_v11 = vor.u32 %v748_v52, %v747_v30  ;;  %v752_v8 = vrot.slane %v747_v30, 4  ;;  %981 = vst [vmem:[#allocation2 + $0x6c] sm:$0xf] %v980_v12  ;;  %v8023_v15 = vld [vmem:[%s7516_s28 + $0x58] sm:$0xff]  }
  0x9c   : > { %v1297_v56 = vrot.slane %v1296_v18, 4  ;;  %v3646_v41 = vsel %vm7907_vm2, %v6244_v50, %v3645_v51  ;;  %v4208_v34 = vsel %vm1573_vm0, %v7705_v22, 0  ;;  %v6544_v13 = vunpack.c.h.bf16 %v7842_v43 }
  0x9d   : > { %6888 = vmatmul.mubr.msk.bf16.gmra.mrb[12].mxu0 %vm1524_vm10, %v6218_v6  ;;  %v1292_v23 = vsel %vm7567_vm11, %v1287_v55, %v1291_v1  ;;  %v751_v2 = vsel %vm7582_vm13, %v743_v44, %v750_v11  ;;  %v984_v63 = vsel %vm7480_vm5, %v752_v8, %v983_v45  ;;  %v6260_v51 = vcombine.low %v3646_v41, %v7955_v47 }
  0x9e   : > { %v1302_v22 = vsel %vm7567_vm11, %v1297_v56, %v1301_v27  ;;  %982 = vst.msk [vmem:[#allocation2 + $0x70] sm:$0xf] %vm380_vm1, %v751_v2  ;;  %985 = vst [vmem:[#allocation2 + $0x74] sm:$0x1] %v984_v63  ;;  %6909 = vmatprep.mubr.msk.bf16.mxu0 %vm1524_vm10, %v6259_v40  ;;  %v298_v61 = vmul.f32 %v7853_v48, %v6543_v46  ;;  %v299_v24 = vmul.f32 %v7853_v48, %v6544_v13 }
  0x9f   : > { %v423_v47 = vsel %vm7480_vm5, 0, %v422_v54  ;;  %v6073_v39 = vcombine.low %v1292_v23, %v1302_v22  ;;  %v479_v25 = vsel %vm7488_vm6, 0, %v478_v58  ;;  %v6547_v9 = vunpack.c.l.bf16 %v6578_v59 }
  0xa0   : > { %424 = vst [vmem:[#allocation2 + $0x78] sm:$0x1] %v423_v47  ;;  %v6548_v29 = vunpack.c.h.bf16 %v6578_v59  ;;  %v334_v43 = vadd.f32 %v7871_v19, %v298_v61  ;;  %v335_v46 = vadd.f32 %v7871_v19, %v299_v24  ;;  %480 = vst [vmem:[#allocation2 + $0x80] sm:$0x1] %v479_v25  ;;  %v426_v40 = vsel %vm7480_vm5, 0, %v425_v16 }
  0xa1   : > { %v482_v1 = vsel %vm7488_vm6, 0, %v481_v20  ;;  %6755 = vmatprep.mubr.msk.bf16.mxu1 %vm1524_vm10, %v6073_v39  ;;  %v300_v38 = vmul.f32 %v7853_v48, %v6547_v9  ;;  %427 = vst [vmem:[#allocation2 + $0x84] sm:$0x1] %v426_v40  ;;  %v6245_v27 = vrot.slane %v3574_v33, 9  ;;  %v3652_v44 = vrot.slane %v7729_v0, 5 }
  0xa2   : > { %v301_v28 = vmul.f32 %v7853_v48, %v6548_v29  ;;  %483 = vst [vmem:[#allocation2 + $0x8c] sm:$0x1] %v482_v1  ;;  %v1053_v14 = vld [vmem:[#allocation2 + $0x6c] sm:$0xf]  ;;  %v366_v30 = vmax.f32 %v334_v43, 0.0  ;;  %v367_v52 = vmax.f32 %v335_v46, 0.0  ;;  %v6552_v58 = vunpack.c.h.bf16 %v8023_v15 }
  0xa3   : > { %v3655_v62 = vrot.slane %v7746_v17, 5  ;;  %v6246_v18 = vrot.slane %v8010_v35, 9  ;;  %v1304_v12 = vshrl.u32 %v1053_v14, 16  ;;  %v1307_v45 = vshll.u32 %v1053_v14, 16 }
  0xa4   : > { %v336_v50 = vadd.f32 %v7871_v19, %v300_v38  ;;  %v337_v6 = vadd.f32 %v7871_v19, %v301_v28  ;;  %v6459_v55 = vpack.c.bf16 %v366_v30, %v366_v30  ;;  %v6460_v11 = vpack.c.bf16 %v367_v52, %v367_v52 }
  0xa5   : > { %v3653_v0 = vsel %vm7907_vm2, %v6245_v27, %v3652_v44  ;;  %v3654_v8 = vrot.slane %v3652_v44, 4  ;;  %v1054_v54 = vld [vmem:[#allocation2 + $0x70] sm:$0xf]  ;;  %v1077_v56 = vld [vmem:[#allocation2 + $0x74] sm:$0x1]  ;;  %v1306_v41 = vrot.slane %v1304_v12, 4  ;;  %6910 = vmatmul.mubr.msk.bf16.vlgmr.msra.gmra.mrb[0].mxu0 %vm1524_vm10, %v6260_v51  ;;  %v6551_v17 = vunpack.c.l.bf16 %v8023_v15 }
  0xa6   : > { %v1309_v13 = vrot.slane %v1307_v45, 5  ;;  %v1313_v59 = vshll.u32 %v1054_v54, 16  ;;  %v1317_v23 = vshrl.u32 %v1054_v54, 16  ;;  %v1323_v2 = vshll.u32 %v1077_v56, 16  ;;  %6942 = vmatpush3.bf16.msra.mxu0 %v4208_v34  ;;  %v428_v54 = vld [vmem:[#allocation2 + $0x90] sm:$0x1] }
  0xa7   : > { %v754_v63 = vshrl.u32 %v6459_v55, 16  ;;  %v757_v20 = vshll.u32 %v6459_v55, 16  ;;  %v762_v22 = vshrl.u32 %v6460_v11, 16  ;;  %v765_v61 = vshll.u32 %v6460_v11, 16  ;;  %v986_v51 = vld [vmem:[#allocation2 + $0x78] sm:$0xf] }
  0xa8   : > { %v1310_v16 = vor.u32 %v1309_v13, %v1306_v41  ;;  %v1315_v24 = vrot.slane %v1313_v59, 5  ;;  %v1319_v47 = vrot.slane %v1317_v23, 4  ;;  %v1325_v33 = vrot.slane %v1323_v2, 5  ;;  %v990_v38 = vld [vmem:[#allocation2 + $0x80] sm:$0x1] }
  0xa9   : > { %v756_v39 = vrot.slane %v754_v63, 7  ;;  %v764_v9 = vrot.slane %v762_v22, 7  ;;  %v368_v29 = vmax.f32 %v336_v50, 0.0  ;;  %v369_v43 = vmax.f32 %v337_v6, 0.0  ;;  %v993_v2 = vld [vmem:[#allocation2 + $0x84] sm:$0xf] }
  0xaa   : > { %v1311_v25 = vrot.slane %v1310_v16, 4  ;;  %v1320_v46 = vor.u32 %v1319_v47, %v1315_v24  ;;  %v3656_v34 = vsel %vm7907_vm2, %v3654_v8, %v3655_v62  ;;  %v3662_v13 = vrot.slane %v7785_v60, 5  ;;  %v484_v22 = vld [vmem:[#allocation2 + $0x98] sm:$0x1]  ;;  %v6580_v47 = vld [vmem:[%s7516_s28 + $0x60] sm:$0xff]  }
  0xab   : > { %v759_v40 = vor.u32 %v757_v20, %v756_v39  ;;  %v760_v1 = vrot.slane %v756_v39, 4  ;;  %v767_v27 = vor.u32 %v765_v61, %v764_v9  ;;  %v769_v44 = vrot.slane %v764_v9, 4 }
  0xac   : > { %v1316_v28 = vsel %vm7567_vm11, %v1311_v25, %v1315_v24  ;;  %v6461_v15 = vpack.c.bf16 %v368_v29, %v368_v29  ;;  %v1321_v14 = vrot.slane %v1320_v46, 4  ;;  %v6462_v52 = vpack.c.bf16 %v369_v43, %v369_v43  ;;  %v997_v24 = vld [vmem:[#allocation2 + $0x8c] sm:$0x1] }
  0xad   : > { %v987_v30 = vsel %vm7576_vm12, %v759_v40, %v986_v51  ;;  %v6261_v12 = vcombine.low %v3653_v0, %v3656_v34  ;;  %v768_v45 = vsel %vm7582_vm13, %v760_v1, %v767_v27  ;;  %v991_v50 = vsel %vm7480_vm5, %v769_v44, %v990_v38 }
  0xae   : > { %988 = vst [vmem:[#allocation2 + $0x78] sm:$0xf] %v987_v30  ;;  %v771_v62 = vshrl.u32 %v6461_v15, 16  ;;  %v774_v6 = vshll.u32 %v6461_v15, 16  ;;  %v1326_v55 = vsel %vm7567_vm11, %v1321_v14, %v1325_v33  ;;  %989 = vst.msk [vmem:[#allocation2 + $0x7c] sm:$0xf] %vm380_vm1, %v768_v45  ;;  %v302_v59 = vmul.f32 %v7853_v48, %v6551_v17 }
  0xaf   : > { %992 = vst [vmem:[#allocation2 + $0x80] sm:$0x1] %v991_v50  ;;  %v779_v11 = vshrl.u32 %v6462_v52, 16  ;;  %v782_v8 = vshll.u32 %v6462_v52, 16  ;;  %6913 = vmatprep.mubr.msk.bf16.mxu0 %vm1524_vm10, %v6261_v12  ;;  %v3659_v0 = vrot.slane %v7781_v31, 5  ;;  %v6074_v56 = vcombine.low %v1316_v28, %v1326_v55 }
  0xb0   : > { %v773_v41 = vrot.slane %v771_v62, 7  ;;  %v303_v20 = vmul.f32 %v7853_v48, %v6552_v58  ;;  %v338_v60 = vadd.f32 %v7871_v19, %v302_v59  ;;  %v429_v17 = vsel %vm7480_vm5, 0, %v428_v54  ;;  %v431_v55 = vld [vmem:[#allocation2 + $0x9c] sm:$0x1] }
  0xb1   : > { %v781_v23 = vrot.slane %v779_v11, 7  ;;  %v3660_v63 = vsel %vm7907_vm2, %v6246_v18, %v3659_v0  ;;  %v3661_v16 = vrot.slane %v3659_v0, 4  ;;  %6756 = vmatmul.mubr.msk.bf16.gmra.mrb[16].mxu1 %vm1524_vm10, %v6074_v56  ;;  %430 = vst [vmem:[#allocation2 + $0x90] sm:$0x1] %v429_v17  ;;  %v485_v51 = vsel %vm7488_vm6, 0, %v484_v22 }
  0xb2   : > { %v776_v31 = vor.u32 %v774_v6, %v773_v41  ;;  %v777_v61 = vrot.slane %v773_v41, 4  ;;  %v339_v39 = vadd.f32 %v7871_v19, %v303_v20  ;;  %v370_v9 = vmax.f32 %v338_v60, 0.0  ;;  %486 = vst [vmem:[#allocation2 + $0x98] sm:$0x1] %v485_v51 }
  0xb3   : > { %v784_v33 = vor.u32 %v782_v8, %v781_v23  ;;  %v786_v35 = vrot.slane %v781_v23, 4  ;;  %v3663_v18 = vsel %vm7907_vm2, %v3661_v16, %v3662_v13  ;;  %v6555_v1 = vunpack.c.l.bf16 %v6580_v47 }
  0xb4   : > { %v994_v58 = vsel %vm7576_vm12, %v776_v31, %v993_v2  ;;  %v6262_v25 = vcombine.low %v3660_v63, %v3663_v18  ;;  %v371_v40 = vmax.f32 %v339_v39, 0.0  ;;  %v6463_v44 = vpack.c.bf16 %v370_v9, %v370_v9 }
  0xb5   : > { %v8068_v29 = vld [vmem:[#allocation2 + $0x78] sm:$0xf]  ;;  %v785_v43 = vsel %vm7582_vm13, %v777_v61, %v784_v33  ;;  %995 = vst [vmem:[#allocation2 + $0x84] sm:$0xf] %v994_v58  ;;  %v998_v46 = vsel %vm7480_vm5, %v786_v35, %v997_v24  ;;  %v8074_v38 = vld [vmem:[#allocation2 + $0x7c] sm:$0xf]  ;;  %v6556_v15 = vunpack.c.h.bf16 %v6580_v47  ;;  %v304_v59 = vmul.f32 %v7853_v48, %v6555_v1 }
  0xb6   : > { %v1078_v34 = vld [vmem:[#allocation2 + $0x80] sm:$0x1]  ;;  %v1328_v28 = vshrl.u32 %v8068_v29, 16  ;;  %v1331_v27 = vshll.u32 %v8068_v29, 16  ;;  %996 = vst.msk [vmem:[#allocation2 + $0x88] sm:$0xf] %vm380_vm1, %v785_v43  ;;  %6914 = vmatmul.mubr.msk.bf16.gmra.mrb[4].mxu0 %vm1524_vm10, %v6262_v25  ;;  %v6464_v12 = vpack.c.bf16 %v371_v40, %v371_v40 }
  0xb7   : > { %999 = vst [vmem:[#allocation2 + $0x8c] sm:$0x1] %v998_v46  ;;  %v1337_v14 = vshll.u32 %v8074_v38, 16  ;;  %v1341_v30 = vshrl.u32 %v8074_v38, 16  ;;  %v1347_v52 = vshll.u32 %v1078_v34, 16  ;;  %v788_v62 = vshrl.u32 %v6463_v44, 16 }
  0xb8   : > { %v1330_v45 = vrot.slane %v1328_v28, 4  ;;  %v1333_v50 = vrot.slane %v1331_v27, 5  ;;  %v791_v6 = vshll.u32 %v6463_v44, 16  ;;  %v796_v54 = vshrl.u32 %v6464_v12, 16  ;;  %v1000_v51 = vld [vmem:[#allocation2 + $0x90] sm:$0xf] }
  0xb9   : > { %v1339_v11 = vrot.slane %v1337_v14, 5  ;;  %v1343_v8 = vrot.slane %v1341_v30, 4  ;;  %v1349_v0 = vrot.slane %v1347_v52, 5  ;;  %v790_v41 = vrot.slane %v788_v62, 7  ;;  %v487_v34 = vld [vmem:[#allocation2 + $0xa4] sm:$0x1] }
  0xba   : > { %v1334_v56 = vor.u32 %v1333_v50, %v1330_v45  ;;  %v799_v13 = vshll.u32 %v6464_v12, 16  ;;  %v798_v2 = vrot.slane %v796_v54, 7  ;;  %v305_v63 = vmul.f32 %v7853_v48, %v6556_v15  ;;  %v3576_v28 = vld [vmem:[#allocation2 + $0x3c] sm:$0xe]  ;;  %v1004_v30 = vld [vmem:[#allocation2 + $0x98] sm:$0x1] }
  0xbb   : > { %v1344_v23 = vor.u32 %v1343_v8, %v1339_v11  ;;  %v432_v16 = vsel %vm7480_vm5, 0, %v431_v55  ;;  %v793_v31 = vor.u32 %v791_v6, %v790_v41  ;;  %v794_v61 = vrot.slane %v790_v41, 4 }
  0xbc   : > { %v1335_v20 = vrot.slane %v1334_v56, 4  ;;  %v8086_v22 = vld [vmem:[#allocation2 + $0x84] sm:$0xf]  ;;  %v340_v24 = vadd.f32 %v7871_v19, %v304_v59  ;;  %433 = vst [vmem:[#allocation2 + $0x9c] sm:$0x1] %v432_v16  ;;  %v801_v35 = vor.u32 %v799_v13, %v798_v2  ;;  %v341_v18 = vadd.f32 %v7871_v19, %v305_v63 }
  0xbd   : > { %v1345_v60 = vrot.slane %v1344_v23, 4  ;;  %v8089_v17 = vld [vmem:[#allocation2 + $0x88] sm:$0xf]  ;;  %v1352_v33 = vshrl.u32 %v8086_v22, 16  ;;  %v1355_v58 = vshll.u32 %v8086_v22, 16  ;;  %v803_v12 = vrot.slane %v798_v2, 4 }
  0xbe   : > { %v1079_v47 = vld [vmem:[#allocation2 + $0x8c] sm:$0x1]  ;;  %v1340_v39 = vsel %vm7567_vm11, %v1335_v20, %v1339_v11  ;;  %v1361_v25 = vshll.u32 %v8089_v17, 16  ;;  %v1365_v9 = vshrl.u32 %v8089_v17, 16  ;;  %v802_v1 = vsel %vm7582_vm13, %v794_v61, %v801_v35  ;;  %v7358_v56 = vld [vmem:[#allocation2 + $0x40] sm:$0xf] }
  0xbf   : > { %v1350_v43 = vsel %vm7567_vm11, %v1345_v60, %v1349_v0  ;;  %v1354_v46 = vrot.slane %v1352_v33, 4  ;;  %v1371_v40 = vshll.u32 %v1079_v47, 16  ;;  %v1357_v44 = vrot.slane %v1355_v58, 5  ;;  %1003 = vst.msk [vmem:[#allocation2 + $0x94] sm:$0xf] %vm380_vm1, %v802_v1 }
  0xc0   : > { %v6075_v27 = vcombine.low %v1340_v39, %v1350_v43  ;;  %v1363_v15 = vrot.slane %v1361_v25, 5  ;;  %v1367_v14 = vrot.slane %v1365_v9, 4  ;;  %v1001_v45 = vsel %vm7576_vm12, %v793_v31, %v1000_v51  ;;  %v3577_v63 = vld [vmem:[#allocation2 + $0x48] sm:$0xe] }
  0xc1   : > { %v1373_v52 = vrot.slane %v1371_v40, 5  ;;  %v372_v50 = vmax.f32 %v340_v24, 0.0  ;;  %v1358_v62 = vor.u32 %v1357_v44, %v1354_v46  ;;  %1002 = vst [vmem:[#allocation2 + $0x90] sm:$0xf] %v1001_v45  ;;  %v373_v55 = vmax.f32 %v341_v18, 0.0  ;;  %v6581_v44 = vld [vmem:[%s7516_s28 + $0x68] sm:$0xff]  }
  0xc2   : > { %6759 = vmatprep.mubr.msk.bf16.mxu1 %vm1524_vm10, %v6075_v27  ;;  %v1368_v6 = vor.u32 %v1367_v14, %v1363_v15  ;;  %v488_v11 = vsel %vm7488_vm6, 0, %v487_v34  ;;  %v1005_v8 = vsel %vm7480_vm5, %v803_v12, %v1004_v30  ;;  %v6247_v54 = vrot.slane %v3576_v28, 9  ;;  %v434_v45 = vld [vmem:[#allocation2 + $0xa8] sm:$0x1] }
  0xc3   : > { %489 = vst [vmem:[#allocation2 + $0xa4] sm:$0x1] %v488_v11  ;;  %v6465_v0 = vpack.c.bf16 %v372_v50, %v372_v50  ;;  %v3666_v41 = vrot.slane %v7358_v56, 5  ;;  %v1359_v13 = vrot.slane %v1358_v62, 4  ;;  %1006 = vst [vmem:[#allocation2 + $0x98] sm:$0x1] %v1005_v8  ;;  %v6466_v23 = vpack.c.bf16 %v373_v55, %v373_v55 }
  0xc4   : > { %v1369_v59 = vrot.slane %v1368_v6, 4  ;;  %v3669_v2 = vrot.slane %v7807_v42, 5  ;;  %v1007_v39 = vld [vmem:[#allocation2 + $0x9c] sm:$0xf]  ;;  %v6248_v25 = vrot.slane %v3577_v63, 9  ;;  %v3673_v28 = vrot.slane %v7864_v21, 5 }
  0xc5   : > { %v805_v16 = vshrl.u32 %v6465_v0, 16  ;;  %v808_v20 = vshll.u32 %v6465_v0, 16  ;;  %v3667_v31 = vsel %vm7907_vm2, %v6247_v54, %v3666_v41  ;;  %v3668_v61 = vrot.slane %v3666_v41, 4  ;;  %v490_v55 = vld [vmem:[#allocation2 + $0xb0] sm:$0x1] }
  0xc6   : > { %v1364_v24 = vsel %vm7567_vm11, %v1359_v13, %v1363_v15  ;;  %v1374_v60 = vsel %vm7567_vm11, %v1369_v59, %v1373_v52  ;;  %v813_v47 = vshrl.u32 %v6466_v23, 16  ;;  %v816_v33 = vshll.u32 %v6466_v23, 16  ;;  %v8117_v18 = vld [vmem:[#allocation2 + $0x94] sm:$0xf]  ;;  %v493_v63 = vld [vmem:[#allocation2 + $0xbc] sm:$0x1] }
  0xc7   : > { %v6076_v35 = vcombine.low %v1364_v24, %v1374_v60  ;;  %v807_v42 = vrot.slane %v805_v16, 7  ;;  %v3670_v58 = vsel %vm7907_vm2, %v3668_v61, %v3669_v2  ;;  %v1385_v9 = vshll.u32 %v8117_v18, 16  ;;  %v437_v56 = vld [vmem:[#allocation2 + $0xb4] sm:$0x1]  ;;  %v8142_v24 = vld [vmem:[#allocation2 + $0x54] sm:$0xe] }
  0xc8   : > { %v1389_v51 = vshrl.u32 %v8117_v18, 16  ;;  %v815_v43 = vrot.slane %v813_v47, 7  ;;  %v6263_v46 = vcombine.low %v3667_v31, %v3670_v58  ;;  %v8124_v40 = vld [vmem:[#allocation2 + $0x90] sm:$0xf]  ;;  %v3676_v27 = vrot.slane %v7866_v53, 5 }
  0xc9   : > { %6760 = vmatmul.mubr.msk.bf16.gmra.mrb[20].mxu1 %vm1524_vm10, %v6076_v35  ;;  %v810_v1 = vor.u32 %v808_v20, %v807_v42  ;;  %v811_v34 = vrot.slane %v807_v42, 4  ;;  %v1376_v15 = vshrl.u32 %v8124_v40, 16  ;;  %v1379_v14 = vshll.u32 %v8124_v40, 16  ;;  %v6582_v2 = vld [vmem:[%s7516_s28 + $0x70] sm:$0xff]  }
  0xca   : > { %v1387_v30 = vrot.slane %v1385_v9, 5  ;;  %v1391_v52 = vrot.slane %v1389_v51, 4  ;;  %v1011_v12 = vld [vmem:[#allocation2 + $0xa4] sm:$0x1]  ;;  %6917 = vmatprep.mubr.msk.bf16.mxu0 %vm1524_vm10, %v6263_v46  ;;  %v1080_v50 = vld [vmem:[#allocation2 + $0x98] sm:$0x1]  ;;  %v818_v62 = vor.u32 %v816_v33, %v815_v43  ;;  %v3674_v53 = vsel %vm7907_vm2, %v6248_v25, %v3673_v28 }
  0xcb   : > { %v820_v6 = vrot.slane %v815_v43, 4  ;;  %v1008_v21 = vsel %vm7576_vm12, %v810_v1, %v1007_v39  ;;  %v1378_v11 = vrot.slane %v1376_v15, 4  ;;  %v1381_v8 = vrot.slane %v1379_v14, 5  ;;  %v8156_v25 = vld [vmem:[%s9503_s1] ss:$0 sm:$0xff] }
  0xcc   : > { %v1392_v0 = vor.u32 %v1391_v52, %v1387_v30  ;;  %v1395_v54 = vshll.u32 %v1080_v50, 16  ;;  %1009 = vst [vmem:[#allocation2 + $0x9c] sm:$0xf] %v1008_v21  ;;  %v819_v41 = vsel %vm7582_vm13, %v811_v34, %v818_v62  ;;  %v3675_v59 = vrot.slane %v3673_v28, 4 }
  0xcd   : > { %v1012_v13 = vsel %vm7480_vm5, %v820_v6, %v1011_v12  ;;  %v6559_v23 = vunpack.c.l.bf16 %v6581_v44  ;;  %v1382_v16 = vor.u32 %v1381_v8, %v1378_v11  ;;  %1010 = vst.msk [vmem:[#allocation2 + $0xa0] sm:$0xf] %vm380_vm1, %v819_v41  ;;  %v6560_v61 = vunpack.c.h.bf16 %v6581_v44 }
  0xce   : > { %v1393_v20 = vrot.slane %v1392_v0, 4  ;;  %v1397_v31 = vrot.slane %v1395_v54, 5  ;;  %1013 = vst [vmem:[#allocation2 + $0xa4] sm:$0x1] %v1012_v13  ;;  %v3677_v60 = vsel %vm7907_vm2, %v3675_v59, %v3676_v27  ;;  %v435_v33 = vsel %vm7480_vm5, 0, %v434_v45 }
  0xcf   : > { %v306_v47 = vmul.f32 %v7853_v48, %v6559_v23  ;;  %v491_v35 = vsel %vm7488_vm6, 0, %v490_v55  ;;  %v1383_v42 = vrot.slane %v1382_v16, 4  ;;  %v6264_v58 = vcombine.low %v3674_v53, %v3677_v60  ;;  %436 = vst [vmem:[#allocation2 + $0xa8] sm:$0x1] %v435_v33  ;;  %v8182_v53 = vld [vmem:[%s9503_s1 + $0x1] ss:$0 sm:$0xff] }
  0xd0   : > { %v1398_v39 = vsel %vm7567_vm11, %v1393_v20, %v1397_v31  ;;  %v307_v9 = vmul.f32 %v8156_v25, %v6560_v61  ;;  %492 = vst [vmem:[#allocation2 + $0xb0] sm:$0x1] %v491_v35  ;;  %v6563_v51 = vunpack.c.l.bf16 %v6582_v2  ;;  %v6564_v43 = vunpack.c.h.bf16 %v6582_v2 }
  0xd1   : > { %v342_v48 = vadd.f32 %v7871_v19, %v306_v47  ;;  %v438_v46 = vsel %vm7480_vm5, 0, %v437_v56  ;;  %v1388_v1 = vsel %vm7567_vm11, %v1383_v42, %v1387_v30  ;;  %6918 = vmatmul.mubr.msk.bf16.gmra.mrb[8].mxu0 %vm1524_vm10, %v6264_v58  ;;  %v494_v28 = vsel %vm7488_vm6, 0, %v493_v63 }
  0xd2   : > { %v343_v34 = vadd.f32 %v7871_v19, %v307_v9  ;;  %439 = vst [vmem:[#allocation2 + $0xb4] sm:$0x1] %v438_v46  ;;  %v6249_v27 = vrot.slane %v8142_v24, 9  ;;  %v6077_v44 = vcombine.low %v1388_v1, %v1398_v39  ;;  %v308_v52 = vmul.f32 %v8156_v25, %v6563_v51  ;;  %495 = vst [vmem:[#allocation2 + $0xbc] sm:$0x1] %v494_v28 }
  0xd3   : > { %v8169_v15 = vld [vmem:[#allocation2 + $0x9c] sm:$0xf]  ;;  %v374_v14 = vmax.f32 %v342_v48, 0.0  ;;  %v309_v12 = vmul.f32 %v8156_v25, %v6564_v43  ;;  %v3680_v50 = vrot.slane %v7932_v37, 5  ;;  %v3683_v8 = vrot.slane %v7934_v49, 5 }
  0xd4   : > { %v1400_v30 = vshrl.u32 %v8169_v15, 16  ;;  %v1403_v45 = vshll.u32 %v8169_v15, 16  ;;  %v375_v19 = vmax.f32 %v343_v34, 0.0  ;;  %6763 = vmatprep.mubr.msk.bf16.mxu1 %vm1524_vm10, %v6077_v44  ;;  %v8177_v62 = vld [vmem:[#allocation2 + $0xa0] sm:$0xf]  ;;  %v344_v55 = vadd.f32 %v8182_v53, %v308_v52 }
  0xd5   : > { %v1081_v6 = vld [vmem:[#allocation2 + $0xa4] sm:$0x1]  ;;  %v6467_v21 = vpack.c.bf16 %v374_v14, %v374_v14  ;;  %v345_v11 = vadd.f32 %v8182_v53, %v309_v12  ;;  %v1409_v37 = vshll.u32 %v8177_v62, 16  ;;  %v1413_v56 = vshrl.u32 %v8177_v62, 16  ;;  %v3579_v12 = vld [vmem:[#allocation2 + $0x60] sm:$0xe] }
  0xd6   : > { %v1402_v0 = vrot.slane %v1400_v30, 4  ;;  %v1405_v54 = vrot.slane %v1403_v45, 5  ;;  %v1419_v41 = vshll.u32 %v1081_v6, 16  ;;  %v6468_v13 = vpack.c.bf16 %v375_v19, %v375_v19  ;;  %v1014_v33 = vld [vmem:[#allocation2 + $0xa8] sm:$0xf] }
  0xd7   : > { %v822_v59 = vshrl.u32 %v6467_v21, 16  ;;  %v825_v23 = vshll.u32 %v6467_v21, 16  ;;  %v1411_v63 = vrot.slane %v1409_v37, 5  ;;  %v1415_v16 = vrot.slane %v1413_v56, 4  ;;  %v1018_v46 = vld [vmem:[#allocation2 + $0xb0] sm:$0x1] }
  0xd8   : > { %v1406_v2 = vor.u32 %v1405_v54, %v1402_v0  ;;  %v376_v20 = vmax.f32 %v344_v55, 0.0  ;;  %v1421_v31 = vrot.slane %v1419_v41, 5  ;;  %v830_v24 = vshrl.u32 %v6468_v13, 16 }
  0xd9   : > { %v824_v61 = vrot.slane %v822_v59, 7  ;;  %v833_v60 = vshll.u32 %v6468_v13, 16  ;;  %v1416_v49 = vor.u32 %v1415_v16, %v1411_v63  ;;  %v377_v35 = vmax.f32 %v345_v11, 0.0  ;;  %v1021_v11 = vld [vmem:[#allocation2 + $0xb4] sm:$0xf] }
  0xda   : > { %v1407_v47 = vrot.slane %v1406_v2, 4  ;;  %v6469_v42 = vpack.c.bf16 %v376_v20, %v376_v20  ;;  %v832_v9 = vrot.slane %v830_v24, 7  ;;  %v3681_v48 = vsel %vm7907_vm2, %v6249_v27, %v3680_v50  ;;  %v3580_v13 = vld [vmem:[#allocation2 + $0x6c] sm:$0xe]  ;;  %v1025_v59 = vld [vmem:[#allocation2 + $0xbc] sm:$0x1] }
  0xdb   : > { %v827_v39 = vor.u32 %v825_v23, %v824_v61  ;;  %v828_v58 = vrot.slane %v824_v61, 4  ;;  %v1417_v43 = vrot.slane %v1416_v49, 4  ;;  %v6470_v1 = vpack.c.bf16 %v377_v35, %v377_v35  ;;  %v2872_v16 = vld [vmem:[#allocation2 + $0x70] sm:$0xf]  ;;  %v2873_v24 = vld [vmem:[#allocation2 + $0x74] sm:$0x1] }
  0xdc   : > { %v1412_v51 = vsel %vm7567_vm11, %v1407_v47, %v1411_v63  ;;  %v839_v34 = vshrl.u32 %v6469_v42, 16  ;;  %v835_v28 = vor.u32 %v833_v60, %v832_v9  ;;  %v837_v44 = vrot.slane %v832_v9, 4 }
  0xdd   : > { %v1015_v14 = vsel %vm7576_vm12, %v827_v39, %v1014_v33  ;;  %v842_v52 = vshll.u32 %v6469_v42, 16  ;;  %v1422_v30 = vsel %vm7567_vm11, %v1417_v43, %v1421_v31  ;;  %v847_v27 = vshrl.u32 %v6470_v1, 16 }
  0xde   : > { %1016 = vst [vmem:[#allocation2 + $0xa8] sm:$0xf] %v1015_v14  ;;  %v841_v45 = vrot.slane %v839_v34, 7  ;;  %v850_v19 = vshll.u32 %v6470_v1, 16  ;;  %v6078_v6 = vcombine.low %v1412_v51, %v1422_v30  ;;  %v836_v21 = vsel %vm7582_vm13, %v828_v58, %v835_v28 }
  0xdf   : > { %v1019_v55 = vsel %vm7480_vm5, %v837_v44, %v1018_v46  ;;  %v3682_v0 = vrot.slane %v3680_v50, 4  ;;  %1017 = vst.msk [vmem:[#allocation2 + $0xac] sm:$0xf] %vm380_vm1, %v836_v21  ;;  %v849_v56 = vrot.slane %v847_v27, 7  ;;  %v6250_v41 = vrot.slane %v3579_v12, 9 }
  0xe0   : > { %1020 = vst [vmem:[#allocation2 + $0xb0] sm:$0x1] %v1019_v55  ;;  %v844_v54 = vor.u32 %v842_v52, %v841_v45  ;;  %v845_v37 = vrot.slane %v841_v45, 4  ;;  %6764 = vmatmul.mubr.msk.bf16.gmra.mrb[24].mxu1 %vm1524_vm10, %v6078_v6  ;;  %v3687_v2 = vrot.slane %v7944_v10, 5  ;;  %v3690_v63 = vrot.slane %v7959_v57, 5 }
  0xe1   : > { %v3684_v23 = vsel %vm7907_vm2, %v3682_v0, %v3683_v8  ;;  %v852_v50 = vor.u32 %v850_v19, %v849_v56  ;;  %v854_v20 = vrot.slane %v849_v56, 4  ;;  %v6251_v49 = vrot.slane %v3580_v13, 9  ;;  %v3581_v6 = vld [vmem:[#allocation2 + $0x78] sm:$0xe]  ;;  %v8241_v0 = vld [vmem:[#allocation2 + $0x80] sm:$0x1] }
  0xe2   : > { %v1022_v31 = vsel %vm7576_vm12, %v844_v54, %v1021_v11  ;;  %v6265_v61 = vcombine.low %v3681_v48, %v3684_v23  ;;  %v3688_v60 = vsel %vm7907_vm2, %v6250_v41, %v3687_v2  ;;  %v3689_v47 = vrot.slane %v3687_v2, 4  ;;  %v8239_v11 = vld [vmem:[#allocation2 + $0x7c] sm:$0xf] }
  0xe3   : > { %1023 = vst [vmem:[#allocation2 + $0xb4] sm:$0xf] %v1022_v31  ;;  %v853_v8 = vsel %vm7582_vm13, %v845_v37, %v852_v50  ;;  %v1026_v10 = vsel %vm7480_vm5, %v854_v20, %v1025_v59  ;;  %v3694_v57 = vrot.slane %v2872_v16, 5  ;;  %v3697_v42 = vrot.slane %v2873_v24, 5  ;;  %v2878_v16 = vld [vmem:[#allocation2 + $0x88] sm:$0xf] }
  0xe4   : > { %6921 = vmatprep.mubr.msk.bf16.mxu0 %vm1524_vm10, %v6265_v61  ;;  %1024 = vst.msk [vmem:[#allocation2 + $0xb8] sm:$0xf] %vm380_vm1, %v853_v8  ;;  %1027 = vst [vmem:[#allocation2 + $0xbc] sm:$0x1] %v1026_v10  ;;  %v3691_v35 = vsel %vm7907_vm2, %v3689_v47, %v3690_v63  ;;  %v2879_v50 = vld [vmem:[#allocation2 + $0x8c] sm:$0x1] }
  0xe5   : > { %v8216_v33 = vld [vmem:[#allocation2 + $0xa8] sm:$0xf]  ;;  %v6266_v9 = vcombine.low %v3688_v60, %v3691_v35  ;;  %v3695_v43 = vsel %vm7907_vm2, %v6251_v49, %v3694_v57  ;;  %v3696_v46 = vrot.slane %v3694_v57, 4  ;;  %v3582_v20 = vld [vmem:[#allocation2 + $0x84] sm:$0xe]  ;;  %v6252_v57 = vrot.slane %v3581_v6, 9 }
  0xe6   : > { %v1424_v39 = vshrl.u32 %v8216_v33, 16  ;;  %v1427_v58 = vshll.u32 %v8216_v33, 16  ;;  %v8223_v48 = vld [vmem:[#allocation2 + $0xac] sm:$0xf]  ;;  %v2881_v60 = vld [vmem:[#allocation2 + $0x94] sm:$0xf] }
  0xe7   : > { %v8225_v51 = vld [vmem:[#allocation2 + $0xb0] sm:$0x1]  ;;  %v1433_v28 = vshll.u32 %v8223_v48, 16  ;;  %v1437_v44 = vshrl.u32 %v8223_v48, 16  ;;  %6922 = vmatmul.mubr.msk.bf16.gmra.mrb[12].mxu0 %vm1524_vm10, %v6266_v9  ;;  %v3698_v52 = vsel %vm7907_vm2, %v3696_v46, %v3697_v42  ;;  %v3583_v47 = vld [vmem:[#allocation2 + $0x90] sm:$0xe] }
  0xe8   : > { %v1426_v1 = vrot.slane %v1424_v39, 4  ;;  %v1429_v34 = vrot.slane %v1427_v58, 5  ;;  %v1443_v14 = vshll.u32 %v8225_v51, 16  ;;  %v6267_v19 = vcombine.low %v3695_v43, %v3698_v52  ;;  %v3584_v6 = vld [vmem:[#allocation2 + $0x9c] sm:$0xe] }
  0xe9   : > { %v1435_v30 = vrot.slane %v1433_v28, 5  ;;  %v1439_v45 = vrot.slane %v1437_v44, 4  ;;  %v3701_v39 = vrot.slane %v8239_v11, 5  ;;  %v3704_v58 = vrot.slane %v8241_v0, 5 }
  0xea   : > { %v1430_v12 = vor.u32 %v1429_v34, %v1426_v1  ;;  %v8235_v27 = vld [vmem:[#allocation2 + $0xb4] sm:$0xf]  ;;  %v1445_v56 = vrot.slane %v1443_v14, 5  ;;  %6925 = vmatprep.mubr.msk.bf16.mxu0 %vm1524_vm10, %v6267_v19  ;;  %v6253_v1 = vrot.slane %v3582_v20, 9  ;;  %v2882_v34 = vld [vmem:[#allocation2 + $0x98] sm:$0x1] }
  0xeb   : > { %v1448_v21 = vshrl.u32 %v8235_v27, 16  ;;  %v1451_v55 = vshll.u32 %v8235_v27, 16  ;;  %v1440_v37 = vor.u32 %v1439_v45, %v1435_v30  ;;  %v8243_v41 = vld [vmem:[#allocation2 + $0xb8] sm:$0xf]  ;;  %v8245_v13 = vld [vmem:[#allocation2 + $0xbc] sm:$0x1]  ;;  %v3702_v28 = vsel %vm7907_vm2, %v6252_v57, %v3701_v39 }
  0xec   : > { %v1431_v54 = vrot.slane %v1430_v12, 4  ;;  %v1457_v2 = vshll.u32 %v8243_v41, 16  ;;  %v1461_v63 = vshrl.u32 %v8243_v41, 16  ;;  %v1467_v24 = vshll.u32 %v8245_v13, 16 }
  0xed   : > { %v1450_v59 = vrot.slane %v1448_v21, 4  ;;  %v1453_v23 = vrot.slane %v1451_v55, 5  ;;  %v1441_v61 = vrot.slane %v1440_v37, 4  ;;  %v3703_v44 = vrot.slane %v3701_v39, 4  ;;  %v2888_v39 = vld [vmem:[#allocation2 + $0xb0] sm:$0x1] }
  0xee   : > { %v1436_v31 = vsel %vm7567_vm11, %v1431_v54, %v1435_v30  ;;  %v1459_v8 = vrot.slane %v1457_v2, 5  ;;  %v1463_v10 = vrot.slane %v1461_v63, 4  ;;  %v1469_v42 = vrot.slane %v1467_v24, 5  ;;  %v8268_v2 = vld [vmem:[#allocation2 + $0x4] sm:$0xf] }
  0xef   : > { %v1454_v49 = vor.u32 %v1453_v23, %v1450_v59  ;;  %v1446_v35 = vsel %vm7567_vm11, %v1441_v61, %v1445_v56  ;;  %v3708_v14 = vrot.slane %v2878_v16, 5  ;;  %v3711_v52 = vrot.slane %v2879_v50, 5  ;;  %v2884_v56 = vld [vmem:[#allocation2 + $0xa0] sm:$0xf]  ;;  %v2885_v59 = vld [vmem:[#allocation2 + $0xa4] sm:$0x1] }
  0xf0   : > { %v6079_v9 = vcombine.low %v1436_v31, %v1446_v35  ;;  %v1464_v46 = vor.u32 %v1463_v10, %v1459_v8  ;;  %v6254_v45 = vrot.slane %v3583_v47, 9  ;;  %v3715_v19 = vrot.slane %v2881_v60, 5  ;;  %v7362_v63 = vld [vmem:[#allocation2] sm:$0xf]  ;;  %v2887_v31 = vld [vmem:[#allocation2 + $0xac] sm:$0xf] }
  0xf1   : > { %v1455_v43 = vrot.slane %v1454_v49, 4  ;;  %v3705_v21 = vsel %vm7907_vm2, %v3703_v44, %v3704_v58  ;;  %v3709_v55 = vsel %vm7907_vm2, %v6253_v1, %v3708_v14  ;;  %v3710_v54 = vrot.slane %v3708_v14, 4  ;;  %v3585_v35 = vld [vmem:[#allocation2 + $0xa8] sm:$0xe]  ;;  %v2891_v44 = vld [vmem:[#allocation2 + $0xbc] sm:$0x1] }
  0xf2   : > { %6767 = vmatprep.mubr.msk.bf16.mxu1 %vm1524_vm10, %v6079_v9  ;;  %v1465_v30 = vrot.slane %v1464_v46, 4  ;;  %v3718_v37 = vrot.slane %v2882_v34, 5  ;;  %v6098_v16 = vcombine.low %v7362_v63, %v8268_v2  ;;  %v6268_v50 = vcombine.low %v3702_v28, %v3705_v21  ;;  %v6583_v9 = vld [vmem:[%s7516_s28 + $0x78] sm:$0xff]   ;;  %v8281_v46 = vld [vmem:[#allocation2 + $0x10] sm:$0xf] }
  0xf3   : > { %v1460_v12 = vsel %vm7567_vm11, %v1455_v43, %v1459_v8  ;;  %v3717_v20 = vrot.slane %v3715_v19, 4  ;;  %v3712_v24 = vsel %vm7907_vm2, %v3710_v54, %v3711_v52  ;;  %v3716_v60 = vsel %vm7907_vm2, %v6254_v45, %v3715_v19  ;;  %v7363_v43 = vld [vmem:[#allocation2 + $0xc] sm:$0xf]  ;;  %v3586_v14 = vld [vmem:[#allocation2 + $0xb4] sm:$0xe] }
  0xf4   : > { %v1470_v23 = vsel %vm7567_vm11, %v1465_v30, %v1469_v42  ;;  %v6255_v47 = vrot.slane %v3584_v6, 9  ;;  %6926 = vmatmul.mubr.msk.bf16.gmra.mrb[16].mxu0 %vm1524_vm10, %v6268_v50  ;;  %v6269_v49 = vcombine.low %v3709_v55, %v3712_v24  ;;  %v3722_v10 = vrot.slane %v2884_v56, 5  ;;  %v2890_v42 = vld [vmem:[#allocation2 + $0xb8] sm:$0xf]  ;;  %v440_v21 = vld [vmem:[#allocation2 + $0xc0] sm:$0x1] }
  0xf5   : > { %v6080_v61 = vcombine.low %v1460_v12, %v1470_v23  ;;  %v3719_v8 = vsel %vm7907_vm2, %v3717_v20, %v3718_v37  ;;  %v3725_v57 = vrot.slane %v2885_v59, 5  ;;  %v3729_v58 = vrot.slane %v2887_v31, 5  ;;  %v7365_v52 = vld [vmem:[#allocation2 + $0x18] sm:$0xf]  ;;  %v8287_v12 = vld [vmem:[#allocation2 + $0x1c] sm:$0xf] }
  0xf6   : > { %v6099_v1 = vcombine.low %v7363_v43, %v8281_v46  ;;  %6929 = vmatprep.mubr.msk.bf16.mxu0 %vm1524_vm10, %v6269_v49  ;;  %v3723_v34 = vsel %vm7907_vm2, %v6255_v47, %v3722_v10  ;;  %v3724_v28 = vrot.slane %v3722_v10, 4  ;;  %v6100_v30 = vcombine.low %v7365_v52, %v8287_v12  ;;  %v496_v59 = vld [vmem:[#allocation2 + $0xc8] sm:$0x1]  ;;  %v8295_v23 = vld [vmem:[%s9504_s2 + $0xc] ss:$0 sps:$4 sm:$0xcc]  }
  0xf7   : > { %6768 = vmatmul.mubr.msk.bf16.gmra.mrb[28].mxu1 %vm1524_vm10, %v6080_v61  ;;  %v6270_v45 = vcombine.low %v3716_v60, %v3719_v8  ;;  %v6256_v19 = vrot.slane %v3585_v35, 9  ;;  %v3736_v6 = vrot.slane %v2890_v42, 5  ;;  %v3732_v54 = vrot.slane %v2888_v39, 5  ;;  %v7367_v47 = vld [vmem:[%s9504_s2 + $0x4] sm:$0x3] }
  0xf8   : > { %6773 = vmatprep.mubr.msk.bf16.mxu1 %vm1524_vm10, %v6098_v16  ;;  %v3726_v55 = vsel %vm7907_vm2, %v3724_v28, %v3725_v57  ;;  %v6567_v37 = vunpack.c.l.bf16 %v6583_v9  ;;  %v6568_v56 = vunpack.c.h.bf16 %v6583_v9  ;;  %v3731_v16 = vrot.slane %v3729_v58, 4  ;;  %v8314_v35 = vld [vmem:[%s9504_s2 + $0x4] ss:$0 sps:$4 sm:$0xcc]  }
  0xf9   : > { %v6271_v63 = vcombine.low %v3723_v34, %v3726_v55  ;;  %v6257_v50 = vrot.slane %v3586_v14, 9  ;;  %v3739_v20 = vrot.slane %v2891_v44, 5  ;;  %v3738_v31 = vrot.slane %v3736_v6, 4  ;;  %v8331_v14 = vld [vmem:[#allocation2 + $0x28] sm:$0xf] }
  0xfa   : > { %v310_v61 = vmul.f32 %v8156_v25, %v6567_v37  ;;  %v311_v24 = vmul.f32 %v8156_v25, %v6568_v56  ;;  %v441_v60 = vsel %vm7480_vm5, 0, %v440_v21  ;;  %v2291_v49 = vsel %vm1573_vm0, %v7367_v47, 0  ;;  %v7369_v52 = vld [vmem:[#allocation2 + $0x24] sm:$0xf] }
  0xfb   : > { %442 = vst [vmem:[#allocation2 + $0xc0] sm:$0x1] %v441_v60  ;;  %v497_v8 = vsel %vm7488_vm6, 0, %v496_v59  ;;  %v4887_v25 = vrot.slane %v8295_v23, 2  ;;  %v3730_v42 = vsel %vm7907_vm2, %v6256_v19, %v3729_v58  ;;  %v3733_v39 = vsel %vm7907_vm2, %v3731_v16, %v3732_v54  ;;  %v8334_v19 = vld [vmem:[#allocation2 + $0x34] sm:$0xf] }
  0xfc   : > { %6930 = vmatmul.mubr.msk.bf16.gmra.mrb[20].mxu0 %vm1524_vm10, %v6270_v45  ;;  %v346_v10 = vadd.f32 %v8182_v53, %v310_v61  ;;  %v347_v57 = vadd.f32 %v8182_v53, %v311_v24  ;;  %498 = vst [vmem:[#allocation2 + $0xc8] sm:$0x1] %v497_v8  ;;  %v3737_v53 = vsel %vm7907_vm2, %v6257_v50, %v3736_v6  ;;  %v2602_v44 = vrot.slane %v8314_v35, 2  ;;  %v7370_v45 = vld [vmem:[#allocation2 + $0x30] sm:$0xf]  ;;  %v7327_v35 = vld [vmem:[#allocation2 + $0x48] sm:$0xff]  }
  0xfd   : > { %6933 = vmatprep.mubr.msk.bf16.mxu0 %vm1524_vm10, %v6271_v63  ;;  %v3740_v9 = vsel %vm7907_vm2, %v3738_v31, %v3739_v20  ;;  %7309 = vmatprep.subr.msk.bf16.mxu0 %vm1573_vm0, %v4887_v25  ;;  %v6102_v6 = vcombine.low %v7370_v45, %v8334_v19  ;;  %v7372_v8 = vld [vmem:[#allocation2 + $0x3c] sm:$0xf]  ;;  %v3121_v26 = vshll.u32 %v8239_v11, 16  ;;  %v7385_v23 = vld [vmem:[#allocation2 + $0x2c] sm:$0x1] }
  0xfe   : > { %v378_v43 = vmax.f32 %v346_v10, 0.0  ;;  %v379_v34 = vmax.f32 %v347_v57, 0.0  ;;  %v6273_v21 = vcombine.low %v3737_v53, %v3740_v9  ;;  %v8350_v10 = vld [vmem:[#allocation2 + $0x40] sm:$0xf]  ;;  %v443_v53 = vld [vmem:[#allocation2 + $0xcc] sm:$0x1] }
  0xff   : > { %6774 = vmatmul.mubr.msk.bf16.vlgmr.msra.gmra.mrb[0].mxu1 %vm1524_vm10, %v6099_v1  ;;  %v6272_v1 = vcombine.low %v3730_v42, %v3733_v39  ;;  %v6103_v57 = vcombine.low %v7372_v8, %v8350_v10  ;;  %v7374_v42 = vld [vmem:[#allocation2 + $0x48] sm:$0xf]  ;;  %v8354_v39 = vld [vmem:[#allocation2 + $0x4c] sm:$0xf]  ;;  %v3125_v9 = vshrl.u32 %v8239_v11, 16 }
 0x100   : > { %6806 = vmatpush3.bf16.msra.mxu1 %v2291_v49  ;;  %6777 = vmatprep.mubr.msk.bf16.mxu1 %vm1524_vm10, %v6100_v30  ;;  %v6471_v58 = vpack.c.bf16 %v378_v43, %v378_v43  ;;  %v6472_v28 = vpack.c.bf16 %v379_v34, %v379_v34  ;;  %v6101_v30 = vcombine.low %v7369_v52, %v8331_v14  ;;  %v444_v43 = vsel %vm7480_vm5, 0, %v443_v53  ;;  %v8363_v52 = vld [vmem:[#allocation2 + $0x58] sm:$0xf]  ;;  %v7380_v8 = vld [vmem:[#allocation2 + $0x8] sm:$0x1] }
 0x101   : > { %7304 = vmatprep.subr.msk.bf16.mxu1 %vm1573_vm0, %v2602_v44  ;;  %v6104_v36 = vcombine.low %v7374_v42, %v8354_v39  ;;  %445 = vst [vmem:[#allocation2 + $0xcc] sm:$0x1] %v444_v43  ;;  %v3127_v11 = vrot.slane %v3125_v9, 4  ;;  %v7381_v42 = vld [vmem:[#allocation2 + $0x14] sm:$0x1]  ;;  %v6108_v43 = vcombine.low %v8068_v29, %v8074_v38  ;;  %v4937_v29 = vsel %vm1573_vm0, %v4887_v25, 0 }
 0x102   : > { %v856_v55 = vshrl.u32 %v6471_v58, 16  ;;  %v859_v54 = vshll.u32 %v6471_v58, 16  ;;  %v864_v37 = vshrl.u32 %v6472_v28, 16  ;;  %v867_v56 = vshll.u32 %v6472_v28, 16  ;;  %v1028_v16 = vld [vmem:[#allocation2 + $0xc0] sm:$0xf] }
 0x103   : > { %v1032_v50 = vld [vmem:[#allocation2 + $0xc8] sm:$0x1]  ;;  %v7376_v28 = vld [vmem:[#allocation2 + $0x54] sm:$0xf]  ;;  %v7382_v53 = vld [vmem:[#allocation2 + $0x6c] sm:$0xf] }
 0x104   : > { %6934 = vmatmul.mubr.msk.bf16.gmra.mrb[24].mxu0 %vm1524_vm10, %v6272_v1  ;;  %v858_v59 = vrot.slane %v856_v55, 7  ;;  %v866_v63 = vrot.slane %v864_v37, 7  ;;  %v8366_v55 = vrot.slane %v3121_v26, 5  ;;  %v8368_v37 = vld [vmem:[#allocation2 + $0x64] sm:$0xf]  ;;  %v7325_v38 = vld [vmem:[#allocation2 + $0x30] sm:$0xff]  }
 0x105   : > { %6937 = vmatprep.mubr.msk.bf16.mxu0 %vm1524_vm10, %v6273_v21  ;;  %v8383_v26 = vld [vmem:[#allocation2 + $0x70] sm:$0xf]  ;;  %v2035_v25 = vld [vmem:[#allocation2 + $0x3c] sm:$0xe] }
 0x106   : > { %v861_v20 = vor.u32 %v859_v54, %v858_v59  ;;  %v862_v31 = vrot.slane %v858_v59, 4  ;;  %v869_v61 = vor.u32 %v867_v56, %v866_v63  ;;  %v871_v24 = vrot.slane %v866_v63, 4  ;;  %9533 = vst [vmem:[#allocation4_spill] sm:$0xff] %v8366_v55  ;;  %v7378_v54 = vld [vmem:[#allocation2 + $0x60] sm:$0xf] }
 0x107   : > { %6778 = vmatmul.mubr.msk.bf16.gmra.mrb[4].mxu1 %vm1524_vm10, %v6101_v30  ;;  %v6105_v30 = vcombine.low %v7376_v28, %v8363_v52  ;;  %v6106_v5 = vcombine.low %v7378_v54, %v8368_v37  ;;  %v7384_v54 = vld [vmem:[#allocation2 + $0x20] sm:$0x1] }
 0x108   : > { %6781 = vmatprep.mubr.msk.bf16.mxu1 %vm1524_vm10, %v6102_v6  ;;  %v870_v60 = vsel %vm7582_vm13, %v862_v31, %v869_v61  ;;  %v1029_v47 = vsel %vm7576_vm12, %v861_v20, %v1028_v16  ;;  %v1033_v49 = vsel %vm7480_vm5, %v871_v24, %v1032_v50  ;;  %v7322_v16 = vld [vmem:[#allocation2 + $0x18] sm:$0xff]   ;;  %v3128_v50 = vor.u32 %v3127_v11, %v8366_v55  ;;  %v4408_v55 = vld [vmem:[#allocation2 + $0x2c] sm:$0x1] }
 0x109   : > { %1030 = vst [vmem:[#allocation2 + $0xc0] sm:$0xf] %v1029_v47  ;;  %1031 = vst.msk [vmem:[#allocation2 + $0xc4] sm:$0xf] %vm380_vm1, %v870_v60  ;;  %v3131_v20 = vshll.u32 %v8241_v0, 16  ;;  %v2083_v61 = vrot.slane %v8268_v2, 5  ;;  %v6107_v0 = vcombine.low %v7382_v53, %v8383_v26 }
 0x10a   : > { %1034 = vst [vmem:[#allocation2 + $0xc8] sm:$0x1] %v1033_v49  ;;  %v2090_v24 = vrot.slane %v8281_v46, 5  ;;  %v2030_v60 = vld [vmem:[#allocation2] sm:$0xe]  ;;  %v2097_v49 = vrot.slane %v8287_v12, 5 }
 0x10b   : > { %v2031_v47 = vld [vmem:[#allocation2 + $0xc] sm:$0xe]  ;;  %v2032_v2 = vld [vmem:[#allocation2 + $0x18] sm:$0xe]  ;;  %v8387_v9 = vrot.slane %v3128_v50, 4  ;;  %v8389_v46 = vrot.slane %v3131_v20, 5 }
 0x10c   : > { %v2104_v12 = vrot.slane %v8331_v14, 5  ;;  %v6131_v28 = vrot.slane %v2031_v47, 9  ;;  %v2099_v11 = vrot.slane %v2097_v49, 4  ;;  %v2034_v14 = vld [vmem:[#allocation2 + $0x30] sm:$0xe]  ;;  %v2107_v50 = vrot.slane %v7385_v23, 5 }
 0x10d   : > { %9534 = vst [vmem:[#allocation5_spill] sm:$0xff] %v8387_v9  ;;  %9535 = vst [vmem:[#allocation6_spill] sm:$0xff] %v8389_v46  ;;  %v7388_v23 = vld [vmem:[#allocation2 + $0x50] sm:$0x1] }
 0x10f   : > { %6782 = vmatmul.mubr.msk.bf16.gmra.mrb[8].mxu1 %vm1524_vm10, %v6103_v57  ;;  %v2086_v57 = vrot.slane %v7380_v8, 5  ;;  %v6134_v8 = vrot.slane %v2034_v14, 9 }
 0x110   : > { %6785 = vmatprep.mubr.msk.bf16.mxu1 %vm1524_vm10, %v6104_v36  ;;  %v2893_v34 = vld [vmem:[#allocation2 + $0xc4] sm:$0xf]  ;;  %v3587_v58 = vld [vmem:[#allocation2 + $0xc0] sm:$0xe]  ;;  %v2093_v36 = vrot.slane %v7381_v42, 5 }
 0x111   : > { %v2894_v1 = vld [vmem:[#allocation2 + $0xc8] sm:$0x1]  ;;  %v6258_v45 = vrot.slane %v3587_v58, 9  ;;  %v3743_v6 = vrot.slane %v2893_v34, 5  ;;  %v6109_v34 = vcombine.low %v8086_v22, %v8089_v17  ;;  %v2085_v58 = vrot.slane %v2083_v61, 4 }
 0x112   : > { %v3746_v21 = vrot.slane %v2894_v1, 5  ;;  %v6130_v1 = vrot.slane %v2030_v60, 9  ;;  %v6110_v22 = vcombine.low %v8124_v40, %v8117_v18  ;;  %v8425_v60 = vld [vmem:[%s9504_s2 + $0x10] sm:$0x3]  ;;  %v7386_v42 = vld [vmem:[#allocation2 + $0x38] sm:$0x1] }
 0x113   : > { %v3744_v56 = vsel %vm7907_vm2, %v6258_v45, %v3743_v6  ;;  %v3745_v59 = vrot.slane %v3743_v6, 4  ;;  %v7324_v45 = vld [vmem:[#allocation2 + $0x24] sm:$0xff]   ;;  %v2092_v6 = vrot.slane %v2090_v24, 4  ;;  %v8416_v40 = vsel %vm7907_vm2, %v2085_v58, %v2086_v57 }
 0x114   : > { %v8412_v18 = vsel %vm7907_vm2, %v6130_v1, %v2083_v61  ;;  %v2114_v53 = vrot.slane %v7386_v42, 5  ;;  %v2125_v58 = vrot.slane %v8354_v39, 5  ;;  %v7326_v39 = vld [vmem:[#allocation2 + $0x3c] sm:$0xff]   ;;  %v2139_v42 = vrot.slane %v8368_v37, 5 }
 0x115   : > { %v3747_v63 = vsel %vm7907_vm2, %v3745_v59, %v3746_v21  ;;  %v6132_v21 = vrot.slane %v2032_v2, 9  ;;  %v8430_v61 = vsel %vm7907_vm2, %v2092_v6, %v2093_v36  ;;  %v2118_v2 = vrot.slane %v8350_v10, 5  ;;  %v4403_v36 = vld [vmem:[#allocation2 + $0x18] sm:$0xf]  ;;  %v7390_v10 = vld [vmem:[#allocation2 + $0x68] sm:$0x1] }
 0x116   : > { %v6274_v31 = vcombine.low %v3744_v56, %v3747_v63  ;;  %v2111_v56 = vrot.slane %v8334_v19, 5  ;;  %v8420_v19 = vsel %vm7907_vm2, %v6131_v28, %v2090_v24  ;;  %v7328_v28 = vld [vmem:[#allocation2 + $0x54] sm:$0xff]  }
 0x117   : > { %6786 = vmatmul.mubr.msk.bf16.gmra.mrb[12].mxu1 %vm1524_vm10, %v6105_v30  ;;  %v2033_v30 = vld [vmem:[#allocation2 + $0x24] sm:$0xe]  ;;  %v8434_v47 = vsel %vm7907_vm2, %v6132_v21, %v2097_v49  ;;  %v7387_v21 = vld [vmem:[#allocation2 + $0x44] sm:$0x1]  ;;  %v7391_v59 = vld [vmem:[#allocation2 + $0x74] sm:$0x1] }
 0x118   : > { %6789 = vmatprep.mubr.msk.bf16.mxu1 %vm1524_vm10, %v6106_v5  ;;  %6938 = vmatmul.mubr.msk.bf16.gmra.mrb[28].mxu0 %vm1524_vm10, %v6274_v31  ;;  %v2100_v5 = vrot.slane %v7384_v54, 5  ;;  %v6133_v63 = vrot.slane %v2033_v30, 9  ;;  %v2036_v31 = vld [vmem:[#allocation2 + $0x48] sm:$0xe]  ;;  %v2113_v57 = vrot.slane %v2111_v56, 4  ;;  %v8468_v6 = vsel %vm7907_vm2, %v6134_v8, %v2111_v56 }
 0x119   : > { %6943 = vmatprep.mubr.msk.bf16.mxu0 %vm1524_vm10, %v7322_v16  ;;  %v2106_v16 = vrot.slane %v2104_v12, 4  ;;  %v6136_v1 = vrot.slane %v2036_v31, 9  ;;  %v4404_v54 = vld [vmem:[#allocation2 + $0x1c] sm:$0xf]  ;;  %v2120_v56 = vrot.slane %v2118_v2, 4 }
 0x11a   : > { %v8438_v24 = vsel %vm7907_vm2, %v2099_v11, %v2100_v5  ;;  %v2121_v11 = vrot.slane %v7387_v21, 5  ;;  %v4452_v5 = vshrl.u32 %v4403_v36, 16  ;;  %v4407_v31 = vld [vmem:[#allocation2 + $0x28] sm:$0xf] }
 0x11b   : > { %v8448_v49 = vsel %vm7907_vm2, %v2106_v16, %v2107_v50  ;;  %v8484_v16 = vsel %vm7907_vm2, %v6136_v1, %v2125_v58  ;;  %v2128_v50 = vrot.slane %v7388_v23, 5  ;;  %v4489_v23 = vshrl.u32 %v4407_v31, 16 }
 0x11c   : > { %v8496_v37 = vsel %vm7907_vm2, %v2120_v56, %v2121_v11  ;;  %v9536_v11 = vcombine.low %v8169_v15, %v8177_v62  ;;  %v7329_v56 = vld [vmem:[#allocation2 + $0x60] sm:$0xff]  }
 0x11f   : > { %6790 = vmatmul.mubr.msk.bf16.gmra.mrb[16].mxu1 %vm1524_vm10, %v6107_v0  ;;  %v6135_v0 = vrot.slane %v2035_v25, 9  ;;  %v2132_v25 = vrot.slane %v8363_v52, 5  ;;  %v2039_v52 = vld [vmem:[#allocation2 + $0x6c] sm:$0xe] }
 0x120   : > { %6793 = vmatprep.mubr.msk.bf16.mxu1 %vm1524_vm10, %v6108_v43  ;;  %6944 = vmatmul.mubr.msk.bf16.vlgmr.msra.gmra.mrb[0].mxu0 %vm1524_vm10, %v7324_v45  ;;  %v8444_v43 = vsel %vm7907_vm2, %v6133_v63, %v2104_v12  ;;  %v8460_v12 = vsel %vm1573_vm0, %v2602_v44, 0  ;;  %v8464_v45 = vld [vmem:[#allocation2 + $0x54] sm:$0xe]  ;;  %v4406_v63 = vld [vmem:[#allocation2 + $0x24] sm:$0xf]  ;;  %v6139_v20 = vrot.slane %v2039_v52, 9 }
 0x121   : > { %6976 = vmatpush3.bf16.msra.mxu0 %v4937_v29  ;;  %6947 = vmatprep.mubr.msk.bf16.mxu0 %vm1524_vm10, %v7325_v38  ;;  %v4455_v29 = vshll.u32 %v4403_v36, 16  ;;  %v8475_v38 = vsel %vm7907_vm2, %v2113_v57, %v2114_v53  ;;  %v8479_v14 = vsel %vm7907_vm2, %v6135_v0, %v2118_v2  ;;  %v6137_v8 = vrot.slane %v8464_v45, 9  ;;  %v2038_v57 = vld [vmem:[#allocation2 + $0x60] sm:$0xe]  ;;  %v4409_v52 = vld [vmem:[#allocation2 + $0x30] sm:$0xf] }
 0x122   : > { %7310 = vmatprep.subr.msk.bf16.mxu0 %vm1573_vm0, %v8425_v60  ;;  %v4461_v53 = vshll.u32 %v4404_v54, 16  ;;  %v4465_v0 = vshrl.u32 %v4404_v54, 16  ;;  %v2146_v2 = vrot.slane %v8383_v26, 5  ;;  %v4454_v36 = vrot.slane %v4452_v5, 4  ;;  %v4405_v5 = vld [vmem:[#allocation2 + $0x20] sm:$0x1] }
 0x123   : > { %v4457_v1 = vrot.slane %v4455_v29, 5  ;;  %v4479_v21 = vshll.u32 %v4406_v63, 16  ;;  %v4485_v45 = vshll.u32 %v4407_v31, 16  ;;  %v2134_v54 = vrot.slane %v2132_v25, 4 }
 0x124   : > { %v6138_v30 = vrot.slane %v2038_v57, 9  ;;  %v2142_v26 = vrot.slane %v7390_v10, 5  ;;  %v8498_v29 = vrot.slane %v4461_v53, 5  ;;  %v2149_v31 = vrot.slane %v7391_v59, 5 }
 0x125   : > { %v4458_v17 = vor.u32 %v4457_v1, %v4454_v36  ;;  %v8504_v10 = vrot.slane %v4485_v45, 5  ;;  %v4491_v53 = vrot.slane %v4489_v23, 4  ;;  %v8516_v15 = vsel %vm7907_vm2, %v6137_v8, %v2132_v25  ;;  %v8552_v45 = vld [vmem:[#allocation2 + $0x34] sm:$0xf] }
 0x126   : > { %v8524_v36 = vsel %vm7907_vm2, %v6138_v30, %v2139_v42  ;;  %9538 = vst [vmem:[#allocation7_spill] sm:$0xff] %v8552_v45  ;;  %v4503_v23 = vshll.u32 %v4409_v52, 16 }
 0x127   : > { %6794 = vmatmul.mubr.msk.bf16.gmra.mrb[20].mxu1 %vm1524_vm10, %v6109_v34  ;;  %v2127_v34 = vrot.slane %v2125_v58, 4  ;;  %v4476_v58 = vshrl.u32 %v4406_v63, 16  ;;  %v2148_v63 = vrot.slane %v2146_v2, 4  ;;  %v8542_v8 = vrot.slane %v4458_v17, 4 }
 0x128   : > { %6797 = vmatprep.mubr.msk.bf16.mxu1 %vm1524_vm10, %v6110_v22  ;;  %6948 = vmatmul.mubr.msk.bf16.gmra.mrb[4].mxu0 %vm1524_vm10, %v7326_v39  ;;  %v7389_v39 = vld [vmem:[#allocation2 + $0x5c] sm:$0x1]  ;;  %v2141_v22 = vrot.slane %v2139_v42, 4  ;;  %v4500_v17 = vshrl.u32 %v4409_v52, 16 }
 0x129   : > { %6951 = vmatprep.mubr.msk.bf16.mxu0 %vm1524_vm10, %v7327_v35  ;;  %v2135_v44 = vrot.slane %v7389_v39, 5  ;;  %v4467_v35 = vrot.slane %v4465_v0, 4  ;;  %v4478_v57 = vrot.slane %v4476_v58, 4  ;;  %v4481_v39 = vrot.slane %v4479_v21, 5  ;;  %v7392_v58 = vld [vmem:[#allocation2 + $0x7c] sm:$0xf] }
 0x12a   : > { %v9537_v0 = vcombine.low %v8216_v33, %v8223_v48  ;;  %v8512_v59 = vsel %vm7907_vm2, %v2127_v34, %v2128_v50  ;;  %v8528_v33 = vsel %vm7907_vm2, %v2141_v22, %v2142_v26  ;;  %v4471_v34 = vshll.u32 %v4405_v5, 16  ;;  %v2040_v22 = vld [vmem:[#allocation2 + $0x78] sm:$0xe]  ;;  %v4412_v52 = vld [vmem:[#allocation2 + $0x3c] sm:$0xf] }
 0x12b   : > { %v8520_v62 = vsel %vm7907_vm2, %v2134_v54, %v2135_v44  ;;  %v4468_v1 = vor.u32 %v4467_v35, %v8498_v29  ;;  %v4495_v50 = vshll.u32 %v4408_v55, 16  ;;  %v8536_v44 = vsel %vm7907_vm2, %v6139_v20, %v2146_v2  ;;  %v7330_v54 = vld [vmem:[#allocation2 + $0x6c] sm:$0xff]   ;;  %v7394_v26 = vld [vmem:[#allocation2 + $0x88] sm:$0xf]  ;;  %v8568_v20 = vld [vmem:[#allocation2 + $0x40] sm:$0xf] }
 0x12c   : > { %v8540_v30 = vsel %vm7907_vm2, %v2148_v63, %v2149_v31  ;;  %v4482_v42 = vor.u32 %v4481_v39, %v4478_v57  ;;  %v2153_v21 = vrot.slane %v7392_v58, 5  ;;  %v4473_v35 = vrot.slane %v4471_v34, 5  ;;  %v2041_v31 = vld [vmem:[#allocation2 + $0x84] sm:$0xe]  ;;  %9540 = vst [vmem:[#allocation8_spill] sm:$0xff] %v8568_v20 }
 0x12d   : > { %v4469_v5 = vrot.slane %v4468_v1, 4  ;;  %v4497_v63 = vrot.slane %v4495_v50, 5  ;;  %v8562_v57 = vsel %vm1573_vm0, %v8425_v60, 0  ;;  %v6140_v39 = vrot.slane %v2040_v22, 9  ;;  %v4415_v55 = vld [vmem:[#allocation2 + $0x48] sm:$0xf] }
 0x12e   : > { %v9539_v1 = vcombine.low %v8235_v27, %v8243_v41  ;;  %v4483_v34 = vrot.slane %v4482_v42, 4  ;;  %v2155_v58 = vrot.slane %v2153_v21, 4  ;;  %v2160_v2 = vrot.slane %v7394_v26, 5 }
 0x12f   : > { %6798 = vmatmul.mubr.msk.bf16.gmra.mrb[24].mxu1 %vm1524_vm10, %v9536_v11  ;;  %v7332_v11 = vld [vmem:[#allocation2 + $0x78] sm:$0xff]   ;;  %v9541_v60 = vcombine.low %v8412_v18, %v8416_v40  ;;  %v4509_v22 = vshll.u32 %v8552_v45, 16  ;;  %v4513_v27 = vshrl.u32 %v8552_v45, 16  ;;  %v4474_v42 = vsel %vm7567_vm11, %v4469_v5, %v4473_v35  ;;  %v7395_v40 = vld [vmem:[#allocation2 + $0x8c] sm:$0x1] }
 0x130   : > { %6801 = vmatprep.mubr.msk.bf16.mxu1 %vm1524_vm10, %v9537_v0  ;;  %6952 = vmatmul.mubr.msk.bf16.gmra.mrb[8].mxu0 %vm1524_vm10, %v7328_v28  ;;  %v4492_v28 = vor.u32 %v4491_v53, %v8504_v10  ;;  %v7393_v53 = vld [vmem:[#allocation2 + $0x80] sm:$0x1]  ;;  %v4524_v26 = vshrl.u32 %v4412_v52, 16  ;;  %v8583_v18 = vsel %vm7907_vm2, %v6140_v39, %v2153_v21  ;;  %v4488_v5 = vsel %vm7567_vm11, %v4483_v34, %v8504_v10  ;;  %v7333_v34 = vld [vmem:[#allocation2 + $0x84] sm:$0xff]  }
 0x131   : > { %6955 = vmatprep.mubr.msk.bf16.mxu0 %vm1524_vm10, %v7329_v56  ;;  %v4464_v56 = vsel %vm7567_vm11, %v8542_v8, %v8498_v29  ;;  %v2156_v0 = vrot.slane %v7393_v53, 5  ;;  %v4502_v29 = vrot.slane %v4500_v17, 4  ;;  %v4505_v8 = vrot.slane %v4503_v23, 5  ;;  %v8578_v53 = vld [vmem:[#allocation2 + $0x38] sm:$0x1] }
 0x132   : > { %v4493_v50 = vrot.slane %v4492_v28, 4  ;;  %v6141_v28 = vrot.slane %v2041_v31, 9  ;;  %9542 = vst [vmem:[#allocation9_spill] sm:$0xff] %v8578_v53  ;;  %v2163_v17 = vrot.slane %v7395_v40, 5  ;;  %v4533_v23 = vshll.u32 %v8568_v20, 16 }
 0x133   : > { %v8595_v21 = vsel %vm7907_vm2, %v2155_v58, %v2156_v0  ;;  %v2162_v35 = vrot.slane %v2160_v2, 4  ;;  %v8597_v31 = vld [vmem:[#allocation2 + $0x4c] sm:$0xf]  ;;  %v4506_v39 = vor.u32 %v4505_v8, %v4502_v29  ;;  %v4515_v40 = vrot.slane %v4513_v27, 4  ;;  %v7334_v29 = vld [vmem:[#allocation2 + $0x90] sm:$0xff]  }
 0x134   : > { %v4526_v25 = vrot.slane %v4524_v26, 4  ;;  %v4548_v45 = vshrl.u32 %v4415_v55, 16  ;;  %v4551_v10 = vshll.u32 %v4415_v55, 16  ;;  %v8602_v3 = vrot.slane %v4533_v23, 5  ;;  %v8620_v26 = vld [vmem:[#allocation2 + $0x44] sm:$0x1] }
 0x135   : > { %v4557_v0 = vshll.u32 %v8597_v31, 16  ;;  %v9543_v58 = vcombine.low %v8420_v19, %v8430_v61  ;;  %v8610_v8 = vcombine.low %v4464_v56, %v4474_v42  ;;  %v8618_v27 = vsel %vm7907_vm2, %v6141_v28, %v2160_v2  ;;  %9544 = vst [vmem:[#allocation10_spill] sm:$0xff] %v8620_v26  ;;  %v4418_v2 = vld [vmem:[#allocation2 + $0x54] sm:$0xf]  ;;  %v8636_v28 = vld [vmem:[#allocation2 + $0x58] sm:$0xf] }
 0x136   : > { %v9545_v19 = vcombine.low %v8434_v47, %v8438_v24  ;;  %v8629_v61 = vsel %vm7907_vm2, %v2162_v35, %v2163_v17  ;;  %v8631_v56 = vrot.slane %v4506_v39, 4  ;;  %9546 = vst [vmem:[#allocation11_spill] sm:$0xff] %v8636_v28  ;;  %v4550_v47 = vrot.slane %v4548_v45, 4  ;;  %v7397_v17 = vld [vmem:[%s9504_s2 + $0x8] sm:$0x3] }
 0x137   : > { %6802 = vmatmul.mubr.msk.bf16.gmra.mrb[28].mxu1 %vm1524_vm10, %v9539_v1  ;;  %v4527_v1 = vshll.u32 %v4412_v52, 16  ;;  %v8599_v52 = vrot.slane %v4509_v22, 5  ;;  %v4553_v24 = vrot.slane %v4551_v10, 5  ;;  %v4543_v35 = vshll.u32 %v8620_v26, 16  ;;  %v2043_v55 = vld [vmem:[#allocation2 + $0x9c] sm:$0xe] }
 0x138   : > { %6807 = vmatprep.mubr.msk.bf16.mxu1 %vm1524_vm10, %v9541_v60  ;;  %6956 = vmatmul.mubr.msk.bf16.gmra.mrb[12].mxu0 %vm1524_vm10, %v7330_v54  ;;  %v4537_v60 = vshrl.u32 %v8568_v20, 16  ;;  %v4498_v54 = vsel %vm7567_vm11, %v4493_v50, %v4497_v63  ;;  %v4561_v50 = vshrl.u32 %v8597_v31, 16  ;;  %v8645_v39 = vrot.slane %v4557_v0, 5  ;;  %v7398_v0 = vld [vmem:[#allocation2 + $0xa0] sm:$0xf] }
 0x139   : > { %6959 = vmatprep.mubr.msk.bf16.mxu0 %vm1524_vm10, %v7332_v11  ;;  %v4519_v11 = vshll.u32 %v8578_v53, 16  ;;  %v4529_v20 = vrot.slane %v4527_v1, 5  ;;  %v8612_v22 = vcombine.low %v4488_v5, %v4498_v54  ;;  %v4516_v42 = vor.u32 %v4515_v40, %v8599_v52 }
 0x13a   : > { %v4539_v63 = vrot.slane %v4537_v60, 4  ;;  %v7396_v60 = vld [vmem:[#allocation2 + $0x94] sm:$0xf]  ;;  %v4572_v45 = vshrl.u32 %v4418_v2, 16  ;;  %v4575_v40 = vshll.u32 %v4418_v2, 16  ;;  %v4585_v10 = vshrl.u32 %v8636_v28, 16 }
 0x13b   : > { %v8634_v1 = vrot.slane %v4519_v11, 5  ;;  %v4530_v23 = vor.u32 %v4529_v20, %v4526_v25  ;;  %v2167_v5 = vrot.slane %v7396_v60, 5  ;;  %v4563_v25 = vrot.slane %v4561_v50, 4  ;;  %v8648_v20 = vld [vmem:[#allocation2 + $0x50] sm:$0x1]  ;;  %v7335_v2 = vld [vmem:[#allocation2 + $0x9c] sm:$0xff]  }
 0x13c   : > { %v4540_v54 = vor.u32 %v4539_v63, %v8602_v3  ;;  %v4581_v11 = vshll.u32 %v8636_v28, 16  ;;  %v4517_v63 = vrot.slane %v4516_v42, 4  ;;  %v4554_v26 = vor.u32 %v4553_v24, %v4550_v47 }
 0x13d   : > { %v4531_v50 = vrot.slane %v4530_v23, 4  ;;  %v2169_v60 = vrot.slane %v2167_v5, 4  ;;  %v4545_v9 = vrot.slane %v4543_v35, 5  ;;  %v4564_v46 = vor.u32 %v4563_v25, %v8645_v39  ;;  %v8672_v25 = vld [vmem:[#allocation2 + $0x5c] sm:$0x1] }
 0x13e   : > { %v4541_v53 = vrot.slane %v4540_v54, 4  ;;  %v4567_v28 = vshll.u32 %v8648_v20, 16  ;;  %v4574_v42 = vrot.slane %v4572_v45, 4  ;;  %v4577_v23 = vrot.slane %v4575_v40, 5 }
 0x13f   : > { %6808 = vmatmul.mubr.msk.bf16.vlgmr.msra.gmra.mrb[0].mxu1 %vm1524_vm10, %v9543_v58  ;;  %v9548_v47 = vcombine.low %v8468_v6, %v8475_v38  ;;  %v6143_v54 = vrot.slane %v2043_v55, 9  ;;  %v4522_v45 = vsel %vm7567_vm11, %v4517_v63, %v8634_v1  ;;  %v4536_v6 = vsel %vm7567_vm11, %v4531_v50, %v8602_v3  ;;  %v2045_v50 = vld [vmem:[#allocation2 + $0xb4] sm:$0xe] }
 0x140   : > { %6840 = vmatpush3.bf16.msra.mxu1 %v8460_v12  ;;  %6811 = vmatprep.mubr.msk.bf16.mxu1 %vm1524_vm10, %v9545_v19  ;;  %v2042_v12 = vld [vmem:[#allocation2 + $0x90] sm:$0xe]  ;;  %v2174_v19 = vrot.slane %v7398_v0, 5  ;;  %v4587_v0 = vrot.slane %v4585_v10, 4  ;;  %v4546_v55 = vsel %vm7567_vm11, %v4541_v53, %v4545_v9  ;;  %v4565_v40 = vrot.slane %v4564_v46, 4 }
 0x141   : > { %7306 = vmatprep.subr.msk.bf16.mxu1 %vm1573_vm0, %v7397_v17  ;;  %6960 = vmatmul.mubr.msk.bf16.gmra.mrb[16].mxu0 %vm1524_vm10, %v7333_v34  ;;  %v4512_v34 = vsel %vm7567_vm11, %v8631_v56, %v8599_v52  ;;  %v6142_v58 = vrot.slane %v2042_v12, 9  ;;  %v9547_v52 = vcombine.low %v8444_v43, %v8448_v49  ;;  %v7336_v56 = vld [vmem:[#allocation2 + $0xa8] sm:$0xff]   ;;  %v8662_v12 = vrot.slane %v4581_v11, 5  ;;  %v7400_v43 = vld [vmem:[#allocation2 + $0xa4] sm:$0x1] }
 0x142   : > { %6963 = vmatprep.mubr.msk.bf16.mxu0 %vm1524_vm10, %v7334_v29  ;;  %v7399_v29 = vld [vmem:[#allocation2 + $0x98] sm:$0x1]  ;;  %v2176_v35 = vrot.slane %v2174_v19, 4  ;;  %v2177_v49 = vrot.slane %v7400_v43, 5  ;;  %v4569_v11 = vrot.slane %v4567_v28, 5  ;;  %v4578_v1 = vor.u32 %v4577_v23, %v4574_v42 }
 0x143   : > { %v2170_v17 = vrot.slane %v7399_v29, 5  ;;  %v8670_v24 = vsel %vm7907_vm2, %v6142_v58, %v2167_v5  ;;  %v4555_v5 = vrot.slane %v4554_v26, 4  ;;  %v2044_v10 = vld [vmem:[#allocation2 + $0xa8] sm:$0xe]  ;;  %v2181_v58 = vrot.slane %v8223_v48, 5 }
 0x144   : > { %v4588_v63 = vor.u32 %v4587_v0, %v8662_v12  ;;  %v4591_v26 = vshll.u32 %v8672_v25, 16  ;;  %v8699_v46 = vsel %vm7907_vm2, %v6143_v54, %v2174_v19  ;;  %v8703_v48 = vsel %vm7907_vm2, %v2176_v35, %v2177_v49  ;;  %v4424_v0 = vld [vmem:[#allocation2 + $0x6c] sm:$0xf] }
 0x145   : > { %v8682_v38 = vsel %vm7907_vm2, %v2169_v60, %v2170_v17  ;;  %v8693_v60 = vcombine.low %v4512_v34, %v4522_v45  ;;  %v8705_v53 = vcombine.low %v4536_v6, %v4546_v55  ;;  %v4560_v28 = vsel %vm7567_vm11, %v4555_v5, %v8645_v39  ;;  %v4421_v17 = vld [vmem:[#allocation2 + $0x60] sm:$0xf]  ;;  %v8734_v6 = vld [vmem:[#allocation2 + $0x70] sm:$0xf] }
 0x146   : > { %v6144_v29 = vrot.slane %v2044_v10, 9  ;;  %v2184_v34 = vrot.slane %v8225_v51, 5  ;;  %v4570_v19 = vsel %vm7567_vm11, %v4565_v40, %v4569_v11  ;;  %v6145_v42 = vrot.slane %v2045_v50, 9  ;;  %v7338_v39 = vld [vmem:[#allocation2 + $0xc0] sm:$0xff]   ;;  %9551 = vst [vmem:[#allocation12_spill] sm:$0xff] %v8734_v6  ;;  %v7339_v51 = vld [vmem:[#allocation2 + $0xcc] sm:$0xff]  }
 0x147   : > { %6812 = vmatmul.mubr.msk.bf16.gmra.mrb[4].mxu1 %vm1524_vm10, %v9547_v52  ;;  %v7337_v52 = vld [vmem:[#allocation2 + $0xb4] sm:$0xff]   ;;  %v2188_v23 = vrot.slane %v8243_v41, 5  ;;  %v8722_v54 = vrot.slane %v4578_v1, 4  ;;  %v8724_v35 = vrot.slane %v4588_v63, 4  ;;  %v8726_v43 = vrot.slane %v4591_v26, 5 }
 0x148   : > { %6815 = vmatprep.mubr.msk.bf16.mxu1 %vm1524_vm10, %v9548_v47  ;;  %v9549_v47 = vcombine.low %v8479_v14, %v8496_v37  ;;  %v9550_v49 = vcombine.low %v8484_v16, %v8512_v59  ;;  %v4596_v41 = vshrl.u32 %v4421_v17, 16  ;;  %v4599_v45 = vshll.u32 %v4421_v17, 16  ;;  %v8752_v63 = vld [vmem:[#allocation2 + $0x68] sm:$0x1]  ;;  %v4427_v26 = vld [vmem:[#allocation2 + $0x78] sm:$0xf] }
 0x149   : > { %6964 = vmatmul.mubr.msk.bf16.gmra.mrb[20].mxu0 %vm1524_vm10, %v7335_v2  ;;  %v8711_v2 = vld [vmem:[#allocation2 + $0x64] sm:$0xf]  ;;  %v8736_v5 = vcombine.low %v4560_v28, %v4570_v19  ;;  %v8740_v55 = vsel %vm7907_vm2, %v6144_v29, %v2181_v58  ;;  %v4620_v40 = vshrl.u32 %v4424_v0, 16  ;;  %v4623_v11 = vshll.u32 %v4424_v0, 16  ;;  %9552 = vst [vmem:[#allocation13_spill] sm:$0xff] %v8752_v63 }
 0x14a   : > { %6967 = vmatprep.mubr.msk.bf16.mxu0 %vm1524_vm10, %v7336_v56  ;;  %v2183_v56 = vrot.slane %v2181_v58, 4  ;;  %v4605_v14 = vshll.u32 %v8711_v2, 16  ;;  %v4609_v37 = vshrl.u32 %v8711_v2, 16  ;;  %v8749_v59 = vsel %vm7907_vm2, %v6145_v42, %v2188_v23  ;;  %v8769_v42 = vld [vmem:[#allocation2 + $0x74] sm:$0x1] }
 0x14b   : > { %v2190_v10 = vrot.slane %v2188_v23, 4  ;;  %v2191_v1 = vrot.slane %v8245_v13, 5  ;;  %v4629_v28 = vshll.u32 %v8734_v6, 16  ;;  %v4633_v29 = vshrl.u32 %v8734_v6, 16  ;;  %v8765_v13 = vld [vmem:[#allocation2 + $0x7c] sm:$0xf] }
 0x14c   : > { %v8745_v16 = vsel %vm7907_vm2, %v2183_v56, %v2184_v34  ;;  %9553 = vst [vmem:[#allocation14_spill] sm:$0xff] %v8765_v13  ;;  %v4430_v34 = vld [vmem:[#allocation2 + $0x84] sm:$0xf]  ;;  %v4598_v17 = vrot.slane %v4596_v41, 4  ;;  %v8767_v19 = vrot.slane %v4605_v14, 5  ;;  %v4611_v56 = vrot.slane %v4609_v37, 4 }
 0x14d   : > { %9554 = vst [vmem:[#allocation15_spill] sm:$0xff] %v8769_v42  ;;  %v4622_v23 = vrot.slane %v4620_v40, 4  ;;  %v4625_v0 = vrot.slane %v4623_v11, 5  ;;  %v4653_v58 = vshll.u32 %v8765_v13, 16  ;;  %v4657_v50 = vshrl.u32 %v8765_v13, 16 }
 0x14e   : > { %v4668_v9 = vshrl.u32 %v4430_v34, 16  ;;  %v4671_v3 = vshll.u32 %v4430_v34, 16  ;;  %v9556_v41 = vcombine.low %v8516_v15, %v8520_v62  ;;  %v4615_v14 = vshll.u32 %v8752_v63, 16  ;;  %v8794_v6 = vld [vmem:[#allocation2 + $0x94] sm:$0xf] }
 0x14f   : > { %6816 = vmatmul.mubr.msk.bf16.gmra.mrb[8].mxu1 %vm1524_vm10, %v9549_v47  ;;  %v4644_v47 = vshrl.u32 %v4427_v26, 16  ;;  %v8784_v37 = vrot.slane %v4629_v28, 5  ;;  %v4635_v40 = vrot.slane %v4633_v29, 4  ;;  %v9557_v11 = vcombine.low %v8524_v36, %v8528_v33  ;;  %9558 = vst [vmem:[#allocation17_spill] sm:$0xff] %v8794_v6  ;;  %v8797_v36 = vld [vmem:[#allocation2 + $0x80] sm:$0x1] }
 0x150   : > { %6819 = vmatprep.mubr.msk.bf16.mxu1 %vm1524_vm10, %v9550_v49  ;;  %v8771_v49 = vld [vmem:[#allocation2 + $0x88] sm:$0xf]  ;;  %v4612_v34 = vor.u32 %v4611_v56, %v8767_v19  ;;  %v8799_v33 = vrot.slane %v4653_v58, 5  ;;  %v4659_v29 = vrot.slane %v4657_v50, 4  ;;  %v8803_v56 = vrot.slane %v4615_v14, 5 }
 0x151   : > { %6968 = vmatmul.mubr.msk.bf16.gmra.mrb[24].mxu0 %vm1524_vm10, %v7337_v52  ;;  %v4601_v52 = vrot.slane %v4599_v45, 5  ;;  %9555 = vst [vmem:[#allocation16_spill] sm:$0xff] %v8771_v49  ;;  %v8781_v45 = vsel %vm7907_vm2, %v2190_v10, %v2191_v1  ;;  %v4677_v15 = vshll.u32 %v8771_v49, 16  ;;  %v4681_v62 = vshrl.u32 %v8771_v49, 16  ;;  %v499_v49 = vld [vmem:[#allocation2 + $0xd4] sm:$0x1] }
 0x152   : > { %6971 = vmatprep.mubr.msk.bf16.mxu0 %vm1524_vm10, %v7338_v39  ;;  %v4647_v39 = vshll.u32 %v4427_v26, 16  ;;  %v4626_v10 = vor.u32 %v4625_v0, %v4622_v23  ;;  %v4639_v1 = vshll.u32 %v8769_v42, 16  ;;  %v4646_v13 = vrot.slane %v4644_v47, 4 }
 0x153   : > { %v4602_v26 = vor.u32 %v4601_v52, %v4598_v17  ;;  %v4670_v17 = vrot.slane %v4668_v9, 4  ;;  %v4673_v52 = vrot.slane %v4671_v3, 5  ;;  %v4636_v23 = vor.u32 %v4635_v40, %v8784_v37 }
 0x154   : > { %v4649_v28 = vrot.slane %v4647_v39, 5  ;;  %v8806_v39 = vld [vmem:[#allocation2 + $0x8c] sm:$0x1]  ;;  %v4701_v58 = vshll.u32 %v8794_v6, 16  ;;  %v4705_v50 = vshrl.u32 %v8794_v6, 16  ;;  %v8814_v3 = vrot.slane %v4612_v34, 4 }
 0x155   : > { %v8812_v9 = vrot.slane %v4602_v26, 4  ;;  %v4663_v14 = vshll.u32 %v8797_v36, 16  ;;  %v8817_v40 = vrot.slane %v4626_v10, 4  ;;  %v4674_v42 = vor.u32 %v4673_v52, %v4670_v17  ;;  %v8827_v6 = vld [vmem:[#allocation2 + $0xa0] sm:$0xf] }
 0x156   : > { %v9559_v63 = vcombine.low %v8536_v44, %v8540_v30  ;;  %v4637_v26 = vrot.slane %v4636_v23, 4  ;;  %v4687_v34 = vshll.u32 %v8806_v39, 16  ;;  %v9560_v10 = vcombine.low %v8583_v18, %v8595_v21 }
 0x157   : > { %6820 = vmatmul.mubr.msk.bf16.gmra.mrb[12].mxu1 %vm1524_vm10, %v9556_v41  ;;  %v4433_v41 = vld [vmem:[#allocation2 + $0x90] sm:$0xf]  ;;  %v8836_v17 = vrot.slane %v4701_v58, 5  ;;  %v4707_v44 = vrot.slane %v4705_v50, 4  ;;  %v500_v30 = vsel %vm7488_vm6, 0, %v499_v49  ;;  %v4665_v52 = vrot.slane %v4663_v14, 5 }
 0x158   : > { %6823 = vmatprep.mubr.msk.bf16.mxu1 %vm1524_vm10, %v9557_v11  ;;  %v4692_v0 = vshrl.u32 %v4433_v41, 16  ;;  %v4695_v47 = vshll.u32 %v4433_v41, 16  ;;  %v8808_v11 = vrot.slane %v4677_v15, 5  ;;  %v8819_v41 = vrot.slane %v4639_v1, 5  ;;  %501 = vst [vmem:[#allocation2 + $0xd4] sm:$0x1] %v500_v30 }
 0x159   : > { %6972 = vmatmul.mubr.msk.bf16.gmra.mrb[28].mxu0 %vm1524_vm10, %v7339_v51  ;;  %v4683_v51 = vrot.slane %v4681_v62, 4  ;;  %v4660_v15 = vor.u32 %v4659_v29, %v8799_v33  ;;  %v4436_v62 = vld [vmem:[#allocation2 + $0x9c] sm:$0xf]  ;;  %v8834_v29 = vld [vmem:[#allocation2 + $0x98] sm:$0x1]  ;;  %v4675_v21 = vrot.slane %v4674_v42, 4  ;;  %v4608_v7 = vsel %vm7567_vm11, %v8812_v9, %v8767_v19 }
 0x15a   : > { %6977 = vmatprep.mubr.msk.bf16.mxu0 %vm1524_vm10, %v8610_v8  ;;  %v4650_v8 = vor.u32 %v4649_v28, %v4646_v13  ;;  %v4694_v13 = vrot.slane %v4692_v0, 4  ;;  %v4697_v28 = vrot.slane %v4695_v47, 5  ;;  %v4716_v23 = vshrl.u32 %v4436_v62, 16  ;;  %v8867_v14 = vld [vmem:[#allocation2 + $0xac] sm:$0xf] }
 0x15b   : > { %v4684_v1 = vor.u32 %v4683_v51, %v8808_v11  ;;  %v4719_v0 = vshll.u32 %v4436_v62, 16  ;;  %v4661_v18 = vrot.slane %v4660_v15, 4  ;;  %v4725_v47 = vshll.u32 %v8827_v6, 16  ;;  %v8874_v15 = vld [vmem:[#allocation2 + $0xa4] sm:$0x1] }
 0x15c   : > { %v4729_v51 = vshrl.u32 %v8827_v6, 16  ;;  %v4698_v42 = vor.u32 %v4697_v28, %v4694_v13  ;;  %v4711_v49 = vshll.u32 %v8834_v29, 16  ;;  %v4708_v50 = vor.u32 %v4707_v44, %v8836_v17 }
 0x15d   : > { %v4685_v58 = vrot.slane %v4684_v1, 4  ;;  %v4642_v19 = vsel %vm7567_vm11, %v4637_v26, %v8819_v41  ;;  %v4718_v9 = vrot.slane %v4716_v23, 4  ;;  %v8876_v62 = vrot.slane %v4725_v47, 5 }
 0x15e   : > { %v4731_v41 = vrot.slane %v4729_v51, 4  ;;  %v9561_v26 = vcombine.low %v8618_v27, %v8629_v61  ;;  %v8892_v1 = vrot.slane %v4708_v50, 4  ;;  %v4749_v27 = vshll.u32 %v8867_v14, 16 }
 0x15f   : > { %6824 = vmatmul.mubr.msk.bf16.gmra.mrb[16].mxu1 %vm1524_vm10, %v9559_v63  ;;  %v4651_v63 = vrot.slane %v4650_v8, 4  ;;  %v4439_v8 = vld [vmem:[#allocation2 + $0xa8] sm:$0xf]  ;;  %v4753_v61 = vshrl.u32 %v8867_v14, 16  ;;  %v9563_v44 = vsel %vm7567_vm11, %v8724_v35, %v8726_v43  ;;  %v6160_v30 = vcombine.low %v8740_v55, %v8745_v16 }
 0x160   : > { %6827 = vmatprep.mubr.msk.bf16.mxu1 %vm1524_vm10, %v9560_v10  ;;  %v4740_v13 = vshrl.u32 %v4439_v8, 16  ;;  %v4743_v28 = vshll.u32 %v4439_v8, 16  ;;  %v9562_v10 = vcombine.low %v8670_v24, %v8682_v38  ;;  %v9564_v24 = vsel %vm7567_vm11, %v8722_v54, %v8662_v12  ;;  %v5136_v12 = vld [vmem:[#allocation2 + $0x48] sm:$0xe] }
 0x161   : > { %6978 = vmatmul.mubr.msk.bf16.vlgmr.msra.gmra.mrb[0].mxu0 %vm1524_vm10, %v8612_v22  ;;  %v4618_v22 = vsel %vm7567_vm11, %v8814_v3, %v8803_v56  ;;  %v4656_v56 = vsel %vm7567_vm11, %v4651_v63, %v8799_v33  ;;  %v4721_v3 = vrot.slane %v4719_v0, 5  ;;  %v8882_v33 = vrot.slane %v4698_v42, 4 }
 0x162   : > { %7010 = vmatpush3.bf16.msra.mxu0 %v8562_v57  ;;  %6981 = vmatprep.mubr.msk.bf16.mxu0 %vm1524_vm10, %v8693_v60  ;;  %v4632_v57 = vsel %vm7567_vm11, %v8817_v40, %v8784_v37  ;;  %v4689_v60 = vrot.slane %v4687_v34, 5  ;;  %v4666_v37 = vsel %vm7567_vm11, %v4661_v18, %v4665_v52  ;;  %v4680_v40 = vsel %vm7567_vm11, %v4675_v21, %v8808_v11  ;;  %v8916_v18 = vld [vmem:[#allocation2 + $0xb0] sm:$0x1]  ;;  %v4442_v21 = vld [vmem:[#allocation2 + $0xb4] sm:$0xf] }
 0x163   : > { %v8884_v34 = vrot.slane %v4711_v49, 5  ;;  %v6329_v38 = vcombine.low %v9564_v24, %v9563_v44  ;;  %v4722_v63 = vor.u32 %v4721_v3, %v4718_v9  ;;  %v4735_v52 = vshll.u32 %v8874_v15, 16 }
 0x164   : > { %v4690_v11 = vsel %vm7567_vm11, %v4685_v58, %v4689_v60  ;;  %v6161_v23 = vcombine.low %v8749_v59, %v8781_v45  ;;  %v6330_v0 = vcombine.low %v4608_v7, %v4618_v22  ;;  %v8913_v35 = vcombine.low %v4632_v57, %v4642_v19  ;;  %v5137_v22 = vld [vmem:[#allocation2 + $0x54] sm:$0xe]  ;;  %v5138_v19 = vld [vmem:[#allocation2 + $0x60] sm:$0xe]  ;;  %v5141_v59 = vld [vmem:[#allocation2 + $0x84] sm:$0xe] }
 0x165   : > { %v4732_v43 = vor.u32 %v4731_v41, %v8876_v62  ;;  %v8920_v54 = vcombine.low %v4656_v56, %v4666_v37  ;;  %v8922_v55 = vcombine.low %v4680_v40, %v4690_v11  ;;  %v8924_v16 = vrot.slane %v4740_v13, 4  ;;  %v9566_v40 = vld [vmem:[#allocation11_spill] sm:$0xff] }
 0x166   : > { %v4704_v47 = vsel %vm7567_vm11, %v8882_v33, %v8836_v17  ;;  %v4714_v51 = vsel %vm7567_vm11, %v8892_v1, %v8884_v34  ;;  %v4755_v7 = vrot.slane %v4753_v61, 4  ;;  %v8938_v42 = vrot.slane %v4722_v63, 4  ;;  %v9567_v1 = vld [vmem:[#allocation13_spill] sm:$0xff] }
 0x167   : > { %6828 = vmatmul.mubr.msk.bf16.gmra.mrb[20].mxu1 %vm1524_vm10, %v9561_v26  ;;  %v8940_v49 = vrot.slane %v4735_v52, 5  ;;  %v4759_v57 = vshll.u32 %v8916_v18, 16  ;;  %v6361_v58 = vrot.slane %v5136_v12, 9  ;;  %v8943_v60 = vrot.slane %v4732_v43, 4  ;;  %v5139_v26 = vld [vmem:[#allocation2 + $0x6c] sm:$0xe] }
 0x168   : > { %6831 = vmatprep.mubr.msk.bf16.mxu1 %vm1524_vm10, %v9562_v10  ;;  %v4764_v50 = vshrl.u32 %v4442_v21, 16  ;;  %v5226_v17 = vrot.slane %v8597_v31, 5  ;;  %v5229_v8 = vrot.slane %v8648_v20, 5  ;;  %v9565_v56 = vcombine.low %v8699_v46, %v8703_v48  ;;  %v8967_v10 = vld [vmem:[#allocation2 + $0xb8] sm:$0xf]  ;;  %v7340_v63 = vld [vmem:[#allocation2 + $0xc] sm:$0xff]  }
 0x169   : > { %6982 = vmatmul.mubr.msk.bf16.gmra.mrb[4].mxu0 %vm1524_vm10, %v8705_v53  ;;  %v8926_v53 = vrot.slane %v4743_v28, 5  ;;  %v4767_v3 = vshll.u32 %v4442_v21, 16  ;;  %v6362_v37 = vrot.slane %v5137_v22, 9  ;;  %v5233_v41 = vrot.slane %v9566_v40, 5  ;;  %v9569_v12 = vld [vmem:[#allocation15_spill] sm:$0xff] }
 0x16a   : > { %6985 = vmatprep.mubr.msk.bf16.mxu0 %vm1524_vm10, %v8736_v5  ;;  %v8936_v5 = vrot.slane %v4749_v27, 5  ;;  %v8958_v20 = vsel %vm7907_vm2, %v6361_v58, %v5226_v17  ;;  %v5228_v33 = vrot.slane %v5226_v17, 4  ;;  %v5236_v46 = vrot.slane %v8672_v25, 5  ;;  %v9568_v25 = vld [vmem:[#allocation12_spill] sm:$0xff]  ;;  %v2874_v58 = vld [vmem:[#allocation2 + $0x78] sm:$0xf] }
 0x16b   : > { %v4746_v9 = vor.u32 %v8926_v53, %v8924_v16  ;;  %v8963_v48 = vsel %vm7907_vm2, %v6362_v37, %v5233_v41  ;;  %v5235_v34 = vrot.slane %v5233_v41, 4  ;;  %v6363_v13 = vrot.slane %v5138_v19, 9  ;;  %v5140_v19 = vld [vmem:[#allocation2 + $0x78] sm:$0xe]  ;;  %v4445_v40 = vld [vmem:[#allocation2 + $0xc0] sm:$0xf] }
 0x16c   : > { %v4756_v31 = vor.u32 %v4755_v7, %v8936_v5  ;;  %v5240_v28 = vrot.slane %v8711_v2, 5  ;;  %v8971_v11 = vsel %vm7907_vm2, %v5228_v33, %v5229_v8  ;;  %v5243_v27 = vrot.slane %v9567_v1, 5  ;;  %v9572_v1 = vld [vmem:[#allocation14_spill] sm:$0xff] }
 0x16d   : > { %v6364_v61 = vrot.slane %v5139_v26, 9  ;;  %v5247_v44 = vrot.slane %v9568_v25, 5  ;;  %v6377_v24 = vcombine.low %v8958_v20, %v8971_v11  ;;  %v8980_v2 = vsel %vm7907_vm2, %v5235_v34, %v5236_v46 }
 0x16e   : > { %v6378_v52 = vcombine.low %v8963_v48, %v8980_v2  ;;  %v5250_v16 = vrot.slane %v9569_v12, 5  ;;  %v8993_v53 = vcombine.low %v4704_v47, %v4714_v51  ;;  %v4728_v21 = vsel %vm7567_vm11, %v8938_v42, %v8876_v62  ;;  %v2886_v2 = vld [vmem:[#allocation2 + $0xa8] sm:$0xf] }
 0x16f   : > { %6832 = vmatmul.mubr.msk.bf16.gmra.mrb[24].mxu1 %vm1524_vm10, %v9565_v56  ;;  %v8990_v43 = vsel %vm7907_vm2, %v6364_v61, %v5247_v44  ;;  %v4773_v7 = vshll.u32 %v8967_v10, 16  ;;  %v4738_v17 = vsel %vm7567_vm11, %v8943_v60, %v8940_v49  ;;  %v9008_v8 = vrot.slane %v4759_v57, 5  ;;  %v9576_v49 = vld [vmem:[#allocation17_spill] sm:$0xff] }
 0x170   : > { %6835 = vmatprep.mubr.msk.bf16.mxu1 %vm1524_vm10, %v6160_v30  ;;  %v5242_v30 = vrot.slane %v5240_v28, 4  ;;  %v9020_v56 = vrot.slane %v4764_v50, 4  ;;  %v9022_v37 = vrot.slane %v4767_v3, 5  ;;  %v4777_v57 = vshrl.u32 %v8967_v10, 16  ;;  %v9570_v50 = vld [vmem:[#allocation6_spill] sm:$0xff]  ;;  %v9571_v3 = vld [vmem:[#allocation5_spill] sm:$0xff] }
 0x171   : > { %6986 = vmatmul.mubr.msk.bf16.gmra.mrb[8].mxu0 %vm1524_vm10, %v6329_v38  ;;  %v8984_v38 = vsel %vm7907_vm2, %v6363_v13, %v5240_v28  ;;  %v9028_v26 = vrot.slane %v4746_v9, 4  ;;  %v4757_v33 = vrot.slane %v4756_v31, 4  ;;  %v3112_v46 = vshrl.u32 %v2874_v58, 16 }
 0x172   : > { %6989 = vmatprep.mubr.msk.bf16.mxu0 %vm1524_vm10, %v6330_v0  ;;  %v5249_v0 = vrot.slane %v5247_v44, 4  ;;  %v9002_v22 = vsel %vm7907_vm2, %v5242_v30, %v5243_v27  ;;  %v3115_v34 = vshll.u32 %v2874_v58, 16  ;;  %v9030_v45 = vrot.slane %v4773_v7, 5  ;;  %v7341_v44 = vld [vmem:[#allocation2 + $0x18] sm:$0xff]   ;;  %v7342_v7 = vld [vmem:[#allocation2 + $0x24] sm:$0xff]  }
 0x173   : > { %v3134_v13 = vsel %vm7567_vm11, %v9571_v3, %v9570_v50  ;;  %v6365_v28 = vrot.slane %v5140_v19, 9  ;;  %v5254_v27 = vrot.slane %v9572_v1, 5  ;;  %v4788_v9 = vshrl.u32 %v4445_v40, 16  ;;  %v9044_v30 = vld [vmem:[#allocation2 + $0xbc] sm:$0x1] }
 0x174   : > { %v9014_v51 = vsel %vm7907_vm2, %v5249_v0, %v5250_v16  ;;  %v3114_v31 = vrot.slane %v3112_v46, 4  ;;  %v3117_v61 = vrot.slane %v3115_v34, 5  ;;  %v5257_v25 = vrot.slane %v8797_v36, 5  ;;  %v9573_v36 = vld [vmem:[#allocation16_spill] sm:$0xff] }
 0x175   : > { %v9048_v0 = vsel %vm7907_vm2, %v6365_v28, %v5254_v27  ;;  %v5256_v12 = vrot.slane %v5254_v27, 4  ;;  %v6366_v16 = vrot.slane %v5141_v59, 9  ;;  %v5261_v46 = vrot.slane %v9573_v36, 5  ;;  %v9065_v28 = vld [vmem:[#allocation2 + $0xc8] sm:$0x1] }
 0x176   : > { %v3118_v19 = vor.u32 %v3117_v61, %v3114_v31  ;;  %v4779_v34 = vrot.slane %v4777_v57, 4  ;;  %v5264_v50 = vrot.slane %v8806_v39, 5  ;;  %v4752_v59 = vsel %vm7567_vm11, %v9028_v26, %v8936_v5  ;;  %v4448_v57 = vld [vmem:[#allocation2 + $0xcc] sm:$0xf]  ;;  %v9073_v27 = vld [vmem:[#allocation2 + $0xd0] sm:$0xf] }
 0x177   : > { %6836 = vmatmul.mubr.msk.bf16.gmra.mrb[28].mxu1 %vm1524_vm10, %v6161_v23  ;;  %v9032_v23 = vld [vmem:[#allocation2 + $0xc4] sm:$0xf]  ;;  %v4783_v3 = vshll.u32 %v9044_v30, 16  ;;  %v4790_v39 = vrot.slane %v4788_v9, 4  ;;  %v9077_v5 = vsel %vm7907_vm2, %v6366_v16, %v5261_v46  ;;  %v5263_v26 = vrot.slane %v5261_v46, 4  ;;  %v9574_v31 = vld [vmem:[#allocation3_spill] sm:$0xff] }
 0x178   : > { %6841 = vmatprep.mubr.msk.bf16.mxu1 %vm1524_vm10, %v7340_v63  ;;  %v4791_v63 = vshll.u32 %v4445_v40, 16  ;;  %v4801_v58 = vshrl.u32 %v9032_v23, 16  ;;  %v9057_v40 = vsel %vm7907_vm2, %v5256_v12, %v5257_v25  ;;  %v3119_v1 = vrot.slane %v3118_v19, 4  ;;  %v9575_v12 = vld [vmem:[#allocation4_spill] sm:$0xff]  ;;  %v5142_v36 = vld [vmem:[#allocation2 + $0x90] sm:$0xe] }
 0x179   : > { %6990 = vmatmul.mubr.msk.bf16.gmra.mrb[12].mxu0 %vm1524_vm10, %v8913_v35  ;;  %v4797_v35 = vshll.u32 %v9032_v23, 16  ;;  %v4807_v9 = vshll.u32 %v9065_v28, 16  ;;  %v9092_v16 = vsel %vm7907_vm2, %v5263_v26, %v5264_v50  ;;  %v7343_v46 = vld [vmem:[#allocation2 + $0x30] sm:$0xff]   ;;  %v7344_v50 = vld [vmem:[#allocation2 + $0x3c] sm:$0xff]   ;;  %v5268_v60 = vrot.slane %v9576_v49, 5 }
 0x17a   : > { %6993 = vmatprep.mubr.msk.bf16.mxu0 %vm1524_vm10, %v8920_v54  ;;  %v4770_v54 = vor.u32 %v9022_v37, %v9020_v56  ;;  %v4762_v37 = vsel %vm7567_vm11, %v4757_v33, %v9008_v8  ;;  %v4793_v61 = vrot.slane %v4791_v63, 5  ;;  %v3124_v8 = vsel %vm7567_vm11, %v3119_v1, %v9575_v12  ;;  %v7402_v49 = vld [vmem:[#allocation2 + $0x20] sm:$0x1] }
 0x17b   : > { %v9081_v25 = vrot.slane %v4797_v35, 5  ;;  %v4780_v33 = vor.u32 %v4779_v34, %v9030_v45  ;;  %v9088_v19 = vcombine.low %v3124_v8, %v3134_v13  ;;  %v4812_v63 = vshrl.u32 %v4448_v57, 16 }
 0x17c   : > { %v4821_v35 = vshll.u32 %v9073_v27, 16  ;;  %v6336_v13 = vcombine.low %v4752_v59, %v4762_v37  ;;  %v4825_v34 = vshrl.u32 %v9073_v27, 16  ;;  %v4771_v1 = vrot.slane %v4770_v54, 4  ;;  %v9123_v37 = vld [vmem:[#allocation2 + $0xd4] sm:$0x1] }
 0x17d   : > { %v4781_v12 = vrot.slane %v4780_v33, 4  ;;  %v4785_v8 = vrot.slane %v4783_v3, 5  ;;  %v4814_v56 = vrot.slane %v4812_v63, 4  ;;  %v5271_v62 = vrot.slane %v8834_v29, 5  ;;  %v7345_v63 = vld [vmem:[#allocation2 + $0x48] sm:$0xff]  }
 0x17e   : > { %v9114_v47 = vrot.slane %v4821_v35, 5  ;;  %v4827_v42 = vrot.slane %v4825_v34, 4  ;;  %v5132_v34 = vld [vmem:[#allocation2 + $0x18] sm:$0xe]  ;;  %vm5931_vm0 = vcmask 1040384  }
 0x17f   : > { %6842 = vmatmul.mubr.msk.bf16.vlgmr.msra.gmra.mrb[0].mxu1 %vm1524_vm10, %v7341_v44  ;;  %v4803_v44 = vrot.slane %v4801_v58, 4  ;;  %v4809_v58 = vrot.slane %v4807_v9, 5 }
 0x180   : > { %7044 = vmatpush3.bf16.msra.mxu1 %v9574_v31  ;;  %6845 = vmatprep.mubr.msk.bf16.mxu1 %vm1524_vm10, %v7342_v7  ;;  %v4815_v7 = vshll.u32 %v4448_v57, 16  ;;  %v4794_v57 = vor.u32 %v4793_v61, %v4790_v39  ;;  %v5143_v31 = vld [vmem:[#allocation2 + $0x9c] sm:$0xe]  ;;  %v5275_v39 = vrot.slane %v8827_v6, 5  ;;  %v5278_v61 = vrot.slane %v8874_v15, 5 }
 0x181   : > { %6994 = vmatmul.mubr.msk.bf16.gmra.mrb[16].mxu0 %vm1524_vm10, %v8922_v55  ;;  %v6335_v55 = vcombine.low %v4728_v21, %v4738_v17  ;;  %v4804_v26 = vor.u32 %v4803_v44, %v9081_v25  ;;  %v5270_v17 = vrot.slane %v5268_v60, 4  ;;  %v6368_v54 = vrot.slane %v5143_v31, 9 }
 0x182   : > { %6997 = vmatprep.mubr.msk.bf16.mxu0 %vm1524_vm10, %v8993_v53  ;;  %v6367_v53 = vrot.slane %v5142_v36, 9  ;;  %v4817_v41 = vrot.slane %v4815_v7, 5  ;;  %v4795_v59 = vrot.slane %v4794_v57, 4  ;;  %v5277_v36 = vrot.slane %v5275_v39, 4  ;;  %v7346_v7 = vld [vmem:[#allocation2 + $0x54] sm:$0xff]  }
 0x183   : > { %v4805_v3 = vrot.slane %v4804_v26, 4  ;;  %v9129_v29 = vsel %vm7907_vm2, %v5270_v17, %v5271_v62  ;;  %v9136_v9 = vsel %vm7907_vm2, %v6368_v54, %v5275_v39  ;;  %v4776_v6 = vsel %vm7567_vm11, %v4771_v1, %v9030_v45  ;;  %v5144_v1 = vld [vmem:[#allocation2 + $0xa8] sm:$0xe]  ;;  %v5134_v39 = vld [vmem:[#allocation2 + $0x30] sm:$0xe] }
 0x184   : > { %v9120_v21 = vsel %vm7907_vm2, %v6367_v53, %v5268_v60  ;;  %v4818_v44 = vor.u32 %v4817_v41, %v4814_v56  ;;  %v4786_v15 = vsel %vm7567_vm11, %v4781_v12, %v4785_v8  ;;  %v4828_v41 = vor.u32 %v4827_v42, %v9114_v47  ;;  %v5133_v12 = vld [vmem:[#allocation2 + $0x24] sm:$0xe]  ;;  %v5145_v42 = vld [vmem:[#allocation2 + $0xb4] sm:$0xe]  ;;  %v7403_v17 = vld [vmem:[#allocation2 + $0x28] sm:$0xf] }
 0x185   : > { %v6383_v33 = vcombine.low %v9120_v21, %v9129_v29  ;;  %v4831_v56 = vshll.u32 %v9123_v37, 16  ;;  %v4800_v35 = vsel %vm7567_vm11, %v4795_v59, %v9081_v25  ;;  %v9153_v45 = vsel %vm7907_vm2, %v5277_v36, %v5278_v61  ;;  %v7347_v36 = vld [vmem:[#allocation2 + $0x60] sm:$0xff]  }
 0x186   : > { %v6337_v57 = vcombine.low %v4776_v6, %v4786_v15  ;;  %v4819_v26 = vrot.slane %v4818_v44, 4  ;;  %v4829_v25 = vrot.slane %v4828_v41, 4  ;;  %v5201_v60 = vrot.slane %v7402_v49, 5  ;;  %v9577_v6 = vld [vmem:[#allocation7_spill] sm:$0xff] }
 0x187   : > { %6846 = vmatmul.mubr.msk.bf16.gmra.mrb[4].mxu1 %vm1524_vm10, %v7343_v46  ;;  %v4810_v46 = vsel %vm7567_vm11, %v4805_v3, %v4809_v58  ;;  %v4833_v31 = vrot.slane %v4831_v56, 5  ;;  %v6357_v58 = vrot.slane %v5132_v34, 9  ;;  %v6369_v62 = vrot.slane %v5144_v1, 9 }
 0x188   : > { %6849 = vmatprep.mubr.msk.bf16.mxu1 %vm1524_vm10, %v7344_v50  ;;  %v6384_v50 = vcombine.low %v9136_v9, %v9153_v45  ;;  %v6338_v53 = vcombine.low %v4800_v35, %v4810_v46  ;;  %v5205_v54 = vrot.slane %v7403_v17, 5  ;;  %v4824_v59 = vsel %vm7567_vm11, %v4819_v26, %v9114_v47  ;;  %v9579_v17 = vld [vmem:[#allocation8_spill] sm:$0xff] }
 0x189   : > { %6998 = vmatmul.mubr.msk.bf16.gmra.mrb[20].mxu0 %vm1524_vm10, %v6335_v55  ;;  %v7401_v55 = vld [vmem:[#allocation2 + $0x1c] sm:$0xf]  ;;  %v6358_v3 = vrot.slane %v5133_v12, 9  ;;  %v5282_v61 = vrot.slane %v8867_v14, 5  ;;  %v5285_v44 = vrot.slane %v8916_v18, 5  ;;  %v5212_v15 = vrot.slane %v9577_v6, 5 }
 0x18a   : > { %7001 = vmatprep.mubr.msk.bf16.mxu0 %vm1524_vm10, %v6336_v13  ;;  %v5198_v13 = vrot.slane %v7401_v55, 5  ;;  %v6370_v41 = vrot.slane %v5145_v42, 9  ;;  %v5289_v56 = vrot.slane %v8967_v10, 5  ;;  %v5207_v46 = vrot.slane %v5205_v54, 4  ;;  %v7404_v55 = vld [vmem:[#allocation2 + $0x2c] sm:$0x1] }
 0x18b   : > { %v9176_v18 = vsel %vm7907_vm2, %v6369_v62, %v5282_v61  ;;  %v5284_v35 = vrot.slane %v5282_v61, 4  ;;  %v5208_v34 = vrot.slane %v7404_v55, 5  ;;  %v6359_v1 = vrot.slane %v5134_v39, 9  ;;  %v9578_v12 = vld [vmem:[#allocation9_spill] sm:$0xff]  ;;  %v5135_v42 = vld [vmem:[#allocation2 + $0x3c] sm:$0xe] }
 0x18c   : > { %v5200_v8 = vrot.slane %v5198_v13, 4  ;;  %v5199_v47 = vsel %vm7907_vm2, %v6357_v58, %v5198_v13  ;;  %v9184_v13 = vsel %vm7907_vm2, %v6370_v41, %v5289_v56  ;;  %v5215_v58 = vrot.slane %v9578_v12, 5  ;;  %v7349_v39 = vld [vmem:[#allocation2 + $0x78] sm:$0xff]   ;;  %v5147_v6 = vld [vmem:[#allocation2 + $0xcc] sm:$0xe] }
 0x18d   : > { %v9180_v10 = vsel %vm7907_vm2, %v5284_v35, %v5285_v44  ;;  %v5209_v62 = vsel %vm7907_vm2, %v5207_v46, %v5208_v34  ;;  %v5213_v61 = vsel %vm7907_vm2, %v6359_v1, %v5212_v15  ;;  %v7405_v46 = vld [vmem:[#allocation2 + $0x70] sm:$0xf]  ;;  %v5303_v1 = vrot.slane %v9073_v27, 5 }
 0x18e   : > { %v5202_v14 = vsel %vm7907_vm2, %v5200_v8, %v5201_v60  ;;  %v6385_v8 = vcombine.low %v9176_v18, %v9180_v10  ;;  %v3097_v55 = vshll.u32 %v7405_v46, 16  ;;  %v3101_v34 = vshrl.u32 %v7405_v46, 16 }
 0x18f   : > { %6850 = vmatmul.mubr.msk.bf16.gmra.mrb[8].mxu1 %vm1524_vm10, %v7345_v63  ;;  %v4834_v63 = vsel %vm7567_vm11, %v4829_v25, %v4833_v31  ;;  %v6373_v25 = vcombine.low %v5199_v47, %v5202_v14  ;;  %v5214_v31 = vrot.slane %v5212_v15, 4  ;;  %v6372_v15 = vrot.slane %v5147_v6, 9 }
 0x190   : > { %6853 = vmatprep.mubr.msk.bf16.mxu1 %vm1524_vm10, %v7346_v7  ;;  %v7348_v7 = vld [vmem:[#allocation2 + $0x6c] sm:$0xff]   ;;  %v6339_v26 = vcombine.low %v4824_v59, %v4834_v63  ;;  %v5219_v59 = vrot.slane %v9579_v17, 5  ;;  %v7350_v63 = vld [vmem:[#allocation2 + $0x84] sm:$0xff]   ;;  %v5306_v12 = vrot.slane %v9123_v37, 5  ;;  %v7352_v17 = vld [vmem:[#allocation2 + $0x9c] sm:$0xff]  }
 0x191   : > { %7002 = vmatmul.mubr.msk.bf16.gmra.mrb[24].mxu0 %vm1524_vm10, %v6337_v57  ;;  %v5291_v57 = vrot.slane %v5289_v56, 4  ;;  %v5216_v44 = vsel %vm7907_vm2, %v5214_v31, %v5215_v58  ;;  %v9220_v31 = vsel %vm7907_vm2, %v6372_v15, %v5303_v1  ;;  %v7351_v58 = vld [vmem:[#allocation2 + $0x90] sm:$0xff]  }
 0x192   : > { %7005 = vmatprep.mubr.msk.bf16.mxu0 %vm1524_vm10, %v6338_v53  ;;  %v5292_v53 = vrot.slane %v9044_v30, 5  ;;  %v5206_v30 = vsel %vm7907_vm2, %v6358_v3, %v5205_v54  ;;  %v6360_v54 = vrot.slane %v5135_v42, 9  ;;  %v9580_v3 = vld [vmem:[#allocation10_spill] sm:$0xff]  ;;  %v5221_v47 = vrot.slane %v5219_v59, 4 }
 0x193   : > { %v6374_v41 = vcombine.low %v5206_v30, %v5209_v62  ;;  %v5222_v56 = vrot.slane %v9580_v3, 5  ;;  %v3099_v62 = vrot.slane %v3097_v55, 5  ;;  %v3103_v42 = vrot.slane %v3101_v34, 4 }
 0x194   : > { %v9194_v49 = vsel %vm7907_vm2, %v5291_v57, %v5292_v53  ;;  %v5305_v57 = vrot.slane %v5303_v1, 4  ;;  %v2880_v1 = vld [vmem:[#allocation2 + $0x90] sm:$0xf] }
 0x195   : > { %v6386_v60 = vcombine.low %v9184_v13, %v9194_v49  ;;  %v5223_v53 = vsel %vm7907_vm2, %v5221_v47, %v5222_v56 }
 0x197   : > { %6854 = vmatmul.mubr.msk.bf16.gmra.mrb[12].mxu1 %vm1524_vm10, %v7347_v36  ;;  %v2871_v36 = vld [vmem:[#allocation2 + $0x6c] sm:$0xf] }
 0x198   : > { %6857 = vmatprep.mubr.msk.bf16.mxu1 %vm1524_vm10, %v7348_v7  ;;  %v6375_v7 = vcombine.low %v5213_v61, %v5216_v44  ;;  %v3088_v14 = vshrl.u32 %v2871_v36, 16  ;;  %v3091_v35 = vshll.u32 %v2871_v36, 16 }
 0x199   : > { %7006 = vmatmul.mubr.msk.bf16.gmra.mrb[28].mxu0 %vm1524_vm10, %v6339_v26  ;;  %v5220_v26 = vsel %vm7907_vm2, %v6360_v54, %v5219_v59  ;;  %v9226_v59 = vsel %vm7907_vm2, %v5305_v57, %v5306_v12  ;;  %v7407_v54 = vld [vmem:[#allocation2 + $0x88] sm:$0xf]  ;;  %v7354_v57 = vld [vmem:[#allocation2 + $0xb4] sm:$0xff]   ;;  %v3163_v12 = vshll.u32 %v2880_v1, 16 }
 0x19a   : > { %7011 = vmatprep.mubr.msk.bf16.mxu0 %vm1524_vm10, %v6373_v25  ;;  %v2877_v25 = vld [vmem:[#allocation2 + $0x84] sm:$0xf]  ;;  %v3090_v27 = vrot.slane %v3088_v14, 4  ;;  %v3093_v30 = vrot.slane %v3091_v35, 5  ;;  %v6388_v44 = vcombine.low %v9220_v31, %v9226_v59  ;;  %v6376_v36 = vcombine.low %v5220_v26, %v5223_v53  ;;  %v7353_v14 = vld [vmem:[#allocation2 + $0xa8] sm:$0xff]  }
 0x19b   : > { %v3139_v61 = vshll.u32 %v2877_v25, 16  ;;  %v3145_v3 = vshll.u32 %v7407_v54, 16  ;;  %v3149_v56 = vshrl.u32 %v7407_v54, 16  ;;  %v2883_v53 = vld [vmem:[#allocation2 + $0x9c] sm:$0xf] }
 0x19c   : > { %v3094_v6 = vor.u32 %v3093_v30, %v3090_v27 }
 0x19d   : > { %v3141_v47 = vrot.slane %v3139_v61, 5  ;;  %v9237_v34 = vrot.slane %v3145_v3, 5  ;;  %v3151_v15 = vrot.slane %v3149_v56, 4  ;;  %v3187_v61 = vshll.u32 %v2883_v53, 16  ;;  %v7355_v56 = vld [vmem:[#allocation2 + $0xc0] sm:$0xff]  }
 0x19e   : > { %v3095_v46 = vrot.slane %v3094_v6, 4 }
 0x19f   : > { %6858 = vmatmul.mubr.msk.bf16.gmra.mrb[16].mxu1 %vm1524_vm10, %v7349_v39  ;;  %v3136_v39 = vshrl.u32 %v2877_v25, 16  ;;  %v3160_v25 = vshrl.u32 %v2880_v1, 16 }
 0x1a0   : > { %6861 = vmatprep.mubr.msk.bf16.mxu1 %vm1524_vm10, %v7350_v63  ;;  %v7406_v63 = vld [vmem:[#allocation2 + $0x74] sm:$0x1]  ;;  %v3100_v20 = vsel %vm7567_vm11, %v3095_v46, %v3099_v62 }
 0x1a1   : > { %7012 = vmatmul.mubr.msk.bf16.vlgmr.msra.gmra.mrb[0].mxu0 %vm1524_vm10, %v6374_v41  ;;  %v3107_v37 = vshll.u32 %v7406_v63, 16  ;;  %v3104_v41 = vor.u32 %v3103_v42, %v3099_v62  ;;  %v7409_v42 = vld [vmem:[#allocation2 + $0x8c] sm:$0x1]  ;;  %v3162_v62 = vrot.slane %v3160_v25, 4  ;;  %v3211_v25 = vshll.u32 %v2886_v2, 16 }
 0x1a2   : > { %7015 = vmatprep.mubr.msk.bf16.mxu0 %vm1524_vm10, %v6375_v7  ;;  %v3138_v7 = vrot.slane %v3136_v39, 4  ;;  %v3184_v39 = vshrl.u32 %v2883_v53, 16  ;;  %v3208_v53 = vshrl.u32 %v2886_v2, 16 }
 0x1a3   : > { %v3109_v35 = vrot.slane %v3107_v37, 5  ;;  %v3105_v55 = vrot.slane %v3104_v41, 4  ;;  %v3165_v41 = vrot.slane %v3163_v12, 5  ;;  %v7412_v12 = vld [vmem:[#allocation2 + $0xac] sm:$0xf] }
 0x1a4   : > { %v3142_v26 = vor.u32 %v3141_v47, %v3138_v7  ;;  %v9581_v7 = vcombine.low %v8984_v38, %v9002_v22  ;;  %v3186_v46 = vrot.slane %v3184_v39, 4  ;;  %v2889_v22 = vld [vmem:[#allocation2 + $0xb4] sm:$0xf]  ;;  %v7414_v39 = vld [vmem:[#allocation2 + $0xb8] sm:$0xf] }
 0x1a5   : > { %v3110_v11 = vsel %vm7567_vm11, %v3105_v55, %v3109_v35  ;;  %v3189_v55 = vrot.slane %v3187_v61, 5  ;;  %v3166_v1 = vor.u32 %v3165_v41, %v3162_v62  ;;  %v3241_v61 = vshll.u32 %v7414_v39, 16 }
 0x1a6   : > { %v3143_v6 = vrot.slane %v3142_v26, 4  ;;  %v6219_v47 = vcombine.low %v3100_v20, %v3110_v11  ;;  %v7411_v26 = vld [vmem:[#allocation2 + $0x98] sm:$0x1]  ;;  %v7413_v11 = vld [vmem:[#allocation2 + $0xa4] sm:$0x1]  ;;  %v9583_v41 = vcombine.low %v9048_v0, %v9057_v40 }
 0x1a7   : > { %6862 = vmatmul.mubr.msk.bf16.gmra.mrb[20].mxu1 %vm1524_vm10, %v7351_v58  ;;  %v7408_v58 = vld [vmem:[#allocation2 + $0x94] sm:$0xf]  ;;  %v3179_v38 = vshll.u32 %v7411_v26, 16  ;;  %v3190_v20 = vor.u32 %v3189_v55, %v3186_v46  ;;  %v3243_v2 = vrot.slane %v3241_v61, 5  ;;  %v7415_v40 = vld [vmem:[#allocation2 + $0xb0] sm:$0x1] }
 0x1a8   : > { %6865 = vmatprep.mubr.msk.bf16.mxu1 %vm1524_vm10, %v7352_v17  ;;  %v3169_v27 = vshll.u32 %v7408_v58, 16  ;;  %v3173_v30 = vshrl.u32 %v7408_v58, 16  ;;  %v3155_v17 = vshll.u32 %v7409_v42, 16  ;;  %v3217_v58 = vshll.u32 %v7412_v12, 16 }
 0x1a9   : > { %7016 = vmatmul.mubr.msk.bf16.gmra.mrb[4].mxu0 %vm1524_vm10, %v6376_v36  ;;  %v7410_v36 = vld [vmem:[#allocation2 + $0xa0] sm:$0xf]  ;;  %v3232_v42 = vshrl.u32 %v2889_v22, 16  ;;  %v3181_v62 = vrot.slane %v3179_v38, 5  ;;  %v3227_v26 = vshll.u32 %v7415_v40, 16 }
 0x1aa   : > { %7019 = vmatprep.mubr.msk.bf16.mxu0 %vm1524_vm10, %v6377_v24  ;;  %v3152_v24 = vor.u32 %v3151_v15, %v9237_v34  ;;  %v3193_v63 = vshll.u32 %v7410_v36, 16  ;;  %v3197_v37 = vshrl.u32 %v7410_v36, 16  ;;  %v9250_v54 = vrot.slane %v3169_v27, 5 }
 0x1ab   : > { %v3175_v3 = vrot.slane %v3173_v30, 4  ;;  %v3157_v35 = vrot.slane %v3155_v17, 5  ;;  %v3221_v27 = vshrl.u32 %v7412_v12, 16  ;;  %v3235_v17 = vshll.u32 %v2889_v22, 16  ;;  %v7416_v12 = vld [vmem:[#allocation2 + $0xc4] sm:$0xf] }
 0x1ac   : > { %v9256_v15 = vrot.slane %v3193_v63, 5  ;;  %v3199_v48 = vrot.slane %v3197_v37, 4  ;;  %v3245_v36 = vshrl.u32 %v7414_v39, 16  ;;  %v9582_v63 = vcombine.low %v8990_v43, %v9014_v51 }
 0x1ad   : > { %v3167_v37 = vrot.slane %v3166_v1, 4  ;;  %v3234_v43 = vrot.slane %v3232_v42, 4  ;;  %v3237_v51 = vrot.slane %v3235_v17, 5  ;;  %v3229_v42 = vrot.slane %v3227_v26, 5 }
 0x1ae   : > { %v3247_v1 = vrot.slane %v3245_v36, 4 }
 0x1af   : > { %6866 = vmatmul.mubr.msk.bf16.gmra.mrb[24].mxu1 %vm1524_vm10, %v7353_v14  ;;  %v3153_v14 = vrot.slane %v3152_v24, 4  ;;  %v3203_v24 = vshll.u32 %v7413_v11, 16  ;;  %v9584_v11 = vcombine.low %v9077_v5, %v9092_v16 }
 0x1b0   : > { %6869 = vmatprep.mubr.msk.bf16.mxu1 %vm1524_vm10, %v7354_v57  ;;  %v3176_v57 = vor.u32 %v3175_v3, %v9250_v54  ;;  %v3210_v3 = vrot.slane %v3208_v53, 4 }
 0x1b1   : > { %7020 = vmatmul.mubr.msk.bf16.gmra.mrb[8].mxu0 %vm1524_vm10, %v6378_v52  ;;  %v3148_v52 = vsel %vm7567_vm11, %v3143_v6, %v9237_v34  ;;  %v3158_v30 = vsel %vm7567_vm11, %v3153_v14, %v3157_v35  ;;  %v3200_v34 = vor.u32 %v3199_v48, %v9256_v15  ;;  %v3191_v35 = vrot.slane %v3190_v20, 4  ;;  %v2892_v48 = vld [vmem:[#allocation2 + $0xc0] sm:$0xf] }
 0x1b2   : > { %7023 = vmatprep.mubr.msk.bf16.mxu0 %vm1524_vm10, %v9581_v7  ;;  %v3177_v6 = vrot.slane %v3176_v57, 4  ;;  %v3219_v7 = vrot.slane %v3217_v58, 5  ;;  %v6221_v14 = vcombine.low %v3148_v52, %v3158_v30  ;;  %v3205_v55 = vrot.slane %v3203_v24, 5 }
 0x1b3   : > { %v3201_v46 = vrot.slane %v3200_v34, 4  ;;  %v3172_v57 = vsel %vm7567_vm11, %v3167_v37, %v9250_v54  ;;  %v3256_v22 = vshrl.u32 %v2892_v48, 16  ;;  %v3259_v53 = vshll.u32 %v2892_v48, 16  ;;  %v7417_v34 = vld [vmem:[#allocation2 + $0xbc] sm:$0x1] }
 0x1b4   : > { %v3182_v0 = vsel %vm7567_vm11, %v3177_v6, %v3181_v62  ;;  %v3265_v54 = vshll.u32 %v7416_v12, 16  ;;  %v3269_v58 = vshrl.u32 %v7416_v12, 16  ;;  %v3238_v30 = vor.u32 %v3237_v51, %v3234_v43 }
 0x1b5   : > { %v3248_v20 = vor.u32 %v3247_v1, %v3243_v2  ;;  %v6222_v24 = vcombine.low %v3172_v57, %v3182_v0  ;;  %v3258_v39 = vrot.slane %v3256_v22, 4  ;;  %v3261_v61 = vrot.slane %v3259_v53, 5 }
 0x1b6   : > { %v3271_v37 = vrot.slane %v3269_v58, 4  ;;  %v5296_v6 = vrot.slane %v9032_v23, 5  ;;  %v3239_v62 = vrot.slane %v3238_v30, 4 }
 0x1b7   : > { %6870 = vmatmul.mubr.msk.bf16.gmra.mrb[28].mxu1 %vm1524_vm10, %v7355_v56  ;;  %v3213_v56 = vrot.slane %v3211_v25, 5  ;;  %v3196_v25 = vsel %vm7567_vm11, %v3191_v35, %v9256_v15  ;;  %v3249_v5 = vrot.slane %v3248_v20, 4  ;;  %v5299_v35 = vrot.slane %v9065_v28, 5 }
 0x1b8   : > { %6891 = vmatprep.mubr.msk.bf16.mxu1 %vm1524_vm10, %v6219_v47  ;;  %v3223_v47 = vrot.slane %v3221_v27, 4  ;;  %v3206_v27 = vsel %vm7567_vm11, %v3201_v46, %v3205_v55  ;;  %v5298_v23 = vrot.slane %v5296_v6, 4  ;;  %v3244_v46 = vsel %vm7567_vm11, %v3239_v62, %v3243_v2 }
 0x1b9   : > { %7024 = vmatmul.mubr.msk.bf16.gmra.mrb[12].mxu0 %vm1524_vm10, %v9582_v63  ;;  %v3214_v52 = vor.u32 %v3213_v56, %v3210_v3  ;;  %v6223_v36 = vcombine.low %v3196_v25, %v3206_v27  ;;  %v3267_v63 = vrot.slane %v3265_v54, 5  ;;  %v7418_v3 = vld [vmem:[#allocation2 + $0xc8] sm:$0x1] }
 0x1ba   : > { %7027 = vmatprep.mubr.msk.bf16.mxu0 %vm1524_vm10, %v9583_v41  ;;  %v3224_v38 = vor.u32 %v3223_v47, %v3219_v7  ;;  %v5146_v41 = vld [vmem:[#allocation2 + $0xc0] sm:$0xe]  ;;  %v3275_v56 = vshll.u32 %v7418_v3, 16  ;;  %v5300_v1 = vsel %vm7907_vm2, %v5298_v23, %v5299_v35 }
 0x1bb   : > { %v3215_v15 = vrot.slane %v3214_v52, 4  ;;  %v3272_v47 = vor.u32 %v3271_v37, %v3267_v63 }
 0x1bc   : > { %v3225_v17 = vrot.slane %v3224_v38, 4  ;;  %v3277_v43 = vrot.slane %v3275_v56, 5 }
 0x1bd   : > { %v3220_v21 = vsel %vm7567_vm11, %v3215_v15, %v3219_v7  ;;  %v3273_v51 = vrot.slane %v3272_v47, 4 }
 0x1be   : > { %v3230_v29 = vsel %vm7567_vm11, %v3225_v17, %v3229_v42 }
 0x1bf   : > { %6892 = vmatmul.mubr.msk.bf16.vlgmr.msra.gmra.mrb[16].mxu1 %vm1524_vm10, %v9088_v19  ;;  %v3251_v19 = vshll.u32 %v7417_v34, 16  ;;  %v6224_v7 = vcombine.low %v3220_v21, %v3230_v29 }
 0x1c0   : > { %6895 = vmatprep.mubr.msk.bf16.mxu1 %vm1524_vm10, %v6221_v14  ;;  %v6371_v14 = vrot.slane %v5146_v41, 9 }
 0x1c1   : > { %7028 = vmatmul.mubr.msk.bf16.gmra.mrb[16].mxu0 %vm1524_vm10, %v9584_v11  ;;  %v3253_v16 = vrot.slane %v3251_v19, 5 }
 0x1c2   : > { %7031 = vmatprep.mubr.msk.bf16.mxu0 %vm1524_vm10, %v6383_v33  ;;  %v3262_v33 = vor.u32 %v3261_v61, %v3258_v39  ;;  %v5297_v2 = vsel %vm7907_vm2, %v6371_v14, %v5296_v6 }
 0x1c3   : > { %v3254_v55 = vsel %vm7567_vm11, %v3249_v5, %v3253_v16  ;;  %v6387_v9 = vcombine.low %v5297_v2, %v5300_v1 }
 0x1c4   : > { %v3263_v48 = vrot.slane %v3262_v33, 4  ;;  %v6225_v28 = vcombine.low %v3244_v46, %v3254_v55 }
 0x1c6   : > { %v3268_v45 = vsel %vm7567_vm11, %v3263_v48, %v3267_v63 }
 0x1c7   : > { %6896 = vmatmul.mubr.msk.bf16.gmra.mrb[20].mxu1 %vm1524_vm10, %v6222_v24 }
 0x1c8   : > { %6899 = vmatprep.mubr.msk.bf16.mxu1 %vm1524_vm10, %v6223_v36 }
 0x1c9   : > { %7032 = vmatmul.mubr.msk.bf16.gmra.mrb[20].mxu0 %vm1524_vm10, %v6384_v50  ;;  %v3278_v50 = vsel %vm7567_vm11, %v3273_v51, %v3277_v43 }
 0x1ca   : > { %7035 = vmatprep.mubr.msk.bf16.mxu0 %vm1524_vm10, %v6385_v8  ;;  %v6226_v18 = vcombine.low %v3268_v45, %v3278_v50 }
 0x1cf   : > { %6900 = vmatmul.mubr.msk.bf16.gmra.mrb[24].mxu1 %vm1524_vm10, %v6224_v7 }
 0x1d0   : > { %6903 = vmatprep.mubr.msk.bf16.mxu1 %vm1524_vm10, %v6225_v28 }
 0x1d1   : > { %7036 = vmatmul.mubr.msk.bf16.gmra.mrb[24].mxu0 %vm1524_vm10, %v6386_v60 }
 0x1d2   : > { %7039 = vmatprep.mubr.msk.bf16.mxu0 %vm1524_vm10, %v6387_v9 }
 0x1d7   : > { %6904 = vmatmul.mubr.msk.bf16.gmra.mrb[28].mxu1 %vm1524_vm10, %v6226_v18 }
 0x1d9   : > { %7040 = vmatmul.mubr.msk.bf16.gmra.mrb[28].mxu0 %vm1524_vm10, %v6388_v44 }
 0x252   : > { %v6843_v32 = vpop.f32.mrb[0].mxu1 }
 0x253   : > { %v2688_v10 = vpop.f32.mrb[1].mxu1 }
 0x254   : > { %v6844_v8 = vpop.f32.mrb[2].mxu1 }
 0x255   : > { %v2691_v4 = vpop.f32.mrb[3].mxu1 }
 0x25a   : > { %v6847_v57 = vpop.f32.mrb[4].mxu1 }
 0x25b   : > { %v2704_v0 = vpop.f32.mrb[5].mxu1 }
 0x25c   : > { %v6848_v13 = vpop.f32.mrb[6].mxu1 }
 0x25d   : > { %v2707_v49 = vpop.f32.mrb[7].mxu1 }
 0x262   : > { %v9336_v60 = vpop.f32.mrb[8].mxu1 }
 0x263   : > { %v9338_v40 = vpop.f32.mrb[9].mxu1 }
 0x264   : > { %v9340_v26 = vpop.f32.mrb[10].mxu1 }
 0x265   : > { %v9342_v52 = vpop.f32.mrb[11].mxu1 }
 0x26a   : > { %v9344_v31 = vpop.f32.mrb[12].mxu1 }
 0x26b   : > { %v9346_v59 = vpop.f32.mrb[13].mxu1 }
 0x26c   : > { %v9348_v44 = vpop.f32.mrb[14].mxu1 }
 0x26d   : > { %v9350_v38 = vpop.f32.mrb[15].mxu1 }
 0x274   : > { %v7013_v22 = vpop.f32.mrb[0].mxu0 }
 0x275   : > { %v7045_v53 = vadd.f32 %v7013_v22, %v6843_v32  ;;  %v5442_v25 = vpop.f32.mrb[1].mxu0 }
 0x276   : > { %v7046_v12 = vadd.f32 %v5442_v25, %v2688_v10  ;;  %v7014_v54 = vpop.f32.mrb[2].mxu0 }
 0x277   : > { %v6475_v58 = vpack.c.bf16 %v7045_v53, %v7045_v53  ;;  %v7047_v27 = vadd.f32 %v7014_v54, %v6844_v8  ;;  %v5445_v30 = vpop.f32.mrb[3].mxu0  ;;  %v5832_v11 = vmul.f32 %v7045_v53, %v7045_v53  ;;  %v5764_v63 = vsel %vm1524_vm10, %v7045_v53, 0.0 }
 0x278   : > { %v6473_v20 = vpack.c.bf16 %v7046_v12, %v7046_v12  ;;  %v5830_v34 = vmul.f32 %v7046_v12, %v7046_v12  ;;  %v7048_v19 = vadd.f32 %v5445_v30, %v2691_v4  ;;  %v5761_v42 = vsel %vm1524_vm10, %v7046_v12, 0.0 }
 0x279   : > { %5731 = vst.msk [vmem:[%s9357_s8 + $0x8] sm:$0xf] %vm380_vm1, %v6475_v58  ;;  %v6476_v24 = vpack.c.bf16 %v7047_v27, %v7047_v27  ;;  %v5833_v61 = vmul.f32 %v7047_v27, %v7047_v27  ;;  %v5865_v29 = vsel %vm1524_vm10, %v5832_v11, 0.0  ;;  %v5766_v56 = vsel %vm1524_vm10, %v7047_v27, 0.0 }
 0x27a   : > { %5729 = vst.msk [vmem:[%s9357_s8] sm:$0xf] %vm380_vm1, %v6473_v20  ;;  %v6474_v15 = vpack.c.bf16 %v7048_v19, %v7048_v19  ;;  %v5762_v17 = vsel %vm1524_vm10, %v7048_v19, 0.0  ;;  %v5831_v39 = vmul.f32 %v7048_v19, %v7048_v19  ;;  %v5862_v37 = vsel %vm1524_vm10, %v5830_v34, 0.0 }
 0x27b   : > { %5732 = vst.msk [vmem:[%s9357_s8 + $0xc] sm:$0xf] %vm380_vm1, %v6476_v24  ;;  %v5763_v36 = vadd.f32 %v5762_v17, %v5761_v42  ;;  %v5867_v47 = vsel %vm1524_vm10, %v5833_v61, 0.0 }
 0x27c   : > { %5730 = vst.msk [vmem:[%s9357_s8 + $0x4] sm:$0xf] %vm380_vm1, %v6474_v15  ;;  %v5863_v6 = vsel %vm1524_vm10, %v5831_v39, 0.0  ;;  %v7017_v62 = vpop.f32.mrb[4].mxu0 }
 0x27d   : > { %v5765_v5 = vadd.f32 %v5764_v63, %v5763_v36  ;;  %v5864_v16 = vadd.f32 %v5863_v6, %v5862_v37  ;;  %v7049_v41 = vadd.f32 %v7017_v62, %v6847_v57  ;;  %v5458_v21 = vpop.f32.mrb[5].mxu0 }
 0x27e   : > { %v7050_v33 = vadd.f32 %v5458_v21, %v2704_v0  ;;  %v7018_v3 = vpop.f32.mrb[6].mxu0 }
 0x27f   : > { %v5866_v14 = vadd.f32 %v5865_v29, %v5864_v16  ;;  %v6479_v23 = vpack.c.bf16 %v7049_v41, %v7049_v41  ;;  %v5461_v35 = vpop.f32.mrb[7].mxu0  ;;  %v5767_v55 = vadd.f32 %v5766_v56, %v5765_v5  ;;  %v7051_v28 = vadd.f32 %v7018_v3, %v6848_v13 }
 0x280   : > { %v6477_v46 = vpack.c.bf16 %v7050_v33, %v7050_v33  ;;  %v5768_v7 = vsel %vm1524_vm10, %v7050_v33, 0.0  ;;  %v5834_v48 = vmul.f32 %v7050_v33, %v7050_v33  ;;  %v7052_v51 = vadd.f32 %v5461_v35, %v2707_v49 }
 0x281   : > { %5735 = vst.msk [vmem:[%s9357_s8 + $0x18] sm:$0xf] %vm380_vm1, %v6479_v23  ;;  %v5868_v43 = vadd.f32 %v5867_v47, %v5866_v14  ;;  %v5769_v2 = vadd.f32 %v5768_v7, %v5767_v55  ;;  %v5836_v9 = vmul.f32 %v7049_v41, %v7049_v41  ;;  %v6480_v50 = vpack.c.bf16 %v7051_v28, %v7051_v28 }
 0x282   : > { %5733 = vst.msk [vmem:[%s9357_s8 + $0x10] sm:$0xf] %vm380_vm1, %v6477_v46  ;;  %v5869_v1 = vsel %vm1524_vm10, %v5834_v48, 0.0  ;;  %v6478_v18 = vpack.c.bf16 %v7052_v51, %v7052_v51  ;;  %v5770_v32 = vsel %vm1524_vm10, %v7052_v51, 0.0  ;;  %v5835_v10 = vmul.f32 %v7052_v51, %v7052_v51 }
 0x283   : > { %v5870_v45 = vadd.f32 %v5869_v1, %v5868_v43  ;;  %5736 = vst.msk [vmem:[%s9357_s8 + $0x1c] sm:$0xf] %vm380_vm1, %v6480_v50  ;;  %v5771_v4 = vadd.f32 %v5770_v32, %v5769_v2  ;;  %v5772_v13 = vsel %vm1524_vm10, %v7049_v41, 0.0  ;;  %v5837_v49 = vmul.f32 %v7051_v28, %v7051_v28 }
 0x284   : > { %v7021_v8 = vpop.f32.mrb[8].mxu0  ;;  %5734 = vst.msk [vmem:[%s9357_s8 + $0x14] sm:$0xf] %vm380_vm1, %v6478_v18  ;;  %v5871_v22 = vsel %vm1524_vm10, %v5835_v10, 0.0  ;;  %v5873_v12 = vsel %vm1524_vm10, %v5836_v9, 0.0 }
 0x285   : > { %v7053_v57 = vadd.f32 %v7021_v8, %v9336_v60  ;;  %v5474_v0 = vpop.f32.mrb[9].mxu0  ;;  %v5773_v54 = vadd.f32 %v5772_v13, %v5771_v4  ;;  %v5872_v58 = vadd.f32 %v5871_v22, %v5870_v45  ;;  %v5774_v60 = vsel %vm1524_vm10, %v7051_v28, 0.0 }
 0x286   : > { %v7054_v53 = vadd.f32 %v5474_v0, %v9338_v40  ;;  %v7022_v25 = vpop.f32.mrb[10].mxu0  ;;  %v5875_v15 = vsel %vm1524_vm10, %v5837_v49, 0.0 }
 0x287   : > { %v6483_v27 = vpack.c.bf16 %v7053_v57, %v7053_v57  ;;  %v5477_v30 = vpop.f32.mrb[11].mxu0  ;;  %v5874_v11 = vadd.f32 %v5873_v12, %v5872_v58  ;;  %v5775_v24 = vadd.f32 %v5774_v60, %v5773_v54  ;;  %v7055_v40 = vadd.f32 %v7022_v25, %v9340_v26 }
 0x288   : > { %v6481_v20 = vpack.c.bf16 %v7054_v53, %v7054_v53  ;;  %v5776_v34 = vsel %vm1524_vm10, %v7054_v53, 0.0  ;;  %v5838_v19 = vmul.f32 %v7054_v53, %v7054_v53  ;;  %v7056_v42 = vadd.f32 %v5477_v30, %v9342_v52 }
 0x289   : > { %5739 = vst.msk [vmem:[%s9357_s8 + $0x28] sm:$0xf] %vm380_vm1, %v6483_v27  ;;  %v5840_v39 = vmul.f32 %v7053_v57, %v7053_v57  ;;  %v5777_v61 = vadd.f32 %v5776_v34, %v5775_v24  ;;  %v5876_v36 = vadd.f32 %v5875_v15, %v5874_v11  ;;  %v6484_v63 = vpack.c.bf16 %v7055_v40, %v7055_v40 }
 0x28a   : > { %5737 = vst.msk [vmem:[%s9357_s8 + $0x20] sm:$0xf] %vm380_vm1, %v6481_v20  ;;  %v5877_v17 = vsel %vm1524_vm10, %v5838_v19, 0.0  ;;  %v6482_v37 = vpack.c.bf16 %v7056_v42, %v7056_v42  ;;  %v5778_v6 = vsel %vm1524_vm10, %v7056_v42, 0.0  ;;  %v5839_v62 = vmul.f32 %v7056_v42, %v7056_v42 }
 0x28b   : > { %v5878_v16 = vadd.f32 %v5877_v17, %v5876_v36  ;;  %5740 = vst.msk [vmem:[%s9357_s8 + $0x2c] sm:$0xf] %vm380_vm1, %v6484_v63  ;;  %v5779_v26 = vadd.f32 %v5778_v6, %v5777_v61  ;;  %v5780_v21 = vsel %vm1524_vm10, %v7053_v57, 0.0  ;;  %v5841_v29 = vmul.f32 %v7055_v40, %v7055_v40 }
 0x28c   : > { %v7025_v5 = vpop.f32.mrb[12].mxu0  ;;  %5738 = vst.msk [vmem:[%s9357_s8 + $0x24] sm:$0xf] %vm380_vm1, %v6482_v37  ;;  %v5879_v33 = vsel %vm1524_vm10, %v5839_v62, 0.0  ;;  %v5881_v47 = vsel %vm1524_vm10, %v5840_v39, 0.0 }
 0x28d   : > { %v7057_v52 = vadd.f32 %v7025_v5, %v9344_v31  ;;  %v5490_v41 = vpop.f32.mrb[13].mxu0  ;;  %v5781_v14 = vadd.f32 %v5780_v21, %v5779_v26  ;;  %v5880_v23 = vadd.f32 %v5879_v33, %v5878_v16  ;;  %v5782_v31 = vsel %vm1524_vm10, %v7055_v40, 0.0 }
 0x28e   : > { %v7058_v3 = vadd.f32 %v5490_v41, %v9346_v59  ;;  %v7026_v56 = vpop.f32.mrb[14].mxu0  ;;  %v5883_v1 = vsel %vm1524_vm10, %v5841_v29, 0.0 }
 0x28f   : > { %v6487_v35 = vpack.c.bf16 %v7057_v52, %v7057_v52  ;;  %v5493_v46 = vpop.f32.mrb[15].mxu0  ;;  %v5882_v43 = vadd.f32 %v5881_v47, %v5880_v23  ;;  %v5783_v28 = vadd.f32 %v5782_v31, %v5781_v14  ;;  %v7059_v59 = vadd.f32 %v7026_v56, %v9348_v44 }
 0x290   : > { %v6485_v55 = vpack.c.bf16 %v7058_v3, %v7058_v3  ;;  %v5784_v7 = vsel %vm1524_vm10, %v7058_v3, 0.0  ;;  %v5842_v48 = vmul.f32 %v7058_v3, %v7058_v3  ;;  %v7060_v51 = vadd.f32 %v5493_v46, %v9350_v38 }
 0x291   : > { %5743 = vst.msk [vmem:[%s9357_s8 + $0x38] sm:$0xf] %vm380_vm1, %v6487_v35  ;;  %v5844_v50 = vmul.f32 %v7057_v52, %v7057_v52  ;;  %v5785_v18 = vadd.f32 %v5784_v7, %v5783_v28  ;;  %v5884_v32 = vadd.f32 %v5883_v1, %v5882_v43  ;;  %v6488_v10 = vpack.c.bf16 %v7059_v59, %v7059_v59 }
 0x292   : > { %v6893_v2 = vpop.f32.mrb[16].mxu1  ;;  %5741 = vst.msk [vmem:[%s9357_s8 + $0x30] sm:$0xf] %vm380_vm1, %v6485_v55  ;;  %v5885_v9 = vsel %vm1524_vm10, %v5842_v48, 0.0  ;;  %v6486_v4 = vpack.c.bf16 %v7060_v51, %v7060_v51  ;;  %v5786_v44 = vsel %vm1524_vm10, %v7060_v51, 0.0  ;;  %v5843_v57 = vmul.f32 %v7060_v51, %v7060_v51 }
 0x293   : > { %v3477_v45 = vpop.f32.mrb[17].mxu1  ;;  %v5886_v13 = vadd.f32 %v5885_v9, %v5884_v32  ;;  %5744 = vst.msk [vmem:[%s9357_s8 + $0x3c] sm:$0xf] %vm380_vm1, %v6488_v10  ;;  %v5787_v49 = vadd.f32 %v5786_v44, %v5785_v18  ;;  %v5788_v25 = vsel %vm1524_vm10, %v7057_v52, 0.0  ;;  %v5845_v12 = vmul.f32 %v7059_v59, %v7059_v59 }
 0x294   : > { %v6894_v8 = vpop.f32.mrb[18].mxu1  ;;  %v7029_v38 = vpop.f32.mrb[16].mxu0  ;;  %5742 = vst.msk [vmem:[%s9357_s8 + $0x34] sm:$0xf] %vm380_vm1, %v6486_v4  ;;  %v5887_v54 = vsel %vm1524_vm10, %v5843_v57, 0.0  ;;  %v5889_v30 = vsel %vm1524_vm10, %v5844_v50, 0.0 }
 0x295   : > { %v3480_v0 = vpop.f32.mrb[19].mxu1  ;;  %v7061_v22 = vadd.f32 %v7029_v38, %v6893_v2  ;;  %v5506_v53 = vpop.f32.mrb[17].mxu0  ;;  %v5789_v60 = vadd.f32 %v5788_v25, %v5787_v49  ;;  %v5888_v20 = vadd.f32 %v5887_v54, %v5886_v13  ;;  %v5790_v11 = vsel %vm1524_vm10, %v7059_v59, 0.0 }
 0x296   : > { %v7062_v58 = vadd.f32 %v5506_v53, %v3477_v45  ;;  %v7030_v27 = vpop.f32.mrb[18].mxu0  ;;  %v5891_v63 = vsel %vm1524_vm10, %v5845_v12, 0.0 }
 0x297   : > { %v6491_v34 = vpack.c.bf16 %v7061_v22, %v7061_v22  ;;  %v5509_v19 = vpop.f32.mrb[19].mxu0  ;;  %v5890_v15 = vadd.f32 %v5889_v30, %v5888_v20  ;;  %v5791_v17 = vadd.f32 %v5790_v11, %v5789_v60  ;;  %v7063_v39 = vadd.f32 %v7030_v27, %v6894_v8 }
 0x298   : > { %v6489_v24 = vpack.c.bf16 %v7062_v58, %v7062_v58  ;;  %v5792_v40 = vsel %vm1524_vm10, %v7062_v58, 0.0  ;;  %v5846_v42 = vmul.f32 %v7062_v58, %v7062_v58  ;;  %v7064_v61 = vadd.f32 %v5509_v19, %v3480_v0 }
 0x299   : > { %5747 = vst.msk [vmem:[%s9357_s8 + $0x48] sm:$0xf] %vm380_vm1, %v6491_v34  ;;  %v5848_v62 = vmul.f32 %v7061_v22, %v7061_v22  ;;  %v5793_v5 = vadd.f32 %v5792_v40, %v5791_v17  ;;  %v5892_v16 = vadd.f32 %v5891_v63, %v5890_v15  ;;  %v6492_v26 = vpack.c.bf16 %v7063_v39, %v7063_v39 }
 0x29a   : > { %v6897_v36 = vpop.f32.mrb[20].mxu1  ;;  %5745 = vst.msk [vmem:[%s9357_s8 + $0x40] sm:$0xf] %vm380_vm1, %v6489_v24  ;;  %v5893_v37 = vsel %vm1524_vm10, %v5846_v42, 0.0  ;;  %v6490_v41 = vpack.c.bf16 %v7064_v61, %v7064_v61  ;;  %v5794_v21 = vsel %vm1524_vm10, %v7064_v61, 0.0  ;;  %v5847_v29 = vmul.f32 %v7064_v61, %v7064_v61 }
 0x29b   : > { %v3493_v6 = vpop.f32.mrb[21].mxu1  ;;  %v5894_v56 = vadd.f32 %v5893_v37, %v5892_v16  ;;  %5748 = vst.msk [vmem:[%s9357_s8 + $0x4c] sm:$0xf] %vm380_vm1, %v6492_v26  ;;  %v5795_v47 = vadd.f32 %v5794_v21, %v5793_v5  ;;  %v5796_v35 = vsel %vm1524_vm10, %v7061_v22, 0.0  ;;  %v5849_v46 = vmul.f32 %v7063_v39, %v7063_v39 }
 0x29c   : > { %v6898_v52 = vpop.f32.mrb[22].mxu1  ;;  %v7033_v33 = vpop.f32.mrb[20].mxu0  ;;  %5746 = vst.msk [vmem:[%s9357_s8 + $0x44] sm:$0xf] %vm380_vm1, %v6490_v41  ;;  %v5895_v31 = vsel %vm1524_vm10, %v5847_v29, 0.0  ;;  %v5897_v48 = vsel %vm1524_vm10, %v5848_v62, 0.0 }
 0x29d   : > { %v3496_v3 = vpop.f32.mrb[23].mxu1  ;;  %v7065_v14 = vadd.f32 %v7033_v33, %v6897_v36  ;;  %v5522_v23 = vpop.f32.mrb[21].mxu0  ;;  %v5797_v43 = vadd.f32 %v5796_v35, %v5795_v47  ;;  %v5896_v28 = vadd.f32 %v5895_v31, %v5894_v56  ;;  %v5798_v2 = vsel %vm1524_vm10, %v7063_v39, 0.0 }
 0x29e   : > { %v7066_v55 = vadd.f32 %v5522_v23, %v3493_v6  ;;  %v7034_v7 = vpop.f32.mrb[22].mxu0  ;;  %v5899_v4 = vsel %vm1524_vm10, %v5849_v46, 0.0 }
 0x29f   : > { %v6495_v59 = vpack.c.bf16 %v7065_v14, %v7065_v14  ;;  %v5525_v51 = vpop.f32.mrb[23].mxu0  ;;  %v5898_v50 = vadd.f32 %v5897_v48, %v5896_v28  ;;  %v5799_v18 = vadd.f32 %v5798_v2, %v5797_v43  ;;  %v7067_v32 = vadd.f32 %v7034_v7, %v6898_v52 }
 0x2a0   : > { %v6493_v1 = vpack.c.bf16 %v7066_v55, %v7066_v55  ;;  %v5800_v9 = vsel %vm1524_vm10, %v7066_v55, 0.0  ;;  %v5850_v45 = vmul.f32 %v7066_v55, %v7066_v55  ;;  %v7068_v10 = vadd.f32 %v5525_v51, %v3496_v3 }
 0x2a1   : > { %5751 = vst.msk [vmem:[%s9357_s8 + $0x58] sm:$0xf] %vm380_vm1, %v6495_v59  ;;  %v5852_v38 = vmul.f32 %v7065_v14, %v7065_v14  ;;  %v5801_v0 = vadd.f32 %v5800_v9, %v5799_v18  ;;  %v5900_v13 = vadd.f32 %v5899_v4, %v5898_v50  ;;  %v6496_v49 = vpack.c.bf16 %v7067_v32, %v7067_v32 }
 0x2a2   : > { %v6901_v8 = vpop.f32.mrb[24].mxu1  ;;  %5749 = vst.msk [vmem:[%s9357_s8 + $0x50] sm:$0xf] %vm380_vm1, %v6493_v1  ;;  %v5901_v44 = vsel %vm1524_vm10, %v5850_v45, 0.0  ;;  %v6494_v53 = vpack.c.bf16 %v7068_v10, %v7068_v10  ;;  %v5802_v25 = vsel %vm1524_vm10, %v7068_v10, 0.0  ;;  %v5851_v12 = vmul.f32 %v7068_v10, %v7068_v10 }
 0x2a3   : > { %v3509_v57 = vpop.f32.mrb[25].mxu1  ;;  %v5902_v27 = vadd.f32 %v5901_v44, %v5900_v13  ;;  %5752 = vst.msk [vmem:[%s9357_s8 + $0x5c] sm:$0xf] %vm380_vm1, %v6496_v49  ;;  %v5803_v30 = vadd.f32 %v5802_v25, %v5801_v0  ;;  %v5804_v34 = vsel %vm1524_vm10, %v7065_v14, 0.0  ;;  %v5853_v19 = vmul.f32 %v7067_v32, %v7067_v32 }
 0x2a4   : > { %v6902_v22 = vpop.f32.mrb[26].mxu1  ;;  %v7037_v54 = vpop.f32.mrb[24].mxu0  ;;  %5750 = vst.msk [vmem:[%s9357_s8 + $0x54] sm:$0xf] %vm380_vm1, %v6494_v53  ;;  %v5903_v11 = vsel %vm1524_vm10, %v5851_v12, 0.0  ;;  %v5905_v42 = vsel %vm1524_vm10, %v5852_v38, 0.0 }
 0x2a5   : > { %v3512_v58 = vpop.f32.mrb[27].mxu1  ;;  %v7069_v60 = vadd.f32 %v7037_v54, %v6901_v8  ;;  %v5538_v20 = vpop.f32.mrb[25].mxu0  ;;  %v5805_v15 = vadd.f32 %v5804_v34, %v5803_v30  ;;  %v5904_v17 = vadd.f32 %v5903_v11, %v5902_v27  ;;  %v5806_v36 = vsel %vm1524_vm10, %v7067_v32, 0.0 }
 0x2a6   : > { %v7070_v24 = vadd.f32 %v5538_v20, %v3509_v57  ;;  %v7038_v40 = vpop.f32.mrb[26].mxu0  ;;  %v5907_v41 = vsel %vm1524_vm10, %v5853_v19, 0.0 }
 0x2a7   : > { %v6499_v39 = vpack.c.bf16 %v7069_v60, %v7069_v60  ;;  %v5541_v61 = vpop.f32.mrb[27].mxu0  ;;  %v5906_v62 = vadd.f32 %v5905_v42, %v5904_v17  ;;  %v5807_v5 = vadd.f32 %v5806_v36, %v5805_v15  ;;  %v7071_v16 = vadd.f32 %v7038_v40, %v6902_v22 }
 0x2a8   : > { %v6497_v63 = vpack.c.bf16 %v7070_v24, %v7070_v24  ;;  %v5808_v37 = vsel %vm1524_vm10, %v7070_v24, 0.0  ;;  %v5854_v6 = vmul.f32 %v7070_v24, %v7070_v24  ;;  %v7072_v26 = vadd.f32 %v5541_v61, %v3512_v58 }
 0x2a9   : > { %5755 = vst.msk [vmem:[%s9357_s8 + $0x68] sm:$0xf] %vm380_vm1, %v6499_v39  ;;  %v5856_v33 = vmul.f32 %v7069_v60, %v7069_v60  ;;  %v5809_v3 = vadd.f32 %v5808_v37, %v5807_v5  ;;  %v5908_v56 = vadd.f32 %v5907_v41, %v5906_v62  ;;  %v6500_v47 = vpack.c.bf16 %v7071_v16, %v7071_v16 }
 0x2aa   : > { %v6905_v52 = vpop.f32.mrb[28].mxu1  ;;  %5753 = vst.msk [vmem:[%s9357_s8 + $0x60] sm:$0xf] %vm380_vm1, %v6497_v63  ;;  %v5909_v21 = vsel %vm1524_vm10, %v5854_v6, 0.0  ;;  %v6498_v23 = vpack.c.bf16 %v7072_v26, %v7072_v26  ;;  %v5810_v35 = vsel %vm1524_vm10, %v7072_v26, 0.0  ;;  %v5855_v46 = vmul.f32 %v7072_v26, %v7072_v26 }
 0x2ab   : > { %v3525_v29 = vpop.f32.mrb[29].mxu1  ;;  %v5910_v7 = vadd.f32 %v5909_v21, %v5908_v56  ;;  %5756 = vst.msk [vmem:[%s9357_s8 + $0x6c] sm:$0xf] %vm380_vm1, %v6500_v47  ;;  %v5811_v48 = vadd.f32 %v5810_v35, %v5809_v3  ;;  %v5812_v59 = vsel %vm1524_vm10, %v7069_v60, 0.0  ;;  %v5857_v51 = vmul.f32 %v7071_v16, %v7071_v16 }
 0x2ac   : > { %v6906_v14 = vpop.f32.mrb[30].mxu1  ;;  %v7041_v31 = vpop.f32.mrb[28].mxu0  ;;  %5754 = vst.msk [vmem:[%s9357_s8 + $0x64] sm:$0xf] %vm380_vm1, %v6498_v23  ;;  %v5911_v2 = vsel %vm1524_vm10, %v5855_v46, 0.0  ;;  %v5913_v45 = vsel %vm1524_vm10, %v5856_v33, 0.0 }
 0x2ad   : > { %v3528_v55 = vpop.f32.mrb[31].mxu1  ;;  %v7073_v43 = vadd.f32 %v7041_v31, %v6905_v52  ;;  %v5554_v28 = vpop.f32.mrb[29].mxu0  ;;  %v5813_v50 = vadd.f32 %v5812_v59, %v5811_v48  ;;  %v5912_v18 = vadd.f32 %v5911_v2, %v5910_v7  ;;  %v5814_v8 = vsel %vm1524_vm10, %v7071_v16, 0.0 }
 0x2ae   : > { %v7074_v1 = vadd.f32 %v5554_v28, %v3525_v29  ;;  %v7042_v9 = vpop.f32.mrb[30].mxu0  ;;  %v5915_v22 = vsel %vm1524_vm10, %v5857_v51, 0.0 }
 0x2af   : > { %v6503_v32 = vpack.c.bf16 %v7073_v43, %v7073_v43  ;;  %v5557_v10 = vpop.f32.mrb[31].mxu0  ;;  %v5914_v38 = vadd.f32 %v5913_v45, %v5912_v18  ;;  %v5815_v0 = vadd.f32 %v5814_v8, %v5813_v50  ;;  %v7075_v13 = vadd.f32 %v7042_v9, %v6906_v14 }
 0x2b0   : > { %v6501_v4 = vpack.c.bf16 %v7074_v1, %v7074_v1  ;;  %v5816_v44 = vsel %vm1524_vm10, %v7074_v1, 0.0  ;;  %v5858_v57 = vmul.f32 %v7074_v1, %v7074_v1  ;;  %v7076_v49 = vadd.f32 %v5557_v10, %v3528_v55 }
 0x2b1   : > { %5759 = vst.msk [vmem:[%s9357_s8 + $0x78] sm:$0xf] %vm380_vm1, %v6503_v32  ;;  %v5817_v25 = vadd.f32 %v5816_v44, %v5815_v0  ;;  %v5916_v12 = vadd.f32 %v5915_v22, %v5914_v38  ;;  %v6504_v54 = vpack.c.bf16 %v7075_v13, %v7075_v13  ;;  %v5860_v58 = vmul.f32 %v7073_v43, %v7073_v43 }
 0x2b2   : > { %5757 = vst.msk [vmem:[%s9357_s8 + $0x70] sm:$0xf] %vm380_vm1, %v6501_v4  ;;  %v5917_v53 = vsel %vm1524_vm10, %v5858_v57, 0.0  ;;  %v6502_v27 = vpack.c.bf16 %v7076_v49, %v7076_v49  ;;  %v5818_v30 = vsel %vm1524_vm10, %v7076_v49, 0.0  ;;  %v5859_v60 = vmul.f32 %v7076_v49, %v7076_v49 }
 0x2b3   : > { %v5918_v20 = vadd.f32 %v5917_v53, %v5916_v12  ;;  %5760 = vst.msk [vmem:[%s9357_s8 + $0x7c] sm:$0xf] %vm380_vm1, %v6504_v54  ;;  %v5819_v34 = vadd.f32 %v5818_v30, %v5817_v25  ;;  %v5820_v19 = vsel %vm1524_vm10, %v7073_v43, 0.0  ;;  %v5861_v11 = vmul.f32 %v7075_v13, %v7075_v13 }
 0x2b4   : > { %5758 = vst.msk [vmem:[%s9357_s8 + $0x74] sm:$0xf] %vm380_vm1, %v6502_v27  ;;  %v5919_v24 = vsel %vm1524_vm10, %v5859_v60, 0.0  ;;  %v5921_v15 = vsel %vm1524_vm10, %v5860_v58, 0.0  ;;  %v5822_v17 = vsel %vm1524_vm10, %v7075_v13, 0.0  ;;  %vm5933_vm1 = vcmask 25600  }
 0x2b5   : > { %v5821_v40 = vadd.f32 %v5820_v19, %v5819_v34  ;;  %v5920_v42 = vadd.f32 %v5919_v24, %v5918_v20  ;;  %v5923_v36 = vsel %vm1524_vm10, %v5861_v11, 0.0 }
 0x2b7   : > { %v5823_v39 = vadd.f32 %v5822_v17, %v5821_v40  ;;  %v5922_v61 = vadd.f32 %v5921_v15, %v5920_v42 }
 0x2b9   : > { %v5824_v63 = vrot.slane %v5823_v39, 4  ;;  %v5924_v37 = vadd.f32 %v5923_v36, %v5922_v61 }
 0x2bb   : > { %v5825_v6 = vadd.f32 %v5824_v63, %v5823_v39  ;;  %v5925_v62 = vrot.slane %v5924_v37, 4 }
 0x2bd   : > { %v5826_v5 = vrot.slane %v5825_v6, 2  ;;  %v5926_v16 = vadd.f32 %v5925_v62, %v5924_v37 }
 0x2bf   : > { %v5827_v26 = vadd.f32 %v5826_v5, %v5825_v6  ;;  %v5927_v52 = vrot.slane %v5926_v16, 2 }
 0x2c1   : > { %v5828_v41 = vrot.slane %v5827_v26, 1  ;;  %v5928_v21 = vadd.f32 %v5927_v52, %v5926_v16 }
 0x2c3   : > { %v5929_v29 = vrot.slane %v5928_v21, 1  ;;  %v5829_v33 = vadd.f32 %v5828_v41, %v5827_v26 }
 0x2c5   : > { %v5930_v3 = vadd.f32 %v5929_v29, %v5928_v21 }
 0x2c7   : > { %v5932_v56 = vsel %vm5931_vm0, %v5829_v33, %v5930_v3 }
 0x2c8   : > { %5934 = vst.msk [vmem:[%s208_s11] sm:$0x3] %vm5933_vm1, %v5932_v56 }
 0x2c9 PF: > { %s15_s15 = sadd.s32 1, %s7425_s15  }
 0x2ca   : > { %p12_p4 = scmp.ge.s32.totalorder %s15_s15, 4  }
 0x2cc   :  { %14 = sbr.rel (!%p12_p4) target bundleno = 1 (0x1), region = 77 }

</bundles_post_ra>
